<compile_context>
chip_gen: v7x
topology: tpu7x:2x2x1
jax: 0.10.0
libtpu: 0.0.40
codegen_flags: <defaults>
</compile_context>

<pallas_src>
import math

import jax
import jax.numpy as jnp
from jax.experimental import pallas as pl
from jax.experimental.pallas import tpu as pltpu


_EPS = 1e-5
_LANE = 128
_VMEM_LIMIT = 32 * 1024 * 1024
_STRIDES = (2, 2, 2, 1)            # conv layers 1-4 (layer 5 is folded into the head)
_HAS_NORM = (False, True, True, True)


# ----------------------------------------------------------------------------
# Pallas kernels
# ----------------------------------------------------------------------------
def _make_layer_kernel(apply_norm):
    """Fused: matmul (bf16 x bf16 -> f32, bias folded in) + [InstanceNorm] + LeakyReLU."""

    def kernel(p_ref, w_ref, o_ref):
        # p_ref: (1, P, K) bf16 patches for one sample; w_ref: (K, C) bf16.
        y = jnp.dot(p_ref[0], w_ref[...], preferred_element_type=jnp.float32)
        if apply_norm:
            # InstanceNorm2d (affine=False): per-sample, per-channel over P.
            mu = jnp.mean(y, axis=0, keepdims=True)
            var = jnp.mean(y * y, axis=0, keepdims=True) - mu * mu   # one pass
            var = jnp.maximum(var, 0.0)
            y = (y - mu) * jax.lax.rsqrt(var + _EPS)
        y = jnp.where(y > 0, y, 0.2 * y)              # LeakyReLU(0.2)
        o_ref[0] = y.astype(o_ref.dtype)

    return kernel


def _head_kernel(p_ref, w_ref, weff_ref, b5_ref, o_ref):
    """Fused layers 4 + 5: conv4 (matmul) + InstanceNorm + LeakyReLU, then the
    final Conv2d(C4, 1, 4x4, pad=1) + global avg-pool folded into
    sum(y * weff) + b5 (pure VPU/XLU reduction, no lane-1 weight tile)."""
    y = jnp.dot(p_ref[0], w_ref[...], preferred_element_type=jnp.float32)  # (P4, C4)
    mu = jnp.mean(y, axis=0, keepdims=True)
    var = jnp.mean(y * y, axis=0, keepdims=True) - mu * mu
    var = jnp.maximum(var, 0.0)
    y = (y - mu) * jax.lax.rsqrt(var + _EPS)
    y = jnp.where(y > 0, y, 0.2 * y)
    z = y * weff_ref[...]                             # (P4, C4)
    s = jnp.sum(z, axis=0, keepdims=True)             # (1, C4)
    t = jnp.sum(s, axis=1, keepdims=True)             # (1, 1)
    o_ref[0] = t + b5_ref[...]


# ----------------------------------------------------------------------------
# pallas_call wrappers
# ----------------------------------------------------------------------------
def _layer_call(patches, w_t, *, apply_norm):
    N, P, K = patches.shape
    cout = w_t.shape[1]
    return pl.pallas_call(
        _make_layer_kernel(apply_norm),
        out_shape=jax.ShapeDtypeStruct((N, P, cout), jnp.bfloat16),
        grid=(N,),
        in_specs=[
            pl.BlockSpec((1, P, K), lambda n: (n, 0, 0)),
            pl.BlockSpec((K, cout), lambda n: (0, 0)),
        ],
        out_specs=pl.BlockSpec((1, P, cout), lambda n: (n, 0, 0)),
        compiler_params=pltpu.CompilerParams(
            dimension_semantics=("parallel",),
            vmem_limit_bytes=_VMEM_LIMIT,
        ),
    )(patches, w_t)


def _head_call(patches, w4_t, weff, b5):
    N, P, K = patches.shape
    c4 = w4_t.shape[1]
    return pl.pallas_call(
        _head_kernel,
        out_shape=jax.ShapeDtypeStruct((N, 1, 1), jnp.float32),
        grid=(N,),
        in_specs=[
            pl.BlockSpec((1, P, K), lambda n: (n, 0, 0)),
            pl.BlockSpec((K, c4), lambda n: (0, 0)),
            pl.BlockSpec((P, c4), lambda n: (0, 0)),
            pl.BlockSpec((1, 1), lambda n: (0, 0)),
        ],
        out_specs=pl.BlockSpec((1, 1, 1), lambda n: (n, 0, 0)),
        compiler_params=pltpu.CompilerParams(
            dimension_semantics=("parallel",),
            vmem_limit_bytes=_VMEM_LIMIT,
        ),
    )(patches, w4_t, weff, b5)


# ----------------------------------------------------------------------------
# Plain-JAX glue: im2col (NHWC, transpose-free), parameter prep
# ----------------------------------------------------------------------------
def _im2col_nhwc(x, stride, *, append_one):
    """x: (N, H, W, C) -> patches (N, Ho*Wo, Kp) with K ordered (kh, kw, c).
    If `append_one`, column 16*C is a constant 1 (for MXU-folded bias); the
    remainder is zero-padded so Kp is a multiple of 128 (lane alignment).  The
    padding is emitted inside the SAME concatenation (single HBM materialize)."""
    N, H, W, C = x.shape
    xp = jnp.pad(x, ((0, 0), (1, 1), (1, 1), (0, 0)))
    Ho = (H + 2 - 4) // stride + 1
    Wo = (W + 2 - 4) // stride + 1
    cols = [xp[:, kh:kh + stride * (Ho - 1) + 1:stride,
                  kw:kw + stride * (Wo - 1) + 1:stride, :]
            for kh in range(4) for kw in range(4)]
    k = 16 * C + (1 if append_one else 0)
    pad = (-k) % _LANE
    if append_one:
        cols.append(jnp.ones((N, Ho, Wo, 1), x.dtype))
    if pad:
        cols.append(jnp.zeros((N, Ho, Wo, pad), x.dtype))
    patches = jnp.concatenate(cols, axis=-1)          # (N, Ho, Wo, Kp)
    return patches.reshape(N, Ho * Wo, k + pad), Ho, Wo


def _spectral_normalize(w, key, n_power_iterations=1, eps=1e-12):
    """Matches nn.utils.spectral_norm on the first forward pass (1 iteration)."""
    cout = w.shape[0]
    wm = w.reshape(cout, -1)
    u = jax.random.normal(key, (cout,), dtype=jnp.float32)
    u = u / (jnp.linalg.norm(u) + eps)
    v = None
    for _ in range(n_power_iterations):
        v = wm.T @ u
        v = v / (jnp.linalg.norm(v) + eps)
        u = wm @ v
        u = u / (jnp.linalg.norm(u) + eps)
    sigma = u @ (wm @ v)
    return w / sigma


def init_conv_params(key, cin, cout):
    """Deterministic init mimicking nn.Conv2d defaults (kaiming_uniform a=sqrt(5))."""
    k_w, k_b, k_u = jax.random.split(key, 3)
    fan_in = cin * 4 * 4
    bound = 1.0 / math.sqrt(fan_in)
    w = jax.random.uniform(k_w, (cout, cin, 4, 4), jnp.float32, -bound, bound)
    b = jax.random.uniform(k_b, (cout,), jnp.float32, -bound, bound)
    w = _spectral_normalize(w, k_u)
    return w, b


def prepare_params(raw_params, h_in, w_in):
    """One-time packing: transpose to (K, Cout), append the bias row (only when
    not followed by InstanceNorm - it is cancelled otherwise), pad K to 128,
    cast to bf16, and fold conv5 + global-avg-pool into `weff`."""
    layers = []
    sh, sw = h_in, w_in
    for i in range(4):
        w_conv, b = raw_params[i]
        cout, cin = w_conv.shape[0], w_conv.shape[1]
        k = cin * 16
        # K ordering (kh, kw, cin) matches the NHWC im2col concat order.
        w_t = jnp.transpose(w_conv, (2, 3, 1, 0)).reshape(k, cout)
        rows = [w_t]
        if not _HAS_NORM[i]:
            # Bias folded into the MXU: matches the patches' constant-1 column.
            rows.append(b.reshape(1, cout))
        total = sum(r.shape[0] for r in rows)
        pad = (-total) % _LANE
        if pad:
            rows.append(jnp.zeros((pad, cout), jnp.float32))
        layers.append(jnp.concatenate(rows, axis=0).astype(jnp.bfloat16))
        sh = (sh + 2 - 4) // _STRIDES[i] + 1
        sw = (sw + 2 - 4) // _STRIDES[i] + 1

    # Fold Conv2d(C4, 1, k=4, pad=1) + global avg-pool into an effective
    # per-(spatial-position, channel) weight over the layer-4 activation.
    w5, b5 = raw_params[4]
    c4 = w5.shape[1]
    oh_n = (sh + 2 - 4) + 1
    ow_n = (sw + 2 - 4) + 1
    acc = jnp.zeros((sh, sw, c4), jnp.float32)
    for oh in range(oh_n):
        for ow in range(ow_n):
            h_lo, h_hi = max(0, oh - 1), min(sh, oh + 3)
            w_lo, w_hi = max(0, ow - 1), min(sw, ow + 3)
            sub = w5[0, :, h_lo + 1 - oh:h_hi + 1 - oh, w_lo + 1 - ow:w_hi + 1 - ow]
            acc = acc.at[h_lo:h_hi, w_lo:w_hi, :].add(jnp.transpose(sub, (1, 2, 0)))
    weff = (acc / float(oh_n * ow_n)).reshape(sh * sw, c4)
    return {"layers": layers, "weff": weff,
            "b5": b5.reshape(1, 1).astype(jnp.float32)}


# ----------------------------------------------------------------------------
# Full forward pass
# ----------------------------------------------------------------------------
@jax.jit
def discriminator_forward(x, params):
    """x: (N, C, H, W) float32 (PyTorch NCHW) -> (N, 1) float32."""
    h = jnp.transpose(x, (0, 2, 3, 1)).astype(jnp.bfloat16)      # NHWC, bf16
    layers = params["layers"]
    # Layers 1-3: conv (+folded bias) (+InstanceNorm) + LeakyReLU (Dropout = identity).
    for i in range(3):
        patches, ho, wo = _im2col_nhwc(h, _STRIDES[i], append_one=not _HAS_NORM[i])
        y = _layer_call(patches, layers[i], apply_norm=_HAS_NORM[i])
        h = y.reshape(y.shape[0], ho, wo, y.shape[-1])
    # Fused layers 4 + 5 (+ global avg-pool).
    patches, _, _ = _im2col_nhwc(h, _STRIDES[3], append_one=False)
    out = _head_call(patches, layers[3], params["weff"], params["b5"])
    return out.reshape(out.shape[0], 1)


if __name__ == "__main__":
    key = jax.random.PRNGKey(0)
    keys = jax.random.split(key, 6)

    input_nc = 3
    N, H, W = 2, 32, 32          # smallest spatial size that survives all 5 convs
    x = jax.random.normal(keys[0], (N, input_nc, H, W), dtype=jnp.float32)

    channel_plan = [(input_nc, 64), (64, 128), (128, 256), (256, 512), (512, 1)]
    raw = [init_conv_params(keys[i + 1], cin, cout)
           for i, (cin, cout) in enumerate(channel_plan)]
    params = prepare_params(raw, H, W)

    out = discriminator_forward(x, params)
    out = jax.block_until_ready(out)

    assert out.shape == (N, 1), out.shape
    assert bool(jnp.all(jnp.isfinite(out)))
    print("KERNEL_OK")
</pallas_src>

<mosaic_0001>
module attributes {stable_mosaic.version = 11 : i64} {
  func.func @kernel(%arg0: i32, %arg1: memref<1x256x128xbf16, #tpu.memory_space<vmem>>, %arg2: memref<128x64xbf16, #tpu.memory_space<vmem>>, %arg3: memref<1x256x64xbf16, #tpu.memory_space<vmem>>) attributes {dimension_semantics = [#tpu.dimension_semantics<parallel>], iteration_bounds = array<i64: 2>, scalar_prefetch = 0 : i64, scratch_operands = 0 : i64, tpu.core_type = #tpu.core_type<tc>, window_params = [{transform_indices = @transform_0, window_bounds = array<i64: 1, 256, 128>}, {pipeline_mode = #tpu.pipeline_mode<synchronous>, transform_indices = @transform_1, window_bounds = array<i64: 128, 64>}, {transform_indices = @transform_2, window_bounds = array<i64: 1, 256, 64>}]} {
    %c0 = arith.constant 0 : index
    %c0_0 = arith.constant 0 : index
    %c0_1 = arith.constant 0 : index
    %0 = vector.load %arg1[%c0, %c0_0, %c0_1] : memref<1x256x128xbf16, #tpu.memory_space<vmem>>, vector<1x256x128xbf16>
    %1 = vector.shape_cast %0 : vector<1x256x128xbf16> to vector<256x128xbf16>
    %c0_2 = arith.constant 0 : index
    %c0_3 = arith.constant 0 : index
    %2 = vector.load %arg2[%c0_2, %c0_3] : memref<128x64xbf16, #tpu.memory_space<vmem>>, vector<128x64xbf16>
    %cst = arith.constant dense<0.000000e+00> : vector<256x64xf32>
    %3 = tpu.matmul %1, %2, %cst {dimension_numbers = #tpu.dot_dimension_numbers<[1], [0], [0], [1], [0, 0, 1, 1], [], []>} : vector<256x128xbf16>, vector<128x64xbf16>, vector<256x64xf32> -> vector<256x64xf32>
    %cst_4 = arith.constant 0.000000e+00 : f32
    %4 = vector.broadcast %cst_4 : f32 to vector<256x64xf32>
    %5 = arith.cmpf ogt, %3, %4 : vector<256x64xf32>
    %cst_5 = arith.constant 2.000000e-01 : f32
    %6 = vector.broadcast %cst_5 : f32 to vector<256x64xf32>
    %7 = arith.mulf %6, %3 : vector<256x64xf32>
    %8 = arith.select %5, %3, %7 : vector<256x64xi1>, vector<256x64xf32>
    %9 = arith.truncf %8 : vector<256x64xf32> to vector<256x64xbf16>
    %c0_6 = arith.constant 0 : index
    %c0_7 = arith.constant 0 : index
    %c0_8 = arith.constant 0 : index
    %10 = vector.load %arg3[%c0_6, %c0_7, %c0_8] : memref<1x256x64xbf16, #tpu.memory_space<vmem>>, vector<1x256x64xbf16>
    %11 = vector.shape_cast %10 : vector<1x256x64xbf16> to vector<256x64xbf16>
    %12 = vector.shape_cast %9 : vector<256x64xbf16> to vector<1x256x64xbf16>
    tpu.vector_store %arg3[%c0_6, %c0_7, %c0_8], %12 {strides = array<i32>} : memref<1x256x64xbf16, #tpu.memory_space<vmem>>, vector<1x256x64xbf16>,
    return
  }
  func.func @transform_0(%arg0: i32) -> (i32, i32, i32) {
    %c0_i32 = arith.constant 0 : i32
    %c0_i32_0 = arith.constant 0 : i32
    %c0_i32_1 = arith.constant 0 : i32
    return %arg0, %c0_i32, %c0_i32_0 : i32, i32, i32
  }
  func.func @transform_1(%arg0: i32) -> (i32, i32) {
    %c0_i32 = arith.constant 0 : i32
    %c0_i32_0 = arith.constant 0 : i32
    %c0_i32_1 = arith.constant 0 : i32
    return %c0_i32, %c0_i32_0 : i32, i32
  }
  func.func @transform_2(%arg0: i32) -> (i32, i32, i32) {
    %c0_i32 = arith.constant 0 : i32
    %c0_i32_0 = arith.constant 0 : i32
    %c0_i32_1 = arith.constant 0 : i32
    return %arg0, %c0_i32, %c0_i32_0 : i32, i32, i32
  }
}

module attributes {stable_mosaic.version = 11 : i64} {
  func.func @kernel(%arg0: i32, %arg1: memref<1x64x1024xbf16, #tpu.memory_space<vmem>>, %arg2: memref<1024x128xbf16, #tpu.memory_space<vmem>>, %arg3: memref<1x64x128xbf16, #tpu.memory_space<vmem>>) attributes {dimension_semantics = [#tpu.dimension_semantics<parallel>], iteration_bounds = array<i64: 2>, scalar_prefetch = 0 : i64, scratch_operands = 0 : i64, tpu.core_type = #tpu.core_type<tc>, window_params = [{transform_indices = @transform_0, window_bounds = array<i64: 1, 64, 1024>}, {pipeline_mode = #tpu.pipeline_mode<synchronous>, transform_indices = @transform_1, window_bounds = array<i64: 1024, 128>}, {transform_indices = @transform_2, window_bounds = array<i64: 1, 64, 128>}]} {
    %c0 = arith.constant 0 : index
    %c0_0 = arith.constant 0 : index
    %c0_1 = arith.constant 0 : index
    %0 = vector.load %arg1[%c0, %c0_0, %c0_1] : memref<1x64x1024xbf16, #tpu.memory_space<vmem>>, vector<1x64x1024xbf16>
    %1 = vector.shape_cast %0 : vector<1x64x1024xbf16> to vector<64x1024xbf16>
    %c0_2 = arith.constant 0 : index
    %c0_3 = arith.constant 0 : index
    %2 = vector.load %arg2[%c0_2, %c0_3] : memref<1024x128xbf16, #tpu.memory_space<vmem>>, vector<1024x128xbf16>
    %cst = arith.constant dense<0.000000e+00> : vector<64x128xf32>
    %3 = tpu.matmul %1, %2, %cst {dimension_numbers = #tpu.dot_dimension_numbers<[1], [0], [0], [1], [0, 0, 1, 1], [], []>} : vector<64x1024xbf16>, vector<1024x128xbf16>, vector<64x128xf32> -> vector<64x128xf32>
    %cst_4 = arith.constant dense<0.000000e+00> : vector<128xf32>
    %4 = vector.multi_reduction <add>, %3, %cst_4 [0] : vector<64x128xf32> to vector<128xf32>
    %5 = vector.shape_cast %4 : vector<128xf32> to vector<1x128xf32>
    %cst_5 = arith.constant 6.400000e+01 : f32
    %6 = vector.broadcast %cst_5 : f32 to vector<1x128xf32>
    %7 = arith.divf %5, %6 : vector<1x128xf32>
    %8 = arith.mulf %3, %3 : vector<64x128xf32>
    %cst_6 = arith.constant dense<0.000000e+00> : vector<128xf32>
    %9 = vector.multi_reduction <add>, %8, %cst_6 [0] : vector<64x128xf32> to vector<128xf32>
    %10 = vector.shape_cast %9 : vector<128xf32> to vector<1x128xf32>
    %cst_7 = arith.constant 6.400000e+01 : f32
    %11 = vector.broadcast %cst_7 : f32 to vector<1x128xf32>
    %12 = arith.divf %10, %11 : vector<1x128xf32>
    %13 = arith.mulf %7, %7 : vector<1x128xf32>
    %14 = arith.subf %12, %13 : vector<1x128xf32>
    %cst_8 = arith.constant 0.000000e+00 : f32
    %15 = vector.broadcast %cst_8 : f32 to vector<1x128xf32>
    %16 = arith.maximumf %14, %15 : vector<1x128xf32>
    %17 = vector.broadcast %7 : vector<1x128xf32> to vector<64x128xf32>
    %18 = arith.subf %3, %17 : vector<64x128xf32>
    %cst_9 = arith.constant 9.99999974E-6 : f32
    %19 = vector.broadcast %cst_9 : f32 to vector<1x128xf32>
    %20 = arith.addf %16, %19 : vector<1x128xf32>
    %21 = math.rsqrt %20 : vector<1x128xf32>
    %22 = vector.broadcast %21 : vector<1x128xf32> to vector<64x128xf32>
    %23 = arith.mulf %18, %22 : vector<64x128xf32>
    %cst_10 = arith.constant 0.000000e+00 : f32
    %24 = vector.broadcast %cst_10 : f32 to vector<64x128xf32>
    %25 = arith.cmpf ogt, %23, %24 : vector<64x128xf32>
    %cst_11 = arith.constant 2.000000e-01 : f32
    %26 = vector.broadcast %cst_11 : f32 to vector<64x128xf32>
    %27 = arith.mulf %26, %23 : vector<64x128xf32>
    %28 = arith.select %25, %23, %27 : vector<64x128xi1>, vector<64x128xf32>
    %29 = arith.truncf %28 : vector<64x128xf32> to vector<64x128xbf16>
    %c0_12 = arith.constant 0 : index
    %c0_13 = arith.constant 0 : index
    %c0_14 = arith.constant 0 : index
    %30 = vector.load %arg3[%c0_12, %c0_13, %c0_14] : memref<1x64x128xbf16, #tpu.memory_space<vmem>>, vector<1x64x128xbf16>
    %31 = vector.shape_cast %30 : vector<1x64x128xbf16> to vector<64x128xbf16>
    %32 = vector.shape_cast %29 : vector<64x128xbf16> to vector<1x64x128xbf16>
    tpu.vector_store %arg3[%c0_12, %c0_13, %c0_14], %32 {strides = array<i32>} : memref<1x64x128xbf16, #tpu.memory_space<vmem>>, vector<1x64x128xbf16>,
    return
  }
  func.func @transform_0(%arg0: i32) -> (i32, i32, i32) {
    %c0_i32 = arith.constant 0 : i32
    %c0_i32_0 = arith.constant 0 : i32
    %c0_i32_1 = arith.constant 0 : i32
    return %arg0, %c0_i32, %c0_i32_0 : i32, i32, i32
  }
  func.func @transform_1(%arg0: i32) -> (i32, i32) {
    %c0_i32 = arith.constant 0 : i32
    %c0_i32_0 = arith.constant 0 : i32
    %c0_i32_1 = arith.constant 0 : i32
    return %c0_i32, %c0_i32_0 : i32, i32
  }
  func.func @transform_2(%arg0: i32) -> (i32, i32, i32) {
    %c0_i32 = arith.constant 0 : i32
    %c0_i32_0 = arith.constant 0 : i32
    %c0_i32_1 = arith.constant 0 : i32
    return %arg0, %c0_i32, %c0_i32_0 : i32, i32, i32
  }
}

module attributes {stable_mosaic.version = 11 : i64} {
  func.func @kernel(%arg0: i32, %arg1: memref<1x16x2048xbf16, #tpu.memory_space<vmem>>, %arg2: memref<2048x256xbf16, #tpu.memory_space<vmem>>, %arg3: memref<1x16x256xbf16, #tpu.memory_space<vmem>>) attributes {dimension_semantics = [#tpu.dimension_semantics<parallel>], iteration_bounds = array<i64: 2>, scalar_prefetch = 0 : i64, scratch_operands = 0 : i64, tpu.core_type = #tpu.core_type<tc>, window_params = [{transform_indices = @transform_0, window_bounds = array<i64: 1, 16, 2048>}, {pipeline_mode = #tpu.pipeline_mode<synchronous>, transform_indices = @transform_1, window_bounds = array<i64: 2048, 256>}, {transform_indices = @transform_2, window_bounds = array<i64: 1, 16, 256>}]} {
    %c0 = arith.constant 0 : index
    %c0_0 = arith.constant 0 : index
    %c0_1 = arith.constant 0 : index
    %0 = vector.load %arg1[%c0, %c0_0, %c0_1] : memref<1x16x2048xbf16, #tpu.memory_space<vmem>>, vector<1x16x2048xbf16>
    %1 = vector.shape_cast %0 : vector<1x16x2048xbf16> to vector<16x2048xbf16>
    %c0_2 = arith.constant 0 : index
    %c0_3 = arith.constant 0 : index
    %2 = vector.load %arg2[%c0_2, %c0_3] : memref<2048x256xbf16, #tpu.memory_space<vmem>>, vector<2048x256xbf16>
    %cst = arith.constant dense<0.000000e+00> : vector<16x256xf32>
    %3 = tpu.matmul %1, %2, %cst {dimension_numbers = #tpu.dot_dimension_numbers<[1], [0], [0], [1], [0, 0, 1, 1], [], []>} : vector<16x2048xbf16>, vector<2048x256xbf16>, vector<16x256xf32> -> vector<16x256xf32>
    %cst_4 = arith.constant dense<0.000000e+00> : vector<256xf32>
    %4 = vector.multi_reduction <add>, %3, %cst_4 [0] : vector<16x256xf32> to vector<256xf32>
    %5 = vector.shape_cast %4 : vector<256xf32> to vector<1x256xf32>
    %cst_5 = arith.constant 1.600000e+01 : f32
    %6 = vector.broadcast %cst_5 : f32 to vector<1x256xf32>
    %7 = arith.divf %5, %6 : vector<1x256xf32>
    %8 = arith.mulf %3, %3 : vector<16x256xf32>
    %cst_6 = arith.constant dense<0.000000e+00> : vector<256xf32>
    %9 = vector.multi_reduction <add>, %8, %cst_6 [0] : vector<16x256xf32> to vector<256xf32>
    %10 = vector.shape_cast %9 : vector<256xf32> to vector<1x256xf32>
    %cst_7 = arith.constant 1.600000e+01 : f32
    %11 = vector.broadcast %cst_7 : f32 to vector<1x256xf32>
    %12 = arith.divf %10, %11 : vector<1x256xf32>
    %13 = arith.mulf %7, %7 : vector<1x256xf32>
    %14 = arith.subf %12, %13 : vector<1x256xf32>
    %cst_8 = arith.constant 0.000000e+00 : f32
    %15 = vector.broadcast %cst_8 : f32 to vector<1x256xf32>
    %16 = arith.maximumf %14, %15 : vector<1x256xf32>
    %17 = vector.broadcast %7 : vector<1x256xf32> to vector<16x256xf32>
    %18 = arith.subf %3, %17 : vector<16x256xf32>
    %cst_9 = arith.constant 9.99999974E-6 : f32
    %19 = vector.broadcast %cst_9 : f32 to vector<1x256xf32>
    %20 = arith.addf %16, %19 : vector<1x256xf32>
    %21 = math.rsqrt %20 : vector<1x256xf32>
    %22 = vector.broadcast %21 : vector<1x256xf32> to vector<16x256xf32>
    %23 = arith.mulf %18, %22 : vector<16x256xf32>
    %cst_10 = arith.constant 0.000000e+00 : f32
    %24 = vector.broadcast %cst_10 : f32 to vector<16x256xf32>
    %25 = arith.cmpf ogt, %23, %24 : vector<16x256xf32>
    %cst_11 = arith.constant 2.000000e-01 : f32
    %26 = vector.broadcast %cst_11 : f32 to vector<16x256xf32>
    %27 = arith.mulf %26, %23 : vector<16x256xf32>
    %28 = arith.select %25, %23, %27 : vector<16x256xi1>, vector<16x256xf32>
    %29 = arith.truncf %28 : vector<16x256xf32> to vector<16x256xbf16>
    %c0_12 = arith.constant 0 : index
    %c0_13 = arith.constant 0 : index
    %c0_14 = arith.constant 0 : index
    %30 = vector.load %arg3[%c0_12, %c0_13, %c0_14] : memref<1x16x256xbf16, #tpu.memory_space<vmem>>, vector<1x16x256xbf16>
    %31 = vector.shape_cast %30 : vector<1x16x256xbf16> to vector<16x256xbf16>
    %32 = vector.shape_cast %29 : vector<16x256xbf16> to vector<1x16x256xbf16>
    tpu.vector_store %arg3[%c0_12, %c0_13, %c0_14], %32 {strides = array<i32>} : memref<1x16x256xbf16, #tpu.memory_space<vmem>>, vector<1x16x256xbf16>,
    return
  }
  func.func @transform_0(%arg0: i32) -> (i32, i32, i32) {
    %c0_i32 = arith.constant 0 : i32
    %c0_i32_0 = arith.constant 0 : i32
    %c0_i32_1 = arith.constant 0 : i32
    return %arg0, %c0_i32, %c0_i32_0 : i32, i32, i32
  }
  func.func @transform_1(%arg0: i32) -> (i32, i32) {
    %c0_i32 = arith.constant 0 : i32
    %c0_i32_0 = arith.constant 0 : i32
    %c0_i32_1 = arith.constant 0 : i32
    return %c0_i32, %c0_i32_0 : i32, i32
  }
  func.func @transform_2(%arg0: i32) -> (i32, i32, i32) {
    %c0_i32 = arith.constant 0 : i32
    %c0_i32_0 = arith.constant 0 : i32
    %c0_i32_1 = arith.constant 0 : i32
    return %arg0, %c0_i32, %c0_i32_0 : i32, i32, i32
  }
}

module attributes {stable_mosaic.version = 11 : i64} {
  func.func @_head_kernel(%arg0: i32, %arg1: memref<1x9x4096xbf16, #tpu.memory_space<vmem>>, %arg2: memref<4096x512xbf16, #tpu.memory_space<vmem>>, %arg3: memref<9x512xf32, #tpu.memory_space<vmem>>, %arg4: memref<1x1xf32, #tpu.memory_space<vmem>>, %arg5: memref<1x1x1xf32, #tpu.memory_space<vmem>>) attributes {dimension_semantics = [#tpu.dimension_semantics<parallel>], iteration_bounds = array<i64: 2>, scalar_prefetch = 0 : i64, scratch_operands = 0 : i64, tpu.core_type = #tpu.core_type<tc>, window_params = [{transform_indices = @transform_0, window_bounds = array<i64: 1, 9, 4096>}, {pipeline_mode = #tpu.pipeline_mode<synchronous>, transform_indices = @transform_1, window_bounds = array<i64: 4096, 512>}, {pipeline_mode = #tpu.pipeline_mode<synchronous>, transform_indices = @transform_2, window_bounds = array<i64: 9, 512>}, {pipeline_mode = #tpu.pipeline_mode<synchronous>, transform_indices = @transform_3, window_bounds = array<i64: 1, 1>}, {transform_indices = @transform_4, window_bounds = array<i64: 1, 1, 1>}]} {
    %c0 = arith.constant 0 : index
    %c0_0 = arith.constant 0 : index
    %c0_1 = arith.constant 0 : index
    %0 = vector.load %arg1[%c0, %c0_0, %c0_1] : memref<1x9x4096xbf16, #tpu.memory_space<vmem>>, vector<1x9x4096xbf16>
    %1 = vector.shape_cast %0 : vector<1x9x4096xbf16> to vector<9x4096xbf16>
    %c0_2 = arith.constant 0 : index
    %c0_3 = arith.constant 0 : index
    %2 = vector.load %arg2[%c0_2, %c0_3] : memref<4096x512xbf16, #tpu.memory_space<vmem>>, vector<4096x512xbf16>
    %cst = arith.constant dense<0.000000e+00> : vector<9x512xf32>
    %3 = tpu.matmul %1, %2, %cst {dimension_numbers = #tpu.dot_dimension_numbers<[1], [0], [0], [1], [0, 0, 1, 1], [], []>} : vector<9x4096xbf16>, vector<4096x512xbf16>, vector<9x512xf32> -> vector<9x512xf32>
    %cst_4 = arith.constant dense<0.000000e+00> : vector<512xf32>
    %4 = vector.multi_reduction <add>, %3, %cst_4 [0] : vector<9x512xf32> to vector<512xf32>
    %5 = vector.shape_cast %4 : vector<512xf32> to vector<1x512xf32>
    %cst_5 = arith.constant 9.000000e+00 : f32
    %6 = vector.broadcast %cst_5 : f32 to vector<1x512xf32>
    %7 = arith.divf %5, %6 : vector<1x512xf32>
    %8 = arith.mulf %3, %3 : vector<9x512xf32>
    %cst_6 = arith.constant dense<0.000000e+00> : vector<512xf32>
    %9 = vector.multi_reduction <add>, %8, %cst_6 [0] : vector<9x512xf32> to vector<512xf32>
    %10 = vector.shape_cast %9 : vector<512xf32> to vector<1x512xf32>
    %cst_7 = arith.constant 9.000000e+00 : f32
    %11 = vector.broadcast %cst_7 : f32 to vector<1x512xf32>
    %12 = arith.divf %10, %11 : vector<1x512xf32>
    %13 = arith.mulf %7, %7 : vector<1x512xf32>
    %14 = arith.subf %12, %13 : vector<1x512xf32>
    %cst_8 = arith.constant 0.000000e+00 : f32
    %15 = vector.broadcast %cst_8 : f32 to vector<1x512xf32>
    %16 = arith.maximumf %14, %15 : vector<1x512xf32>
    %17 = vector.broadcast %7 : vector<1x512xf32> to vector<9x512xf32>
    %18 = arith.subf %3, %17 : vector<9x512xf32>
    %cst_9 = arith.constant 9.99999974E-6 : f32
    %19 = vector.broadcast %cst_9 : f32 to vector<1x512xf32>
    %20 = arith.addf %16, %19 : vector<1x512xf32>
    %21 = math.rsqrt %20 : vector<1x512xf32>
    %22 = vector.broadcast %21 : vector<1x512xf32> to vector<9x512xf32>
    %23 = arith.mulf %18, %22 : vector<9x512xf32>
    %cst_10 = arith.constant 0.000000e+00 : f32
    %24 = vector.broadcast %cst_10 : f32 to vector<9x512xf32>
    %25 = arith.cmpf ogt, %23, %24 : vector<9x512xf32>
    %cst_11 = arith.constant 2.000000e-01 : f32
    %26 = vector.broadcast %cst_11 : f32 to vector<9x512xf32>
    %27 = arith.mulf %26, %23 : vector<9x512xf32>
    %28 = arith.select %25, %23, %27 : vector<9x512xi1>, vector<9x512xf32>
    %c0_12 = arith.constant 0 : index
    %c0_13 = arith.constant 0 : index
    %29 = vector.load %arg3[%c0_12, %c0_13] : memref<9x512xf32, #tpu.memory_space<vmem>>, vector<9x512xf32>
    %30 = arith.mulf %28, %29 : vector<9x512xf32>
    %cst_14 = arith.constant dense<0.000000e+00> : vector<512xf32>
    %31 = vector.multi_reduction <add>, %30, %cst_14 [0] : vector<9x512xf32> to vector<512xf32>
    %32 = vector.shape_cast %31 : vector<512xf32> to vector<1x512xf32>
    %cst_15 = arith.constant dense<0.000000e+00> : vector<1xf32>
    %33 = vector.multi_reduction <add>, %32, %cst_15 [1] : vector<1x512xf32> to vector<1xf32>
    %34 = vector.shape_cast %33 : vector<1xf32> to vector<1x1xf32>
    %c0_16 = arith.constant 0 : index
    %c0_17 = arith.constant 0 : index
    %35 = vector.load %arg4[%c0_16, %c0_17] : memref<1x1xf32, #tpu.memory_space<vmem>>, vector<1x1xf32>
    %36 = arith.addf %34, %35 : vector<1x1xf32>
    %c0_18 = arith.constant 0 : index
    %c0_19 = arith.constant 0 : index
    %c0_20 = arith.constant 0 : index
    %37 = vector.load %arg5[%c0_18, %c0_19, %c0_20] : memref<1x1x1xf32, #tpu.memory_space<vmem>>, vector<1x1x1xf32>
    %38 = vector.shape_cast %37 : vector<1x1x1xf32> to vector<1x1xf32>
    %39 = vector.shape_cast %36 : vector<1x1xf32> to vector<1x1x1xf32>
    tpu.vector_store %arg5[%c0_18, %c0_19, %c0_20], %39 {strides = array<i32>} : memref<1x1x1xf32, #tpu.memory_space<vmem>>, vector<1x1x1xf32>,
    return
  }
  func.func @transform_0(%arg0: i32) -> (i32, i32, i32) {
    %c0_i32 = arith.constant 0 : i32
    %c0_i32_0 = arith.constant 0 : i32
    %c0_i32_1 = arith.constant 0 : i32
    return %arg0, %c0_i32, %c0_i32_0 : i32, i32, i32
  }
  func.func @transform_1(%arg0: i32) -> (i32, i32) {
    %c0_i32 = arith.constant 0 : i32
    %c0_i32_0 = arith.constant 0 : i32
    %c0_i32_1 = arith.constant 0 : i32
    return %c0_i32, %c0_i32_0 : i32, i32
  }
  func.func @transform_2(%arg0: i32) -> (i32, i32) {
    %c0_i32 = arith.constant 0 : i32
    %c0_i32_0 = arith.constant 0 : i32
    %c0_i32_1 = arith.constant 0 : i32
    return %c0_i32, %c0_i32_0 : i32, i32
  }
  func.func @transform_3(%arg0: i32) -> (i32, i32) {
    %c0_i32 = arith.constant 0 : i32
    %c0_i32_0 = arith.constant 0 : i32
    %c0_i32_1 = arith.constant 0 : i32
    return %c0_i32, %c0_i32_0 : i32, i32
  }
  func.func @transform_4(%arg0: i32) -> (i32, i32, i32) {
    %c0_i32 = arith.constant 0 : i32
    %c0_i32_0 = arith.constant 0 : i32
    %c0_i32_1 = arith.constant 0 : i32
    return %arg0, %c0_i32, %c0_i32_0 : i32, i32, i32
  }
}

</mosaic_0001>

<bundles_post_ra>
// kernel: discriminator_forward.4
= control target key start
LH: loop header
LB: loop body
LE: loop exit
PB: predicated region body
PF: predicated region fallthrough
CT: control target
= control target key end

     0   :  { %s1054_s9 = smov 0   ;;  %s1187_s0 = inlined_call_operand.vmem [shape: bf16[2,256,128], index: 0, kind: input, shape index: {}]   ;;  %s1188_s1 = inlined_call_operand.vmem [shape: bf16[128,64], index: 1, kind: input, shape index: {}]   ;;  %s1189_s2 = inlined_call_operand.vmem [shape: bf16[2,256,64], index: 2, kind: output, shape index: {}]  }
   0x1 LB: > { %s810_s10 = sadd.s32 4294967295, %s1037_s9   ;;  %p814_p0 = scmp.ge.s32.totalorder %s1037_s9, 1  ;;  %s1037_s9 = sphi %s1054_s9, %s12_s9  }
   0x2   : > { %p112_p1 = scmp.lt.s32.totalorder %s1037_s9, 3 }
   0x4   : > { %p113_p2 = pnand %p814_p0, %p112_p1 }
   0x5   : > { %v1007_v0 = vld [vmem:[%s1188_s1] sm:$0xff] (!%p113_p2)   ;;  %p134_p3 = scmp.lt.s32.totalorder (!%p113_p2), %s810_s10, 1  ;;  %v1008_v1 = vld [vmem:[%s1188_s1 + $0x8] sm:$0xff] (!%p113_p2)   ;;  %v1009_v2 = vld [vmem:[%s1188_s1 + $0x10] sm:$0xff] (!%p113_p2)   ;;  %vm722_vm2 = vcmask (!%p113_p2), 519168  }
   0x6   : > { %116 = sbr.rel (%p113_p2) target bundleno = 289 (0x121), region = 28  ;;  %935 = vmatprep.subr.bf16.mxu0 (!%p113_p2), %v1007_v0  ;;  %983 = vmatprep.subr.bf16.mxu1 (!%p113_p2), %v1007_v0  ;;  %v1010_v3 = vld [vmem:[%s1188_s1 + $0x18] sm:$0xff] (!%p113_p2)   ;;  %v1011_v6 = vld [vmem:[%s1188_s1 + $0x20] sm:$0xff] (!%p113_p2)   ;;  %v1012_v7 = vld [vmem:[%s1188_s1 + $0x28] sm:$0xff] (!%p113_p2)  }
   0x7   : > { %936 = vmatpush3.bf16.msra.mxu0 (!%p113_p2), %v1007_v0  ;;  %991 = vmatpush3.bf16.msra.mxu1 (!%p113_p2), %v1007_v0  ;;  %v1013_v8 = vld [vmem:[%s1188_s1 + $0x30] sm:$0xff] (!%p113_p2)   ;;  %v1014_v9 = vld [vmem:[%s1188_s1 + $0x38] sm:$0xff] (!%p113_p2)  }
   0x8   : > { %937 = vmatprep.subr.bf16.mxu0 (!%p113_p2), %v1008_v1  ;;  %984 = vmatprep.subr.bf16.mxu1 (!%p113_p2), %v1008_v1 }
   0xb   : > { %938 = vmatpush3.bf16.msra.mxu0 (!%p113_p2), %v1008_v1  ;;  %992 = vmatpush3.bf16.msra.mxu1 (!%p113_p2), %v1008_v1 }
   0xc   : > { %939 = vmatprep.subr.bf16.mxu0 (!%p113_p2), %v1009_v2  ;;  %985 = vmatprep.subr.bf16.mxu1 (!%p113_p2), %v1009_v2 }
   0xd   : > { %s1191_s10 = smov (!%p134_p3, %s810_s10), 1 }
   0xe   : > { %s877_s17 = sshll.u32 %s1191_s10, 7 }
   0xf   : > { %s1079_s20 = scalar_lea.vmem %s1187_s0, %s877_s17  ;;  %940 = vmatpush3.bf16.msra.mxu0 %v1009_v2  ;;  %993 = vmatpush3.bf16.msra.mxu1 %v1009_v2  ;;  %s1117_s5 = scalar_lea.vmem %s1189_s2, %s877_s17 }
  0x10   : > { %v1015_v4 = vld [vmem:[%s1079_s20] sm:$0xff]   ;;  %941 = vmatprep.subr.bf16.mxu0 %v1010_v3  ;;  %986 = vmatprep.subr.bf16.mxu1 %v1010_v3  ;;  %v1017_v10 = vld [vmem:[%s1079_s20 + $0x8] sm:$0xff]   ;;  %v1019_v12 = vld [vmem:[%s1079_s20 + $0x10] sm:$0xff]  }
  0x11   : > { %v1016_v5 = vld [vmem:[%s1079_s20 + $0x40] sm:$0xff]   ;;  %951 = vmatprep.mubr.bf16.mxu0 %v1015_v4  ;;  %v1018_v11 = vld [vmem:[%s1079_s20 + $0x48] sm:$0xff]   ;;  %v1020_v13 = vld [vmem:[%s1079_s20 + $0x50] sm:$0xff]  }
  0x12   : > { %967 = vmatprep.mubr.bf16.mxu1 %v1016_v5  ;;  %v1021_v14 = vld [vmem:[%s1079_s20 + $0x18] sm:$0xff]   ;;  %v1023_v16 = vld [vmem:[%s1079_s20 + $0x20] sm:$0xff]   ;;  %v1025_v18 = vld [vmem:[%s1079_s20 + $0x28] sm:$0xff]  }
  0x13   : > { %942 = vmatpush3.bf16.msra.mxu0 %v1010_v3  ;;  %994 = vmatpush3.bf16.msra.mxu1 %v1010_v3  ;;  %v1022_v15 = vld [vmem:[%s1079_s20 + $0x58] sm:$0xff]   ;;  %v1024_v17 = vld [vmem:[%s1079_s20 + $0x60] sm:$0xff]   ;;  %v1026_v19 = vld [vmem:[%s1079_s20 + $0x68] sm:$0xff]  }
  0x14   : > { %943 = vmatprep.subr.bf16.mxu0 %v1011_v6  ;;  %987 = vmatprep.subr.bf16.mxu1 %v1011_v6  ;;  %v1027_v20 = vld [vmem:[%s1079_s20 + $0x30] sm:$0xff]   ;;  %v1029_v22 = vld [vmem:[%s1079_s20 + $0x38] sm:$0xff]  }
  0x15   : > { %v1028_v21 = vld [vmem:[%s1079_s20 + $0x70] sm:$0xff]   ;;  %v1030_v23 = vld [vmem:[%s1079_s20 + $0x78] sm:$0xff]  }
  0x17   : > { %944 = vmatpush3.bf16.msra.mxu0 %v1011_v6  ;;  %995 = vmatpush3.bf16.msra.mxu1 %v1011_v6 }
  0x18   : > { %945 = vmatprep.subr.bf16.mxu0 %v1012_v7  ;;  %988 = vmatprep.subr.bf16.mxu1 %v1012_v7 }
  0x1b   : > { %946 = vmatpush3.bf16.msra.mxu0 %v1012_v7  ;;  %996 = vmatpush3.bf16.msra.mxu1 %v1012_v7 }
  0x1c   : > { %947 = vmatprep.subr.bf16.mxu0 %v1013_v8  ;;  %989 = vmatprep.subr.bf16.mxu1 %v1013_v8 }
  0x1f   : > { %948 = vmatpush3.bf16.msra.mxu0 %v1013_v8  ;;  %997 = vmatpush3.bf16.msra.mxu1 %v1013_v8 }
  0x20   : > { %949 = vmatprep.subr.bf16.mxu0 %v1014_v9  ;;  %990 = vmatprep.subr.bf16.mxu1 %v1014_v9 }
  0x23   : > { %950 = vmatpush3.bf16.msra.mxu0 %v1014_v9  ;;  %998 = vmatpush3.bf16.msra.mxu1 %v1014_v9 }
  0x26   : > { %952 = vmatmul.mubr.bf16.vlgmr.msra.gmra.mrb[0].mxu0 %v1017_v10  ;;  %968 = vmatmul.mubr.bf16.vlgmr.msra.gmra.mrb[0].mxu1 %v1018_v11 }
  0x27   : > { %955 = vmatprep.mubr.bf16.mxu0 %v1019_v12  ;;  %971 = vmatprep.mubr.bf16.mxu1 %v1020_v13 }
  0x2e   : > { %956 = vmatmul.mubr.bf16.gmra.mrb[4].mxu0 %v1021_v14  ;;  %972 = vmatmul.mubr.bf16.gmra.mrb[4].mxu1 %v1022_v15 }
  0x2f   : > { %959 = vmatprep.mubr.bf16.mxu0 %v1023_v16  ;;  %975 = vmatprep.mubr.bf16.mxu1 %v1024_v17 }
  0x36   : > { %960 = vmatmul.mubr.bf16.gmra.mrb[8].mxu0 %v1025_v18  ;;  %976 = vmatmul.mubr.bf16.gmra.mrb[8].mxu1 %v1026_v19 }
  0x37   : > { %963 = vmatprep.mubr.bf16.mxu0 %v1027_v20  ;;  %979 = vmatprep.mubr.bf16.mxu1 %v1028_v21 }
  0x3e   : > { %964 = vmatmul.mubr.bf16.gmra.mrb[12].mxu0 %v1029_v22  ;;  %980 = vmatmul.mubr.bf16.gmra.mrb[12].mxu1 %v1030_v23 }
  0xf9   : > { %v953_v24 = vpop.f32.mrb[0].mxu0  ;;  %v969_v25 = vpop.f32.mrb[0].mxu1 }
  0xfa   : > { %vm500_vm0 = vcmp.gt.f32.partialorder %v953_v24, 0.0  ;;  %v532_v26 = vmul.f32 0.2, %v953_v24  ;;  %vm516_vm1 = vcmp.gt.f32.partialorder %v969_v25, 0.0  ;;  %v548_v27 = vmul.f32 0.2, %v969_v25 }
  0xfb   : > { %v371_v28 = vpop.f32.mrb[1].mxu0  ;;  %v435_v29 = vpop.f32.mrb[1].mxu1 }
  0xfc   : > { %v564_v30 = vsel %vm500_vm0, %v953_v24, %v532_v26  ;;  %v580_v31 = vsel %vm516_vm1, %v969_v25, %v548_v27  ;;  %vm498_vm3 = vcmp.gt.f32.partialorder %v371_v28, 0.0  ;;  %v530_v32 = vmul.f32 0.2, %v371_v28  ;;  %v954_v33 = vpop.f32.mrb[2].mxu0  ;;  %v970_v34 = vpop.f32.mrb[2].mxu1 }
  0xfd   : > { %v881_v35 = vpack.c.bf16 %v564_v30, %v564_v30  ;;  %v897_v36 = vpack.c.bf16 %v580_v31, %v580_v31  ;;  %vm514_vm4 = vcmp.gt.f32.partialorder %v435_v29, 0.0  ;;  %v546_v37 = vmul.f32 0.2, %v435_v29  ;;  %v374_v38 = vpop.f32.mrb[3].mxu0  ;;  %v438_v39 = vpop.f32.mrb[3].mxu1 }
  0xfe   : > { %v562_v40 = vsel %vm498_vm3, %v371_v28, %v530_v32  ;;  %vm501_vm5 = vcmp.gt.f32.partialorder %v954_v33, 0.0  ;;  %v533_v41 = vmul.f32 0.2, %v954_v33  ;;  %vm517_vm6 = vcmp.gt.f32.partialorder %v970_v34, 0.0 }
  0xff   : > { %725 = vst.msk [vmem:[%s1117_s5 + $0x8] sm:$0xf] %vm722_vm2, %v881_v35  ;;  %741 = vst.msk [vmem:[%s1117_s5 + $0x48] sm:$0xf] %vm722_vm2, %v897_v36  ;;  %v879_v42 = vpack.c.bf16 %v562_v40, %v562_v40  ;;  %v578_v43 = vsel %vm514_vm4, %v435_v29, %v546_v37  ;;  %v549_v44 = vmul.f32 0.2, %v970_v34 }
 0x100   : > { %vm499_vm7 = vcmp.gt.f32.partialorder %v374_v38, 0.0  ;;  %v895_v45 = vpack.c.bf16 %v578_v43, %v578_v43  ;;  %v565_v46 = vsel %vm501_vm5, %v954_v33, %v533_v41  ;;  %v531_v47 = vmul.f32 0.2, %v374_v38 }
 0x101   : > { %vm515_vm8 = vcmp.gt.f32.partialorder %v438_v39, 0.0  ;;  %723 = vst.msk [vmem:[%s1117_s5] sm:$0xf] %vm722_vm2, %v879_v42  ;;  %v882_v48 = vpack.c.bf16 %v565_v46, %v565_v46  ;;  %v581_v49 = vsel %vm517_vm6, %v970_v34, %v549_v44  ;;  %v547_v50 = vmul.f32 0.2, %v438_v39  ;;  %v957_v51 = vpop.f32.mrb[4].mxu0 }
 0x102   : > { %v973_v52 = vpop.f32.mrb[4].mxu1  ;;  %739 = vst.msk [vmem:[%s1117_s5 + $0x40] sm:$0xf] %vm722_vm2, %v895_v45  ;;  %v898_v53 = vpack.c.bf16 %v581_v49, %v581_v49  ;;  %v563_v54 = vsel %vm499_vm7, %v374_v38, %v531_v47  ;;  %vm504_vm9 = vcmp.gt.f32.partialorder %v957_v51, 0.0  ;;  %v536_v55 = vmul.f32 0.2, %v957_v51 }
 0x103   : > { %v387_v56 = vpop.f32.mrb[5].mxu0  ;;  %v451_v57 = vpop.f32.mrb[5].mxu1  ;;  %726 = vst.msk [vmem:[%s1117_s5 + $0xc] sm:$0xf] %vm722_vm2, %v882_v48  ;;  %v880_v58 = vpack.c.bf16 %v563_v54, %v563_v54  ;;  %v579_v59 = vsel %vm515_vm8, %v438_v39, %v547_v50  ;;  %vm520_vm10 = vcmp.gt.f32.partialorder %v973_v52, 0.0 }
 0x104   : > { %v552_v60 = vmul.f32 0.2, %v973_v52  ;;  %v958_v61 = vpop.f32.mrb[6].mxu0  ;;  %v974_v62 = vpop.f32.mrb[6].mxu1  ;;  %742 = vst.msk [vmem:[%s1117_s5 + $0x4c] sm:$0xf] %vm722_vm2, %v898_v53  ;;  %v896_v63 = vpack.c.bf16 %v579_v59, %v579_v59  ;;  %v568_v0 = vsel %vm504_vm9, %v957_v51, %v536_v55 }
 0x105   : > { %vm502_vm11 = vcmp.gt.f32.partialorder %v387_v56, 0.0  ;;  %v534_v1 = vmul.f32 0.2, %v387_v56  ;;  %v390_v2 = vpop.f32.mrb[7].mxu0  ;;  %v454_v3 = vpop.f32.mrb[7].mxu1  ;;  %v885_v4 = vpack.c.bf16 %v568_v0, %v568_v0  ;;  %vm518_vm12 = vcmp.gt.f32.partialorder %v451_v57, 0.0 }
 0x106   : > { %724 = vst.msk [vmem:[%s1117_s5 + $0x4] sm:$0xf] %vm722_vm2, %v880_v58  ;;  %v584_v5 = vsel %vm520_vm10, %v973_v52, %v552_v60  ;;  %v550_v6 = vmul.f32 0.2, %v451_v57  ;;  %740 = vst.msk [vmem:[%s1117_s5 + $0x44] sm:$0xf] %vm722_vm2, %v896_v63 }
 0x107   : > { %v901_v7 = vpack.c.bf16 %v584_v5, %v584_v5  ;;  %v566_v8 = vsel %vm502_vm11, %v387_v56, %v534_v1  ;;  %vm505_vm13 = vcmp.gt.f32.partialorder %v958_v61, 0.0  ;;  %v537_v9 = vmul.f32 0.2, %v958_v61  ;;  %729 = vst.msk [vmem:[%s1117_s5 + $0x18] sm:$0xf] %vm722_vm2, %v885_v4 }
 0x108   : > { %v883_v10 = vpack.c.bf16 %v566_v8, %v566_v8  ;;  %v582_v11 = vsel %vm518_vm12, %v451_v57, %v550_v6  ;;  %vm521_vm14 = vcmp.gt.f32.partialorder %v974_v62, 0.0  ;;  %v553_v12 = vmul.f32 0.2, %v974_v62 }
 0x109   : > { %745 = vst.msk [vmem:[%s1117_s5 + $0x58] sm:$0xf] %vm722_vm2, %v901_v7  ;;  %v899_v13 = vpack.c.bf16 %v582_v11, %v582_v11  ;;  %v569_v14 = vsel %vm505_vm13, %v958_v61, %v537_v9  ;;  %vm503_vm15 = vcmp.gt.f32.partialorder %v390_v2, 0.0  ;;  %v535_v15 = vmul.f32 0.2, %v390_v2  ;;  %v961_v19 = vpop.f32.mrb[8].mxu0 }
 0x10a   : > { %727 = vst.msk [vmem:[%s1117_s5 + $0x10] sm:$0xf] %vm722_vm2, %v883_v10  ;;  %v886_v16 = vpack.c.bf16 %v569_v14, %v569_v14  ;;  %v585_v17 = vsel %vm521_vm14, %v974_v62, %v553_v12  ;;  %vm519_vm0 = vcmp.gt.f32.partialorder %v454_v3, 0.0  ;;  %v551_v18 = vmul.f32 0.2, %v454_v3  ;;  %v977_v20 = vpop.f32.mrb[8].mxu1 }
 0x10b   : > { %743 = vst.msk [vmem:[%s1117_s5 + $0x50] sm:$0xf] %vm722_vm2, %v899_v13  ;;  %v902_v21 = vpack.c.bf16 %v585_v17, %v585_v17  ;;  %v567_v22 = vsel %vm503_vm15, %v390_v2, %v535_v15  ;;  %vm508_vm1 = vcmp.gt.f32.partialorder %v961_v19, 0.0  ;;  %v540_v23 = vmul.f32 0.2, %v961_v19  ;;  %v403_v24 = vpop.f32.mrb[9].mxu0 }
 0x10c   : > { %v467_v25 = vpop.f32.mrb[9].mxu1  ;;  %730 = vst.msk [vmem:[%s1117_s5 + $0x1c] sm:$0xf] %vm722_vm2, %v886_v16  ;;  %v884_v26 = vpack.c.bf16 %v567_v22, %v567_v22  ;;  %v583_v27 = vsel %vm519_vm0, %v454_v3, %v551_v18  ;;  %vm524_vm3 = vcmp.gt.f32.partialorder %v977_v20, 0.0  ;;  %v556_v28 = vmul.f32 0.2, %v977_v20 }
 0x10d   : > { %v962_v29 = vpop.f32.mrb[10].mxu0  ;;  %v978_v30 = vpop.f32.mrb[10].mxu1  ;;  %746 = vst.msk [vmem:[%s1117_s5 + $0x5c] sm:$0xf] %vm722_vm2, %v902_v21  ;;  %v900_v31 = vpack.c.bf16 %v583_v27, %v583_v27  ;;  %v572_v32 = vsel %vm508_vm1, %v961_v19, %v540_v23  ;;  %vm506_vm4 = vcmp.gt.f32.partialorder %v403_v24, 0.0  ;;  %vm522_vm5 = vcmp.gt.f32.partialorder %v467_v25, 0.0 }
 0x10e   : > { %v538_v33 = vmul.f32 0.2, %v403_v24  ;;  %v406_v34 = vpop.f32.mrb[11].mxu0  ;;  %v470_v35 = vpop.f32.mrb[11].mxu1  ;;  %728 = vst.msk [vmem:[%s1117_s5 + $0x14] sm:$0xf] %vm722_vm2, %v884_v26  ;;  %v889_v36 = vpack.c.bf16 %v572_v32, %v572_v32  ;;  %v588_v37 = vsel %vm524_vm3, %v977_v20, %v556_v28 }
 0x10f   : > { %v554_v38 = vmul.f32 0.2, %v467_v25  ;;  %744 = vst.msk [vmem:[%s1117_s5 + $0x54] sm:$0xf] %vm722_vm2, %v900_v31  ;;  %v905_v39 = vpack.c.bf16 %v588_v37, %v588_v37  ;;  %vm509_vm6 = vcmp.gt.f32.partialorder %v962_v29, 0.0  ;;  %vm525_vm7 = vcmp.gt.f32.partialorder %v978_v30, 0.0 }
 0x110   : > { %v570_v40 = vsel %vm506_vm4, %v403_v24, %v538_v33  ;;  %v541_v41 = vmul.f32 0.2, %v962_v29  ;;  %733 = vst.msk [vmem:[%s1117_s5 + $0x28] sm:$0xf] %vm722_vm2, %v889_v36  ;;  %v557_v44 = vmul.f32 0.2, %v978_v30 }
 0x111   : > { %v887_v42 = vpack.c.bf16 %v570_v40, %v570_v40  ;;  %v586_v43 = vsel %vm522_vm5, %v467_v25, %v554_v38  ;;  %749 = vst.msk [vmem:[%s1117_s5 + $0x68] sm:$0xf] %vm722_vm2, %v905_v39  ;;  %vm507_vm8 = vcmp.gt.f32.partialorder %v406_v34, 0.0  ;;  %v539_v47 = vmul.f32 0.2, %v406_v34  ;;  %v965_v51 = vpop.f32.mrb[12].mxu0 }
 0x112   : > { %v903_v45 = vpack.c.bf16 %v586_v43, %v586_v43  ;;  %v573_v46 = vsel %vm509_vm6, %v962_v29, %v541_v41  ;;  %v589_v49 = vsel %vm525_vm7, %v978_v30, %v557_v44  ;;  %vm523_vm9 = vcmp.gt.f32.partialorder %v470_v35, 0.0  ;;  %v981_v52 = vpop.f32.mrb[12].mxu1  ;;  %v419_v56 = vpop.f32.mrb[13].mxu0 }
 0x113   : > { %731 = vst.msk [vmem:[%s1117_s5 + $0x20] sm:$0xf] %vm722_vm2, %v887_v42  ;;  %v890_v48 = vpack.c.bf16 %v573_v46, %v573_v46  ;;  %v555_v50 = vmul.f32 0.2, %v470_v35  ;;  %v906_v53 = vpack.c.bf16 %v589_v49, %v589_v49  ;;  %v571_v54 = vsel %vm507_vm8, %v406_v34, %v539_v47  ;;  %v483_v57 = vpop.f32.mrb[13].mxu1  ;;  %v966_v61 = vpop.f32.mrb[14].mxu0 }
 0x114   : > { %747 = vst.msk [vmem:[%s1117_s5 + $0x60] sm:$0xf] %vm722_vm2, %v903_v45  ;;  %vm512_vm10 = vcmp.gt.f32.partialorder %v965_v51, 0.0  ;;  %v544_v55 = vmul.f32 0.2, %v965_v51  ;;  %v888_v58 = vpack.c.bf16 %v571_v54, %v571_v54  ;;  %vm528_vm11 = vcmp.gt.f32.partialorder %v981_v52, 0.0 }
 0x115   : > { %734 = vst.msk [vmem:[%s1117_s5 + $0x2c] sm:$0xf] %vm722_vm2, %v890_v48  ;;  %v587_v59 = vsel %vm523_vm9, %v470_v35, %v555_v50  ;;  %v560_v60 = vmul.f32 0.2, %v981_v52  ;;  %v982_v62 = vpop.f32.mrb[14].mxu1  ;;  %vm510_vm12 = vcmp.gt.f32.partialorder %v419_v56, 0.0 }
 0x116   : > { %750 = vst.msk [vmem:[%s1117_s5 + $0x6c] sm:$0xf] %vm722_vm2, %v906_v53  ;;  %v904_v63 = vpack.c.bf16 %v587_v59, %v587_v59  ;;  %v576_v0 = vsel %vm512_vm10, %v965_v51, %v544_v55  ;;  %v542_v1 = vmul.f32 0.2, %v419_v56  ;;  %v422_v2 = vpop.f32.mrb[15].mxu0  ;;  %v486_v3 = vpop.f32.mrb[15].mxu1 }
 0x117   : > { %732 = vst.msk [vmem:[%s1117_s5 + $0x24] sm:$0xf] %vm722_vm2, %v888_v58  ;;  %v893_v4 = vpack.c.bf16 %v576_v0, %v576_v0  ;;  %v592_v5 = vsel %vm528_vm11, %v981_v52, %v560_v60  ;;  %vm526_vm13 = vcmp.gt.f32.partialorder %v483_v57, 0.0  ;;  %v558_v6 = vmul.f32 0.2, %v483_v57 }
 0x118   : > { %748 = vst.msk [vmem:[%s1117_s5 + $0x64] sm:$0xf] %vm722_vm2, %v904_v63  ;;  %v909_v7 = vpack.c.bf16 %v592_v5, %v592_v5  ;;  %v574_v8 = vsel %vm510_vm12, %v419_v56, %v542_v1  ;;  %vm513_vm14 = vcmp.gt.f32.partialorder %v966_v61, 0.0  ;;  %v545_v9 = vmul.f32 0.2, %v966_v61 }
 0x119   : > { %737 = vst.msk [vmem:[%s1117_s5 + $0x38] sm:$0xf] %vm722_vm2, %v893_v4  ;;  %v891_v10 = vpack.c.bf16 %v574_v8, %v574_v8  ;;  %v590_v11 = vsel %vm526_vm13, %v483_v57, %v558_v6  ;;  %vm529_vm15 = vcmp.gt.f32.partialorder %v982_v62, 0.0  ;;  %v561_v12 = vmul.f32 0.2, %v982_v62 }
 0x11a   : > { %753 = vst.msk [vmem:[%s1117_s5 + $0x78] sm:$0xf] %vm722_vm2, %v909_v7  ;;  %v907_v13 = vpack.c.bf16 %v590_v11, %v590_v11  ;;  %v577_v14 = vsel %vm513_vm14, %v966_v61, %v545_v9  ;;  %vm511_vm0 = vcmp.gt.f32.partialorder %v422_v2, 0.0  ;;  %v543_v15 = vmul.f32 0.2, %v422_v2 }
 0x11b   : > { %735 = vst.msk [vmem:[%s1117_s5 + $0x30] sm:$0xf] %vm722_vm2, %v891_v10  ;;  %v894_v16 = vpack.c.bf16 %v577_v14, %v577_v14  ;;  %v593_v17 = vsel %vm529_vm15, %v982_v62, %v561_v12  ;;  %vm527_vm1 = vcmp.gt.f32.partialorder %v486_v3, 0.0  ;;  %v559_v18 = vmul.f32 0.2, %v486_v3 }
 0x11c   : > { %751 = vst.msk [vmem:[%s1117_s5 + $0x70] sm:$0xf] %vm722_vm2, %v907_v13  ;;  %v910_v19 = vpack.c.bf16 %v593_v17, %v593_v17  ;;  %v575_v20 = vsel %vm511_vm0, %v422_v2, %v543_v15 }
 0x11d   : > { %738 = vst.msk [vmem:[%s1117_s5 + $0x3c] sm:$0xf] %vm722_vm2, %v894_v16  ;;  %v892_v21 = vpack.c.bf16 %v575_v20, %v575_v20  ;;  %v591_v22 = vsel %vm527_vm1, %v486_v3, %v559_v18 }
 0x11e   : > { %754 = vst.msk [vmem:[%s1117_s5 + $0x7c] sm:$0xf] %vm722_vm2, %v910_v19  ;;  %v908_v23 = vpack.c.bf16 %v591_v22, %v591_v22 }
 0x11f   : > { %736 = vst.msk [vmem:[%s1117_s5 + $0x34] sm:$0xf] %vm722_vm2, %v892_v21 }
 0x120   : > { %752 = vst.msk [vmem:[%s1117_s5 + $0x74] sm:$0xf] %vm722_vm2, %v908_v23 }
 0x121 PF: > { %s12_s9 = sadd.s32 1, %s1037_s9  }
 0x122   : > { %p9_p4 = scmp.ge.s32.totalorder %s12_s9, 4  }
 0x124   :  { %11 = sbr.rel (!%p9_p4) target bundleno = 1 (0x1), region = 58 }

// kernel: discriminator_forward.5
= control target key start
LH: loop header
LB: loop body
LE: loop exit
PB: predicated region body
PF: predicated region fallthrough
CT: control target
= control target key end

     0   :  { %s1691_s9 = smov 0   ;;  %s1995_s0 = inlined_call_operand.vmem [shape: bf16[2,64,1024], index: 0, kind: input, shape index: {}]   ;;  %s1996_s1 = inlined_call_operand.vmem [shape: bf16[1024,128], index: 1, kind: input, shape index: {}]   ;;  %s1997_s2 = inlined_call_operand.vmem [shape: bf16[2,64,128], index: 2, kind: output, shape index: {}]  }
   0x1 LB: > { %s1286_s10 = sadd.s32 4294967295, %s1674_s9   ;;  %p1290_p0 = scmp.ge.s32.totalorder %s1674_s9, 1  ;;  %s1674_s9 = sphi %s1691_s9, %s12_s9  }
   0x2   : > { %p112_p1 = scmp.lt.s32.totalorder %s1674_s9, 3 }
   0x4   : > { %p113_p2 = pnand %p1290_p0, %p112_p1 }
   0x5   : > { %v1602_v0 = vld [vmem:[%s1996_s1 + $0x40] sm:$0xff] (!%p113_p2)   ;;  %v1606_v4 = vld [vmem:[%s1996_s1 + $0x48] sm:$0xff] (!%p113_p2)   ;;  %v1610_v8 = vld [vmem:[%s1996_s1 + $0x50] sm:$0xff] (!%p113_p2)   ;;  %p134_p3 = scmp.lt.s32.totalorder (!%p113_p2), %s1286_s10, 1 }
   0x6   : > { %116 = sbr.rel (%p113_p2) target bundleno = 363 (0x16b), region = 28  ;;  %v1603_v1 = vld [vmem:[%s1996_s1 + $0xc0] sm:$0xff] (!%p113_p2)   ;;  %1434 = vmatprep.subr.bf16.mxu0 (!%p113_p2), %v1602_v0  ;;  %v1607_v5 = vld [vmem:[%s1996_s1 + $0xc8] sm:$0xff] (!%p113_p2)   ;;  %v1611_v9 = vld [vmem:[%s1996_s1 + $0xd0] sm:$0xff] (!%p113_p2)  }
   0x7   : > { %v1604_v2 = vld [vmem:[%s1996_s1] sm:$0xff] (!%p113_p2)   ;;  %1474 = vmatprep.subr.bf16.mxu1 (!%p113_p2), %v1603_v1  ;;  %v1608_v6 = vld [vmem:[%s1996_s1 + $0x8] sm:$0xff] (!%p113_p2)   ;;  %v1612_v10 = vld [vmem:[%s1996_s1 + $0x10] sm:$0xff] (!%p113_p2)  }
   0x8   : > { %v1605_v3 = vld [vmem:[%s1996_s1 + $0x80] sm:$0xff] (!%p113_p2)   ;;  %1435 = vmatpush3.bf16.msra.mxu0 (!%p113_p2), %v1604_v2  ;;  %v1609_v7 = vld [vmem:[%s1996_s1 + $0x88] sm:$0xff] (!%p113_p2)   ;;  %v1613_v11 = vld [vmem:[%s1996_s1 + $0x90] sm:$0xff] (!%p113_p2)  }
   0x9   : > { %1475 = vmatpush3.bf16.msra.mxu1 (!%p113_p2), %v1605_v3  ;;  %1436 = vmatprep.subr.bf16.mxu0 (!%p113_p2), %v1606_v4  ;;  %v1614_v12 = vld [vmem:[%s1996_s1 + $0x58] sm:$0xff] (!%p113_p2)   ;;  %v1618_v16 = vld [vmem:[%s1996_s1 + $0x60] sm:$0xff] (!%p113_p2)   ;;  %v1622_v20 = vld [vmem:[%s1996_s1 + $0x68] sm:$0xff] (!%p113_p2)  }
   0xa   : > { %1476 = vmatprep.subr.bf16.mxu1 (!%p113_p2), %v1607_v5  ;;  %v1615_v13 = vld [vmem:[%s1996_s1 + $0xd8] sm:$0xff] (!%p113_p2)   ;;  %v1619_v17 = vld [vmem:[%s1996_s1 + $0xe0] sm:$0xff] (!%p113_p2)   ;;  %v1623_v21 = vld [vmem:[%s1996_s1 + $0xe8] sm:$0xff] (!%p113_p2)  }
   0xb   : > { %v1616_v14 = vld [vmem:[%s1996_s1 + $0x18] sm:$0xff] (!%p113_p2)   ;;  %v1620_v18 = vld [vmem:[%s1996_s1 + $0x20] sm:$0xff] (!%p113_p2)   ;;  %v1624_v22 = vld [vmem:[%s1996_s1 + $0x28] sm:$0xff] (!%p113_p2)  }
   0xc   : > { %1437 = vmatpush3.bf16.msra.mxu0 (!%p113_p2), %v1608_v6  ;;  %v1617_v15 = vld [vmem:[%s1996_s1 + $0x98] sm:$0xff] (!%p113_p2)   ;;  %v1621_v19 = vld [vmem:[%s1996_s1 + $0xa0] sm:$0xff] (!%p113_p2)   ;;  %v1625_v23 = vld [vmem:[%s1996_s1 + $0xa8] sm:$0xff] (!%p113_p2)  }
   0xd   : > { %1477 = vmatpush3.bf16.msra.mxu1 %v1609_v7  ;;  %1438 = vmatprep.subr.bf16.mxu0 %v1610_v8  ;;  %s1999_s10 = smov (!%p134_p3, %s1286_s10), 1  ;;  %v1626_v24 = vld [vmem:[%s1996_s1 + $0x70] sm:$0xff]   ;;  %v1630_v28 = vld [vmem:[%s1996_s1 + $0x78] sm:$0xff]   ;;  %v1634_v40 = vld [vmem:[%s1996_s1 + $0x140] sm:$0xff]  }
   0xe   : > { %1478 = vmatprep.subr.bf16.mxu1 %v1611_v9  ;;  %v1627_v25 = vld [vmem:[%s1996_s1 + $0xf0] sm:$0xff]   ;;  %s1401_s13 = sshll.u32 %s1999_s10, 8  ;;  %v1631_v29 = vld [vmem:[%s1996_s1 + $0xf8] sm:$0xff]   ;;  %v1635_v41 = vld [vmem:[%s1996_s1 + $0x1c0] sm:$0xff]  }
   0xf   : > { %v1628_v26 = vld [vmem:[%s1996_s1 + $0x30] sm:$0xff]   ;;  %s1799_s22 = scalar_lea.vmem %s1995_s0, %s1401_s13  ;;  %v1632_v30 = vld [vmem:[%s1996_s1 + $0x38] sm:$0xff]   ;;  %v1636_v42 = vld [vmem:[%s1996_s1 + $0x100] sm:$0xff]  }
  0x10   : > { %1439 = vmatpush3.bf16.msra.mxu0 %v1612_v10  ;;  %v1629_v27 = vld [vmem:[%s1996_s1 + $0xb0] sm:$0xff]   ;;  %v1633_v31 = vld [vmem:[%s1996_s1 + $0xb8] sm:$0xff]   ;;  %v145_v32 = vld [vmem:[%s1799_s22] sm:$0xff] }
  0x11   : > { %1479 = vmatpush3.bf16.msra.mxu1 %v1613_v11  ;;  %1440 = vmatprep.subr.bf16.mxu0 %v1614_v12  ;;  %v149_v33 = vld [vmem:[%s1799_s22 + $0x20] sm:$0xff]  ;;  %v146_v34 = vld [vmem:[%s1799_s22 + $0x8] sm:$0xff]  ;;  %v1642_v56 = vld [vmem:[%s1996_s1 + $0x150] sm:$0xff]  }
  0x12   : > { %1480 = vmatprep.subr.bf16.mxu1 %v1615_v13  ;;  %v1295_v35 = vcombine.low %v145_v32, %v149_v33  ;;  %v1296_v36 = vcombine.high %v145_v32, %v149_v33  ;;  %v150_v37 = vld [vmem:[%s1799_s22 + $0x28] sm:$0xff]  ;;  %v1637_v43 = vld [vmem:[%s1996_s1 + $0x180] sm:$0xff]   ;;  %v1643_v57 = vld [vmem:[%s1996_s1 + $0x1d0] sm:$0xff]  }
  0x13   : > { %v1297_v38 = vcombine.low %v146_v34, %v150_v37  ;;  %v1298_v39 = vcombine.high %v146_v34, %v150_v37  ;;  %v1638_v44 = vld [vmem:[%s1996_s1 + $0x148] sm:$0xff]   ;;  %v153_v48 = vld [vmem:[%s1799_s22 + $0x40] sm:$0xff]  ;;  %v1644_v58 = vld [vmem:[%s1996_s1 + $0x110] sm:$0xff]  }
  0x14   : > { %1441 = vmatpush3.bf16.msra.mxu0 %v1616_v14  ;;  %881 = vmatprep.mubr.bf16.mxu0 %v1296_v36  ;;  %v1639_v45 = vld [vmem:[%s1996_s1 + $0x1c8] sm:$0xff]   ;;  %v157_v49 = vld [vmem:[%s1799_s22 + $0x60] sm:$0xff]  ;;  %v1645_v59 = vld [vmem:[%s1996_s1 + $0x190] sm:$0xff]  }
  0x15   : > { %1481 = vmatpush3.bf16.msra.mxu1 %v1617_v15  ;;  %1442 = vmatprep.subr.bf16.mxu0 %v1618_v16  ;;  %v1640_v46 = vld [vmem:[%s1996_s1 + $0x108] sm:$0xff]   ;;  %v1304_v50 = vcombine.high %v153_v48, %v157_v49  ;;  %v1303_v53 = vcombine.low %v153_v48, %v157_v49  ;;  %v1646_v60 = vld [vmem:[%s1996_s1 + $0x158] sm:$0xff]   ;;  %v161_v0 = vld [vmem:[%s1799_s22 + $0x80] sm:$0xff] }
  0x16   : > { %1482 = vmatprep.subr.bf16.mxu1 %v1619_v17  ;;  %946 = vmatprep.mubr.bf16.mxu1 %v1298_v39  ;;  %v1641_v47 = vld [vmem:[%s1996_s1 + $0x188] sm:$0xff]   ;;  %v1647_v61 = vld [vmem:[%s1996_s1 + $0x1d8] sm:$0xff]   ;;  %v165_v1 = vld [vmem:[%s1799_s22 + $0xa0] sm:$0xff] }
  0x17   : > { %v154_v51 = vld [vmem:[%s1799_s22 + $0x48] sm:$0xff]  ;;  %v1648_v62 = vld [vmem:[%s1996_s1 + $0x118] sm:$0xff]   ;;  %v1312_v4 = vcombine.high %v161_v0, %v165_v1  ;;  %v1311_v6 = vcombine.low %v161_v0, %v165_v1  ;;  %v1650_v8 = vld [vmem:[%s1996_s1 + $0x160] sm:$0xff]  }
  0x18   : > { %1443 = vmatpush3.bf16.msra.mxu0 %v1620_v18  ;;  %v158_v52 = vld [vmem:[%s1799_s22 + $0x68] sm:$0xff]  ;;  %v1649_v63 = vld [vmem:[%s1996_s1 + $0x198] sm:$0xff]   ;;  %v1651_v9 = vld [vmem:[%s1996_s1 + $0x1e0] sm:$0xff]  }
  0x19   : > { %1483 = vmatpush3.bf16.msra.mxu1 %v1621_v19  ;;  %1444 = vmatprep.subr.bf16.mxu0 %v1622_v20  ;;  %v1306_v54 = vcombine.high %v154_v51, %v158_v52  ;;  %v1305_v55 = vcombine.low %v154_v51, %v158_v52  ;;  %v162_v2 = vld [vmem:[%s1799_s22 + $0x88] sm:$0xff]  ;;  %v1652_v10 = vld [vmem:[%s1996_s1 + $0x120] sm:$0xff]   ;;  %v147_v32 = vld [vmem:[%s1799_s22 + $0x10] sm:$0xff] }
  0x1a   : > { %1484 = vmatprep.subr.bf16.mxu1 %v1623_v21  ;;  %v166_v3 = vld [vmem:[%s1799_s22 + $0xa8] sm:$0xff]  ;;  %v1653_v11 = vld [vmem:[%s1996_s1 + $0x1a0] sm:$0xff]   ;;  %v151_v33 = vld [vmem:[%s1799_s22 + $0x30] sm:$0xff] }
  0x1b   : > { %v1314_v5 = vcombine.high %v162_v2, %v166_v3  ;;  %v1313_v7 = vcombine.low %v162_v2, %v166_v3  ;;  %v1654_v12 = vld [vmem:[%s1996_s1 + $0x168] sm:$0xff]   ;;  %v169_v16 = vld [vmem:[%s1799_s22 + $0xc0] sm:$0xff]  ;;  %v1299_v34 = vcombine.low %v147_v32, %v151_v33  ;;  %v148_v36 = vld [vmem:[%s1799_s22 + $0x18] sm:$0xff] }
  0x1c   : > { %1445 = vmatpush3.bf16.msra.mxu0 %v1624_v22  ;;  %v1655_v13 = vld [vmem:[%s1996_s1 + $0x1e8] sm:$0xff]   ;;  %v173_v17 = vld [vmem:[%s1799_s22 + $0xe0] sm:$0xff]  ;;  %v152_v37 = vld [vmem:[%s1799_s22 + $0x38] sm:$0xff] }
  0x1d   : > { %1485 = vmatpush3.bf16.msra.mxu1 %v1625_v23  ;;  %1446 = vmatprep.subr.bf16.mxu0 %v1626_v24  ;;  %v1656_v14 = vld [vmem:[%s1996_s1 + $0x128] sm:$0xff]   ;;  %v1320_v19 = vcombine.high %v169_v16, %v173_v17  ;;  %v1319_v21 = vcombine.low %v169_v16, %v173_v17  ;;  %v1658_v24 = vld [vmem:[%s1996_s1 + $0x170] sm:$0xff]   ;;  %v1301_v39 = vcombine.low %v148_v36, %v152_v37  ;;  %v164_v48 = vld [vmem:[%s1799_s22 + $0x98] sm:$0xff] }
  0x1e   : > { %1486 = vmatprep.subr.bf16.mxu1 %v1627_v25  ;;  %v1657_v15 = vld [vmem:[%s1996_s1 + $0x1a8] sm:$0xff]   ;;  %v1659_v25 = vld [vmem:[%s1996_s1 + $0x1f0] sm:$0xff]   ;;  %v168_v49 = vld [vmem:[%s1799_s22 + $0xb8] sm:$0xff] }
  0x1f   : > { %v170_v18 = vld [vmem:[%s1799_s22 + $0xc8] sm:$0xff] }
  0x20   : > { %1447 = vmatpush3.bf16.msra.mxu0 %v1628_v26  ;;  %v174_v20 = vld [vmem:[%s1799_s22 + $0xe8] sm:$0xff]  ;;  %v1660_v26 = vld [vmem:[%s1996_s1 + $0x130] sm:$0xff]  }
  0x21   : > { %1487 = vmatpush3.bf16.msra.mxu1 %v1629_v27  ;;  %1448 = vmatprep.subr.bf16.mxu0 %v1630_v28  ;;  %v1322_v22 = vcombine.high %v170_v18, %v174_v20  ;;  %v1321_v23 = vcombine.low %v170_v18, %v174_v20  ;;  %v1661_v27 = vld [vmem:[%s1996_s1 + $0x1b0] sm:$0xff]   ;;  %v1662_v28 = vld [vmem:[%s1996_s1 + $0x178] sm:$0xff]  }
  0x22   : > { %1488 = vmatprep.subr.bf16.mxu1 %v1631_v29  ;;  %v1663_v29 = vld [vmem:[%s1996_s1 + $0x1f8] sm:$0xff]  }
  0x24   : > { %1449 = vmatpush3.bf16.msra.mxu0 %v1632_v30  ;;  %v1664_v30 = vld [vmem:[%s1996_s1 + $0x138] sm:$0xff]  }
  0x25   : > { %1489 = vmatpush3.bf16.msra.mxu1 %v1633_v31  ;;  %1514 = vmatprep.subr.bf16.mxu0 %v1634_v40  ;;  %v1665_v31 = vld [vmem:[%s1996_s1 + $0x1b8] sm:$0xff]   ;;  %v1302_v40 = vcombine.high %v148_v36, %v152_v37 }
  0x26   : > { %1554 = vmatprep.subr.bf16.mxu1 %v1635_v41  ;;  %v159_v41 = vld [vmem:[%s1799_s22 + $0x70] sm:$0xff] }
  0x27   : > { %882 = vmatmul.mubr.bf16.vlgmr.msra.gmra.mrb[0].mxu0 %v1295_v35  ;;  %v1300_v35 = vcombine.high %v147_v32, %v151_v33 }
  0x28   : > { %947 = vmatmul.mubr.bf16.vlgmr.msra.gmra.mrb[0].mxu1 %v1297_v38  ;;  %1515 = vmatpush3.bf16.msra.mxu0 %v1636_v42  ;;  %v155_v38 = vld [vmem:[%s1799_s22 + $0x50] sm:$0xff]  ;;  %v156_v42 = vld [vmem:[%s1799_s22 + $0x58] sm:$0xff] }
  0x29   : > { %1555 = vmatpush3.bf16.msra.mxu1 %v1637_v43  ;;  %1516 = vmatprep.subr.bf16.mxu0 %v1638_v44  ;;  %v160_v43 = vld [vmem:[%s1799_s22 + $0x78] sm:$0xff]  ;;  %v1308_v44 = vcombine.high %v155_v38, %v159_v41 }
  0x2a   : > { %1556 = vmatprep.subr.bf16.mxu1 %v1639_v45  ;;  %889 = vmatprep.mubr.bf16.mxu0 %v1304_v50  ;;  %v1310_v45 = vcombine.high %v156_v42, %v160_v43  ;;  %v1307_v50 = vcombine.low %v155_v38, %v159_v41  ;;  %v1309_v51 = vcombine.low %v156_v42, %v160_v43 }
  0x2b   : > { %954 = vmatprep.mubr.bf16.mxu1 %v1306_v54  ;;  %v171_v54 = vld [vmem:[%s1799_s22 + $0xd0] sm:$0xff] }
  0x2c   : > { %1517 = vmatpush3.bf16.msra.mxu0 %v1640_v46  ;;  %v163_v46 = vld [vmem:[%s1799_s22 + $0x90] sm:$0xff] }
  0x2d   : > { %1557 = vmatpush3.bf16.msra.mxu1 %v1641_v47  ;;  %1518 = vmatprep.subr.bf16.mxu0 %v1642_v56  ;;  %v167_v47 = vld [vmem:[%s1799_s22 + $0xb0] sm:$0xff]  ;;  %v172_v56 = vld [vmem:[%s1799_s22 + $0xd8] sm:$0xff] }
  0x2e   : > { %1558 = vmatprep.subr.bf16.mxu1 %v1643_v57  ;;  %v1316_v52 = vcombine.high %v163_v46, %v167_v47  ;;  %v176_v57 = vld [vmem:[%s1799_s22 + $0xf8] sm:$0xff] }
  0x2f   : > { %890 = vmatmul.mubr.bf16.gmra.mrb[4].mxu0 %v1303_v53  ;;  %v1318_v53 = vcombine.high %v164_v48, %v168_v49 }
  0x30   : > { %955 = vmatmul.mubr.bf16.gmra.mrb[4].mxu1 %v1305_v55  ;;  %1519 = vmatpush3.bf16.msra.mxu0 %v1644_v58  ;;  %v175_v55 = vld [vmem:[%s1799_s22 + $0xf0] sm:$0xff]  ;;  %v1315_v58 = vcombine.low %v163_v46, %v167_v47  ;;  %s1402_s22 = sshll.u32 %s1999_s10, 5 }
  0x31   : > { %1559 = vmatpush3.bf16.msra.mxu1 %v1645_v59  ;;  %1520 = vmatprep.subr.bf16.mxu0 %v1646_v60  ;;  %v1317_v59 = vcombine.low %v164_v48, %v168_v49  ;;  %v1324_v60 = vcombine.high %v171_v54, %v175_v55  ;;  %s143_s10 = scalar_lea.vmem %s1997_s2, %s1402_s22 }
  0x32   : > { %1560 = vmatprep.subr.bf16.mxu1 %v1647_v61  ;;  %897 = vmatprep.mubr.bf16.mxu0 %v1312_v4  ;;  %v1326_v61 = vcombine.high %v172_v56, %v176_v57 }
  0x33   : > { %962 = vmatprep.mubr.bf16.mxu1 %v1314_v5 }
  0x34   : > { %1521 = vmatpush3.bf16.msra.mxu0 %v1648_v62  ;;  %v1323_v62 = vcombine.low %v171_v54, %v175_v55 }
  0x35   : > { %1561 = vmatpush3.bf16.msra.mxu1 %v1649_v63  ;;  %1522 = vmatprep.subr.bf16.mxu0 %v1650_v8  ;;  %v1325_v63 = vcombine.low %v172_v56, %v176_v57 }
  0x36   : > { %1562 = vmatprep.subr.bf16.mxu1 %v1651_v9 }
  0x37   : > { %898 = vmatmul.mubr.bf16.gmra.mrb[8].mxu0 %v1311_v6 }
  0x38   : > { %963 = vmatmul.mubr.bf16.gmra.mrb[8].mxu1 %v1313_v7  ;;  %1523 = vmatpush3.bf16.msra.mxu0 %v1652_v10 }
  0x39   : > { %1563 = vmatpush3.bf16.msra.mxu1 %v1653_v11  ;;  %1524 = vmatprep.subr.bf16.mxu0 %v1654_v12 }
  0x3a   : > { %1564 = vmatprep.subr.bf16.mxu1 %v1655_v13  ;;  %905 = vmatprep.mubr.bf16.mxu0 %v1320_v19 }
  0x3b   : > { %970 = vmatprep.mubr.bf16.mxu1 %v1322_v22 }
  0x3c   : > { %1525 = vmatpush3.bf16.msra.mxu0 %v1656_v14 }
  0x3d   : > { %1565 = vmatpush3.bf16.msra.mxu1 %v1657_v15  ;;  %1526 = vmatprep.subr.bf16.mxu0 %v1658_v24 }
  0x3e   : > { %1566 = vmatprep.subr.bf16.mxu1 %v1659_v25 }
  0x3f   : > { %906 = vmatmul.mubr.bf16.gmra.mrb[12].mxu0 %v1319_v21 }
  0x40   : > { %971 = vmatmul.mubr.bf16.gmra.mrb[12].mxu1 %v1321_v23  ;;  %1527 = vmatpush3.bf16.msra.mxu0 %v1660_v26 }
  0x41   : > { %1567 = vmatpush3.bf16.msra.mxu1 %v1661_v27  ;;  %1528 = vmatprep.subr.bf16.mxu0 %v1662_v28 }
  0x42   : > { %1568 = vmatprep.subr.bf16.mxu1 %v1663_v29  ;;  %1011 = vmatprep.mubr.bf16.mxu0 %v1300_v35 }
  0x43   : > { %1076 = vmatprep.mubr.bf16.mxu1 %v1302_v40 }
  0x44   : > { %1529 = vmatpush3.bf16.msra.mxu0 %v1664_v30 }
  0x45   : > { %1569 = vmatpush3.bf16.msra.mxu1 %v1665_v31 }
  0x47   : > { %1012 = vmatmul.mubr.bf16.vlgmr.msra.gmra.mrb[16].mxu0 %v1299_v34 }
  0x48   : > { %1077 = vmatmul.mubr.bf16.vlgmr.msra.gmra.mrb[16].mxu1 %v1301_v39  ;;  %1019 = vmatprep.mubr.bf16.mxu0 %v1308_v44 }
  0x49   : > { %1084 = vmatprep.mubr.bf16.mxu1 %v1310_v45 }
  0x4f   : > { %1020 = vmatmul.mubr.bf16.gmra.mrb[20].mxu0 %v1307_v50 }
  0x50   : > { %1085 = vmatmul.mubr.bf16.gmra.mrb[20].mxu1 %v1309_v51  ;;  %1027 = vmatprep.mubr.bf16.mxu0 %v1316_v52 }
  0x51   : > { %1092 = vmatprep.mubr.bf16.mxu1 %v1318_v53 }
  0x57   : > { %1028 = vmatmul.mubr.bf16.gmra.mrb[24].mxu0 %v1315_v58 }
  0x58   : > { %1093 = vmatmul.mubr.bf16.gmra.mrb[24].mxu1 %v1317_v59  ;;  %1035 = vmatprep.mubr.bf16.mxu0 %v1324_v60 }
  0x59   : > { %1100 = vmatprep.mubr.bf16.mxu1 %v1326_v61 }
  0x5f   : > { %1036 = vmatmul.mubr.bf16.gmra.mrb[28].mxu0 %v1323_v62 }
  0x60   : > { %1101 = vmatmul.mubr.bf16.gmra.mrb[28].mxu1 %v1325_v63 }
  0xfa   : > { %v1450_v0 = vpop.f32.mrb[0].mxu0 }
  0xfb   : > { %v1490_v1 = vpop.f32.mrb[0].mxu1  ;;  %v1451_v2 = vpop.f32.mrb[1].mxu0 }
  0xfc   : > { %v1452_v3 = vadd.f32 %v1451_v2, %v1450_v0  ;;  %v1491_v4 = vpop.f32.mrb[1].mxu1  ;;  %v1453_v5 = vpop.f32.mrb[2].mxu0 }
  0xfd   : > { %v1492_v6 = vadd.f32 %v1491_v4, %v1490_v1  ;;  %v1493_v7 = vpop.f32.mrb[2].mxu1  ;;  %v1454_v8 = vpop.f32.mrb[3].mxu0 }
  0xfe   : > { %v1455_v9 = vadd.f32 %v1454_v8, %v1453_v5  ;;  %v1494_v10 = vpop.f32.mrb[3].mxu1 }
  0xff   : > { %v949_v11 = vadd.f32 %v1492_v6, %v1452_v3  ;;  %v1495_v12 = vadd.f32 %v1494_v10, %v1493_v7 }
 0x101   : > { %v952_v13 = vadd.f32 %v1495_v12, %v1455_v9 }
 0x102   : > { %v1456_v14 = vpop.f32.mrb[4].mxu0 }
 0x103   : > { %v1496_v15 = vpop.f32.mrb[4].mxu1  ;;  %v1457_v16 = vpop.f32.mrb[5].mxu0 }
 0x104   : > { %v1458_v17 = vadd.f32 %v1457_v16, %v1456_v14  ;;  %v1497_v18 = vpop.f32.mrb[5].mxu1  ;;  %v1459_v19 = vpop.f32.mrb[6].mxu0 }
 0x105   : > { %v1498_v20 = vadd.f32 %v1497_v18, %v1496_v15  ;;  %v1499_v21 = vpop.f32.mrb[6].mxu1  ;;  %v1460_v22 = vpop.f32.mrb[7].mxu0 }
 0x106   : > { %v1461_v23 = vadd.f32 %v1460_v22, %v1459_v19  ;;  %v1500_v24 = vpop.f32.mrb[7].mxu1 }
 0x107   : > { %v957_v25 = vadd.f32 %v1498_v20, %v1458_v17  ;;  %v1501_v26 = vadd.f32 %v1500_v24, %v1499_v21 }
 0x109   : > { %v1935_v27 = vadd.f32 %v1501_v26, %v1461_v23 }
 0x10a   : > { %v1462_v28 = vpop.f32.mrb[8].mxu0 }
 0x10b   : > { %v1502_v29 = vpop.f32.mrb[8].mxu1  ;;  %v1463_v30 = vpop.f32.mrb[9].mxu0 }
 0x10c   : > { %v1503_v31 = vpop.f32.mrb[9].mxu1  ;;  %v1464_v32 = vadd.f32 %v1463_v30, %v1462_v28  ;;  %v1465_v34 = vpop.f32.mrb[10].mxu0 }
 0x10d   : > { %v1504_v33 = vadd.f32 %v1503_v31, %v1502_v29  ;;  %v1505_v35 = vpop.f32.mrb[10].mxu1  ;;  %v1466_v36 = vpop.f32.mrb[11].mxu0 }
 0x10e   : > { %v1506_v37 = vpop.f32.mrb[11].mxu1  ;;  %v1467_v39 = vadd.f32 %v1466_v36, %v1465_v34 }
 0x10f   : > { %v1937_v38 = vadd.f32 %v1504_v33, %v1464_v32  ;;  %v1507_v40 = vadd.f32 %v1506_v37, %v1505_v35 }
 0x111   : > { %v1939_v41 = vadd.f32 %v1507_v40, %v1467_v39 }
 0x112   : > { %v1468_v42 = vpop.f32.mrb[12].mxu0 }
 0x113   : > { %v1508_v43 = vpop.f32.mrb[12].mxu1  ;;  %v1469_v44 = vpop.f32.mrb[13].mxu0 }
 0x114   : > { %v1470_v45 = vadd.f32 %v1469_v44, %v1468_v42  ;;  %v1509_v46 = vpop.f32.mrb[13].mxu1  ;;  %v1471_v47 = vpop.f32.mrb[14].mxu0 }
 0x115   : > { %v1510_v48 = vadd.f32 %v1509_v46, %v1508_v43  ;;  %v1511_v49 = vpop.f32.mrb[14].mxu1  ;;  %v1472_v50 = vpop.f32.mrb[15].mxu0 }
 0x116   : > { %v1473_v51 = vadd.f32 %v1472_v50, %v1471_v47  ;;  %v1512_v52 = vpop.f32.mrb[15].mxu1 }
 0x117   : > { %v1941_v53 = vadd.f32 %v1510_v48, %v1470_v45  ;;  %v1513_v54 = vadd.f32 %v1512_v52, %v1511_v49 }
 0x119   : > { %v1943_v55 = vadd.f32 %v1513_v54, %v1473_v51 }
 0x11a   : > { %v1530_v56 = vpop.f32.mrb[16].mxu0 }
 0x11b   : > { %v1570_v57 = vpop.f32.mrb[16].mxu1  ;;  %v1531_v58 = vpop.f32.mrb[17].mxu0 }
 0x11c   : > { %v1532_v59 = vadd.f32 %v1531_v58, %v1530_v56  ;;  %v1571_v60 = vpop.f32.mrb[17].mxu1  ;;  %v1533_v61 = vpop.f32.mrb[18].mxu0 }
 0x11d   : > { %v1572_v62 = vadd.f32 %v1571_v60, %v1570_v57  ;;  %v1573_v63 = vpop.f32.mrb[18].mxu1  ;;  %v1534_v0 = vpop.f32.mrb[19].mxu0 }
 0x11e   : > { %v1014_v1 = vadd.f32 %v1532_v59, %v949_v11  ;;  %v1535_v2 = vadd.f32 %v1534_v0, %v1533_v61  ;;  %v1574_v3 = vpop.f32.mrb[19].mxu1 }
 0x11f   : > { %v1575_v4 = vadd.f32 %v1574_v3, %v1573_v63 }
 0x120   : > { %v1945_v5 = vadd.f32 %v1572_v62, %v1014_v1  ;;  %v1017_v6 = vadd.f32 %v1535_v2, %v952_v13 }
 0x122   : > { %v1947_v7 = vadd.f32 %v1575_v4, %v1017_v6  ;;  %v1536_v8 = vpop.f32.mrb[20].mxu0  ;;  %v1124_v12 = vmul.f32 %v1945_v5, %v1945_v5 }
 0x123   : > { %v1576_v9 = vpop.f32.mrb[20].mxu1  ;;  %v1537_v10 = vpop.f32.mrb[21].mxu0 }
 0x124   : > { %v1109_v14 = vadd.f32 %v1947_v7, %v1945_v5  ;;  %v1125_v11 = vmul.f32 %v1947_v7, %v1947_v7  ;;  %v1538_v15 = vadd.f32 %v1537_v10, %v1536_v8  ;;  %v1577_v16 = vpop.f32.mrb[21].mxu1  ;;  %v1539_v17 = vpop.f32.mrb[22].mxu0 }
 0x125   : > { %v1578_v18 = vadd.f32 %v1577_v16, %v1576_v9  ;;  %v1579_v19 = vpop.f32.mrb[22].mxu1  ;;  %v1540_v13 = vpop.f32.mrb[23].mxu0 }
 0x126   : > { %v1132_v20 = vadd.f32 %v1125_v11, %v1124_v12  ;;  %v1022_v21 = vadd.f32 %v1538_v15, %v957_v25  ;;  %v1541_v22 = vadd.f32 %v1540_v13, %v1539_v17  ;;  %v1580_v23 = vpop.f32.mrb[23].mxu1 }
 0x127   : > { %v1581_v24 = vadd.f32 %v1580_v23, %v1579_v19 }
 0x128   : > { %v1955_v26 = vadd.f32 %v1578_v18, %v1022_v21  ;;  %v1025_v28 = vadd.f32 %v1541_v22, %v1935_v27 }
 0x12a   : > { %v1110_v29 = vadd.f32 %v1109_v14, %v1955_v26  ;;  %v1126_v30 = vmul.f32 %v1955_v26, %v1955_v26  ;;  %v1961_v31 = vadd.f32 %v1581_v24, %v1025_v28  ;;  %v1542_v32 = vpop.f32.mrb[24].mxu0 }
 0x12b   : > { %v1582_v33 = vpop.f32.mrb[24].mxu1  ;;  %v1543_v34 = vpop.f32.mrb[25].mxu0 }
 0x12c   : > { %v1133_v35 = vadd.f32 %v1132_v20, %v1126_v30  ;;  %v1111_v25 = vadd.f32 %v1110_v29, %v1961_v31  ;;  %v1127_v36 = vmul.f32 %v1961_v31, %v1961_v31  ;;  %v1544_v37 = vadd.f32 %v1543_v34, %v1542_v32  ;;  %v1583_v39 = vpop.f32.mrb[25].mxu1  ;;  %v1545_v40 = vpop.f32.mrb[26].mxu0 }
 0x12d   : > { %v1584_v27 = vadd.f32 %v1583_v39, %v1582_v33  ;;  %v1585_v42 = vpop.f32.mrb[26].mxu1  ;;  %v1546_v43 = vpop.f32.mrb[27].mxu0 }
 0x12e   : > { %v1134_v44 = vadd.f32 %v1133_v35, %v1127_v36  ;;  %v1030_v45 = vadd.f32 %v1544_v37, %v1937_v38  ;;  %v1547_v46 = vadd.f32 %v1546_v43, %v1545_v40  ;;  %v1586_v47 = vpop.f32.mrb[27].mxu1 }
 0x12f   : > { %v1587_v48 = vadd.f32 %v1586_v47, %v1585_v42 }
 0x130   : > { %v1967_v49 = vadd.f32 %v1584_v27, %v1030_v45  ;;  %v1033_v50 = vadd.f32 %v1547_v46, %v1939_v41 }
 0x132   : > { %v1112_v51 = vadd.f32 %v1111_v25, %v1967_v49  ;;  %v1128_v52 = vmul.f32 %v1967_v49, %v1967_v49  ;;  %v1098_v54 = vadd.f32 %v1587_v48, %v1033_v50  ;;  %v1548_v56 = vpop.f32.mrb[28].mxu0 }
 0x133   : > { %v1588_v57 = vpop.f32.mrb[28].mxu1  ;;  %v1549_v58 = vpop.f32.mrb[29].mxu0 }
 0x134   : > { %v1135_v59 = vadd.f32 %v1134_v44, %v1128_v52  ;;  %v1113_v60 = vadd.f32 %v1112_v51, %v1098_v54  ;;  %v1129_v61 = vmul.f32 %v1098_v54, %v1098_v54  ;;  %v1550_v38 = vadd.f32 %v1549_v58, %v1548_v56  ;;  %v1589_v62 = vpop.f32.mrb[29].mxu1  ;;  %v1551_v63 = vpop.f32.mrb[30].mxu0 }
 0x135   : > { %v1590_v0 = vadd.f32 %v1589_v62, %v1588_v57  ;;  %v1591_v1 = vpop.f32.mrb[30].mxu1  ;;  %v1552_v2 = vpop.f32.mrb[31].mxu0 }
 0x136   : > { %v1136_v3 = vadd.f32 %v1135_v59, %v1129_v61  ;;  %v1038_v41 = vadd.f32 %v1550_v38, %v1941_v53  ;;  %v1553_v4 = vadd.f32 %v1552_v2, %v1551_v63  ;;  %v1592_v6 = vpop.f32.mrb[31].mxu1 }
 0x137   : > { %v1593_v8 = vadd.f32 %v1592_v6, %v1591_v1 }
 0x138   : > { %v1103_v9 = vadd.f32 %v1590_v0, %v1038_v41  ;;  %v1041_v10 = vadd.f32 %v1553_v4, %v1943_v55 }
 0x13a   : > { %v1114_v12 = vadd.f32 %v1113_v60, %v1103_v9  ;;  %v1130_v14 = vmul.f32 %v1103_v9, %v1103_v9  ;;  %v1106_v11 = vadd.f32 %v1593_v8, %v1041_v10 }
 0x13c   : > { %v1137_v15 = vadd.f32 %v1136_v3, %v1130_v14  ;;  %v1115_v16 = vadd.f32 %v1114_v12, %v1106_v11  ;;  %v1131_v17 = vmul.f32 %v1106_v11, %v1106_v11 }
 0x13e   : > { %v1116_v18 = vrot.slane %v1115_v16, 4  ;;  %v1138_v19 = vadd.f32 %v1137_v15, %v1131_v17 }
 0x140   : > { %v1117_v13 = vadd.f32 %v1116_v18, %v1115_v16  ;;  %v1139_v20 = vrot.slane %v1138_v19, 4 }
 0x142   : > { %v1118_v21 = vrot.slane %v1117_v13, 2  ;;  %v1140_v22 = vadd.f32 %v1139_v20, %v1138_v19 }
 0x144   : > { %v1119_v23 = vadd.f32 %v1118_v21, %v1117_v13  ;;  %v1141_v53 = vrot.slane %v1140_v22, 2 }
 0x146   : > { %v1120_v24 = vrot.slane %v1119_v23, 1  ;;  %v1142_v28 = vadd.f32 %v1141_v53, %v1140_v22 }
 0x148   : > { %v1121_v29 = vadd.f32 %v1120_v24, %v1119_v23  ;;  %v1143_v30 = vrot.slane %v1142_v28, 1 }
 0x14a   : > { %v1123_v32 = vmul.f32 0.015625, %v1121_v29  ;;  %v1144_v55 = vadd.f32 %v1143_v30, %v1142_v28 }
 0x14c   : > { %v1145_v33 = vmul.f32 0.015625, %v1144_v55  ;;  %v1146_v34 = vmul.f32 %v1123_v32, %v1123_v32  ;;  %v1149_v35 = vsub.f32 %v1945_v5, %v1123_v32  ;;  %v1150_v25 = vsub.f32 %v1947_v7, %v1123_v32 }
 0x14d   : > { %v1151_v36 = vsub.f32 %v1955_v26, %v1123_v32  ;;  %v1152_v37 = vsub.f32 %v1961_v31, %v1123_v32  ;;  %v1153_v39 = vsub.f32 %v1967_v49, %v1123_v32  ;;  %v1154_v40 = vsub.f32 %v1098_v54, %v1123_v32 }
 0x14e   : > { %v1147_v27 = vsub.f32 %v1145_v33, %v1146_v34  ;;  %v1155_v42 = vsub.f32 %v1103_v9, %v1123_v32  ;;  %v1156_v43 = vsub.f32 %v1106_v11, %v1123_v32 }
 0x150   : > { %v1148_v44 = vmax.f32 %v1147_v27, 0.0 }
 0x152   : > { %v1157_v45 = vadd.f32 1e-05, %v1148_v44 }
 0x154   : > { %1666 = vrsqrt.f32 %v1157_v45 }
 0x15e   : > { %v1667_v46 = vpop.eup %1666 }
 0x15f   : > { %v1159_v47 = vmul.f32 %v1667_v46, %v1149_v35  ;;  %v1160_v48 = vmul.f32 %v1667_v46, %v1150_v25  ;;  %v1161_v5 = vmul.f32 %v1667_v46, %v1151_v36  ;;  %v1162_v50 = vmul.f32 %v1667_v46, %v1152_v37 }
 0x160   : > { %v1163_v7 = vmul.f32 %v1667_v46, %v1153_v39  ;;  %v1164_v51 = vmul.f32 %v1667_v46, %v1154_v40  ;;  %v1165_v26 = vmul.f32 %v1667_v46, %v1155_v42  ;;  %v1166_v52 = vmul.f32 %v1667_v46, %v1156_v43 }
 0x161   : > { %vm1167_vm0 = vcmp.gt.f32.partialorder %v1159_v47, 0.0  ;;  %vm1168_vm1 = vcmp.gt.f32.partialorder %v1160_v48, 0.0  ;;  %vm1169_vm2 = vcmp.gt.f32.partialorder %v1161_v5, 0.0  ;;  %vm1170_vm3 = vcmp.gt.f32.partialorder %v1162_v50, 0.0 }
 0x162   : > { %vm1171_vm4 = vcmp.gt.f32.partialorder %v1163_v7, 0.0  ;;  %vm1172_vm5 = vcmp.gt.f32.partialorder %v1164_v51, 0.0  ;;  %vm1173_vm6 = vcmp.gt.f32.partialorder %v1165_v26, 0.0  ;;  %vm1174_vm7 = vcmp.gt.f32.partialorder %v1166_v52, 0.0 }
 0x163   : > { %v1175_v31 = vmul.f32 0.2, %v1159_v47  ;;  %v1176_v49 = vmul.f32 0.2, %v1160_v48  ;;  %v1177_v54 = vmul.f32 0.2, %v1161_v5 }
 0x164   : > { %v1178_v56 = vmul.f32 0.2, %v1162_v50  ;;  %v1179_v57 = vmul.f32 0.2, %v1163_v7  ;;  %v1180_v58 = vmul.f32 0.2, %v1164_v51 }
 0x165   : > { %v1181_v59 = vmul.f32 0.2, %v1165_v26  ;;  %v1182_v60 = vmul.f32 0.2, %v1166_v52  ;;  %v1183_v61 = vsel %vm1167_vm0, %v1159_v47, %v1175_v31  ;;  %v1184_v38 = vsel %vm1168_vm1, %v1160_v48, %v1176_v49 }
 0x166   : > { %v1185_v62 = vsel %vm1169_vm2, %v1161_v5, %v1177_v54  ;;  %v1186_v63 = vsel %vm1170_vm3, %v1162_v50, %v1178_v56  ;;  %v1187_v0 = vsel %vm1171_vm4, %v1163_v7, %v1179_v57  ;;  %v1188_v1 = vsel %vm1172_vm5, %v1164_v51, %v1180_v58 }
 0x167   : > { %v1189_v2 = vsel %vm1173_vm6, %v1165_v26, %v1181_v59  ;;  %v1190_v3 = vsel %vm1174_vm7, %v1166_v52, %v1182_v60  ;;  %v1414_v41 = vpack.c.bf16 %v1184_v38, %v1183_v61  ;;  %v1419_v4 = vpack.c.bf16 %v1186_v63, %v1185_v62 }
 0x168   : > { %v1424_v6 = vpack.c.bf16 %v1188_v1, %v1187_v0  ;;  %v1429_v8 = vpack.c.bf16 %v1190_v3, %v1189_v2 }
 0x169   : > { %1415 = vst [vmem:[%s143_s10] sm:$0xff] %v1414_v41   ;;  %1431 = vst [vmem:[%s143_s10 + $0x8] sm:$0xff] %v1419_v4  }
 0x16a   : > { %1432 = vst [vmem:[%s143_s10 + $0x10] sm:$0xff] %v1424_v6   ;;  %1433 = vst [vmem:[%s143_s10 + $0x18] sm:$0xff] %v1429_v8  }
 0x16b PF: > { %s12_s9 = sadd.s32 1, %s1674_s9  }
 0x16c   : > { %p9_p4 = scmp.ge.s32.totalorder %s12_s9, 4  }
 0x16e   :  { %11 = sbr.rel (!%p9_p4) target bundleno = 1 (0x1), region = 58 }

// kernel: discriminator_forward.6
= control target key start
LH: loop header
LB: loop body
LE: loop exit
PB: predicated region body
PF: predicated region fallthrough
CT: control target
= control target key end

     0   :  { %s2992_s9 = smov 0   ;;  %s3863_s0 = inlined_call_operand.vmem [shape: bf16[2,16,2048], index: 0, kind: input, shape index: {}]   ;;  %s3864_s1 = inlined_call_operand.vmem [shape: bf16[2048,256], index: 1, kind: input, shape index: {}]   ;;  %s3865_s2 = inlined_call_operand.vmem [shape: bf16[2,16,256], index: 2, kind: output, shape index: {}]  }
   0x1 LB: > { %s2256_s10 = sadd.s32 4294967295, %s2975_s9   ;;  %p2260_p0 = scmp.ge.s32.totalorder %s2975_s9, 1  ;;  %s2975_s9 = sphi %s2992_s9, %s12_s9  }
   0x2   : > { %p112_p1 = scmp.lt.s32.totalorder %s2975_s9, 3 }
   0x4   : > { %p113_p2 = pnand %p2260_p0, %p112_p1 }
   0x5   : > { %v2581_v0 = vld [vmem:[%s3864_s1 + $0x4] ss:$8 sps:$4 sm:$0xff] (!%p113_p2)   ;;  %v2585_v2 = vld [vmem:[%s3864_s1] ss:$8 sps:$4 sm:$0xff] (!%p113_p2)   ;;  %v2587_v4 = vld [vmem:[%s3864_s1 + $0x14] ss:$8 sps:$4 sm:$0xff] (!%p113_p2)  }
   0x6   : > { %116 = sbr.rel (%p113_p2) target bundleno = 523 (0x20b), region = 28  ;;  %v2583_v1 = vld [vmem:[%s3864_s1 + $0x404] ss:$8 sps:$4 sm:$0xff] (!%p113_p2)   ;;  %1776 = vmatprep.subr.bf16.mxu1 (!%p113_p2), %v2581_v0  ;;  %v2586_v3 = vld [vmem:[%s3864_s1 + $0x400] ss:$8 sps:$4 sm:$0xff] (!%p113_p2)   ;;  %p134_p3 = scmp.lt.s32.totalorder (!%p113_p2), %s2256_s10, 1 }
   0x7   : > { %1948 = vmatprep.subr.bf16.mxu0 (!%p113_p2), %v2583_v1  ;;  %1777 = vmatpush1.bf16.msra.mxu1 (!%p113_p2), %v2585_v2  ;;  %v2589_v5 = vld [vmem:[%s3864_s1 + $0x414] ss:$8 sps:$4 sm:$0xff] (!%p113_p2)   ;;  %v2591_v6 = vld [vmem:[%s3864_s1 + $0x10] ss:$8 sps:$4 sm:$0xff] (!%p113_p2)   ;;  %v2593_v8 = vld [vmem:[%s3864_s1 + $0x24] ss:$8 sps:$4 sm:$0xff] (!%p113_p2)  }
   0x8   : > { %1949 = vmatpush1.bf16.msra.mxu0 (!%p113_p2), %v2586_v3  ;;  %1778 = vmatprep.subr.bf16.mxu1 (!%p113_p2), %v2587_v4  ;;  %v2592_v7 = vld [vmem:[%s3864_s1 + $0x410] ss:$8 sps:$4 sm:$0xff] (!%p113_p2)   ;;  %v2595_v9 = vld [vmem:[%s3864_s1 + $0x424] ss:$8 sps:$4 sm:$0xff] (!%p113_p2)   ;;  %v2597_v10 = vld [vmem:[%s3864_s1 + $0x20] ss:$8 sps:$4 sm:$0xff] (!%p113_p2)  }
   0x9   : > { %1950 = vmatprep.subr.bf16.mxu0 (!%p113_p2), %v2589_v5  ;;  %v2598_v11 = vld [vmem:[%s3864_s1 + $0x420] ss:$8 sps:$4 sm:$0xff] (!%p113_p2)   ;;  %v2599_v12 = vld [vmem:[%s3864_s1 + $0x34] ss:$8 sps:$4 sm:$0xff] (!%p113_p2)   ;;  %v2603_v14 = vld [vmem:[%s3864_s1 + $0x30] ss:$8 sps:$4 sm:$0xff] (!%p113_p2)  }
   0xa   : > { %v2601_v13 = vld [vmem:[%s3864_s1 + $0x434] ss:$8 sps:$4 sm:$0xff] (!%p113_p2)   ;;  %v2604_v15 = vld [vmem:[%s3864_s1 + $0x430] ss:$8 sps:$4 sm:$0xff] (!%p113_p2)   ;;  %v2605_v16 = vld [vmem:[%s3864_s1 + $0x44] ss:$8 sps:$4 sm:$0xff] (!%p113_p2)  }
   0xb   : > { %1779 = vmatpush1.bf16.msra.mxu1 (!%p113_p2), %v2591_v6  ;;  %v2607_v17 = vld [vmem:[%s3864_s1 + $0x444] ss:$8 sps:$4 sm:$0xff] (!%p113_p2)   ;;  %v2609_v18 = vld [vmem:[%s3864_s1 + $0x40] ss:$8 sps:$4 sm:$0xff] (!%p113_p2)   ;;  %v2611_v20 = vld [vmem:[%s3864_s1 + $0x54] ss:$8 sps:$4 sm:$0xff] (!%p113_p2)  }
   0xc   : > { %1951 = vmatpush1.bf16.msra.mxu0 (!%p113_p2), %v2592_v7  ;;  %1780 = vmatprep.subr.bf16.mxu1 (!%p113_p2), %v2593_v8  ;;  %v2610_v19 = vld [vmem:[%s3864_s1 + $0x440] ss:$8 sps:$4 sm:$0xff] (!%p113_p2)   ;;  %v2613_v21 = vld [vmem:[%s3864_s1 + $0x454] ss:$8 sps:$4 sm:$0xff] (!%p113_p2)   ;;  %v2615_v22 = vld [vmem:[%s3864_s1 + $0x50] ss:$8 sps:$4 sm:$0xff] (!%p113_p2)  }
   0xd   : > { %1952 = vmatprep.subr.bf16.mxu0 %v2595_v9  ;;  %v2616_v23 = vld [vmem:[%s3864_s1 + $0x450] ss:$8 sps:$4 sm:$0xff]   ;;  %v2617_v24 = vld [vmem:[%s3864_s1 + $0x64] ss:$8 sps:$4 sm:$0xff]   ;;  %v2621_v26 = vld [vmem:[%s3864_s1 + $0x60] ss:$8 sps:$4 sm:$0xff]  }
   0xe   : > { %v2619_v25 = vld [vmem:[%s3864_s1 + $0x464] ss:$8 sps:$4 sm:$0xff]   ;;  %v2622_v27 = vld [vmem:[%s3864_s1 + $0x460] ss:$8 sps:$4 sm:$0xff]   ;;  %v2623_v28 = vld [vmem:[%s3864_s1 + $0x74] ss:$8 sps:$4 sm:$0xff]  }
   0xf   : > { %1781 = vmatpush1.bf16.msra.mxu1 %v2597_v10  ;;  %v2625_v29 = vld [vmem:[%s3864_s1 + $0x474] ss:$8 sps:$4 sm:$0xff]   ;;  %v2627_v30 = vld [vmem:[%s3864_s1 + $0x70] ss:$8 sps:$4 sm:$0xff]   ;;  %v2629_v32 = vld [vmem:[%s3864_s1 + $0x84] ss:$8 sps:$4 sm:$0xff]  }
  0x10   : > { %1953 = vmatpush1.bf16.msra.mxu0 %v2598_v11  ;;  %1782 = vmatprep.subr.bf16.mxu1 %v2599_v12  ;;  %v2628_v31 = vld [vmem:[%s3864_s1 + $0x470] ss:$8 sps:$4 sm:$0xff]   ;;  %v2631_v33 = vld [vmem:[%s3864_s1 + $0x484] ss:$8 sps:$4 sm:$0xff]   ;;  %v2633_v34 = vld [vmem:[%s3864_s1 + $0x80] ss:$8 sps:$4 sm:$0xff]  }
  0x11   : > { %1954 = vmatprep.subr.bf16.mxu0 %v2601_v13  ;;  %v2634_v35 = vld [vmem:[%s3864_s1 + $0x480] ss:$8 sps:$4 sm:$0xff]   ;;  %v2635_v36 = vld [vmem:[%s3864_s1 + $0x94] ss:$8 sps:$4 sm:$0xff]   ;;  %s3867_s10 = smov (!%p134_p3, %s2256_s10), 1 }
  0x12   : > { %v2637_v37 = vld [vmem:[%s3864_s1 + $0x494] ss:$8 sps:$4 sm:$0xff]   ;;  %v2639_v38 = vld [vmem:[%s3864_s1 + $0x90] ss:$8 sps:$4 sm:$0xff]   ;;  %v2641_v40 = vld [vmem:[%s3864_s1 + $0xa4] ss:$8 sps:$4 sm:$0xff]  }
  0x13   : > { %1783 = vmatpush1.bf16.msra.mxu1 %v2603_v14  ;;  %v2640_v39 = vld [vmem:[%s3864_s1 + $0x490] ss:$8 sps:$4 sm:$0xff]   ;;  %s2541_s15 = sshll.u32 %s3867_s10, 7  ;;  %v2643_v41 = vld [vmem:[%s3864_s1 + $0x4a4] ss:$8 sps:$4 sm:$0xff]   ;;  %s2542_s18 = sshll.u32 %s3867_s10, 4 }
  0x14   : > { %1955 = vmatpush1.bf16.msra.mxu0 %v2604_v15  ;;  %1784 = vmatprep.subr.bf16.mxu1 %v2605_v16  ;;  %v2645_v42 = vld [vmem:[%s3864_s1 + $0xa0] ss:$8 sps:$4 sm:$0xff]   ;;  %s3142_s24 = scalar_lea.vmem %s3863_s0, %s2541_s15  ;;  %v2647_v44 = vld [vmem:[%s3864_s1 + $0xb4] ss:$8 sps:$4 sm:$0xff]   ;;  %v2651_v46 = vld [vmem:[%s3864_s1 + $0xb0] ss:$8 sps:$4 sm:$0xff]   ;;  %s143_s21 = scalar_lea.vmem %s3865_s2, %s2542_s18 }
  0x15   : > { %1956 = vmatprep.subr.bf16.mxu0 %v2607_v17  ;;  %v2646_v43 = vld [vmem:[%s3864_s1 + $0x4a0] ss:$8 sps:$4 sm:$0xff]   ;;  %v2649_v45 = vld [vmem:[%s3864_s1 + $0x4b4] ss:$8 sps:$4 sm:$0xff]   ;;  %v2652_v47 = vld [vmem:[%s3864_s1 + $0x4b0] ss:$8 sps:$4 sm:$0xff]  }
  0x16   : > { %v144_v48 = vld [vmem:[%s3142_s24] sm:$0xff]  ;;  %v2659_v58 = vld [vmem:[%s3864_s1 + $0xd4] ss:$8 sps:$4 sm:$0xff]   ;;  %v2663_v60 = vld [vmem:[%s3864_s1 + $0xd0] ss:$8 sps:$4 sm:$0xff]  }
  0x17   : > { %1785 = vmatpush1.bf16.msra.mxu1 %v2609_v18  ;;  %v152_v49 = vld [vmem:[%s3142_s24 + $0x40] sm:$0xff]  ;;  %v2661_v59 = vld [vmem:[%s3864_s1 + $0x4d4] ss:$8 sps:$4 sm:$0xff]   ;;  %v2664_v61 = vld [vmem:[%s3864_s1 + $0x4d0] ss:$8 sps:$4 sm:$0xff]  }
  0x18   : > { %1957 = vmatpush1.bf16.msra.mxu0 %v2610_v19  ;;  %1786 = vmatprep.subr.bf16.mxu1 %v2611_v20  ;;  %v2653_v50 = vld [vmem:[%s3864_s1 + $0xc4] ss:$8 sps:$4 sm:$0xff]   ;;  %v2266_v52 = vcombine.high %v144_v48, %v152_v49  ;;  %v2657_v56 = vld [vmem:[%s3864_s1 + $0xc0] ss:$8 sps:$4 sm:$0xff]   ;;  %v2671_v2 = vld [vmem:[%s3864_s1 + $0xf4] ss:$8 sps:$4 sm:$0xff]   ;;  %v2265_v8 = vcombine.low %v144_v48, %v152_v49 }
  0x19   : > { %1958 = vmatprep.subr.bf16.mxu0 %v2613_v21  ;;  %v2655_v51 = vld [vmem:[%s3864_s1 + $0x4c4] ss:$8 sps:$4 sm:$0xff]   ;;  %v2658_v57 = vld [vmem:[%s3864_s1 + $0x4c0] ss:$8 sps:$4 sm:$0xff]   ;;  %v2673_v3 = vld [vmem:[%s3864_s1 + $0x4f4] ss:$8 sps:$4 sm:$0xff]  }
  0x1a   : > { %v148_v53 = vld [vmem:[%s3142_s24 + $0x20] sm:$0xff]  ;;  %1808 = vmatprep.mubr.bf16.mxu1 %v2266_v52  ;;  %v2675_v4 = vld [vmem:[%s3864_s1 + $0xf0] ss:$8 sps:$4 sm:$0xff]   ;;  %v2685_v12 = vld [vmem:[%s3864_s1 + $0x114] ss:$8 sps:$4 sm:$0xff]  }
  0x1b   : > { %1787 = vmatpush1.bf16.msra.mxu1 %v2615_v22  ;;  %v156_v54 = vld [vmem:[%s3142_s24 + $0x60] sm:$0xff]  ;;  %v2676_v5 = vld [vmem:[%s3864_s1 + $0x4f0] ss:$8 sps:$4 sm:$0xff]   ;;  %v2688_v13 = vld [vmem:[%s3864_s1 + $0x514] ss:$8 sps:$4 sm:$0xff]  }
  0x1c   : > { %1959 = vmatpush1.bf16.msra.mxu0 %v2616_v23  ;;  %1788 = vmatprep.subr.bf16.mxu1 %v2617_v24  ;;  %v2274_v55 = vcombine.high %v148_v53, %v156_v54  ;;  %v2665_v62 = vld [vmem:[%s3864_s1 + $0xe4] ss:$8 sps:$4 sm:$0xff]   ;;  %v2669_v0 = vld [vmem:[%s3864_s1 + $0xe0] ss:$8 sps:$4 sm:$0xff]   ;;  %v2273_v10 = vcombine.low %v148_v53, %v156_v54  ;;  %v2683_v14 = vld [vmem:[%s3864_s1 + $0x110] ss:$8 sps:$4 sm:$0xff]  }
  0x1d   : > { %1960 = vmatprep.subr.bf16.mxu0 %v2619_v25  ;;  %v2667_v63 = vld [vmem:[%s3864_s1 + $0x4e4] ss:$8 sps:$4 sm:$0xff]   ;;  %v2670_v1 = vld [vmem:[%s3864_s1 + $0x4e0] ss:$8 sps:$4 sm:$0xff]   ;;  %v2686_v15 = vld [vmem:[%s3864_s1 + $0x510] ss:$8 sps:$4 sm:$0xff]  }
  0x1e   : > { %1980 = vmatprep.mubr.bf16.mxu0 %v2274_v55  ;;  %v2679_v6 = vld [vmem:[%s3864_s1 + $0x104] ss:$8 sps:$4 sm:$0xff]   ;;  %v2677_v9 = vld [vmem:[%s3864_s1 + $0x100] ss:$8 sps:$4 sm:$0xff]   ;;  %v2697_v20 = vld [vmem:[%s3864_s1 + $0x134] ss:$8 sps:$4 sm:$0xff]  }
  0x1f   : > { %1789 = vmatpush1.bf16.msra.mxu1 %v2621_v26  ;;  %v2682_v7 = vld [vmem:[%s3864_s1 + $0x504] ss:$8 sps:$4 sm:$0xff]   ;;  %v2680_v11 = vld [vmem:[%s3864_s1 + $0x500] ss:$8 sps:$4 sm:$0xff]   ;;  %v2700_v21 = vld [vmem:[%s3864_s1 + $0x534] ss:$8 sps:$4 sm:$0xff]  }
  0x20   : > { %1961 = vmatpush1.bf16.msra.mxu0 %v2622_v27  ;;  %1790 = vmatprep.subr.bf16.mxu1 %v2623_v28  ;;  %v2691_v16 = vld [vmem:[%s3864_s1 + $0x124] ss:$8 sps:$4 sm:$0xff]   ;;  %v2689_v18 = vld [vmem:[%s3864_s1 + $0x120] ss:$8 sps:$4 sm:$0xff]   ;;  %v2695_v22 = vld [vmem:[%s3864_s1 + $0x130] ss:$8 sps:$4 sm:$0xff]  }
  0x21   : > { %1962 = vmatprep.subr.bf16.mxu0 %v2625_v29  ;;  %v2694_v17 = vld [vmem:[%s3864_s1 + $0x524] ss:$8 sps:$4 sm:$0xff]   ;;  %v2692_v19 = vld [vmem:[%s3864_s1 + $0x520] ss:$8 sps:$4 sm:$0xff]   ;;  %v2698_v23 = vld [vmem:[%s3864_s1 + $0x530] ss:$8 sps:$4 sm:$0xff]  }
  0x22   : > { %v2703_v24 = vld [vmem:[%s3864_s1 + $0x144] ss:$8 sps:$4 sm:$0xff]   ;;  %v2701_v26 = vld [vmem:[%s3864_s1 + $0x140] ss:$8 sps:$4 sm:$0xff]   ;;  %v2709_v28 = vld [vmem:[%s3864_s1 + $0x154] ss:$8 sps:$4 sm:$0xff]  }
  0x23   : > { %1791 = vmatpush1.bf16.msra.mxu1 %v2627_v30  ;;  %v2706_v25 = vld [vmem:[%s3864_s1 + $0x544] ss:$8 sps:$4 sm:$0xff]   ;;  %v2704_v27 = vld [vmem:[%s3864_s1 + $0x540] ss:$8 sps:$4 sm:$0xff]   ;;  %v2712_v29 = vld [vmem:[%s3864_s1 + $0x554] ss:$8 sps:$4 sm:$0xff]  }
  0x24   : > { %1963 = vmatpush1.bf16.msra.mxu0 %v2628_v31  ;;  %1792 = vmatprep.subr.bf16.mxu1 %v2629_v32  ;;  %v2707_v30 = vld [vmem:[%s3864_s1 + $0x150] ss:$8 sps:$4 sm:$0xff]   ;;  %v2715_v32 = vld [vmem:[%s3864_s1 + $0x164] ss:$8 sps:$4 sm:$0xff]   ;;  %v2725_v48 = vld [vmem:[%s3864_s1 + $0x180] ss:$8 sps:$4 sm:$0xff]  }
  0x25   : > { %1964 = vmatprep.subr.bf16.mxu0 %v2631_v33  ;;  %v2710_v31 = vld [vmem:[%s3864_s1 + $0x550] ss:$8 sps:$4 sm:$0xff]   ;;  %v2718_v33 = vld [vmem:[%s3864_s1 + $0x564] ss:$8 sps:$4 sm:$0xff]   ;;  %v2728_v49 = vld [vmem:[%s3864_s1 + $0x580] ss:$8 sps:$4 sm:$0xff]  }
  0x26   : > { %v2731_v52 = vld [vmem:[%s3864_s1 + $0x190] ss:$8 sps:$4 sm:$0xff]   ;;  %v2739_v54 = vld [vmem:[%s3864_s1 + $0x1a4] ss:$8 sps:$4 sm:$0xff]  }
  0x27   : > { %1793 = vmatpush1.bf16.msra.mxu1 %v2633_v34  ;;  %v2713_v34 = vld [vmem:[%s3864_s1 + $0x160] ss:$8 sps:$4 sm:$0xff]   ;;  %v2734_v53 = vld [vmem:[%s3864_s1 + $0x590] ss:$8 sps:$4 sm:$0xff]   ;;  %v2742_v55 = vld [vmem:[%s3864_s1 + $0x5a4] ss:$8 sps:$4 sm:$0xff]  }
  0x28   : > { %1965 = vmatpush1.bf16.msra.mxu0 %v2634_v35  ;;  %1794 = vmatprep.subr.bf16.mxu1 %v2635_v36  ;;  %v2716_v35 = vld [vmem:[%s3864_s1 + $0x560] ss:$8 sps:$4 sm:$0xff]  }
  0x29   : > { %1966 = vmatprep.subr.bf16.mxu0 %v2637_v37  ;;  %v3293_v36 = vld [vmem:[%s3142_s24 + $0x8] sm:$0xff] }
  0x2a   : > { %v3296_v37 = vld [vmem:[%s3142_s24 + $0x48] sm:$0xff] }
  0x2b   : > { %1795 = vmatpush1.bf16.msra.mxu1 %v2639_v38  ;;  %v2721_v38 = vld [vmem:[%s3864_s1 + $0x174] ss:$8 sps:$4 sm:$0xff]  }
  0x2c   : > { %1967 = vmatpush1.bf16.msra.mxu0 %v2640_v39  ;;  %1796 = vmatprep.subr.bf16.mxu1 %v2641_v40  ;;  %v2724_v39 = vld [vmem:[%s3864_s1 + $0x574] ss:$8 sps:$4 sm:$0xff]   ;;  %v2268_v40 = vcombine.high %v3293_v36, %v3296_v37 }
  0x2d   : > { %1968 = vmatprep.subr.bf16.mxu0 %v2643_v41  ;;  %v3307_v41 = vld [vmem:[%s3142_s24 + $0x28] sm:$0xff] }
  0x2f   : > { %1797 = vmatpush1.bf16.msra.mxu1 %v2645_v42  ;;  %v3310_v42 = vld [vmem:[%s3142_s24 + $0x68] sm:$0xff] }
  0x30   : > { %1969 = vmatpush1.bf16.msra.mxu0 %v2646_v43  ;;  %1798 = vmatprep.subr.bf16.mxu1 %v2647_v44  ;;  %v2276_v43 = vcombine.high %v3307_v41, %v3310_v42  ;;  %v2719_v44 = vld [vmem:[%s3864_s1 + $0x170] ss:$8 sps:$4 sm:$0xff]  }
  0x31   : > { %1970 = vmatprep.subr.bf16.mxu0 %v2649_v45  ;;  %v2722_v45 = vld [vmem:[%s3864_s1 + $0x570] ss:$8 sps:$4 sm:$0xff]  }
  0x33   : > { %1799 = vmatpush1.bf16.msra.mxu1 %v2651_v46  ;;  %v2727_v46 = vld [vmem:[%s3864_s1 + $0x184] ss:$8 sps:$4 sm:$0xff]  }
  0x34   : > { %1971 = vmatpush1.bf16.msra.mxu0 %v2652_v47  ;;  %1800 = vmatprep.subr.bf16.mxu1 %v2653_v50  ;;  %v2730_v47 = vld [vmem:[%s3864_s1 + $0x584] ss:$8 sps:$4 sm:$0xff]   ;;  %v2733_v50 = vld [vmem:[%s3864_s1 + $0x194] ss:$8 sps:$4 sm:$0xff]  }
  0x35   : > { %1972 = vmatprep.subr.bf16.mxu0 %v2655_v51  ;;  %v2736_v51 = vld [vmem:[%s3864_s1 + $0x594] ss:$8 sps:$4 sm:$0xff]  }
  0x37   : > { %1801 = vmatpush1.bf16.msra.mxu1 %v2657_v56  ;;  %v2737_v56 = vld [vmem:[%s3864_s1 + $0x1a0] ss:$8 sps:$4 sm:$0xff]  }
  0x38   : > { %1973 = vmatpush1.bf16.msra.mxu0 %v2658_v57  ;;  %1802 = vmatprep.subr.bf16.mxu1 %v2659_v58  ;;  %v2740_v57 = vld [vmem:[%s3864_s1 + $0x5a0] ss:$8 sps:$4 sm:$0xff]   ;;  %v2745_v58 = vld [vmem:[%s3864_s1 + $0x1b4] ss:$8 sps:$4 sm:$0xff]  }
  0x39   : > { %1974 = vmatprep.subr.bf16.mxu0 %v2661_v59  ;;  %v2748_v59 = vld [vmem:[%s3864_s1 + $0x5b4] ss:$8 sps:$4 sm:$0xff]  }
  0x3b   : > { %1803 = vmatpush1.bf16.msra.mxu1 %v2663_v60  ;;  %v2743_v60 = vld [vmem:[%s3864_s1 + $0x1b0] ss:$8 sps:$4 sm:$0xff]  }
  0x3c   : > { %1975 = vmatpush1.bf16.msra.mxu0 %v2664_v61  ;;  %1804 = vmatprep.subr.bf16.mxu1 %v2665_v62  ;;  %v2746_v61 = vld [vmem:[%s3864_s1 + $0x5b0] ss:$8 sps:$4 sm:$0xff]   ;;  %v2751_v62 = vld [vmem:[%s3864_s1 + $0x1c4] ss:$8 sps:$4 sm:$0xff]  }
  0x3d   : > { %1976 = vmatprep.subr.bf16.mxu0 %v2667_v63  ;;  %v2754_v63 = vld [vmem:[%s3864_s1 + $0x5c4] ss:$8 sps:$4 sm:$0xff]  }
  0x3f   : > { %1805 = vmatpush1.bf16.msra.mxu1 %v2669_v0  ;;  %v2749_v0 = vld [vmem:[%s3864_s1 + $0x1c0] ss:$8 sps:$4 sm:$0xff]  }
  0x40   : > { %1977 = vmatpush1.bf16.msra.mxu0 %v2670_v1  ;;  %1806 = vmatprep.subr.bf16.mxu1 %v2671_v2  ;;  %v2752_v1 = vld [vmem:[%s3864_s1 + $0x5c0] ss:$8 sps:$4 sm:$0xff]   ;;  %v2757_v2 = vld [vmem:[%s3864_s1 + $0x1d4] ss:$8 sps:$4 sm:$0xff]  }
  0x41   : > { %1978 = vmatprep.subr.bf16.mxu0 %v2673_v3  ;;  %v2760_v3 = vld [vmem:[%s3864_s1 + $0x5d4] ss:$8 sps:$4 sm:$0xff]  }
  0x43   : > { %1807 = vmatpush1.bf16.msra.mxu1 %v2675_v4  ;;  %v2755_v4 = vld [vmem:[%s3864_s1 + $0x1d0] ss:$8 sps:$4 sm:$0xff]  }
  0x44   : > { %1979 = vmatpush1.bf16.msra.mxu0 %v2676_v5  ;;  %1819 = vmatprep.subr.bf16.mxu1 %v2679_v6  ;;  %v2758_v5 = vld [vmem:[%s3864_s1 + $0x5d0] ss:$8 sps:$4 sm:$0xff]   ;;  %v2763_v6 = vld [vmem:[%s3864_s1 + $0x1e4] ss:$8 sps:$4 sm:$0xff]  }
  0x45   : > { %1991 = vmatprep.subr.bf16.mxu0 %v2682_v7  ;;  %v2766_v7 = vld [vmem:[%s3864_s1 + $0x5e4] ss:$8 sps:$4 sm:$0xff]  }
  0x46   : > { %1809 = vmatmul.mubr.bf16.vlgmr.msra.gmra.mrb[0].mxu1 %v2265_v8  ;;  %v2761_v8 = vld [vmem:[%s3864_s1 + $0x1e0] ss:$8 sps:$4 sm:$0xff]  }
  0x47   : > { %1981 = vmatmul.mubr.bf16.vlgmr.msra.gmra.mrb[0].mxu0 %v2273_v10  ;;  %1820 = vmatpush1.bf16.msra.mxu1 %v2677_v9  ;;  %v2764_v9 = vld [vmem:[%s3864_s1 + $0x5e0] ss:$8 sps:$4 sm:$0xff]   ;;  %v2769_v10 = vld [vmem:[%s3864_s1 + $0x1f4] ss:$8 sps:$4 sm:$0xff]  }
  0x48   : > { %1992 = vmatpush1.bf16.msra.mxu0 %v2680_v11  ;;  %1821 = vmatprep.subr.bf16.mxu1 %v2685_v12  ;;  %v2772_v11 = vld [vmem:[%s3864_s1 + $0x5f4] ss:$8 sps:$4 sm:$0xff]   ;;  %v2767_v12 = vld [vmem:[%s3864_s1 + $0x1f0] ss:$8 sps:$4 sm:$0xff]  }
  0x49   : > { %1993 = vmatprep.subr.bf16.mxu0 %v2688_v13  ;;  %1851 = vmatprep.mubr.bf16.mxu1 %v2268_v40  ;;  %v2770_v13 = vld [vmem:[%s3864_s1 + $0x5f0] ss:$8 sps:$4 sm:$0xff]   ;;  %v2797_v40 = vld [vmem:[%s3864_s1 + $0x240] ss:$8 sps:$4 sm:$0xff]  }
  0x4a   : > { %2023 = vmatprep.mubr.bf16.mxu0 %v2276_v43  ;;  %v2808_v43 = vld [vmem:[%s3864_s1 + $0x654] ss:$8 sps:$4 sm:$0xff]  }
  0x4b   : > { %1822 = vmatpush1.bf16.msra.mxu1 %v2683_v14  ;;  %v2775_v14 = vld [vmem:[%s3864_s1 + $0x204] ss:$8 sps:$4 sm:$0xff]  }
  0x4c   : > { %1994 = vmatpush1.bf16.msra.mxu0 %v2686_v15  ;;  %1823 = vmatprep.subr.bf16.mxu1 %v2691_v16  ;;  %v2778_v15 = vld [vmem:[%s3864_s1 + $0x604] ss:$8 sps:$4 sm:$0xff]   ;;  %v2267_v16 = vcombine.low %v3293_v36, %v3296_v37  ;;  %v2791_v36 = vld [vmem:[%s3864_s1 + $0x230] ss:$8 sps:$4 sm:$0xff]  }
  0x4d   : > { %1995 = vmatprep.subr.bf16.mxu0 %v2694_v17  ;;  %v2773_v17 = vld [vmem:[%s3864_s1 + $0x200] ss:$8 sps:$4 sm:$0xff]   ;;  %v2794_v37 = vld [vmem:[%s3864_s1 + $0x630] ss:$8 sps:$4 sm:$0xff]  }
  0x4f   : > { %1824 = vmatpush1.bf16.msra.mxu1 %v2689_v18  ;;  %v2275_v18 = vcombine.low %v3307_v41, %v3310_v42  ;;  %v2800_v41 = vld [vmem:[%s3864_s1 + $0x640] ss:$8 sps:$4 sm:$0xff]   ;;  %v2805_v42 = vld [vmem:[%s3864_s1 + $0x254] ss:$8 sps:$4 sm:$0xff]  }
  0x50   : > { %1996 = vmatpush1.bf16.msra.mxu0 %v2692_v19  ;;  %1825 = vmatprep.subr.bf16.mxu1 %v2697_v20  ;;  %v2776_v19 = vld [vmem:[%s3864_s1 + $0x600] ss:$8 sps:$4 sm:$0xff]   ;;  %v2781_v20 = vld [vmem:[%s3864_s1 + $0x214] ss:$8 sps:$4 sm:$0xff]  }
  0x51   : > { %1997 = vmatprep.subr.bf16.mxu0 %v2700_v21  ;;  %v2784_v21 = vld [vmem:[%s3864_s1 + $0x614] ss:$8 sps:$4 sm:$0xff]  }
  0x53   : > { %1826 = vmatpush1.bf16.msra.mxu1 %v2695_v22  ;;  %v2779_v22 = vld [vmem:[%s3864_s1 + $0x210] ss:$8 sps:$4 sm:$0xff]  }
  0x54   : > { %1998 = vmatpush1.bf16.msra.mxu0 %v2698_v23  ;;  %1827 = vmatprep.subr.bf16.mxu1 %v2703_v24  ;;  %v2782_v23 = vld [vmem:[%s3864_s1 + $0x610] ss:$8 sps:$4 sm:$0xff]  }
  0x55   : > { %1999 = vmatprep.subr.bf16.mxu0 %v2706_v25  ;;  %v3445_v24 = vld [vmem:[%s3142_s24 + $0x10] sm:$0xff] }
  0x56   : > { %v3448_v25 = vld [vmem:[%s3142_s24 + $0x50] sm:$0xff] }
  0x57   : > { %1828 = vmatpush1.bf16.msra.mxu1 %v2701_v26  ;;  %v2787_v26 = vld [vmem:[%s3864_s1 + $0x224] ss:$8 sps:$4 sm:$0xff]  }
  0x58   : > { %2000 = vmatpush1.bf16.msra.mxu0 %v2704_v27  ;;  %1829 = vmatprep.subr.bf16.mxu1 %v2709_v28  ;;  %v2790_v27 = vld [vmem:[%s3864_s1 + $0x624] ss:$8 sps:$4 sm:$0xff]   ;;  %v2270_v28 = vcombine.high %v3445_v24, %v3448_v25 }
  0x59   : > { %2001 = vmatprep.subr.bf16.mxu0 %v2712_v29  ;;  %v3459_v29 = vld [vmem:[%s3142_s24 + $0x30] sm:$0xff] }
  0x5b   : > { %1830 = vmatpush1.bf16.msra.mxu1 %v2707_v30  ;;  %v3462_v30 = vld [vmem:[%s3142_s24 + $0x70] sm:$0xff] }
  0x5c   : > { %2002 = vmatpush1.bf16.msra.mxu0 %v2710_v31  ;;  %1831 = vmatprep.subr.bf16.mxu1 %v2715_v32  ;;  %v2278_v31 = vcombine.high %v3459_v29, %v3462_v30  ;;  %v2785_v32 = vld [vmem:[%s3864_s1 + $0x220] ss:$8 sps:$4 sm:$0xff]  }
  0x5d   : > { %2003 = vmatprep.subr.bf16.mxu0 %v2718_v33  ;;  %v2788_v33 = vld [vmem:[%s3864_s1 + $0x620] ss:$8 sps:$4 sm:$0xff]  }
  0x5f   : > { %1832 = vmatpush1.bf16.msra.mxu1 %v2713_v34  ;;  %v2793_v34 = vld [vmem:[%s3864_s1 + $0x234] ss:$8 sps:$4 sm:$0xff]  }
  0x60   : > { %2004 = vmatpush1.bf16.msra.mxu0 %v2716_v35  ;;  %1833 = vmatprep.subr.bf16.mxu1 %v2721_v38  ;;  %v2796_v35 = vld [vmem:[%s3864_s1 + $0x634] ss:$8 sps:$4 sm:$0xff]   ;;  %v2799_v38 = vld [vmem:[%s3864_s1 + $0x244] ss:$8 sps:$4 sm:$0xff]  }
  0x61   : > { %2005 = vmatprep.subr.bf16.mxu0 %v2724_v39  ;;  %v2802_v39 = vld [vmem:[%s3864_s1 + $0x644] ss:$8 sps:$4 sm:$0xff]  }
  0x63   : > { %1834 = vmatpush1.bf16.msra.mxu1 %v2719_v44  ;;  %v2803_v44 = vld [vmem:[%s3864_s1 + $0x250] ss:$8 sps:$4 sm:$0xff]  }
  0x64   : > { %2006 = vmatpush1.bf16.msra.mxu0 %v2722_v45  ;;  %1835 = vmatprep.subr.bf16.mxu1 %v2727_v46  ;;  %v2806_v45 = vld [vmem:[%s3864_s1 + $0x650] ss:$8 sps:$4 sm:$0xff]   ;;  %v2811_v46 = vld [vmem:[%s3864_s1 + $0x264] ss:$8 sps:$4 sm:$0xff]  }
  0x65   : > { %2007 = vmatprep.subr.bf16.mxu0 %v2730_v47  ;;  %v2814_v47 = vld [vmem:[%s3864_s1 + $0x664] ss:$8 sps:$4 sm:$0xff]  }
  0x67   : > { %1836 = vmatpush1.bf16.msra.mxu1 %v2725_v48  ;;  %v2809_v48 = vld [vmem:[%s3864_s1 + $0x260] ss:$8 sps:$4 sm:$0xff]  }
  0x68   : > { %2008 = vmatpush1.bf16.msra.mxu0 %v2728_v49  ;;  %1837 = vmatprep.subr.bf16.mxu1 %v2733_v50  ;;  %v2812_v49 = vld [vmem:[%s3864_s1 + $0x660] ss:$8 sps:$4 sm:$0xff]   ;;  %v2817_v50 = vld [vmem:[%s3864_s1 + $0x274] ss:$8 sps:$4 sm:$0xff]  }
  0x69   : > { %2009 = vmatprep.subr.bf16.mxu0 %v2736_v51  ;;  %v2820_v51 = vld [vmem:[%s3864_s1 + $0x674] ss:$8 sps:$4 sm:$0xff]  }
  0x6b   : > { %1838 = vmatpush1.bf16.msra.mxu1 %v2731_v52  ;;  %v2815_v52 = vld [vmem:[%s3864_s1 + $0x270] ss:$8 sps:$4 sm:$0xff]  }
  0x6c   : > { %2010 = vmatpush1.bf16.msra.mxu0 %v2734_v53  ;;  %1839 = vmatprep.subr.bf16.mxu1 %v2739_v54  ;;  %v2818_v53 = vld [vmem:[%s3864_s1 + $0x670] ss:$8 sps:$4 sm:$0xff]   ;;  %v2823_v54 = vld [vmem:[%s3864_s1 + $0x284] ss:$8 sps:$4 sm:$0xff]  }
  0x6d   : > { %2011 = vmatprep.subr.bf16.mxu0 %v2742_v55  ;;  %v2826_v55 = vld [vmem:[%s3864_s1 + $0x684] ss:$8 sps:$4 sm:$0xff]  }
  0x6f   : > { %1840 = vmatpush1.bf16.msra.mxu1 %v2737_v56  ;;  %v2821_v56 = vld [vmem:[%s3864_s1 + $0x280] ss:$8 sps:$4 sm:$0xff]  }
  0x70   : > { %2012 = vmatpush1.bf16.msra.mxu0 %v2740_v57  ;;  %1841 = vmatprep.subr.bf16.mxu1 %v2745_v58  ;;  %v2824_v57 = vld [vmem:[%s3864_s1 + $0x680] ss:$8 sps:$4 sm:$0xff]   ;;  %v2829_v58 = vld [vmem:[%s3864_s1 + $0x294] ss:$8 sps:$4 sm:$0xff]  }
  0x71   : > { %2013 = vmatprep.subr.bf16.mxu0 %v2748_v59  ;;  %v2832_v59 = vld [vmem:[%s3864_s1 + $0x694] ss:$8 sps:$4 sm:$0xff]  }
  0x73   : > { %1842 = vmatpush1.bf16.msra.mxu1 %v2743_v60  ;;  %v2827_v60 = vld [vmem:[%s3864_s1 + $0x290] ss:$8 sps:$4 sm:$0xff]  }
  0x74   : > { %2014 = vmatpush1.bf16.msra.mxu0 %v2746_v61  ;;  %1843 = vmatprep.subr.bf16.mxu1 %v2751_v62  ;;  %v2830_v61 = vld [vmem:[%s3864_s1 + $0x690] ss:$8 sps:$4 sm:$0xff]   ;;  %v2835_v62 = vld [vmem:[%s3864_s1 + $0x2a4] ss:$8 sps:$4 sm:$0xff]  }
  0x75   : > { %2015 = vmatprep.subr.bf16.mxu0 %v2754_v63  ;;  %v2838_v63 = vld [vmem:[%s3864_s1 + $0x6a4] ss:$8 sps:$4 sm:$0xff]  }
  0x77   : > { %1844 = vmatpush1.bf16.msra.mxu1 %v2749_v0  ;;  %v2833_v0 = vld [vmem:[%s3864_s1 + $0x2a0] ss:$8 sps:$4 sm:$0xff]  }
  0x78   : > { %2016 = vmatpush1.bf16.msra.mxu0 %v2752_v1  ;;  %1845 = vmatprep.subr.bf16.mxu1 %v2757_v2  ;;  %v2836_v1 = vld [vmem:[%s3864_s1 + $0x6a0] ss:$8 sps:$4 sm:$0xff]   ;;  %v2841_v2 = vld [vmem:[%s3864_s1 + $0x2b4] ss:$8 sps:$4 sm:$0xff]  }
  0x79   : > { %2017 = vmatprep.subr.bf16.mxu0 %v2760_v3  ;;  %v2844_v3 = vld [vmem:[%s3864_s1 + $0x6b4] ss:$8 sps:$4 sm:$0xff]  }
  0x7b   : > { %1846 = vmatpush1.bf16.msra.mxu1 %v2755_v4  ;;  %v2839_v4 = vld [vmem:[%s3864_s1 + $0x2b0] ss:$8 sps:$4 sm:$0xff]  }
  0x7c   : > { %2018 = vmatpush1.bf16.msra.mxu0 %v2758_v5  ;;  %1847 = vmatprep.subr.bf16.mxu1 %v2763_v6  ;;  %v2842_v5 = vld [vmem:[%s3864_s1 + $0x6b0] ss:$8 sps:$4 sm:$0xff]   ;;  %v2847_v6 = vld [vmem:[%s3864_s1 + $0x2c4] ss:$8 sps:$4 sm:$0xff]  }
  0x7d   : > { %2019 = vmatprep.subr.bf16.mxu0 %v2766_v7  ;;  %v2850_v7 = vld [vmem:[%s3864_s1 + $0x6c4] ss:$8 sps:$4 sm:$0xff]  }
  0x7f   : > { %1848 = vmatpush1.bf16.msra.mxu1 %v2761_v8  ;;  %v2845_v8 = vld [vmem:[%s3864_s1 + $0x2c0] ss:$8 sps:$4 sm:$0xff]  }
  0x80   : > { %2020 = vmatpush1.bf16.msra.mxu0 %v2764_v9  ;;  %1849 = vmatprep.subr.bf16.mxu1 %v2769_v10  ;;  %v2848_v9 = vld [vmem:[%s3864_s1 + $0x6c0] ss:$8 sps:$4 sm:$0xff]   ;;  %v2853_v10 = vld [vmem:[%s3864_s1 + $0x2d4] ss:$8 sps:$4 sm:$0xff]  }
  0x81   : > { %2021 = vmatprep.subr.bf16.mxu0 %v2772_v11  ;;  %v2856_v11 = vld [vmem:[%s3864_s1 + $0x6d4] ss:$8 sps:$4 sm:$0xff]  }
  0x83   : > { %1850 = vmatpush1.bf16.msra.mxu1 %v2767_v12  ;;  %v2851_v12 = vld [vmem:[%s3864_s1 + $0x2d0] ss:$8 sps:$4 sm:$0xff]  }
  0x84   : > { %2022 = vmatpush1.bf16.msra.mxu0 %v2770_v13  ;;  %1862 = vmatprep.subr.bf16.mxu1 %v2775_v14  ;;  %v2854_v13 = vld [vmem:[%s3864_s1 + $0x6d0] ss:$8 sps:$4 sm:$0xff]   ;;  %v2859_v14 = vld [vmem:[%s3864_s1 + $0x2e4] ss:$8 sps:$4 sm:$0xff]  }
  0x85   : > { %2034 = vmatprep.subr.bf16.mxu0 %v2778_v15  ;;  %v2862_v15 = vld [vmem:[%s3864_s1 + $0x6e4] ss:$8 sps:$4 sm:$0xff]  }
  0x86   : > { %1852 = vmatmul.mubr.bf16.vlgmr.msra.gmra.mrb[0].mxu1 %v2267_v16  ;;  %v2857_v16 = vld [vmem:[%s3864_s1 + $0x2e0] ss:$8 sps:$4 sm:$0xff]  }
  0x87   : > { %2024 = vmatmul.mubr.bf16.vlgmr.msra.gmra.mrb[0].mxu0 %v2275_v18  ;;  %1863 = vmatpush1.bf16.msra.mxu1 %v2773_v17  ;;  %v2860_v17 = vld [vmem:[%s3864_s1 + $0x6e0] ss:$8 sps:$4 sm:$0xff]   ;;  %v2865_v18 = vld [vmem:[%s3864_s1 + $0x2f4] ss:$8 sps:$4 sm:$0xff]  }
  0x88   : > { %2035 = vmatpush1.bf16.msra.mxu0 %v2776_v19  ;;  %1864 = vmatprep.subr.bf16.mxu1 %v2781_v20  ;;  %v2868_v19 = vld [vmem:[%s3864_s1 + $0x6f4] ss:$8 sps:$4 sm:$0xff]   ;;  %v2863_v20 = vld [vmem:[%s3864_s1 + $0x2f0] ss:$8 sps:$4 sm:$0xff]  }
  0x89   : > { %2036 = vmatprep.subr.bf16.mxu0 %v2784_v21  ;;  %1894 = vmatprep.mubr.bf16.mxu1 %v2270_v28  ;;  %v2866_v21 = vld [vmem:[%s3864_s1 + $0x6f0] ss:$8 sps:$4 sm:$0xff]   ;;  %v2277_v28 = vcombine.low %v3459_v29, %v3462_v30 }
  0x8a   : > { %2066 = vmatprep.mubr.bf16.mxu0 %v2278_v31  ;;  %v3642_v31 = vld [vmem:[%s3142_s24 + $0x58] sm:$0xff] }
  0x8b   : > { %1865 = vmatpush1.bf16.msra.mxu1 %v2779_v22  ;;  %v2871_v22 = vld [vmem:[%s3864_s1 + $0x304] ss:$8 sps:$4 sm:$0xff]  }
  0x8c   : > { %2037 = vmatpush1.bf16.msra.mxu0 %v2782_v23  ;;  %1866 = vmatprep.subr.bf16.mxu1 %v2787_v26  ;;  %v2874_v23 = vld [vmem:[%s3864_s1 + $0x704] ss:$8 sps:$4 sm:$0xff]   ;;  %v3635_v26 = vld [vmem:[%s3142_s24 + $0x18] sm:$0xff] }
  0x8d   : > { %2038 = vmatprep.subr.bf16.mxu0 %v2790_v27  ;;  %v2269_v27 = vcombine.low %v3445_v24, %v3448_v25  ;;  %v2877_v24 = vld [vmem:[%s3864_s1 + $0x314] ss:$8 sps:$4 sm:$0xff]   ;;  %v2272_v29 = vcombine.high %v3635_v26, %v3642_v31 }
  0x8e   : > { %v2880_v25 = vld [vmem:[%s3864_s1 + $0x714] ss:$8 sps:$4 sm:$0xff]  }
  0x8f   : > { %1867 = vmatpush1.bf16.msra.mxu1 %v2785_v32  ;;  %v3645_v32 = vld [vmem:[%s3142_s24 + $0x38] sm:$0xff] }
  0x90   : > { %2039 = vmatpush1.bf16.msra.mxu0 %v2788_v33  ;;  %1868 = vmatprep.subr.bf16.mxu1 %v2793_v34  ;;  %v3648_v33 = vld [vmem:[%s3142_s24 + $0x78] sm:$0xff]  ;;  %v2869_v34 = vld [vmem:[%s3864_s1 + $0x300] ss:$8 sps:$4 sm:$0xff]  }
  0x91   : > { %2040 = vmatprep.subr.bf16.mxu0 %v2796_v35  ;;  %v2872_v35 = vld [vmem:[%s3864_s1 + $0x700] ss:$8 sps:$4 sm:$0xff]   ;;  %v2280_v30 = vcombine.high %v3645_v32, %v3648_v33 }
  0x93   : > { %1869 = vmatpush1.bf16.msra.mxu1 %v2791_v36  ;;  %v2875_v36 = vld [vmem:[%s3864_s1 + $0x310] ss:$8 sps:$4 sm:$0xff]  }
  0x94   : > { %2041 = vmatpush1.bf16.msra.mxu0 %v2794_v37  ;;  %1870 = vmatprep.subr.bf16.mxu1 %v2799_v38  ;;  %v2878_v37 = vld [vmem:[%s3864_s1 + $0x710] ss:$8 sps:$4 sm:$0xff]   ;;  %v2883_v38 = vld [vmem:[%s3864_s1 + $0x324] ss:$8 sps:$4 sm:$0xff]  }
  0x95   : > { %2042 = vmatprep.subr.bf16.mxu0 %v2802_v39  ;;  %v2886_v39 = vld [vmem:[%s3864_s1 + $0x724] ss:$8 sps:$4 sm:$0xff]  }
  0x97   : > { %1871 = vmatpush1.bf16.msra.mxu1 %v2797_v40  ;;  %v2881_v40 = vld [vmem:[%s3864_s1 + $0x320] ss:$8 sps:$4 sm:$0xff]  }
  0x98   : > { %2043 = vmatpush1.bf16.msra.mxu0 %v2800_v41  ;;  %1872 = vmatprep.subr.bf16.mxu1 %v2805_v42  ;;  %v2884_v41 = vld [vmem:[%s3864_s1 + $0x720] ss:$8 sps:$4 sm:$0xff]   ;;  %v2889_v42 = vld [vmem:[%s3864_s1 + $0x334] ss:$8 sps:$4 sm:$0xff]  }
  0x99   : > { %2044 = vmatprep.subr.bf16.mxu0 %v2808_v43  ;;  %v2892_v43 = vld [vmem:[%s3864_s1 + $0x734] ss:$8 sps:$4 sm:$0xff]  }
  0x9b   : > { %1873 = vmatpush1.bf16.msra.mxu1 %v2803_v44  ;;  %v2887_v44 = vld [vmem:[%s3864_s1 + $0x330] ss:$8 sps:$4 sm:$0xff]  }
  0x9c   : > { %2045 = vmatpush1.bf16.msra.mxu0 %v2806_v45  ;;  %1874 = vmatprep.subr.bf16.mxu1 %v2811_v46  ;;  %v2890_v45 = vld [vmem:[%s3864_s1 + $0x730] ss:$8 sps:$4 sm:$0xff]   ;;  %v2895_v46 = vld [vmem:[%s3864_s1 + $0x344] ss:$8 sps:$4 sm:$0xff]  }
  0x9d   : > { %2046 = vmatprep.subr.bf16.mxu0 %v2814_v47  ;;  %v2898_v47 = vld [vmem:[%s3864_s1 + $0x744] ss:$8 sps:$4 sm:$0xff]  }
  0x9f   : > { %1875 = vmatpush1.bf16.msra.mxu1 %v2809_v48  ;;  %v2893_v48 = vld [vmem:[%s3864_s1 + $0x340] ss:$8 sps:$4 sm:$0xff]  }
  0xa0   : > { %2047 = vmatpush1.bf16.msra.mxu0 %v2812_v49  ;;  %1876 = vmatprep.subr.bf16.mxu1 %v2817_v50  ;;  %v2896_v49 = vld [vmem:[%s3864_s1 + $0x740] ss:$8 sps:$4 sm:$0xff]   ;;  %v2901_v50 = vld [vmem:[%s3864_s1 + $0x354] ss:$8 sps:$4 sm:$0xff]  }
  0xa1   : > { %2048 = vmatprep.subr.bf16.mxu0 %v2820_v51  ;;  %v2904_v51 = vld [vmem:[%s3864_s1 + $0x754] ss:$8 sps:$4 sm:$0xff]  }
  0xa3   : > { %1877 = vmatpush1.bf16.msra.mxu1 %v2815_v52  ;;  %v2899_v52 = vld [vmem:[%s3864_s1 + $0x350] ss:$8 sps:$4 sm:$0xff]  }
  0xa4   : > { %2049 = vmatpush1.bf16.msra.mxu0 %v2818_v53  ;;  %1878 = vmatprep.subr.bf16.mxu1 %v2823_v54  ;;  %v2902_v53 = vld [vmem:[%s3864_s1 + $0x750] ss:$8 sps:$4 sm:$0xff]   ;;  %v2907_v54 = vld [vmem:[%s3864_s1 + $0x364] ss:$8 sps:$4 sm:$0xff]  }
  0xa5   : > { %2050 = vmatprep.subr.bf16.mxu0 %v2826_v55  ;;  %v2910_v55 = vld [vmem:[%s3864_s1 + $0x764] ss:$8 sps:$4 sm:$0xff]  }
  0xa7   : > { %1879 = vmatpush1.bf16.msra.mxu1 %v2821_v56  ;;  %v2905_v56 = vld [vmem:[%s3864_s1 + $0x360] ss:$8 sps:$4 sm:$0xff]  }
  0xa8   : > { %2051 = vmatpush1.bf16.msra.mxu0 %v2824_v57  ;;  %1880 = vmatprep.subr.bf16.mxu1 %v2829_v58  ;;  %v2908_v57 = vld [vmem:[%s3864_s1 + $0x760] ss:$8 sps:$4 sm:$0xff]   ;;  %v2913_v58 = vld [vmem:[%s3864_s1 + $0x374] ss:$8 sps:$4 sm:$0xff]  }
  0xa9   : > { %2052 = vmatprep.subr.bf16.mxu0 %v2832_v59  ;;  %v2916_v59 = vld [vmem:[%s3864_s1 + $0x774] ss:$8 sps:$4 sm:$0xff]  }
  0xab   : > { %1881 = vmatpush1.bf16.msra.mxu1 %v2827_v60  ;;  %v2911_v60 = vld [vmem:[%s3864_s1 + $0x370] ss:$8 sps:$4 sm:$0xff]  }
  0xac   : > { %2053 = vmatpush1.bf16.msra.mxu0 %v2830_v61  ;;  %1882 = vmatprep.subr.bf16.mxu1 %v2835_v62  ;;  %v2914_v61 = vld [vmem:[%s3864_s1 + $0x770] ss:$8 sps:$4 sm:$0xff]   ;;  %v2919_v62 = vld [vmem:[%s3864_s1 + $0x384] ss:$8 sps:$4 sm:$0xff]  }
  0xad   : > { %2054 = vmatprep.subr.bf16.mxu0 %v2838_v63  ;;  %v2922_v63 = vld [vmem:[%s3864_s1 + $0x784] ss:$8 sps:$4 sm:$0xff]  }
  0xaf   : > { %1883 = vmatpush1.bf16.msra.mxu1 %v2833_v0  ;;  %v2917_v0 = vld [vmem:[%s3864_s1 + $0x380] ss:$8 sps:$4 sm:$0xff]  }
  0xb0   : > { %2055 = vmatpush1.bf16.msra.mxu0 %v2836_v1  ;;  %1884 = vmatprep.subr.bf16.mxu1 %v2841_v2  ;;  %v2920_v1 = vld [vmem:[%s3864_s1 + $0x780] ss:$8 sps:$4 sm:$0xff]   ;;  %v2925_v2 = vld [vmem:[%s3864_s1 + $0x394] ss:$8 sps:$4 sm:$0xff]  }
  0xb1   : > { %2056 = vmatprep.subr.bf16.mxu0 %v2844_v3  ;;  %v2928_v3 = vld [vmem:[%s3864_s1 + $0x794] ss:$8 sps:$4 sm:$0xff]  }
  0xb3   : > { %1885 = vmatpush1.bf16.msra.mxu1 %v2839_v4  ;;  %v2923_v4 = vld [vmem:[%s3864_s1 + $0x390] ss:$8 sps:$4 sm:$0xff]  }
  0xb4   : > { %2057 = vmatpush1.bf16.msra.mxu0 %v2842_v5  ;;  %1886 = vmatprep.subr.bf16.mxu1 %v2847_v6  ;;  %v2926_v5 = vld [vmem:[%s3864_s1 + $0x790] ss:$8 sps:$4 sm:$0xff]   ;;  %v2931_v6 = vld [vmem:[%s3864_s1 + $0x3a4] ss:$8 sps:$4 sm:$0xff]  }
  0xb5   : > { %2058 = vmatprep.subr.bf16.mxu0 %v2850_v7  ;;  %v2934_v7 = vld [vmem:[%s3864_s1 + $0x7a4] ss:$8 sps:$4 sm:$0xff]  }
  0xb7   : > { %1887 = vmatpush1.bf16.msra.mxu1 %v2845_v8  ;;  %v2929_v8 = vld [vmem:[%s3864_s1 + $0x3a0] ss:$8 sps:$4 sm:$0xff]  }
  0xb8   : > { %2059 = vmatpush1.bf16.msra.mxu0 %v2848_v9  ;;  %1888 = vmatprep.subr.bf16.mxu1 %v2853_v10  ;;  %v2932_v9 = vld [vmem:[%s3864_s1 + $0x7a0] ss:$8 sps:$4 sm:$0xff]   ;;  %v2937_v10 = vld [vmem:[%s3864_s1 + $0x3b4] ss:$8 sps:$4 sm:$0xff]  }
  0xb9   : > { %2060 = vmatprep.subr.bf16.mxu0 %v2856_v11  ;;  %v2940_v11 = vld [vmem:[%s3864_s1 + $0x7b4] ss:$8 sps:$4 sm:$0xff]  }
  0xbb   : > { %1889 = vmatpush1.bf16.msra.mxu1 %v2851_v12  ;;  %v2935_v12 = vld [vmem:[%s3864_s1 + $0x3b0] ss:$8 sps:$4 sm:$0xff]  }
  0xbc   : > { %2061 = vmatpush1.bf16.msra.mxu0 %v2854_v13  ;;  %1890 = vmatprep.subr.bf16.mxu1 %v2859_v14  ;;  %v2938_v13 = vld [vmem:[%s3864_s1 + $0x7b0] ss:$8 sps:$4 sm:$0xff]   ;;  %v2943_v14 = vld [vmem:[%s3864_s1 + $0x3c4] ss:$8 sps:$4 sm:$0xff]  }
  0xbd   : > { %2062 = vmatprep.subr.bf16.mxu0 %v2862_v15  ;;  %v2946_v15 = vld [vmem:[%s3864_s1 + $0x7c4] ss:$8 sps:$4 sm:$0xff]  }
  0xbf   : > { %1891 = vmatpush1.bf16.msra.mxu1 %v2857_v16  ;;  %v2941_v16 = vld [vmem:[%s3864_s1 + $0x3c0] ss:$8 sps:$4 sm:$0xff]  }
  0xc0   : > { %2063 = vmatpush1.bf16.msra.mxu0 %v2860_v17  ;;  %1892 = vmatprep.subr.bf16.mxu1 %v2865_v18  ;;  %v2944_v17 = vld [vmem:[%s3864_s1 + $0x7c0] ss:$8 sps:$4 sm:$0xff]   ;;  %v2949_v18 = vld [vmem:[%s3864_s1 + $0x3d4] ss:$8 sps:$4 sm:$0xff]  }
  0xc1   : > { %2064 = vmatprep.subr.bf16.mxu0 %v2868_v19  ;;  %v2952_v19 = vld [vmem:[%s3864_s1 + $0x7d4] ss:$8 sps:$4 sm:$0xff]  }
  0xc3   : > { %1893 = vmatpush1.bf16.msra.mxu1 %v2863_v20  ;;  %v2947_v20 = vld [vmem:[%s3864_s1 + $0x3d0] ss:$8 sps:$4 sm:$0xff]  }
  0xc4   : > { %2065 = vmatpush1.bf16.msra.mxu0 %v2866_v21  ;;  %1905 = vmatprep.subr.bf16.mxu1 %v2871_v22  ;;  %v2950_v21 = vld [vmem:[%s3864_s1 + $0x7d0] ss:$8 sps:$4 sm:$0xff]   ;;  %v2955_v22 = vld [vmem:[%s3864_s1 + $0x3e4] ss:$8 sps:$4 sm:$0xff]  }
  0xc5   : > { %2077 = vmatprep.subr.bf16.mxu0 %v2874_v23  ;;  %v2958_v23 = vld [vmem:[%s3864_s1 + $0x7e4] ss:$8 sps:$4 sm:$0xff]  }
  0xc6   : > { %1895 = vmatmul.mubr.bf16.vlgmr.msra.gmra.mrb[0].mxu1 %v2269_v27  ;;  %v2953_v27 = vld [vmem:[%s3864_s1 + $0x3e0] ss:$8 sps:$4 sm:$0xff]  }
  0xc7   : > { %2067 = vmatmul.mubr.bf16.vlgmr.msra.gmra.mrb[0].mxu0 %v2277_v28  ;;  %1906 = vmatpush1.bf16.msra.mxu1 %v2869_v34  ;;  %v2956_v28 = vld [vmem:[%s3864_s1 + $0x7e0] ss:$8 sps:$4 sm:$0xff]   ;;  %v2961_v34 = vld [vmem:[%s3864_s1 + $0x3f4] ss:$8 sps:$4 sm:$0xff]  }
  0xc8   : > { %2078 = vmatpush1.bf16.msra.mxu0 %v2872_v35  ;;  %1907 = vmatprep.subr.bf16.mxu1 %v2877_v24  ;;  %v2964_v35 = vld [vmem:[%s3864_s1 + $0x7f4] ss:$8 sps:$4 sm:$0xff]   ;;  %v2959_v24 = vld [vmem:[%s3864_s1 + $0x3f0] ss:$8 sps:$4 sm:$0xff]  }
  0xc9   : > { %2079 = vmatprep.subr.bf16.mxu0 %v2880_v25  ;;  %1937 = vmatprep.mubr.bf16.mxu1 %v2272_v29  ;;  %v2962_v25 = vld [vmem:[%s3864_s1 + $0x7f0] ss:$8 sps:$4 sm:$0xff]   ;;  %v2271_v29 = vcombine.low %v3635_v26, %v3642_v31 }
  0xca   : > { %2109 = vmatprep.mubr.bf16.mxu0 %v2280_v30  ;;  %v2279_v30 = vcombine.low %v3645_v32, %v3648_v33 }
  0xcb   : > { %1908 = vmatpush1.bf16.msra.mxu1 %v2875_v36 }
  0xcc   : > { %2080 = vmatpush1.bf16.msra.mxu0 %v2878_v37  ;;  %1909 = vmatprep.subr.bf16.mxu1 %v2883_v38 }
  0xcd   : > { %2081 = vmatprep.subr.bf16.mxu0 %v2886_v39 }
  0xcf   : > { %1910 = vmatpush1.bf16.msra.mxu1 %v2881_v40 }
  0xd0   : > { %2082 = vmatpush1.bf16.msra.mxu0 %v2884_v41  ;;  %1911 = vmatprep.subr.bf16.mxu1 %v2889_v42 }
  0xd1   : > { %2083 = vmatprep.subr.bf16.mxu0 %v2892_v43 }
  0xd3   : > { %1912 = vmatpush1.bf16.msra.mxu1 %v2887_v44 }
  0xd4   : > { %2084 = vmatpush1.bf16.msra.mxu0 %v2890_v45  ;;  %1913 = vmatprep.subr.bf16.mxu1 %v2895_v46 }
  0xd5   : > { %2085 = vmatprep.subr.bf16.mxu0 %v2898_v47 }
  0xd7   : > { %1914 = vmatpush1.bf16.msra.mxu1 %v2893_v48 }
  0xd8   : > { %2086 = vmatpush1.bf16.msra.mxu0 %v2896_v49  ;;  %1915 = vmatprep.subr.bf16.mxu1 %v2901_v50 }
  0xd9   : > { %2087 = vmatprep.subr.bf16.mxu0 %v2904_v51 }
  0xdb   : > { %1916 = vmatpush1.bf16.msra.mxu1 %v2899_v52 }
  0xdc   : > { %2088 = vmatpush1.bf16.msra.mxu0 %v2902_v53  ;;  %1917 = vmatprep.subr.bf16.mxu1 %v2907_v54 }
  0xdd   : > { %2089 = vmatprep.subr.bf16.mxu0 %v2910_v55 }
  0xdf   : > { %1918 = vmatpush1.bf16.msra.mxu1 %v2905_v56 }
  0xe0   : > { %2090 = vmatpush1.bf16.msra.mxu0 %v2908_v57  ;;  %1919 = vmatprep.subr.bf16.mxu1 %v2913_v58 }
  0xe1   : > { %2091 = vmatprep.subr.bf16.mxu0 %v2916_v59 }
  0xe3   : > { %1920 = vmatpush1.bf16.msra.mxu1 %v2911_v60 }
  0xe4   : > { %2092 = vmatpush1.bf16.msra.mxu0 %v2914_v61  ;;  %1921 = vmatprep.subr.bf16.mxu1 %v2919_v62 }
  0xe5   : > { %2093 = vmatprep.subr.bf16.mxu0 %v2922_v63 }
  0xe7   : > { %1922 = vmatpush1.bf16.msra.mxu1 %v2917_v0 }
  0xe8   : > { %2094 = vmatpush1.bf16.msra.mxu0 %v2920_v1  ;;  %1923 = vmatprep.subr.bf16.mxu1 %v2925_v2 }
  0xe9   : > { %2095 = vmatprep.subr.bf16.mxu0 %v2928_v3 }
  0xeb   : > { %1924 = vmatpush1.bf16.msra.mxu1 %v2923_v4 }
  0xec   : > { %2096 = vmatpush1.bf16.msra.mxu0 %v2926_v5  ;;  %1925 = vmatprep.subr.bf16.mxu1 %v2931_v6 }
  0xed   : > { %2097 = vmatprep.subr.bf16.mxu0 %v2934_v7 }
  0xef   : > { %1926 = vmatpush1.bf16.msra.mxu1 %v2929_v8 }
  0xf0   : > { %2098 = vmatpush1.bf16.msra.mxu0 %v2932_v9  ;;  %1927 = vmatprep.subr.bf16.mxu1 %v2937_v10 }
  0xf1   : > { %2099 = vmatprep.subr.bf16.mxu0 %v2940_v11 }
  0xf3   : > { %1928 = vmatpush1.bf16.msra.mxu1 %v2935_v12 }
  0xf4   : > { %2100 = vmatpush1.bf16.msra.mxu0 %v2938_v13  ;;  %1929 = vmatprep.subr.bf16.mxu1 %v2943_v14 }
  0xf5   : > { %2101 = vmatprep.subr.bf16.mxu0 %v2946_v15 }
  0xf7   : > { %1930 = vmatpush1.bf16.msra.mxu1 %v2941_v16 }
  0xf8   : > { %2102 = vmatpush1.bf16.msra.mxu0 %v2944_v17  ;;  %1931 = vmatprep.subr.bf16.mxu1 %v2949_v18 }
  0xf9   : > { %2103 = vmatprep.subr.bf16.mxu0 %v2952_v19 }
  0xfb   : > { %1932 = vmatpush1.bf16.msra.mxu1 %v2947_v20 }
  0xfc   : > { %2104 = vmatpush1.bf16.msra.mxu0 %v2950_v21  ;;  %1933 = vmatprep.subr.bf16.mxu1 %v2955_v22 }
  0xfd   : > { %2105 = vmatprep.subr.bf16.mxu0 %v2958_v23 }
  0xff   : > { %1934 = vmatpush1.bf16.msra.mxu1 %v2953_v27 }
 0x100   : > { %2106 = vmatpush1.bf16.msra.mxu0 %v2956_v28  ;;  %1935 = vmatprep.subr.bf16.mxu1 %v2961_v34 }
 0x101   : > { %2107 = vmatprep.subr.bf16.mxu0 %v2964_v35 }
 0x103   : > { %1936 = vmatpush1.bf16.msra.mxu1 %v2959_v24 }
 0x104   : > { %2108 = vmatpush1.bf16.msra.mxu0 %v2962_v25 }
 0x106   : > { %1938 = vmatmul.mubr.bf16.vlgmr.msra.gmra.mrb[0].mxu1 %v2271_v29 }
 0x107   : > { %2110 = vmatmul.mubr.bf16.vlgmr.msra.gmra.mrb[0].mxu0 %v2279_v30 }
 0x1d9   : > { %v1939_v36 = vpop.f32.mrb[0].mxu1 }
 0x1da   : > { %v2111_v37 = vpop.f32.mrb[0].mxu0  ;;  %v1941_v39 = vpop.f32.mrb[1].mxu1 }
 0x1db   : > { %v3844_v38 = vadd.f32 %v2111_v37, %v1939_v36  ;;  %v2113_v40 = vpop.f32.mrb[1].mxu0  ;;  %v1943_v42 = vpop.f32.mrb[2].mxu1 }
 0x1dc   : > { %v3846_v41 = vadd.f32 %v2113_v40, %v1941_v39  ;;  %v2115_v43 = vpop.f32.mrb[2].mxu0  ;;  %v1945_v45 = vpop.f32.mrb[3].mxu1 }
 0x1dd   : > { %v2547_v44 = vadd.f32 %v2115_v43, %v1943_v42  ;;  %v2117_v26 = vpop.f32.mrb[3].mxu0  ;;  %v2137_v32 = vmul.f32 %v3844_v38, %v3844_v38 }
 0x1de   : > { %v2548_v31 = vadd.f32 %v2117_v26, %v1945_v45  ;;  %v2138_v47 = vmul.f32 %v3846_v41, %v3846_v41 }
 0x1df   : > { %v2120_v33 = vadd.f32 %v2547_v44, %v3844_v38  ;;  %v2139_v46 = vmul.f32 %v2547_v44, %v2547_v44 }
 0x1e0   : > { %v2127_v48 = vadd.f32 %v2548_v31, %v3846_v41  ;;  %v2140_v49 = vmul.f32 %v2548_v31, %v2548_v31 }
 0x1e1   : > { %v2121_v50 = vrot.slane %v2120_v33, 4  ;;  %v2141_v51 = vadd.f32 %v2139_v46, %v2137_v32 }
 0x1e2   : > { %v2128_v52 = vrot.slane %v2127_v48, 4  ;;  %v2148_v53 = vadd.f32 %v2140_v49, %v2138_v47 }
 0x1e3   : > { %v2122_v54 = vadd.f32 %v2121_v50, %v2120_v33  ;;  %v2142_v55 = vrot.slane %v2141_v51, 4 }
 0x1e4   : > { %v2129_v56 = vadd.f32 %v2128_v52, %v2127_v48  ;;  %v2149_v57 = vrot.slane %v2148_v53, 4 }
 0x1e5   : > { %v2123_v58 = vrot.slane %v2122_v54, 2  ;;  %v2143_v59 = vadd.f32 %v2142_v55, %v2141_v51 }
 0x1e6   : > { %v2130_v60 = vrot.slane %v2129_v56, 2  ;;  %v2150_v61 = vadd.f32 %v2149_v57, %v2148_v53 }
 0x1e7   : > { %v2124_v62 = vadd.f32 %v2123_v58, %v2122_v54  ;;  %v2144_v63 = vrot.slane %v2143_v59, 2 }
 0x1e8   : > { %v2131_v0 = vadd.f32 %v2130_v60, %v2129_v56  ;;  %v2151_v1 = vrot.slane %v2150_v61, 2 }
 0x1e9   : > { %v2125_v2 = vrot.slane %v2124_v62, 1  ;;  %v2145_v3 = vadd.f32 %v2144_v63, %v2143_v59 }
 0x1ea   : > { %v2132_v4 = vrot.slane %v2131_v0, 1  ;;  %v2152_v5 = vadd.f32 %v2151_v1, %v2150_v61 }
 0x1eb   : > { %v2126_v6 = vadd.f32 %v2125_v2, %v2124_v62  ;;  %v2146_v7 = vrot.slane %v2145_v3, 1 }
 0x1ec   : > { %v2133_v8 = vadd.f32 %v2132_v4, %v2131_v0  ;;  %v2153_v9 = vrot.slane %v2152_v5, 1 }
 0x1ed   : > { %v2135_v10 = vmul.f32 0.0625, %v2126_v6  ;;  %v2147_v11 = vadd.f32 %v2146_v7, %v2145_v3 }
 0x1ee   : > { %v2136_v12 = vmul.f32 0.0625, %v2133_v8  ;;  %v2154_v13 = vadd.f32 %v2153_v9, %v2152_v5 }
 0x1ef   : > { %v2155_v14 = vmul.f32 0.0625, %v2147_v11  ;;  %v2157_v15 = vmul.f32 %v2135_v10, %v2135_v10  ;;  %v2163_v16 = vsub.f32 %v3844_v38, %v2135_v10  ;;  %v2165_v17 = vsub.f32 %v2547_v44, %v2135_v10 }
 0x1f0   : > { %v2156_v18 = vmul.f32 0.0625, %v2154_v13  ;;  %v2158_v19 = vmul.f32 %v2136_v12, %v2136_v12  ;;  %v2164_v20 = vsub.f32 %v3846_v41, %v2136_v12  ;;  %v2166_v21 = vsub.f32 %v2548_v31, %v2136_v12 }
 0x1f1   : > { %v2159_v22 = vsub.f32 %v2155_v14, %v2157_v15 }
 0x1f2   : > { %v2160_v23 = vsub.f32 %v2156_v18, %v2158_v19 }
 0x1f3   : > { %v2161_v27 = vmax.f32 %v2159_v22, 0.0 }
 0x1f4   : > { %v2162_v28 = vmax.f32 %v2160_v23, 0.0 }
 0x1f5   : > { %v2167_v34 = vadd.f32 1e-05, %v2161_v27 }
 0x1f6   : > { %v2168_v35 = vadd.f32 1e-05, %v2162_v28 }
 0x1f7   : > { %2965 = vrsqrt.f32 %v2167_v34 }
 0x1f8   : > { %2967 = vrsqrt.f32 %v2168_v35 }
 0x201   : > { %v2966_v24 = vpop.eup %2965 }
 0x202   : > { %v2968_v25 = vpop.eup %2967  ;;  %v2171_v29 = vmul.f32 %v2966_v24, %v2163_v16  ;;  %v2173_v30 = vmul.f32 %v2966_v24, %v2165_v17 }
 0x203   : > { %v2172_v36 = vmul.f32 %v2968_v25, %v2164_v20  ;;  %v2174_v37 = vmul.f32 %v2968_v25, %v2166_v21 }
 0x204   : > { %vm2175_vm0 = vcmp.gt.f32.partialorder %v2171_v29, 0.0  ;;  %vm2177_vm1 = vcmp.gt.f32.partialorder %v2173_v30, 0.0  ;;  %v2179_v38 = vmul.f32 0.2, %v2171_v29  ;;  %v2181_v39 = vmul.f32 0.2, %v2173_v30 }
 0x205   : > { %vm2176_vm2 = vcmp.gt.f32.partialorder %v2172_v36, 0.0  ;;  %vm2178_vm3 = vcmp.gt.f32.partialorder %v2174_v37, 0.0  ;;  %v2180_v40 = vmul.f32 0.2, %v2172_v36  ;;  %v2182_v41 = vmul.f32 0.2, %v2174_v37 }
 0x206   : > { %v2185_v42 = vsel %vm2177_vm1, %v2173_v30, %v2181_v39  ;;  %v2183_v43 = vsel %vm2175_vm0, %v2171_v29, %v2179_v38 }
 0x207   : > { %v2184_v44 = vsel %vm2176_vm2, %v2172_v36, %v2180_v40  ;;  %v2186_v45 = vsel %vm2178_vm3, %v2174_v37, %v2182_v41 }
 0x208   : > { %v2543_v26 = vpack.c.bf16 %v2184_v44, %v2183_v43  ;;  %v2544_v31 = vpack.c.bf16 %v2186_v45, %v2185_v42 }
 0x20a   : > { %2199 = vst [vmem:[%s143_s21] sm:$0xff] %v2543_v26  ;;  %2200 = vst [vmem:[%s143_s21 + $0x8] sm:$0xff] %v2544_v31 }
 0x20b PF: > { %s12_s9 = sadd.s32 1, %s2975_s9  }
 0x20c   : > { %p9_p4 = scmp.ge.s32.totalorder %s12_s9, 4  }
 0x20e   :  { %11 = sbr.rel (!%p9_p4) target bundleno = 1 (0x1), region = 58 }

// kernel: discriminator_forward.7
= control target key start
LH: loop header
LB: loop body
LE: loop exit
PB: predicated region body
PF: predicated region fallthrough
CT: control target
= control target key end

     0   :  { %s10928_s17 = smov 0   ;;  %s14263_s0 = inlined_call_operand.vmem [shape: bf16[2,9,4096], index: 0, kind: input, shape index: {}]   ;;  %s14264_s1 = inlined_call_operand.vmem [shape: bf16[4096,512], index: 1, kind: input, shape index: {}]   ;;  %s14265_s2 = inlined_call_operand.vmem [shape: f32[9,512], index: 2, kind: input, shape index: {}]   ;;  %s14266_s3 = inlined_call_operand.<no memory space> [shape: f32[1,1], index: 3, kind: input, shape index: {}]   ;;  %s14267_s4 = inlined_call_operand.vmem [shape: f32[2,1,1], index: 4, kind: output, shape index: {}]  }
   0x1   :  { %v9_v0 = vstv %s14266_s3 }
   0x2   :  { %10 = vst [vmem:[#allocation2] sm:$0x1] %v9_v0 }
   0x3 LB: > { %s8154_s18 = sadd.s32 4294967295, %s10898_s17   ;;  %p8158_p0 = scmp.ge.s32.totalorder %s10898_s17, 1  ;;  %s10898_s17 = sphi %s10928_s17, %s16_s17  }
   0x4   : > { %p164_p1 = scmp.lt.s32.totalorder %s10898_s17, 3 }
   0x6   : > { %p165_p2 = pnand %p8158_p0, %p164_p1 }
   0x7   : > { %v9348_v1 = vld [vmem:[%s14264_s1 + $0x4] ss:$16 sps:$4 sm:$0xff] (!%p165_p2)   ;;  %v9350_v2 = vld [vmem:[%s14264_s1 + $0xc] ss:$16 sps:$4 sm:$0xff] (!%p165_p2)   ;;  %v9352_v3 = vld [vmem:[%s14264_s1] ss:$16 sps:$4 sm:$0xff] (!%p165_p2)  }
   0x8   : > { %168 = sbr.rel (%p165_p2) target bundleno = 1459 (0x5b3), region = 36  ;;  %6532 = vmatprep.subr.bf16.mxu0 (!%p165_p2), %v9348_v1  ;;  %v9353_v4 = vld [vmem:[%s14264_s1 + $0x8] ss:$16 sps:$4 sm:$0xff] (!%p165_p2)   ;;  %7220 = vmatprep.subr.bf16.mxu1 (!%p165_p2), %v9350_v2  ;;  %v9354_v5 = vld [vmem:[%s14264_s1 + $0x24] ss:$16 sps:$4 sm:$0xff] (!%p165_p2)   ;;  %p188_p3 = scmp.lt.s32.totalorder (!%p165_p2), %s8154_s18, 1 }
   0x9   : > { %6533 = vmatpush1.bf16.msra.mxu0 (!%p165_p2), %v9352_v3  ;;  %7221 = vmatpush1.bf16.msra.mxu1 (!%p165_p2), %v9353_v4  ;;  %v9356_v6 = vld [vmem:[%s14264_s1 + $0x2c] ss:$16 sps:$4 sm:$0xff] (!%p165_p2)   ;;  %v9358_v7 = vld [vmem:[%s14264_s1 + $0x20] ss:$16 sps:$4 sm:$0xff] (!%p165_p2)   ;;  %v9359_v8 = vld [vmem:[%s14264_s1 + $0x28] ss:$16 sps:$4 sm:$0xff] (!%p165_p2)  }
   0xa   : > { %6534 = vmatprep.subr.bf16.mxu0 (!%p165_p2), %v9354_v5  ;;  %7222 = vmatprep.subr.bf16.mxu1 (!%p165_p2), %v9356_v6  ;;  %v9360_v9 = vld [vmem:[%s14264_s1 + $0x44] ss:$16 sps:$4 sm:$0xff] (!%p165_p2)   ;;  %v9362_v10 = vld [vmem:[%s14264_s1 + $0x4c] ss:$16 sps:$4 sm:$0xff] (!%p165_p2)   ;;  %v9364_v11 = vld [vmem:[%s14264_s1 + $0x40] ss:$16 sps:$4 sm:$0xff] (!%p165_p2)  }
   0xb   : > { %v9365_v12 = vld [vmem:[%s14264_s1 + $0x48] ss:$16 sps:$4 sm:$0xff] (!%p165_p2)   ;;  %v9366_v13 = vld [vmem:[%s14264_s1 + $0x64] ss:$16 sps:$4 sm:$0xff] (!%p165_p2)   ;;  %v9368_v14 = vld [vmem:[%s14264_s1 + $0x6c] ss:$16 sps:$4 sm:$0xff] (!%p165_p2)  }
   0xc   : > { %v9370_v15 = vld [vmem:[%s14264_s1 + $0x60] ss:$16 sps:$4 sm:$0xff] (!%p165_p2)   ;;  %v9371_v16 = vld [vmem:[%s14264_s1 + $0x68] ss:$16 sps:$4 sm:$0xff] (!%p165_p2)   ;;  %v9372_v17 = vld [vmem:[%s14264_s1 + $0x84] ss:$16 sps:$4 sm:$0xff] (!%p165_p2)  }
   0xd   : > { %6535 = vmatpush1.bf16.msra.mxu0 (!%p165_p2), %v9358_v7  ;;  %7223 = vmatpush1.bf16.msra.mxu1 (!%p165_p2), %v9359_v8  ;;  %v9374_v18 = vld [vmem:[%s14264_s1 + $0x8c] ss:$16 sps:$4 sm:$0xff] (!%p165_p2)   ;;  %v9376_v19 = vld [vmem:[%s14264_s1 + $0x80] ss:$16 sps:$4 sm:$0xff] (!%p165_p2)   ;;  %v9377_v20 = vld [vmem:[%s14264_s1 + $0x88] ss:$16 sps:$4 sm:$0xff] (!%p165_p2)  }
   0xe   : > { %6536 = vmatprep.subr.bf16.mxu0 (!%p165_p2), %v9360_v9  ;;  %7224 = vmatprep.subr.bf16.mxu1 (!%p165_p2), %v9362_v10  ;;  %v9378_v21 = vld [vmem:[%s14264_s1 + $0xa4] ss:$16 sps:$4 sm:$0xff] (!%p165_p2)   ;;  %v9380_v22 = vld [vmem:[%s14264_s1 + $0xac] ss:$16 sps:$4 sm:$0xff] (!%p165_p2)   ;;  %v9382_v23 = vld [vmem:[%s14264_s1 + $0xa0] ss:$16 sps:$4 sm:$0xff] (!%p165_p2)  }
   0xf   : > { %v9383_v24 = vld [vmem:[%s14264_s1 + $0xa8] ss:$16 sps:$4 sm:$0xff]   ;;  %v9384_v25 = vld [vmem:[%s14264_s1 + $0xc4] ss:$16 sps:$4 sm:$0xff]   ;;  %v9386_v26 = vld [vmem:[%s14264_s1 + $0xcc] ss:$16 sps:$4 sm:$0xff]  }
  0x10   : > { %v9388_v27 = vld [vmem:[%s14264_s1 + $0xc0] ss:$16 sps:$4 sm:$0xff]   ;;  %v9389_v28 = vld [vmem:[%s14264_s1 + $0xc8] ss:$16 sps:$4 sm:$0xff]   ;;  %v9390_v29 = vld [vmem:[%s14264_s1 + $0xe4] ss:$16 sps:$4 sm:$0xff]  }
  0x11   : > { %6537 = vmatpush1.bf16.msra.mxu0 %v9364_v11  ;;  %7225 = vmatpush1.bf16.msra.mxu1 %v9365_v12  ;;  %v9392_v30 = vld [vmem:[%s14264_s1 + $0xec] ss:$16 sps:$4 sm:$0xff]   ;;  %v9394_v31 = vld [vmem:[%s14264_s1 + $0xe0] ss:$16 sps:$4 sm:$0xff]   ;;  %v9395_v32 = vld [vmem:[%s14264_s1 + $0xe8] ss:$16 sps:$4 sm:$0xff]  }
  0x12   : > { %6538 = vmatprep.subr.bf16.mxu0 %v9366_v13  ;;  %7226 = vmatprep.subr.bf16.mxu1 %v9368_v14  ;;  %v9396_v33 = vld [vmem:[%s14264_s1 + $0x104] ss:$16 sps:$4 sm:$0xff]   ;;  %v9398_v34 = vld [vmem:[%s14264_s1 + $0x10c] ss:$16 sps:$4 sm:$0xff]   ;;  %v9400_v35 = vld [vmem:[%s14264_s1 + $0x100] ss:$16 sps:$4 sm:$0xff]  }
  0x13   : > { %v9401_v36 = vld [vmem:[%s14264_s1 + $0x108] ss:$16 sps:$4 sm:$0xff]   ;;  %v9402_v37 = vld [vmem:[%s14264_s1 + $0x124] ss:$16 sps:$4 sm:$0xff]   ;;  %s14269_s18 = smov (!%p188_p3, %s8154_s18), 1  ;;  %vm7908_vm0 = vcmask 1040384  }
  0x14   : > { %v9404_v38 = vld [vmem:[%s14264_s1 + $0x12c] ss:$16 sps:$4 sm:$0xff]   ;;  %v9406_v39 = vld [vmem:[%s14264_s1 + $0x120] ss:$16 sps:$4 sm:$0xff]   ;;  %v9407_v40 = vld [vmem:[%s14264_s1 + $0x128] ss:$16 sps:$4 sm:$0xff]   ;;  %s195_s13 = scalar_lea.vmem %s14267_s4, %s14269_s18 }
  0x15   : > { %6539 = vmatpush1.bf16.msra.mxu0 %v9370_v15  ;;  %7227 = vmatpush1.bf16.msra.mxu1 %v9371_v16  ;;  %v9408_v41 = vld [vmem:[%s14264_s1 + $0x144] ss:$16 sps:$4 sm:$0xff]   ;;  %s9219_s25 = sshll.u32 %s14269_s18, 8  ;;  %v9410_v42 = vld [vmem:[%s14264_s1 + $0x14c] ss:$16 sps:$4 sm:$0xff]   ;;  %vm8105_vm9 = vcmask 0  }
  0x16   : > { %6540 = vmatprep.subr.bf16.mxu0 %v9372_v17  ;;  %7228 = vmatprep.subr.bf16.mxu1 %v9374_v18  ;;  %v9412_v43 = vld [vmem:[%s14264_s1 + $0x140] ss:$16 sps:$4 sm:$0xff]   ;;  %v9413_v44 = vld [vmem:[%s14264_s1 + $0x148] ss:$16 sps:$4 sm:$0xff]   ;;  %s11078_s8 = scalar_lea.vmem %s14263_s0, %s9219_s25  ;;  %v9414_v45 = vld [vmem:[%s14264_s1 + $0x164] ss:$16 sps:$4 sm:$0xff]  }
  0x17   : > { %v9416_v46 = vld [vmem:[%s14264_s1 + $0x16c] ss:$16 sps:$4 sm:$0xff]   ;;  %v196_v47 = vld [vmem:[%s11078_s8] sm:$0xff]  ;;  %v9419_v50 = vld [vmem:[%s14264_s1 + $0x168] ss:$16 sps:$4 sm:$0xff]  }
  0x18   : > { %v212_v48 = vld [vmem:[%s11078_s8 + $0x80] sm:$0x11]  ;;  %v9422_v53 = vld [vmem:[%s14264_s1 + $0x18c] ss:$16 sps:$4 sm:$0xff]   ;;  %v9425_v55 = vld [vmem:[%s14264_s1 + $0x188] ss:$16 sps:$4 sm:$0xff]  }
  0x19   : > { %6541 = vmatpush1.bf16.msra.mxu0 %v9376_v19  ;;  %7229 = vmatpush1.bf16.msra.mxu1 %v9377_v20  ;;  %v9418_v49 = vld [vmem:[%s14264_s1 + $0x160] ss:$16 sps:$4 sm:$0xff]   ;;  %v8162_v51 = vcombine.high %v196_v47, %v212_v48  ;;  %v9420_v52 = vld [vmem:[%s14264_s1 + $0x184] ss:$16 sps:$4 sm:$0xff]   ;;  %v9428_v57 = vld [vmem:[%s14264_s1 + $0x1ac] ss:$16 sps:$4 sm:$0xff]   ;;  %v8161_v6 = vcombine.low %v196_v47, %v212_v48 }
  0x1a   : > { %6542 = vmatprep.subr.bf16.mxu0 %v9378_v21  ;;  %7230 = vmatprep.subr.bf16.mxu1 %v9380_v22  ;;  %v9424_v54 = vld [vmem:[%s14264_s1 + $0x180] ss:$16 sps:$4 sm:$0xff]   ;;  %v9426_v56 = vld [vmem:[%s14264_s1 + $0x1a4] ss:$16 sps:$4 sm:$0xff]   ;;  %v9431_v59 = vld [vmem:[%s14264_s1 + $0x1a8] ss:$16 sps:$4 sm:$0xff]  }
  0x1b   : > { %6564 = vmatprep.mubr.bf16.mxu0 %v8162_v51  ;;  %7252 = vmatprep.mubr.bf16.mxu1 %v8162_v51  ;;  %v9430_v58 = vld [vmem:[%s14264_s1 + $0x1a0] ss:$16 sps:$4 sm:$0xff]   ;;  %v9432_v60 = vld [vmem:[%s14264_s1 + $0x1c4] ss:$16 sps:$4 sm:$0xff]   ;;  %v9434_v61 = vld [vmem:[%s14264_s1 + $0x1cc] ss:$16 sps:$4 sm:$0xff]  }
  0x1c   : > { %v9436_v62 = vld [vmem:[%s14264_s1 + $0x1c0] ss:$16 sps:$4 sm:$0xff]   ;;  %v9437_v63 = vld [vmem:[%s14264_s1 + $0x1c8] ss:$16 sps:$4 sm:$0xff]   ;;  %v9438_v0 = vld [vmem:[%s14264_s1 + $0x1e4] ss:$16 sps:$4 sm:$0xff]  }
  0x1d   : > { %6543 = vmatpush1.bf16.msra.mxu0 %v9382_v23  ;;  %7231 = vmatpush1.bf16.msra.mxu1 %v9383_v24  ;;  %v9440_v1 = vld [vmem:[%s14264_s1 + $0x1ec] ss:$16 sps:$4 sm:$0xff]   ;;  %v9442_v2 = vld [vmem:[%s14264_s1 + $0x1e0] ss:$16 sps:$4 sm:$0xff]   ;;  %v9443_v3 = vld [vmem:[%s14264_s1 + $0x1e8] ss:$16 sps:$4 sm:$0xff]  }
  0x1e   : > { %6544 = vmatprep.subr.bf16.mxu0 %v9384_v25  ;;  %7232 = vmatprep.subr.bf16.mxu1 %v9386_v26  ;;  %v9446_v4 = vld [vmem:[%s14264_s1 + $0x204] ss:$16 sps:$4 sm:$0xff]   ;;  %v9449_v5 = vld [vmem:[%s14264_s1 + $0x20c] ss:$16 sps:$4 sm:$0xff]   ;;  %v9444_v7 = vld [vmem:[%s14264_s1 + $0x200] ss:$16 sps:$4 sm:$0xff]  }
  0x1f   : > { %v9447_v8 = vld [vmem:[%s14264_s1 + $0x208] ss:$16 sps:$4 sm:$0xff]   ;;  %v9452_v9 = vld [vmem:[%s14264_s1 + $0x224] ss:$16 sps:$4 sm:$0xff]   ;;  %v9455_v10 = vld [vmem:[%s14264_s1 + $0x22c] ss:$16 sps:$4 sm:$0xff]  }
  0x20   : > { %v9450_v11 = vld [vmem:[%s14264_s1 + $0x220] ss:$16 sps:$4 sm:$0xff]   ;;  %v9453_v12 = vld [vmem:[%s14264_s1 + $0x228] ss:$16 sps:$4 sm:$0xff]   ;;  %v9458_v13 = vld [vmem:[%s14264_s1 + $0x244] ss:$16 sps:$4 sm:$0xff]  }
  0x21   : > { %6545 = vmatpush1.bf16.msra.mxu0 %v9388_v27  ;;  %7233 = vmatpush1.bf16.msra.mxu1 %v9389_v28  ;;  %v9461_v14 = vld [vmem:[%s14264_s1 + $0x24c] ss:$16 sps:$4 sm:$0xff]   ;;  %v9456_v15 = vld [vmem:[%s14264_s1 + $0x240] ss:$16 sps:$4 sm:$0xff]   ;;  %v9459_v16 = vld [vmem:[%s14264_s1 + $0x248] ss:$16 sps:$4 sm:$0xff]  }
  0x22   : > { %6546 = vmatprep.subr.bf16.mxu0 %v9390_v29  ;;  %7234 = vmatprep.subr.bf16.mxu1 %v9392_v30  ;;  %v9464_v17 = vld [vmem:[%s14264_s1 + $0x264] ss:$16 sps:$4 sm:$0xff]   ;;  %v9467_v18 = vld [vmem:[%s14264_s1 + $0x26c] ss:$16 sps:$4 sm:$0xff]   ;;  %v9462_v19 = vld [vmem:[%s14264_s1 + $0x260] ss:$16 sps:$4 sm:$0xff]  }
  0x23   : > { %v9465_v20 = vld [vmem:[%s14264_s1 + $0x268] ss:$16 sps:$4 sm:$0xff]   ;;  %v9470_v21 = vld [vmem:[%s14264_s1 + $0x284] ss:$16 sps:$4 sm:$0xff]   ;;  %v9473_v22 = vld [vmem:[%s14264_s1 + $0x28c] ss:$16 sps:$4 sm:$0xff]  }
  0x24   : > { %v9468_v23 = vld [vmem:[%s14264_s1 + $0x280] ss:$16 sps:$4 sm:$0xff]   ;;  %v9471_v24 = vld [vmem:[%s14264_s1 + $0x288] ss:$16 sps:$4 sm:$0xff]   ;;  %v9476_v25 = vld [vmem:[%s14264_s1 + $0x2a4] ss:$16 sps:$4 sm:$0xff]  }
  0x25   : > { %6547 = vmatpush1.bf16.msra.mxu0 %v9394_v31  ;;  %7235 = vmatpush1.bf16.msra.mxu1 %v9395_v32  ;;  %v9479_v26 = vld [vmem:[%s14264_s1 + $0x2ac] ss:$16 sps:$4 sm:$0xff]   ;;  %v9474_v27 = vld [vmem:[%s14264_s1 + $0x2a0] ss:$16 sps:$4 sm:$0xff]   ;;  %v9477_v28 = vld [vmem:[%s14264_s1 + $0x2a8] ss:$16 sps:$4 sm:$0xff]  }
  0x26   : > { %6548 = vmatprep.subr.bf16.mxu0 %v9396_v33  ;;  %7236 = vmatprep.subr.bf16.mxu1 %v9398_v34  ;;  %v9482_v29 = vld [vmem:[%s14264_s1 + $0x2c4] ss:$16 sps:$4 sm:$0xff]   ;;  %v9485_v30 = vld [vmem:[%s14264_s1 + $0x2cc] ss:$16 sps:$4 sm:$0xff]   ;;  %v9480_v33 = vld [vmem:[%s14264_s1 + $0x2c0] ss:$16 sps:$4 sm:$0xff]  }
  0x27   : > { %v11221_v31 = vld [vmem:[%s11078_s8 + $0x8] sm:$0xff]  ;;  %v9506_v48 = vld [vmem:[%s14264_s1 + $0x344] ss:$16 sps:$4 sm:$0xff]  }
  0x28   : > { %v11224_v32 = vld [vmem:[%s11078_s8 + $0x88] sm:$0x11] }
  0x29   : > { %6549 = vmatpush1.bf16.msra.mxu0 %v9400_v35  ;;  %7237 = vmatpush1.bf16.msra.mxu1 %v9401_v36  ;;  %v9483_v34 = vld [vmem:[%s14264_s1 + $0x2c8] ss:$16 sps:$4 sm:$0xff]   ;;  %v8164_v35 = vcombine.high %v11221_v31, %v11224_v32  ;;  %v9488_v36 = vld [vmem:[%s14264_s1 + $0x2e4] ss:$16 sps:$4 sm:$0xff]  }
  0x2a   : > { %6550 = vmatprep.subr.bf16.mxu0 %v9402_v37  ;;  %7238 = vmatprep.subr.bf16.mxu1 %v9404_v38  ;;  %v9491_v37 = vld [vmem:[%s14264_s1 + $0x2ec] ss:$16 sps:$4 sm:$0xff]   ;;  %v9486_v38 = vld [vmem:[%s14264_s1 + $0x2e0] ss:$16 sps:$4 sm:$0xff]   ;;  %v9501_v47 = vld [vmem:[%s14264_s1 + $0x328] ss:$16 sps:$4 sm:$0xff]  }
  0x2b   : > { %v9507_v51 = vld [vmem:[%s14264_s1 + $0x348] ss:$16 sps:$4 sm:$0xff]  }
  0x2d   : > { %6551 = vmatpush1.bf16.msra.mxu0 %v9406_v39  ;;  %7239 = vmatpush1.bf16.msra.mxu1 %v9407_v40  ;;  %v9489_v39 = vld [vmem:[%s14264_s1 + $0x2e8] ss:$16 sps:$4 sm:$0xff]   ;;  %v9494_v40 = vld [vmem:[%s14264_s1 + $0x304] ss:$16 sps:$4 sm:$0xff]  }
  0x2e   : > { %6552 = vmatprep.subr.bf16.mxu0 %v9408_v41  ;;  %7240 = vmatprep.subr.bf16.mxu1 %v9410_v42  ;;  %v9497_v41 = vld [vmem:[%s14264_s1 + $0x30c] ss:$16 sps:$4 sm:$0xff]   ;;  %v9492_v42 = vld [vmem:[%s14264_s1 + $0x300] ss:$16 sps:$4 sm:$0xff]  }
  0x31   : > { %6553 = vmatpush1.bf16.msra.mxu0 %v9412_v43  ;;  %7241 = vmatpush1.bf16.msra.mxu1 %v9413_v44  ;;  %v9495_v43 = vld [vmem:[%s14264_s1 + $0x308] ss:$16 sps:$4 sm:$0xff]   ;;  %v9500_v44 = vld [vmem:[%s14264_s1 + $0x324] ss:$16 sps:$4 sm:$0xff]  }
  0x32   : > { %6554 = vmatprep.subr.bf16.mxu0 %v9414_v45  ;;  %7242 = vmatprep.subr.bf16.mxu1 %v9416_v46  ;;  %v9503_v45 = vld [vmem:[%s14264_s1 + $0x32c] ss:$16 sps:$4 sm:$0xff]   ;;  %v9498_v46 = vld [vmem:[%s14264_s1 + $0x320] ss:$16 sps:$4 sm:$0xff]  }
  0x35   : > { %6555 = vmatpush1.bf16.msra.mxu0 %v9418_v49  ;;  %7243 = vmatpush1.bf16.msra.mxu1 %v9419_v50  ;;  %v9509_v49 = vld [vmem:[%s14264_s1 + $0x34c] ss:$16 sps:$4 sm:$0xff]   ;;  %v9504_v50 = vld [vmem:[%s14264_s1 + $0x340] ss:$16 sps:$4 sm:$0xff]  }
  0x36   : > { %6556 = vmatprep.subr.bf16.mxu0 %v9420_v52  ;;  %7244 = vmatprep.subr.bf16.mxu1 %v9422_v53  ;;  %v9512_v52 = vld [vmem:[%s14264_s1 + $0x364] ss:$16 sps:$4 sm:$0xff]   ;;  %v9515_v53 = vld [vmem:[%s14264_s1 + $0x36c] ss:$16 sps:$4 sm:$0xff]  }
  0x39   : > { %6557 = vmatpush1.bf16.msra.mxu0 %v9424_v54  ;;  %7245 = vmatpush1.bf16.msra.mxu1 %v9425_v55  ;;  %v9510_v54 = vld [vmem:[%s14264_s1 + $0x360] ss:$16 sps:$4 sm:$0xff]   ;;  %v9513_v55 = vld [vmem:[%s14264_s1 + $0x368] ss:$16 sps:$4 sm:$0xff]  }
  0x3a   : > { %6558 = vmatprep.subr.bf16.mxu0 %v9426_v56  ;;  %7246 = vmatprep.subr.bf16.mxu1 %v9428_v57  ;;  %v9518_v56 = vld [vmem:[%s14264_s1 + $0x384] ss:$16 sps:$4 sm:$0xff]   ;;  %v9521_v57 = vld [vmem:[%s14264_s1 + $0x38c] ss:$16 sps:$4 sm:$0xff]  }
  0x3d   : > { %6559 = vmatpush1.bf16.msra.mxu0 %v9430_v58  ;;  %7247 = vmatpush1.bf16.msra.mxu1 %v9431_v59  ;;  %v9516_v58 = vld [vmem:[%s14264_s1 + $0x380] ss:$16 sps:$4 sm:$0xff]   ;;  %v9519_v59 = vld [vmem:[%s14264_s1 + $0x388] ss:$16 sps:$4 sm:$0xff]  }
  0x3e   : > { %6560 = vmatprep.subr.bf16.mxu0 %v9432_v60  ;;  %7248 = vmatprep.subr.bf16.mxu1 %v9434_v61  ;;  %v9524_v60 = vld [vmem:[%s14264_s1 + $0x3a4] ss:$16 sps:$4 sm:$0xff]   ;;  %v9527_v61 = vld [vmem:[%s14264_s1 + $0x3ac] ss:$16 sps:$4 sm:$0xff]  }
  0x41   : > { %6561 = vmatpush1.bf16.msra.mxu0 %v9436_v62  ;;  %7249 = vmatpush1.bf16.msra.mxu1 %v9437_v63  ;;  %v9522_v62 = vld [vmem:[%s14264_s1 + $0x3a0] ss:$16 sps:$4 sm:$0xff]   ;;  %v9525_v63 = vld [vmem:[%s14264_s1 + $0x3a8] ss:$16 sps:$4 sm:$0xff]  }
  0x42   : > { %6562 = vmatprep.subr.bf16.mxu0 %v9438_v0  ;;  %7250 = vmatprep.subr.bf16.mxu1 %v9440_v1  ;;  %v9530_v0 = vld [vmem:[%s14264_s1 + $0x3c4] ss:$16 sps:$4 sm:$0xff]   ;;  %v9533_v1 = vld [vmem:[%s14264_s1 + $0x3cc] ss:$16 sps:$4 sm:$0xff]  }
  0x45   : > { %6563 = vmatpush1.bf16.msra.mxu0 %v9442_v2  ;;  %7251 = vmatpush1.bf16.msra.mxu1 %v9443_v3  ;;  %v9528_v2 = vld [vmem:[%s14264_s1 + $0x3c0] ss:$16 sps:$4 sm:$0xff]   ;;  %v9531_v3 = vld [vmem:[%s14264_s1 + $0x3c8] ss:$16 sps:$4 sm:$0xff]  }
  0x46   : > { %6575 = vmatprep.subr.bf16.mxu0 %v9446_v4  ;;  %7263 = vmatprep.subr.bf16.mxu1 %v9449_v5  ;;  %v9536_v4 = vld [vmem:[%s14264_s1 + $0x3e4] ss:$16 sps:$4 sm:$0xff]   ;;  %v9539_v5 = vld [vmem:[%s14264_s1 + $0x3ec] ss:$16 sps:$4 sm:$0xff]  }
  0x48   : > { %6565 = vmatmul.mubr.bf16.vlgmr.msra.gmra.mrb[0].mxu0 %v8161_v6  ;;  %7253 = vmatmul.mubr.bf16.vlgmr.msra.gmra.mrb[0].mxu1 %v8161_v6  ;;  %v9534_v6 = vld [vmem:[%s14264_s1 + $0x3e0] ss:$16 sps:$4 sm:$0xff]  }
  0x49   : > { %6576 = vmatpush1.bf16.msra.mxu0 %v9444_v7  ;;  %7264 = vmatpush1.bf16.msra.mxu1 %v9447_v8  ;;  %v9537_v7 = vld [vmem:[%s14264_s1 + $0x3e8] ss:$16 sps:$4 sm:$0xff]   ;;  %v9542_v8 = vld [vmem:[%s14264_s1 + $0x404] ss:$16 sps:$4 sm:$0xff]  }
  0x4a   : > { %6577 = vmatprep.subr.bf16.mxu0 %v9452_v9  ;;  %7265 = vmatprep.subr.bf16.mxu1 %v9455_v10  ;;  %v9545_v9 = vld [vmem:[%s14264_s1 + $0x40c] ss:$16 sps:$4 sm:$0xff]   ;;  %v8163_v10 = vcombine.low %v11221_v31, %v11224_v32  ;;  %v9567_v31 = vld [vmem:[%s14264_s1 + $0x488] ss:$16 sps:$4 sm:$0xff]   ;;  %v9572_v32 = vld [vmem:[%s14264_s1 + $0x4a4] ss:$16 sps:$4 sm:$0xff]  }
  0x4b   : > { %6607 = vmatprep.mubr.bf16.mxu0 %v8164_v35  ;;  %7295 = vmatprep.mubr.bf16.mxu1 %v8164_v35  ;;  %v9573_v35 = vld [vmem:[%s14264_s1 + $0x4a8] ss:$16 sps:$4 sm:$0xff]  }
  0x4d   : > { %6578 = vmatpush1.bf16.msra.mxu0 %v9450_v11  ;;  %7266 = vmatpush1.bf16.msra.mxu1 %v9453_v12  ;;  %v9540_v11 = vld [vmem:[%s14264_s1 + $0x400] ss:$16 sps:$4 sm:$0xff]   ;;  %v9543_v12 = vld [vmem:[%s14264_s1 + $0x408] ss:$16 sps:$4 sm:$0xff]  }
  0x4e   : > { %6579 = vmatprep.subr.bf16.mxu0 %v9458_v13  ;;  %7267 = vmatprep.subr.bf16.mxu1 %v9461_v14  ;;  %v9548_v13 = vld [vmem:[%s14264_s1 + $0x424] ss:$16 sps:$4 sm:$0xff]   ;;  %v9551_v14 = vld [vmem:[%s14264_s1 + $0x42c] ss:$16 sps:$4 sm:$0xff]  }
  0x51   : > { %6580 = vmatpush1.bf16.msra.mxu0 %v9456_v15  ;;  %7268 = vmatpush1.bf16.msra.mxu1 %v9459_v16  ;;  %v11363_v15 = vld [vmem:[%s11078_s8 + $0x10] sm:$0xff] }
  0x52   : > { %6581 = vmatprep.subr.bf16.mxu0 %v9464_v17  ;;  %7269 = vmatprep.subr.bf16.mxu1 %v9467_v18  ;;  %v11366_v16 = vld [vmem:[%s11078_s8 + $0x90] sm:$0x11] }
  0x53   : > { %v8166_v17 = vcombine.high %v11363_v15, %v11366_v16  ;;  %v9546_v18 = vld [vmem:[%s14264_s1 + $0x420] ss:$16 sps:$4 sm:$0xff]  }
  0x55   : > { %6582 = vmatpush1.bf16.msra.mxu0 %v9462_v19  ;;  %7270 = vmatpush1.bf16.msra.mxu1 %v9465_v20  ;;  %v9549_v19 = vld [vmem:[%s14264_s1 + $0x428] ss:$16 sps:$4 sm:$0xff]   ;;  %v9554_v20 = vld [vmem:[%s14264_s1 + $0x444] ss:$16 sps:$4 sm:$0xff]  }
  0x56   : > { %6583 = vmatprep.subr.bf16.mxu0 %v9470_v21  ;;  %7271 = vmatprep.subr.bf16.mxu1 %v9473_v22  ;;  %v9557_v21 = vld [vmem:[%s14264_s1 + $0x44c] ss:$16 sps:$4 sm:$0xff]   ;;  %v9552_v22 = vld [vmem:[%s14264_s1 + $0x440] ss:$16 sps:$4 sm:$0xff]  }
  0x59   : > { %6584 = vmatpush1.bf16.msra.mxu0 %v9468_v23  ;;  %7272 = vmatpush1.bf16.msra.mxu1 %v9471_v24  ;;  %v9555_v23 = vld [vmem:[%s14264_s1 + $0x448] ss:$16 sps:$4 sm:$0xff]   ;;  %v9560_v24 = vld [vmem:[%s14264_s1 + $0x464] ss:$16 sps:$4 sm:$0xff]  }
  0x5a   : > { %6585 = vmatprep.subr.bf16.mxu0 %v9476_v25  ;;  %7273 = vmatprep.subr.bf16.mxu1 %v9479_v26  ;;  %v9563_v25 = vld [vmem:[%s14264_s1 + $0x46c] ss:$16 sps:$4 sm:$0xff]   ;;  %v9558_v26 = vld [vmem:[%s14264_s1 + $0x460] ss:$16 sps:$4 sm:$0xff]  }
  0x5d   : > { %6586 = vmatpush1.bf16.msra.mxu0 %v9474_v27  ;;  %7274 = vmatpush1.bf16.msra.mxu1 %v9477_v28  ;;  %v9561_v27 = vld [vmem:[%s14264_s1 + $0x468] ss:$16 sps:$4 sm:$0xff]   ;;  %v9566_v28 = vld [vmem:[%s14264_s1 + $0x484] ss:$16 sps:$4 sm:$0xff]  }
  0x5e   : > { %6587 = vmatprep.subr.bf16.mxu0 %v9482_v29  ;;  %7275 = vmatprep.subr.bf16.mxu1 %v9485_v30  ;;  %v9569_v29 = vld [vmem:[%s14264_s1 + $0x48c] ss:$16 sps:$4 sm:$0xff]   ;;  %v9564_v30 = vld [vmem:[%s14264_s1 + $0x480] ss:$16 sps:$4 sm:$0xff]  }
  0x61   : > { %6588 = vmatpush1.bf16.msra.mxu0 %v9480_v33  ;;  %7276 = vmatpush1.bf16.msra.mxu1 %v9483_v34  ;;  %v9575_v33 = vld [vmem:[%s14264_s1 + $0x4ac] ss:$16 sps:$4 sm:$0xff]   ;;  %v9570_v34 = vld [vmem:[%s14264_s1 + $0x4a0] ss:$16 sps:$4 sm:$0xff]  }
  0x62   : > { %6589 = vmatprep.subr.bf16.mxu0 %v9488_v36  ;;  %7277 = vmatprep.subr.bf16.mxu1 %v9491_v37  ;;  %v9578_v36 = vld [vmem:[%s14264_s1 + $0x4c4] ss:$16 sps:$4 sm:$0xff]   ;;  %v9581_v37 = vld [vmem:[%s14264_s1 + $0x4cc] ss:$16 sps:$4 sm:$0xff]  }
  0x65   : > { %6590 = vmatpush1.bf16.msra.mxu0 %v9486_v38  ;;  %7278 = vmatpush1.bf16.msra.mxu1 %v9489_v39  ;;  %v9576_v38 = vld [vmem:[%s14264_s1 + $0x4c0] ss:$16 sps:$4 sm:$0xff]   ;;  %v9579_v39 = vld [vmem:[%s14264_s1 + $0x4c8] ss:$16 sps:$4 sm:$0xff]  }
  0x66   : > { %6591 = vmatprep.subr.bf16.mxu0 %v9494_v40  ;;  %7279 = vmatprep.subr.bf16.mxu1 %v9497_v41  ;;  %v9584_v40 = vld [vmem:[%s14264_s1 + $0x4e4] ss:$16 sps:$4 sm:$0xff]   ;;  %v9587_v41 = vld [vmem:[%s14264_s1 + $0x4ec] ss:$16 sps:$4 sm:$0xff]  }
  0x69   : > { %6592 = vmatpush1.bf16.msra.mxu0 %v9492_v42  ;;  %7280 = vmatpush1.bf16.msra.mxu1 %v9495_v43  ;;  %v9582_v42 = vld [vmem:[%s14264_s1 + $0x4e0] ss:$16 sps:$4 sm:$0xff]   ;;  %v9585_v43 = vld [vmem:[%s14264_s1 + $0x4e8] ss:$16 sps:$4 sm:$0xff]  }
  0x6a   : > { %6593 = vmatprep.subr.bf16.mxu0 %v9500_v44  ;;  %7281 = vmatprep.subr.bf16.mxu1 %v9503_v45  ;;  %v9590_v44 = vld [vmem:[%s14264_s1 + $0x504] ss:$16 sps:$4 sm:$0xff]   ;;  %v9593_v45 = vld [vmem:[%s14264_s1 + $0x50c] ss:$16 sps:$4 sm:$0xff]  }
  0x6d   : > { %6594 = vmatpush1.bf16.msra.mxu0 %v9498_v46  ;;  %7282 = vmatpush1.bf16.msra.mxu1 %v9501_v47  ;;  %v9588_v46 = vld [vmem:[%s14264_s1 + $0x500] ss:$16 sps:$4 sm:$0xff]   ;;  %v9591_v47 = vld [vmem:[%s14264_s1 + $0x508] ss:$16 sps:$4 sm:$0xff]  }
  0x6e   : > { %6595 = vmatprep.subr.bf16.mxu0 %v9506_v48  ;;  %7283 = vmatprep.subr.bf16.mxu1 %v9509_v49  ;;  %v9596_v48 = vld [vmem:[%s14264_s1 + $0x524] ss:$16 sps:$4 sm:$0xff]   ;;  %v9599_v49 = vld [vmem:[%s14264_s1 + $0x52c] ss:$16 sps:$4 sm:$0xff]  }
  0x71   : > { %6596 = vmatpush1.bf16.msra.mxu0 %v9504_v50  ;;  %7284 = vmatpush1.bf16.msra.mxu1 %v9507_v51  ;;  %v9594_v50 = vld [vmem:[%s14264_s1 + $0x520] ss:$16 sps:$4 sm:$0xff]   ;;  %v9597_v51 = vld [vmem:[%s14264_s1 + $0x528] ss:$16 sps:$4 sm:$0xff]  }
  0x72   : > { %6597 = vmatprep.subr.bf16.mxu0 %v9512_v52  ;;  %7285 = vmatprep.subr.bf16.mxu1 %v9515_v53  ;;  %v9602_v52 = vld [vmem:[%s14264_s1 + $0x544] ss:$16 sps:$4 sm:$0xff]   ;;  %v9605_v53 = vld [vmem:[%s14264_s1 + $0x54c] ss:$16 sps:$4 sm:$0xff]  }
  0x75   : > { %6598 = vmatpush1.bf16.msra.mxu0 %v9510_v54  ;;  %7286 = vmatpush1.bf16.msra.mxu1 %v9513_v55  ;;  %v9600_v54 = vld [vmem:[%s14264_s1 + $0x540] ss:$16 sps:$4 sm:$0xff]   ;;  %v9603_v55 = vld [vmem:[%s14264_s1 + $0x548] ss:$16 sps:$4 sm:$0xff]  }
  0x76   : > { %6599 = vmatprep.subr.bf16.mxu0 %v9518_v56  ;;  %7287 = vmatprep.subr.bf16.mxu1 %v9521_v57  ;;  %v9608_v56 = vld [vmem:[%s14264_s1 + $0x564] ss:$16 sps:$4 sm:$0xff]   ;;  %v9611_v57 = vld [vmem:[%s14264_s1 + $0x56c] ss:$16 sps:$4 sm:$0xff]  }
  0x79   : > { %6600 = vmatpush1.bf16.msra.mxu0 %v9516_v58  ;;  %7288 = vmatpush1.bf16.msra.mxu1 %v9519_v59  ;;  %v9606_v58 = vld [vmem:[%s14264_s1 + $0x560] ss:$16 sps:$4 sm:$0xff]   ;;  %v9609_v59 = vld [vmem:[%s14264_s1 + $0x568] ss:$16 sps:$4 sm:$0xff]  }
  0x7a   : > { %6601 = vmatprep.subr.bf16.mxu0 %v9524_v60  ;;  %7289 = vmatprep.subr.bf16.mxu1 %v9527_v61  ;;  %v9614_v60 = vld [vmem:[%s14264_s1 + $0x584] ss:$16 sps:$4 sm:$0xff]   ;;  %v9617_v61 = vld [vmem:[%s14264_s1 + $0x58c] ss:$16 sps:$4 sm:$0xff]  }
  0x7d   : > { %6602 = vmatpush1.bf16.msra.mxu0 %v9522_v62  ;;  %7290 = vmatpush1.bf16.msra.mxu1 %v9525_v63  ;;  %v9612_v62 = vld [vmem:[%s14264_s1 + $0x580] ss:$16 sps:$4 sm:$0xff]   ;;  %v9615_v63 = vld [vmem:[%s14264_s1 + $0x588] ss:$16 sps:$4 sm:$0xff]  }
  0x7e   : > { %6603 = vmatprep.subr.bf16.mxu0 %v9530_v0  ;;  %7291 = vmatprep.subr.bf16.mxu1 %v9533_v1  ;;  %v9620_v0 = vld [vmem:[%s14264_s1 + $0x5a4] ss:$16 sps:$4 sm:$0xff]   ;;  %v9623_v1 = vld [vmem:[%s14264_s1 + $0x5ac] ss:$16 sps:$4 sm:$0xff]  }
  0x81   : > { %6604 = vmatpush1.bf16.msra.mxu0 %v9528_v2  ;;  %7292 = vmatpush1.bf16.msra.mxu1 %v9531_v3  ;;  %v9618_v2 = vld [vmem:[%s14264_s1 + $0x5a0] ss:$16 sps:$4 sm:$0xff]   ;;  %v9621_v3 = vld [vmem:[%s14264_s1 + $0x5a8] ss:$16 sps:$4 sm:$0xff]  }
  0x82   : > { %6605 = vmatprep.subr.bf16.mxu0 %v9536_v4  ;;  %7293 = vmatprep.subr.bf16.mxu1 %v9539_v5  ;;  %v9626_v4 = vld [vmem:[%s14264_s1 + $0x5c4] ss:$16 sps:$4 sm:$0xff]   ;;  %v9629_v5 = vld [vmem:[%s14264_s1 + $0x5cc] ss:$16 sps:$4 sm:$0xff]  }
  0x85   : > { %6606 = vmatpush1.bf16.msra.mxu0 %v9534_v6  ;;  %7294 = vmatpush1.bf16.msra.mxu1 %v9537_v7  ;;  %v9624_v6 = vld [vmem:[%s14264_s1 + $0x5c0] ss:$16 sps:$4 sm:$0xff]   ;;  %v9627_v7 = vld [vmem:[%s14264_s1 + $0x5c8] ss:$16 sps:$4 sm:$0xff]  }
  0x86   : > { %6618 = vmatprep.subr.bf16.mxu0 %v9542_v8  ;;  %7306 = vmatprep.subr.bf16.mxu1 %v9545_v9  ;;  %v9632_v8 = vld [vmem:[%s14264_s1 + $0x5e4] ss:$16 sps:$4 sm:$0xff]   ;;  %v9635_v9 = vld [vmem:[%s14264_s1 + $0x5ec] ss:$16 sps:$4 sm:$0xff]  }
  0x88   : > { %6608 = vmatmul.mubr.bf16.vlgmr.msra.gmra.mrb[0].mxu0 %v8163_v10  ;;  %7296 = vmatmul.mubr.bf16.vlgmr.msra.gmra.mrb[0].mxu1 %v8163_v10  ;;  %v9630_v10 = vld [vmem:[%s14264_s1 + $0x5e0] ss:$16 sps:$4 sm:$0xff]  }
  0x89   : > { %6619 = vmatpush1.bf16.msra.mxu0 %v9540_v11  ;;  %7307 = vmatpush1.bf16.msra.mxu1 %v9543_v12  ;;  %v9633_v11 = vld [vmem:[%s14264_s1 + $0x5e8] ss:$16 sps:$4 sm:$0xff]   ;;  %v9638_v12 = vld [vmem:[%s14264_s1 + $0x604] ss:$16 sps:$4 sm:$0xff]  }
  0x8a   : > { %6620 = vmatprep.subr.bf16.mxu0 %v9548_v13  ;;  %7308 = vmatprep.subr.bf16.mxu1 %v9551_v14  ;;  %v9641_v13 = vld [vmem:[%s14264_s1 + $0x60c] ss:$16 sps:$4 sm:$0xff]   ;;  %v9636_v14 = vld [vmem:[%s14264_s1 + $0x600] ss:$16 sps:$4 sm:$0xff]  }
  0x8b   : > { %6650 = vmatprep.mubr.bf16.mxu0 %v8166_v17  ;;  %7338 = vmatprep.mubr.bf16.mxu1 %v8166_v17  ;;  %v9639_v17 = vld [vmem:[%s14264_s1 + $0x608] ss:$16 sps:$4 sm:$0xff]  }
  0x8d   : > { %6621 = vmatpush1.bf16.msra.mxu0 %v9546_v18  ;;  %7309 = vmatpush1.bf16.msra.mxu1 %v9549_v19  ;;  %v8165_v18 = vcombine.low %v11363_v15, %v11366_v16  ;;  %v11559_v19 = vld [vmem:[%s11078_s8 + $0x18] sm:$0xff]  ;;  %v9642_v15 = vld [vmem:[%s14264_s1 + $0x620] ss:$16 sps:$4 sm:$0xff]  }
  0x8e   : > { %6622 = vmatprep.subr.bf16.mxu0 %v9554_v20  ;;  %7310 = vmatprep.subr.bf16.mxu1 %v9557_v21  ;;  %v11562_v20 = vld [vmem:[%s11078_s8 + $0x98] sm:$0x11]  ;;  %v9644_v21 = vld [vmem:[%s14264_s1 + $0x624] ss:$16 sps:$4 sm:$0xff]  }
  0x8f   : > { %v9645_v16 = vld [vmem:[%s14264_s1 + $0x628] ss:$16 sps:$4 sm:$0xff]  }
  0x91   : > { %6623 = vmatpush1.bf16.msra.mxu0 %v9552_v22  ;;  %7311 = vmatpush1.bf16.msra.mxu1 %v9555_v23  ;;  %v9647_v22 = vld [vmem:[%s14264_s1 + $0x62c] ss:$16 sps:$4 sm:$0xff]   ;;  %v8168_v23 = vcombine.high %v11559_v19, %v11562_v20 }
  0x92   : > { %6624 = vmatprep.subr.bf16.mxu0 %v9560_v24  ;;  %7312 = vmatprep.subr.bf16.mxu1 %v9563_v25  ;;  %v9650_v24 = vld [vmem:[%s14264_s1 + $0x644] ss:$16 sps:$4 sm:$0xff]   ;;  %v9653_v25 = vld [vmem:[%s14264_s1 + $0x64c] ss:$16 sps:$4 sm:$0xff]  }
  0x95   : > { %6625 = vmatpush1.bf16.msra.mxu0 %v9558_v26  ;;  %7313 = vmatpush1.bf16.msra.mxu1 %v9561_v27  ;;  %v9648_v26 = vld [vmem:[%s14264_s1 + $0x640] ss:$16 sps:$4 sm:$0xff]   ;;  %v9651_v27 = vld [vmem:[%s14264_s1 + $0x648] ss:$16 sps:$4 sm:$0xff]  }
  0x96   : > { %6626 = vmatprep.subr.bf16.mxu0 %v9566_v28  ;;  %7314 = vmatprep.subr.bf16.mxu1 %v9569_v29  ;;  %v9656_v28 = vld [vmem:[%s14264_s1 + $0x664] ss:$16 sps:$4 sm:$0xff]   ;;  %v9659_v29 = vld [vmem:[%s14264_s1 + $0x66c] ss:$16 sps:$4 sm:$0xff]  }
  0x99   : > { %6627 = vmatpush1.bf16.msra.mxu0 %v9564_v30  ;;  %7315 = vmatpush1.bf16.msra.mxu1 %v9567_v31  ;;  %v9654_v30 = vld [vmem:[%s14264_s1 + $0x660] ss:$16 sps:$4 sm:$0xff]   ;;  %v9657_v31 = vld [vmem:[%s14264_s1 + $0x668] ss:$16 sps:$4 sm:$0xff]  }
  0x9a   : > { %6628 = vmatprep.subr.bf16.mxu0 %v9572_v32  ;;  %7316 = vmatprep.subr.bf16.mxu1 %v9575_v33  ;;  %v9662_v32 = vld [vmem:[%s14264_s1 + $0x684] ss:$16 sps:$4 sm:$0xff]   ;;  %v9665_v33 = vld [vmem:[%s14264_s1 + $0x68c] ss:$16 sps:$4 sm:$0xff]  }
  0x9d   : > { %6629 = vmatpush1.bf16.msra.mxu0 %v9570_v34  ;;  %7317 = vmatpush1.bf16.msra.mxu1 %v9573_v35  ;;  %v9660_v34 = vld [vmem:[%s14264_s1 + $0x680] ss:$16 sps:$4 sm:$0xff]   ;;  %v9663_v35 = vld [vmem:[%s14264_s1 + $0x688] ss:$16 sps:$4 sm:$0xff]  }
  0x9e   : > { %6630 = vmatprep.subr.bf16.mxu0 %v9578_v36  ;;  %7318 = vmatprep.subr.bf16.mxu1 %v9581_v37  ;;  %v9668_v36 = vld [vmem:[%s14264_s1 + $0x6a4] ss:$16 sps:$4 sm:$0xff]   ;;  %v9671_v37 = vld [vmem:[%s14264_s1 + $0x6ac] ss:$16 sps:$4 sm:$0xff]  }
  0xa1   : > { %6631 = vmatpush1.bf16.msra.mxu0 %v9576_v38  ;;  %7319 = vmatpush1.bf16.msra.mxu1 %v9579_v39  ;;  %v9666_v38 = vld [vmem:[%s14264_s1 + $0x6a0] ss:$16 sps:$4 sm:$0xff]   ;;  %v9669_v39 = vld [vmem:[%s14264_s1 + $0x6a8] ss:$16 sps:$4 sm:$0xff]  }
  0xa2   : > { %6632 = vmatprep.subr.bf16.mxu0 %v9584_v40  ;;  %7320 = vmatprep.subr.bf16.mxu1 %v9587_v41  ;;  %v9674_v40 = vld [vmem:[%s14264_s1 + $0x6c4] ss:$16 sps:$4 sm:$0xff]   ;;  %v9677_v41 = vld [vmem:[%s14264_s1 + $0x6cc] ss:$16 sps:$4 sm:$0xff]  }
  0xa5   : > { %6633 = vmatpush1.bf16.msra.mxu0 %v9582_v42  ;;  %7321 = vmatpush1.bf16.msra.mxu1 %v9585_v43  ;;  %v9672_v42 = vld [vmem:[%s14264_s1 + $0x6c0] ss:$16 sps:$4 sm:$0xff]   ;;  %v9675_v43 = vld [vmem:[%s14264_s1 + $0x6c8] ss:$16 sps:$4 sm:$0xff]  }
  0xa6   : > { %6634 = vmatprep.subr.bf16.mxu0 %v9590_v44  ;;  %7322 = vmatprep.subr.bf16.mxu1 %v9593_v45  ;;  %v9680_v44 = vld [vmem:[%s14264_s1 + $0x6e4] ss:$16 sps:$4 sm:$0xff]   ;;  %v9683_v45 = vld [vmem:[%s14264_s1 + $0x6ec] ss:$16 sps:$4 sm:$0xff]  }
  0xa9   : > { %6635 = vmatpush1.bf16.msra.mxu0 %v9588_v46  ;;  %7323 = vmatpush1.bf16.msra.mxu1 %v9591_v47  ;;  %v9678_v46 = vld [vmem:[%s14264_s1 + $0x6e0] ss:$16 sps:$4 sm:$0xff]   ;;  %v9681_v47 = vld [vmem:[%s14264_s1 + $0x6e8] ss:$16 sps:$4 sm:$0xff]  }
  0xaa   : > { %6636 = vmatprep.subr.bf16.mxu0 %v9596_v48  ;;  %7324 = vmatprep.subr.bf16.mxu1 %v9599_v49  ;;  %v9686_v48 = vld [vmem:[%s14264_s1 + $0x704] ss:$16 sps:$4 sm:$0xff]   ;;  %v9689_v49 = vld [vmem:[%s14264_s1 + $0x70c] ss:$16 sps:$4 sm:$0xff]  }
  0xad   : > { %6637 = vmatpush1.bf16.msra.mxu0 %v9594_v50  ;;  %7325 = vmatpush1.bf16.msra.mxu1 %v9597_v51  ;;  %v9684_v50 = vld [vmem:[%s14264_s1 + $0x700] ss:$16 sps:$4 sm:$0xff]   ;;  %v9687_v51 = vld [vmem:[%s14264_s1 + $0x708] ss:$16 sps:$4 sm:$0xff]  }
  0xae   : > { %6638 = vmatprep.subr.bf16.mxu0 %v9602_v52  ;;  %7326 = vmatprep.subr.bf16.mxu1 %v9605_v53  ;;  %v9692_v52 = vld [vmem:[%s14264_s1 + $0x724] ss:$16 sps:$4 sm:$0xff]   ;;  %v9695_v53 = vld [vmem:[%s14264_s1 + $0x72c] ss:$16 sps:$4 sm:$0xff]  }
  0xb1   : > { %6639 = vmatpush1.bf16.msra.mxu0 %v9600_v54  ;;  %7327 = vmatpush1.bf16.msra.mxu1 %v9603_v55  ;;  %v9690_v54 = vld [vmem:[%s14264_s1 + $0x720] ss:$16 sps:$4 sm:$0xff]   ;;  %v9693_v55 = vld [vmem:[%s14264_s1 + $0x728] ss:$16 sps:$4 sm:$0xff]  }
  0xb2   : > { %6640 = vmatprep.subr.bf16.mxu0 %v9608_v56  ;;  %7328 = vmatprep.subr.bf16.mxu1 %v9611_v57  ;;  %v9698_v56 = vld [vmem:[%s14264_s1 + $0x744] ss:$16 sps:$4 sm:$0xff]   ;;  %v9701_v57 = vld [vmem:[%s14264_s1 + $0x74c] ss:$16 sps:$4 sm:$0xff]  }
  0xb5   : > { %6641 = vmatpush1.bf16.msra.mxu0 %v9606_v58  ;;  %7329 = vmatpush1.bf16.msra.mxu1 %v9609_v59  ;;  %v9696_v58 = vld [vmem:[%s14264_s1 + $0x740] ss:$16 sps:$4 sm:$0xff]   ;;  %v9699_v59 = vld [vmem:[%s14264_s1 + $0x748] ss:$16 sps:$4 sm:$0xff]  }
  0xb6   : > { %6642 = vmatprep.subr.bf16.mxu0 %v9614_v60  ;;  %7330 = vmatprep.subr.bf16.mxu1 %v9617_v61  ;;  %v9704_v60 = vld [vmem:[%s14264_s1 + $0x764] ss:$16 sps:$4 sm:$0xff]   ;;  %v9707_v61 = vld [vmem:[%s14264_s1 + $0x76c] ss:$16 sps:$4 sm:$0xff]  }
  0xb9   : > { %6643 = vmatpush1.bf16.msra.mxu0 %v9612_v62  ;;  %7331 = vmatpush1.bf16.msra.mxu1 %v9615_v63  ;;  %v9702_v62 = vld [vmem:[%s14264_s1 + $0x760] ss:$16 sps:$4 sm:$0xff]   ;;  %v9705_v63 = vld [vmem:[%s14264_s1 + $0x768] ss:$16 sps:$4 sm:$0xff]  }
  0xba   : > { %6644 = vmatprep.subr.bf16.mxu0 %v9620_v0  ;;  %7332 = vmatprep.subr.bf16.mxu1 %v9623_v1  ;;  %v9710_v0 = vld [vmem:[%s14264_s1 + $0x784] ss:$16 sps:$4 sm:$0xff]   ;;  %v9713_v1 = vld [vmem:[%s14264_s1 + $0x78c] ss:$16 sps:$4 sm:$0xff]  }
  0xbd   : > { %6645 = vmatpush1.bf16.msra.mxu0 %v9618_v2  ;;  %7333 = vmatpush1.bf16.msra.mxu1 %v9621_v3  ;;  %v9708_v2 = vld [vmem:[%s14264_s1 + $0x780] ss:$16 sps:$4 sm:$0xff]   ;;  %v9711_v3 = vld [vmem:[%s14264_s1 + $0x788] ss:$16 sps:$4 sm:$0xff]  }
  0xbe   : > { %6646 = vmatprep.subr.bf16.mxu0 %v9626_v4  ;;  %7334 = vmatprep.subr.bf16.mxu1 %v9629_v5  ;;  %v9716_v4 = vld [vmem:[%s14264_s1 + $0x7a4] ss:$16 sps:$4 sm:$0xff]   ;;  %v9719_v5 = vld [vmem:[%s14264_s1 + $0x7ac] ss:$16 sps:$4 sm:$0xff]  }
  0xc1   : > { %6647 = vmatpush1.bf16.msra.mxu0 %v9624_v6  ;;  %7335 = vmatpush1.bf16.msra.mxu1 %v9627_v7  ;;  %v9714_v6 = vld [vmem:[%s14264_s1 + $0x7a0] ss:$16 sps:$4 sm:$0xff]   ;;  %v9717_v7 = vld [vmem:[%s14264_s1 + $0x7a8] ss:$16 sps:$4 sm:$0xff]  }
  0xc2   : > { %6648 = vmatprep.subr.bf16.mxu0 %v9632_v8  ;;  %7336 = vmatprep.subr.bf16.mxu1 %v9635_v9  ;;  %v9722_v8 = vld [vmem:[%s14264_s1 + $0x7c4] ss:$16 sps:$4 sm:$0xff]   ;;  %v9725_v9 = vld [vmem:[%s14264_s1 + $0x7cc] ss:$16 sps:$4 sm:$0xff]  }
  0xc5   : > { %6649 = vmatpush1.bf16.msra.mxu0 %v9630_v10  ;;  %7337 = vmatpush1.bf16.msra.mxu1 %v9633_v11  ;;  %v9720_v10 = vld [vmem:[%s14264_s1 + $0x7c0] ss:$16 sps:$4 sm:$0xff]   ;;  %v9723_v11 = vld [vmem:[%s14264_s1 + $0x7c8] ss:$16 sps:$4 sm:$0xff]  }
  0xc6   : > { %6661 = vmatprep.subr.bf16.mxu0 %v9638_v12  ;;  %7349 = vmatprep.subr.bf16.mxu1 %v9641_v13  ;;  %v9728_v12 = vld [vmem:[%s14264_s1 + $0x7e4] ss:$16 sps:$4 sm:$0xff]   ;;  %v9731_v13 = vld [vmem:[%s14264_s1 + $0x7ec] ss:$16 sps:$4 sm:$0xff]  }
  0xc8   : > { %6651 = vmatmul.mubr.bf16.vlgmr.msra.gmra.mrb[0].mxu0 %v8165_v18  ;;  %7339 = vmatmul.mubr.bf16.vlgmr.msra.gmra.mrb[0].mxu1 %v8165_v18  ;;  %v9734_v18 = vld [vmem:[%s14264_s1 + $0x804] ss:$16 sps:$4 sm:$0xff]  }
  0xc9   : > { %6662 = vmatpush1.bf16.msra.mxu0 %v9636_v14  ;;  %7350 = vmatpush1.bf16.msra.mxu1 %v9639_v17  ;;  %v9726_v14 = vld [vmem:[%s14264_s1 + $0x7e0] ss:$16 sps:$4 sm:$0xff]   ;;  %v9729_v17 = vld [vmem:[%s14264_s1 + $0x7e8] ss:$16 sps:$4 sm:$0xff]  }
  0xca   : > { %6663 = vmatprep.subr.bf16.mxu0 %v9644_v21  ;;  %7351 = vmatprep.subr.bf16.mxu1 %v9647_v22  ;;  %v9737_v21 = vld [vmem:[%s14264_s1 + $0x80c] ss:$16 sps:$4 sm:$0xff]   ;;  %v11753_v22 = vld [vmem:[%s11078_s8 + $0x20] sm:$0xff] }
  0xcb   : > { %6693 = vmatprep.mubr.bf16.mxu0 %v8168_v23  ;;  %7381 = vmatprep.mubr.bf16.mxu1 %v8168_v23  ;;  %v8167_v23 = vcombine.low %v11559_v19, %v11562_v20  ;;  %v9743_v19 = vld [vmem:[%s14264_s1 + $0x82c] ss:$16 sps:$4 sm:$0xff]  }
  0xcd   : > { %6664 = vmatpush1.bf16.msra.mxu0 %v9642_v15  ;;  %7352 = vmatpush1.bf16.msra.mxu1 %v9645_v16  ;;  %v11758_v15 = vld [vmem:[%s11078_s8 + $0xa0] sm:$0x11] }
  0xce   : > { %6665 = vmatprep.subr.bf16.mxu0 %v9650_v24  ;;  %7353 = vmatprep.subr.bf16.mxu1 %v9653_v25  ;;  %v9732_v16 = vld [vmem:[%s14264_s1 + $0x800] ss:$16 sps:$4 sm:$0xff]   ;;  %v9735_v24 = vld [vmem:[%s14264_s1 + $0x808] ss:$16 sps:$4 sm:$0xff]   ;;  %v9740_v25 = vld [vmem:[%s14264_s1 + $0x824] ss:$16 sps:$4 sm:$0xff]   ;;  %v8170_v20 = vcombine.high %v11753_v22, %v11758_v15 }
  0xd1   : > { %6666 = vmatpush1.bf16.msra.mxu0 %v9648_v26  ;;  %7354 = vmatpush1.bf16.msra.mxu1 %v9651_v27  ;;  %v9738_v26 = vld [vmem:[%s14264_s1 + $0x820] ss:$16 sps:$4 sm:$0xff]   ;;  %v9741_v27 = vld [vmem:[%s14264_s1 + $0x828] ss:$16 sps:$4 sm:$0xff]  }
  0xd2   : > { %6667 = vmatprep.subr.bf16.mxu0 %v9656_v28  ;;  %7355 = vmatprep.subr.bf16.mxu1 %v9659_v29  ;;  %v9746_v28 = vld [vmem:[%s14264_s1 + $0x844] ss:$16 sps:$4 sm:$0xff]   ;;  %v9749_v29 = vld [vmem:[%s14264_s1 + $0x84c] ss:$16 sps:$4 sm:$0xff]  }
  0xd5   : > { %6668 = vmatpush1.bf16.msra.mxu0 %v9654_v30  ;;  %7356 = vmatpush1.bf16.msra.mxu1 %v9657_v31  ;;  %v9744_v30 = vld [vmem:[%s14264_s1 + $0x840] ss:$16 sps:$4 sm:$0xff]   ;;  %v9747_v31 = vld [vmem:[%s14264_s1 + $0x848] ss:$16 sps:$4 sm:$0xff]  }
  0xd6   : > { %6669 = vmatprep.subr.bf16.mxu0 %v9662_v32  ;;  %7357 = vmatprep.subr.bf16.mxu1 %v9665_v33  ;;  %v9752_v32 = vld [vmem:[%s14264_s1 + $0x864] ss:$16 sps:$4 sm:$0xff]   ;;  %v9755_v33 = vld [vmem:[%s14264_s1 + $0x86c] ss:$16 sps:$4 sm:$0xff]  }
  0xd9   : > { %6670 = vmatpush1.bf16.msra.mxu0 %v9660_v34  ;;  %7358 = vmatpush1.bf16.msra.mxu1 %v9663_v35  ;;  %v9750_v34 = vld [vmem:[%s14264_s1 + $0x860] ss:$16 sps:$4 sm:$0xff]   ;;  %v9753_v35 = vld [vmem:[%s14264_s1 + $0x868] ss:$16 sps:$4 sm:$0xff]  }
  0xda   : > { %6671 = vmatprep.subr.bf16.mxu0 %v9668_v36  ;;  %7359 = vmatprep.subr.bf16.mxu1 %v9671_v37  ;;  %v9758_v36 = vld [vmem:[%s14264_s1 + $0x884] ss:$16 sps:$4 sm:$0xff]   ;;  %v9761_v37 = vld [vmem:[%s14264_s1 + $0x88c] ss:$16 sps:$4 sm:$0xff]  }
  0xdd   : > { %6672 = vmatpush1.bf16.msra.mxu0 %v9666_v38  ;;  %7360 = vmatpush1.bf16.msra.mxu1 %v9669_v39  ;;  %v9756_v38 = vld [vmem:[%s14264_s1 + $0x880] ss:$16 sps:$4 sm:$0xff]   ;;  %v9759_v39 = vld [vmem:[%s14264_s1 + $0x888] ss:$16 sps:$4 sm:$0xff]  }
  0xde   : > { %6673 = vmatprep.subr.bf16.mxu0 %v9674_v40  ;;  %7361 = vmatprep.subr.bf16.mxu1 %v9677_v41  ;;  %v9764_v40 = vld [vmem:[%s14264_s1 + $0x8a4] ss:$16 sps:$4 sm:$0xff]   ;;  %v9767_v41 = vld [vmem:[%s14264_s1 + $0x8ac] ss:$16 sps:$4 sm:$0xff]  }
  0xe1   : > { %6674 = vmatpush1.bf16.msra.mxu0 %v9672_v42  ;;  %7362 = vmatpush1.bf16.msra.mxu1 %v9675_v43  ;;  %v9762_v42 = vld [vmem:[%s14264_s1 + $0x8a0] ss:$16 sps:$4 sm:$0xff]   ;;  %v9765_v43 = vld [vmem:[%s14264_s1 + $0x8a8] ss:$16 sps:$4 sm:$0xff]  }
  0xe2   : > { %6675 = vmatprep.subr.bf16.mxu0 %v9680_v44  ;;  %7363 = vmatprep.subr.bf16.mxu1 %v9683_v45  ;;  %v9770_v44 = vld [vmem:[%s14264_s1 + $0x8c4] ss:$16 sps:$4 sm:$0xff]   ;;  %v9773_v45 = vld [vmem:[%s14264_s1 + $0x8cc] ss:$16 sps:$4 sm:$0xff]  }
  0xe5   : > { %6676 = vmatpush1.bf16.msra.mxu0 %v9678_v46  ;;  %7364 = vmatpush1.bf16.msra.mxu1 %v9681_v47  ;;  %v9768_v46 = vld [vmem:[%s14264_s1 + $0x8c0] ss:$16 sps:$4 sm:$0xff]   ;;  %v9771_v47 = vld [vmem:[%s14264_s1 + $0x8c8] ss:$16 sps:$4 sm:$0xff]  }
  0xe6   : > { %6677 = vmatprep.subr.bf16.mxu0 %v9686_v48  ;;  %7365 = vmatprep.subr.bf16.mxu1 %v9689_v49  ;;  %v9776_v48 = vld [vmem:[%s14264_s1 + $0x8e4] ss:$16 sps:$4 sm:$0xff]   ;;  %v9779_v49 = vld [vmem:[%s14264_s1 + $0x8ec] ss:$16 sps:$4 sm:$0xff]  }
  0xe9   : > { %6678 = vmatpush1.bf16.msra.mxu0 %v9684_v50  ;;  %7366 = vmatpush1.bf16.msra.mxu1 %v9687_v51  ;;  %v9774_v50 = vld [vmem:[%s14264_s1 + $0x8e0] ss:$16 sps:$4 sm:$0xff]   ;;  %v9777_v51 = vld [vmem:[%s14264_s1 + $0x8e8] ss:$16 sps:$4 sm:$0xff]  }
  0xea   : > { %6679 = vmatprep.subr.bf16.mxu0 %v9692_v52  ;;  %7367 = vmatprep.subr.bf16.mxu1 %v9695_v53  ;;  %v9782_v52 = vld [vmem:[%s14264_s1 + $0x904] ss:$16 sps:$4 sm:$0xff]   ;;  %v9785_v53 = vld [vmem:[%s14264_s1 + $0x90c] ss:$16 sps:$4 sm:$0xff]  }
  0xed   : > { %6680 = vmatpush1.bf16.msra.mxu0 %v9690_v54  ;;  %7368 = vmatpush1.bf16.msra.mxu1 %v9693_v55  ;;  %v9780_v54 = vld [vmem:[%s14264_s1 + $0x900] ss:$16 sps:$4 sm:$0xff]   ;;  %v9783_v55 = vld [vmem:[%s14264_s1 + $0x908] ss:$16 sps:$4 sm:$0xff]  }
  0xee   : > { %6681 = vmatprep.subr.bf16.mxu0 %v9698_v56  ;;  %7369 = vmatprep.subr.bf16.mxu1 %v9701_v57  ;;  %v9788_v56 = vld [vmem:[%s14264_s1 + $0x924] ss:$16 sps:$4 sm:$0xff]   ;;  %v9791_v57 = vld [vmem:[%s14264_s1 + $0x92c] ss:$16 sps:$4 sm:$0xff]  }
  0xf1   : > { %6682 = vmatpush1.bf16.msra.mxu0 %v9696_v58  ;;  %7370 = vmatpush1.bf16.msra.mxu1 %v9699_v59  ;;  %v9786_v58 = vld [vmem:[%s14264_s1 + $0x920] ss:$16 sps:$4 sm:$0xff]   ;;  %v9789_v59 = vld [vmem:[%s14264_s1 + $0x928] ss:$16 sps:$4 sm:$0xff]  }
  0xf2   : > { %6683 = vmatprep.subr.bf16.mxu0 %v9704_v60  ;;  %7371 = vmatprep.subr.bf16.mxu1 %v9707_v61  ;;  %v9794_v60 = vld [vmem:[%s14264_s1 + $0x944] ss:$16 sps:$4 sm:$0xff]   ;;  %v9797_v61 = vld [vmem:[%s14264_s1 + $0x94c] ss:$16 sps:$4 sm:$0xff]  }
  0xf5   : > { %6684 = vmatpush1.bf16.msra.mxu0 %v9702_v62  ;;  %7372 = vmatpush1.bf16.msra.mxu1 %v9705_v63  ;;  %v9792_v62 = vld [vmem:[%s14264_s1 + $0x940] ss:$16 sps:$4 sm:$0xff]   ;;  %v9795_v63 = vld [vmem:[%s14264_s1 + $0x948] ss:$16 sps:$4 sm:$0xff]  }
  0xf6   : > { %6685 = vmatprep.subr.bf16.mxu0 %v9710_v0  ;;  %7373 = vmatprep.subr.bf16.mxu1 %v9713_v1  ;;  %v9800_v0 = vld [vmem:[%s14264_s1 + $0x964] ss:$16 sps:$4 sm:$0xff]   ;;  %v9803_v1 = vld [vmem:[%s14264_s1 + $0x96c] ss:$16 sps:$4 sm:$0xff]  }
  0xf9   : > { %6686 = vmatpush1.bf16.msra.mxu0 %v9708_v2  ;;  %7374 = vmatpush1.bf16.msra.mxu1 %v9711_v3  ;;  %v9798_v2 = vld [vmem:[%s14264_s1 + $0x960] ss:$16 sps:$4 sm:$0xff]   ;;  %v9801_v3 = vld [vmem:[%s14264_s1 + $0x968] ss:$16 sps:$4 sm:$0xff]  }
  0xfa   : > { %6687 = vmatprep.subr.bf16.mxu0 %v9716_v4  ;;  %7375 = vmatprep.subr.bf16.mxu1 %v9719_v5  ;;  %v9806_v4 = vld [vmem:[%s14264_s1 + $0x984] ss:$16 sps:$4 sm:$0xff]   ;;  %v9809_v5 = vld [vmem:[%s14264_s1 + $0x98c] ss:$16 sps:$4 sm:$0xff]  }
  0xfd   : > { %6688 = vmatpush1.bf16.msra.mxu0 %v9714_v6  ;;  %7376 = vmatpush1.bf16.msra.mxu1 %v9717_v7  ;;  %v9804_v6 = vld [vmem:[%s14264_s1 + $0x980] ss:$16 sps:$4 sm:$0xff]   ;;  %v9807_v7 = vld [vmem:[%s14264_s1 + $0x988] ss:$16 sps:$4 sm:$0xff]  }
  0xfe   : > { %6689 = vmatprep.subr.bf16.mxu0 %v9722_v8  ;;  %7377 = vmatprep.subr.bf16.mxu1 %v9725_v9  ;;  %v9812_v8 = vld [vmem:[%s14264_s1 + $0x9a4] ss:$16 sps:$4 sm:$0xff]   ;;  %v9815_v9 = vld [vmem:[%s14264_s1 + $0x9ac] ss:$16 sps:$4 sm:$0xff]  }
 0x101   : > { %6690 = vmatpush1.bf16.msra.mxu0 %v9720_v10  ;;  %7378 = vmatpush1.bf16.msra.mxu1 %v9723_v11  ;;  %v9810_v10 = vld [vmem:[%s14264_s1 + $0x9a0] ss:$16 sps:$4 sm:$0xff]   ;;  %v9813_v11 = vld [vmem:[%s14264_s1 + $0x9a8] ss:$16 sps:$4 sm:$0xff]  }
 0x102   : > { %6691 = vmatprep.subr.bf16.mxu0 %v9728_v12  ;;  %7379 = vmatprep.subr.bf16.mxu1 %v9731_v13  ;;  %v9818_v12 = vld [vmem:[%s14264_s1 + $0x9c4] ss:$16 sps:$4 sm:$0xff]   ;;  %v9821_v13 = vld [vmem:[%s14264_s1 + $0x9cc] ss:$16 sps:$4 sm:$0xff]  }
 0x105   : > { %6692 = vmatpush1.bf16.msra.mxu0 %v9726_v14  ;;  %7380 = vmatpush1.bf16.msra.mxu1 %v9729_v17  ;;  %v9816_v14 = vld [vmem:[%s14264_s1 + $0x9c0] ss:$16 sps:$4 sm:$0xff]   ;;  %v9819_v17 = vld [vmem:[%s14264_s1 + $0x9c8] ss:$16 sps:$4 sm:$0xff]  }
 0x106   : > { %6704 = vmatprep.subr.bf16.mxu0 %v9734_v18  ;;  %7392 = vmatprep.subr.bf16.mxu1 %v9737_v21  ;;  %v9824_v18 = vld [vmem:[%s14264_s1 + $0x9e4] ss:$16 sps:$4 sm:$0xff]   ;;  %v9827_v21 = vld [vmem:[%s14264_s1 + $0x9ec] ss:$16 sps:$4 sm:$0xff]  }
 0x108   : > { %6694 = vmatmul.mubr.bf16.vlgmr.msra.gmra.mrb[0].mxu0 %v8167_v23  ;;  %7382 = vmatmul.mubr.bf16.vlgmr.msra.gmra.mrb[0].mxu1 %v8167_v23  ;;  %v9822_v23 = vld [vmem:[%s14264_s1 + $0x9e0] ss:$16 sps:$4 sm:$0xff]  }
 0x109   : > { %6705 = vmatpush1.bf16.msra.mxu0 %v9732_v16  ;;  %7393 = vmatpush1.bf16.msra.mxu1 %v9735_v24  ;;  %v9825_v16 = vld [vmem:[%s14264_s1 + $0x9e8] ss:$16 sps:$4 sm:$0xff]   ;;  %v9830_v24 = vld [vmem:[%s14264_s1 + $0xa04] ss:$16 sps:$4 sm:$0xff]  }
 0x10a   : > { %6706 = vmatprep.subr.bf16.mxu0 %v9740_v25  ;;  %7394 = vmatprep.subr.bf16.mxu1 %v9743_v19  ;;  %v9833_v25 = vld [vmem:[%s14264_s1 + $0xa0c] ss:$16 sps:$4 sm:$0xff]  }
 0x10b   : > { %6736 = vmatprep.mubr.bf16.mxu0 %v8170_v20  ;;  %7424 = vmatprep.mubr.bf16.mxu1 %v8170_v20  ;;  %v11955_v19 = vld [vmem:[%s11078_s8 + $0x28] sm:$0xff] }
 0x10c   : > { %v11958_v20 = vld [vmem:[%s11078_s8 + $0xa8] sm:$0x11] }
 0x10d   : > { %6707 = vmatpush1.bf16.msra.mxu0 %v9738_v26  ;;  %7395 = vmatpush1.bf16.msra.mxu1 %v9741_v27  ;;  %v8169_v26 = vcombine.low %v11753_v22, %v11758_v15  ;;  %v9828_v27 = vld [vmem:[%s14264_s1 + $0xa00] ss:$16 sps:$4 sm:$0xff]   ;;  %v9839_v22 = vld [vmem:[%s14264_s1 + $0xa2c] ss:$16 sps:$4 sm:$0xff]   ;;  %v8172_v15 = vcombine.high %v11955_v19, %v11958_v20 }
 0x10e   : > { %6708 = vmatprep.subr.bf16.mxu0 %v9746_v28  ;;  %7396 = vmatprep.subr.bf16.mxu1 %v9749_v29  ;;  %v9831_v28 = vld [vmem:[%s14264_s1 + $0xa08] ss:$16 sps:$4 sm:$0xff]   ;;  %v9836_v29 = vld [vmem:[%s14264_s1 + $0xa24] ss:$16 sps:$4 sm:$0xff]  }
 0x111   : > { %6709 = vmatpush1.bf16.msra.mxu0 %v9744_v30  ;;  %7397 = vmatpush1.bf16.msra.mxu1 %v9747_v31  ;;  %v9834_v30 = vld [vmem:[%s14264_s1 + $0xa20] ss:$16 sps:$4 sm:$0xff]   ;;  %v9837_v31 = vld [vmem:[%s14264_s1 + $0xa28] ss:$16 sps:$4 sm:$0xff]  }
 0x112   : > { %6710 = vmatprep.subr.bf16.mxu0 %v9752_v32  ;;  %7398 = vmatprep.subr.bf16.mxu1 %v9755_v33  ;;  %v9842_v32 = vld [vmem:[%s14264_s1 + $0xa44] ss:$16 sps:$4 sm:$0xff]   ;;  %v9845_v33 = vld [vmem:[%s14264_s1 + $0xa4c] ss:$16 sps:$4 sm:$0xff]  }
 0x115   : > { %6711 = vmatpush1.bf16.msra.mxu0 %v9750_v34  ;;  %7399 = vmatpush1.bf16.msra.mxu1 %v9753_v35  ;;  %v9840_v34 = vld [vmem:[%s14264_s1 + $0xa40] ss:$16 sps:$4 sm:$0xff]   ;;  %v9843_v35 = vld [vmem:[%s14264_s1 + $0xa48] ss:$16 sps:$4 sm:$0xff]  }
 0x116   : > { %6712 = vmatprep.subr.bf16.mxu0 %v9758_v36  ;;  %7400 = vmatprep.subr.bf16.mxu1 %v9761_v37  ;;  %v9848_v36 = vld [vmem:[%s14264_s1 + $0xa64] ss:$16 sps:$4 sm:$0xff]   ;;  %v9851_v37 = vld [vmem:[%s14264_s1 + $0xa6c] ss:$16 sps:$4 sm:$0xff]  }
 0x119   : > { %6713 = vmatpush1.bf16.msra.mxu0 %v9756_v38  ;;  %7401 = vmatpush1.bf16.msra.mxu1 %v9759_v39  ;;  %v9846_v38 = vld [vmem:[%s14264_s1 + $0xa60] ss:$16 sps:$4 sm:$0xff]   ;;  %v9849_v39 = vld [vmem:[%s14264_s1 + $0xa68] ss:$16 sps:$4 sm:$0xff]  }
 0x11a   : > { %6714 = vmatprep.subr.bf16.mxu0 %v9764_v40  ;;  %7402 = vmatprep.subr.bf16.mxu1 %v9767_v41  ;;  %v9854_v40 = vld [vmem:[%s14264_s1 + $0xa84] ss:$16 sps:$4 sm:$0xff]   ;;  %v9857_v41 = vld [vmem:[%s14264_s1 + $0xa8c] ss:$16 sps:$4 sm:$0xff]  }
 0x11d   : > { %6715 = vmatpush1.bf16.msra.mxu0 %v9762_v42  ;;  %7403 = vmatpush1.bf16.msra.mxu1 %v9765_v43  ;;  %v9852_v42 = vld [vmem:[%s14264_s1 + $0xa80] ss:$16 sps:$4 sm:$0xff]   ;;  %v9855_v43 = vld [vmem:[%s14264_s1 + $0xa88] ss:$16 sps:$4 sm:$0xff]  }
 0x11e   : > { %6716 = vmatprep.subr.bf16.mxu0 %v9770_v44  ;;  %7404 = vmatprep.subr.bf16.mxu1 %v9773_v45  ;;  %v9860_v44 = vld [vmem:[%s14264_s1 + $0xaa4] ss:$16 sps:$4 sm:$0xff]   ;;  %v9863_v45 = vld [vmem:[%s14264_s1 + $0xaac] ss:$16 sps:$4 sm:$0xff]  }
 0x121   : > { %6717 = vmatpush1.bf16.msra.mxu0 %v9768_v46  ;;  %7405 = vmatpush1.bf16.msra.mxu1 %v9771_v47  ;;  %v9858_v46 = vld [vmem:[%s14264_s1 + $0xaa0] ss:$16 sps:$4 sm:$0xff]   ;;  %v9861_v47 = vld [vmem:[%s14264_s1 + $0xaa8] ss:$16 sps:$4 sm:$0xff]  }
 0x122   : > { %6718 = vmatprep.subr.bf16.mxu0 %v9776_v48  ;;  %7406 = vmatprep.subr.bf16.mxu1 %v9779_v49  ;;  %v9866_v48 = vld [vmem:[%s14264_s1 + $0xac4] ss:$16 sps:$4 sm:$0xff]   ;;  %v9869_v49 = vld [vmem:[%s14264_s1 + $0xacc] ss:$16 sps:$4 sm:$0xff]  }
 0x125   : > { %6719 = vmatpush1.bf16.msra.mxu0 %v9774_v50  ;;  %7407 = vmatpush1.bf16.msra.mxu1 %v9777_v51  ;;  %v9864_v50 = vld [vmem:[%s14264_s1 + $0xac0] ss:$16 sps:$4 sm:$0xff]   ;;  %v9867_v51 = vld [vmem:[%s14264_s1 + $0xac8] ss:$16 sps:$4 sm:$0xff]  }
 0x126   : > { %6720 = vmatprep.subr.bf16.mxu0 %v9782_v52  ;;  %7408 = vmatprep.subr.bf16.mxu1 %v9785_v53  ;;  %v9872_v52 = vld [vmem:[%s14264_s1 + $0xae4] ss:$16 sps:$4 sm:$0xff]   ;;  %v9875_v53 = vld [vmem:[%s14264_s1 + $0xaec] ss:$16 sps:$4 sm:$0xff]  }
 0x129   : > { %6721 = vmatpush1.bf16.msra.mxu0 %v9780_v54  ;;  %7409 = vmatpush1.bf16.msra.mxu1 %v9783_v55  ;;  %v9870_v54 = vld [vmem:[%s14264_s1 + $0xae0] ss:$16 sps:$4 sm:$0xff]   ;;  %v9873_v55 = vld [vmem:[%s14264_s1 + $0xae8] ss:$16 sps:$4 sm:$0xff]  }
 0x12a   : > { %6722 = vmatprep.subr.bf16.mxu0 %v9788_v56  ;;  %7410 = vmatprep.subr.bf16.mxu1 %v9791_v57  ;;  %v9878_v56 = vld [vmem:[%s14264_s1 + $0xb04] ss:$16 sps:$4 sm:$0xff]   ;;  %v9881_v57 = vld [vmem:[%s14264_s1 + $0xb0c] ss:$16 sps:$4 sm:$0xff]  }
 0x12d   : > { %6723 = vmatpush1.bf16.msra.mxu0 %v9786_v58  ;;  %7411 = vmatpush1.bf16.msra.mxu1 %v9789_v59  ;;  %v9876_v58 = vld [vmem:[%s14264_s1 + $0xb00] ss:$16 sps:$4 sm:$0xff]   ;;  %v9879_v59 = vld [vmem:[%s14264_s1 + $0xb08] ss:$16 sps:$4 sm:$0xff]  }
 0x12e   : > { %6724 = vmatprep.subr.bf16.mxu0 %v9794_v60  ;;  %7412 = vmatprep.subr.bf16.mxu1 %v9797_v61  ;;  %v9884_v60 = vld [vmem:[%s14264_s1 + $0xb24] ss:$16 sps:$4 sm:$0xff]   ;;  %v9887_v61 = vld [vmem:[%s14264_s1 + $0xb2c] ss:$16 sps:$4 sm:$0xff]  }
 0x131   : > { %6725 = vmatpush1.bf16.msra.mxu0 %v9792_v62  ;;  %7413 = vmatpush1.bf16.msra.mxu1 %v9795_v63  ;;  %v9882_v62 = vld [vmem:[%s14264_s1 + $0xb20] ss:$16 sps:$4 sm:$0xff]   ;;  %v9885_v63 = vld [vmem:[%s14264_s1 + $0xb28] ss:$16 sps:$4 sm:$0xff]  }
 0x132   : > { %6726 = vmatprep.subr.bf16.mxu0 %v9800_v0  ;;  %7414 = vmatprep.subr.bf16.mxu1 %v9803_v1  ;;  %v9890_v0 = vld [vmem:[%s14264_s1 + $0xb44] ss:$16 sps:$4 sm:$0xff]   ;;  %v9893_v1 = vld [vmem:[%s14264_s1 + $0xb4c] ss:$16 sps:$4 sm:$0xff]  }
 0x135   : > { %6727 = vmatpush1.bf16.msra.mxu0 %v9798_v2  ;;  %7415 = vmatpush1.bf16.msra.mxu1 %v9801_v3  ;;  %v9888_v2 = vld [vmem:[%s14264_s1 + $0xb40] ss:$16 sps:$4 sm:$0xff]   ;;  %v9891_v3 = vld [vmem:[%s14264_s1 + $0xb48] ss:$16 sps:$4 sm:$0xff]  }
 0x136   : > { %6728 = vmatprep.subr.bf16.mxu0 %v9806_v4  ;;  %7416 = vmatprep.subr.bf16.mxu1 %v9809_v5  ;;  %v9896_v4 = vld [vmem:[%s14264_s1 + $0xb64] ss:$16 sps:$4 sm:$0xff]   ;;  %v9899_v5 = vld [vmem:[%s14264_s1 + $0xb6c] ss:$16 sps:$4 sm:$0xff]  }
 0x139   : > { %6729 = vmatpush1.bf16.msra.mxu0 %v9804_v6  ;;  %7417 = vmatpush1.bf16.msra.mxu1 %v9807_v7  ;;  %v9894_v6 = vld [vmem:[%s14264_s1 + $0xb60] ss:$16 sps:$4 sm:$0xff]   ;;  %v9897_v7 = vld [vmem:[%s14264_s1 + $0xb68] ss:$16 sps:$4 sm:$0xff]  }
 0x13a   : > { %6730 = vmatprep.subr.bf16.mxu0 %v9812_v8  ;;  %7418 = vmatprep.subr.bf16.mxu1 %v9815_v9  ;;  %v9902_v8 = vld [vmem:[%s14264_s1 + $0xb84] ss:$16 sps:$4 sm:$0xff]   ;;  %v9905_v9 = vld [vmem:[%s14264_s1 + $0xb8c] ss:$16 sps:$4 sm:$0xff]  }
 0x13d   : > { %6731 = vmatpush1.bf16.msra.mxu0 %v9810_v10  ;;  %7419 = vmatpush1.bf16.msra.mxu1 %v9813_v11  ;;  %v9900_v10 = vld [vmem:[%s14264_s1 + $0xb80] ss:$16 sps:$4 sm:$0xff]   ;;  %v9903_v11 = vld [vmem:[%s14264_s1 + $0xb88] ss:$16 sps:$4 sm:$0xff]  }
 0x13e   : > { %6732 = vmatprep.subr.bf16.mxu0 %v9818_v12  ;;  %7420 = vmatprep.subr.bf16.mxu1 %v9821_v13  ;;  %v9908_v12 = vld [vmem:[%s14264_s1 + $0xba4] ss:$16 sps:$4 sm:$0xff]   ;;  %v9911_v13 = vld [vmem:[%s14264_s1 + $0xbac] ss:$16 sps:$4 sm:$0xff]  }
 0x141   : > { %6733 = vmatpush1.bf16.msra.mxu0 %v9816_v14  ;;  %7421 = vmatpush1.bf16.msra.mxu1 %v9819_v17  ;;  %v9906_v14 = vld [vmem:[%s14264_s1 + $0xba0] ss:$16 sps:$4 sm:$0xff]   ;;  %v9909_v17 = vld [vmem:[%s14264_s1 + $0xba8] ss:$16 sps:$4 sm:$0xff]  }
 0x142   : > { %6734 = vmatprep.subr.bf16.mxu0 %v9824_v18  ;;  %7422 = vmatprep.subr.bf16.mxu1 %v9827_v21  ;;  %v9914_v18 = vld [vmem:[%s14264_s1 + $0xbc4] ss:$16 sps:$4 sm:$0xff]   ;;  %v9917_v21 = vld [vmem:[%s14264_s1 + $0xbcc] ss:$16 sps:$4 sm:$0xff]  }
 0x145   : > { %6735 = vmatpush1.bf16.msra.mxu0 %v9822_v23  ;;  %7423 = vmatpush1.bf16.msra.mxu1 %v9825_v16  ;;  %v9912_v23 = vld [vmem:[%s14264_s1 + $0xbc0] ss:$16 sps:$4 sm:$0xff]   ;;  %v9915_v16 = vld [vmem:[%s14264_s1 + $0xbc8] ss:$16 sps:$4 sm:$0xff]  }
 0x146   : > { %6747 = vmatprep.subr.bf16.mxu0 %v9830_v24  ;;  %7435 = vmatprep.subr.bf16.mxu1 %v9833_v25  ;;  %v9920_v24 = vld [vmem:[%s14264_s1 + $0xbe4] ss:$16 sps:$4 sm:$0xff]   ;;  %v9923_v25 = vld [vmem:[%s14264_s1 + $0xbec] ss:$16 sps:$4 sm:$0xff]  }
 0x148   : > { %6737 = vmatmul.mubr.bf16.vlgmr.msra.gmra.mrb[0].mxu0 %v8169_v26  ;;  %7425 = vmatmul.mubr.bf16.vlgmr.msra.gmra.mrb[0].mxu1 %v8169_v26  ;;  %v9918_v26 = vld [vmem:[%s14264_s1 + $0xbe0] ss:$16 sps:$4 sm:$0xff]  }
 0x149   : > { %6748 = vmatpush1.bf16.msra.mxu0 %v9828_v27  ;;  %7436 = vmatpush1.bf16.msra.mxu1 %v9831_v28  ;;  %v9921_v27 = vld [vmem:[%s14264_s1 + $0xbe8] ss:$16 sps:$4 sm:$0xff]   ;;  %v9926_v28 = vld [vmem:[%s14264_s1 + $0xc04] ss:$16 sps:$4 sm:$0xff]  }
 0x14a   : > { %6749 = vmatprep.subr.bf16.mxu0 %v9836_v29  ;;  %7437 = vmatprep.subr.bf16.mxu1 %v9839_v22  ;;  %v9929_v29 = vld [vmem:[%s14264_s1 + $0xc0c] ss:$16 sps:$4 sm:$0xff]   ;;  %v12157_v22 = vld [vmem:[%s11078_s8 + $0x30] sm:$0xff] }
 0x14b   : > { %6779 = vmatprep.mubr.bf16.mxu0 %v8172_v15  ;;  %7467 = vmatprep.mubr.bf16.mxu1 %v8172_v15  ;;  %v12160_v15 = vld [vmem:[%s11078_s8 + $0xb0] sm:$0x11] }
 0x14d   : > { %6750 = vmatpush1.bf16.msra.mxu0 %v9834_v30  ;;  %7438 = vmatpush1.bf16.msra.mxu1 %v9837_v31  ;;  %v8171_v30 = vcombine.low %v11955_v19, %v11958_v20  ;;  %v9924_v31 = vld [vmem:[%s14264_s1 + $0xc00] ss:$16 sps:$4 sm:$0xff]   ;;  %v9935_v19 = vld [vmem:[%s14264_s1 + $0xc2c] ss:$16 sps:$4 sm:$0xff]   ;;  %v8174_v20 = vcombine.high %v12157_v22, %v12160_v15 }
 0x14e   : > { %6751 = vmatprep.subr.bf16.mxu0 %v9842_v32  ;;  %7439 = vmatprep.subr.bf16.mxu1 %v9845_v33  ;;  %v9927_v32 = vld [vmem:[%s14264_s1 + $0xc08] ss:$16 sps:$4 sm:$0xff]   ;;  %v9932_v33 = vld [vmem:[%s14264_s1 + $0xc24] ss:$16 sps:$4 sm:$0xff]  }
 0x151   : > { %6752 = vmatpush1.bf16.msra.mxu0 %v9840_v34  ;;  %7440 = vmatpush1.bf16.msra.mxu1 %v9843_v35  ;;  %v9930_v34 = vld [vmem:[%s14264_s1 + $0xc20] ss:$16 sps:$4 sm:$0xff]   ;;  %v9933_v35 = vld [vmem:[%s14264_s1 + $0xc28] ss:$16 sps:$4 sm:$0xff]  }
 0x152   : > { %6753 = vmatprep.subr.bf16.mxu0 %v9848_v36  ;;  %7441 = vmatprep.subr.bf16.mxu1 %v9851_v37  ;;  %v9938_v36 = vld [vmem:[%s14264_s1 + $0xc44] ss:$16 sps:$4 sm:$0xff]   ;;  %v9941_v37 = vld [vmem:[%s14264_s1 + $0xc4c] ss:$16 sps:$4 sm:$0xff]  }
 0x155   : > { %6754 = vmatpush1.bf16.msra.mxu0 %v9846_v38  ;;  %7442 = vmatpush1.bf16.msra.mxu1 %v9849_v39  ;;  %v9936_v38 = vld [vmem:[%s14264_s1 + $0xc40] ss:$16 sps:$4 sm:$0xff]   ;;  %v9939_v39 = vld [vmem:[%s14264_s1 + $0xc48] ss:$16 sps:$4 sm:$0xff]  }
 0x156   : > { %6755 = vmatprep.subr.bf16.mxu0 %v9854_v40  ;;  %7443 = vmatprep.subr.bf16.mxu1 %v9857_v41  ;;  %v9944_v40 = vld [vmem:[%s14264_s1 + $0xc64] ss:$16 sps:$4 sm:$0xff]   ;;  %v9947_v41 = vld [vmem:[%s14264_s1 + $0xc6c] ss:$16 sps:$4 sm:$0xff]  }
 0x159   : > { %6756 = vmatpush1.bf16.msra.mxu0 %v9852_v42  ;;  %7444 = vmatpush1.bf16.msra.mxu1 %v9855_v43  ;;  %v9942_v42 = vld [vmem:[%s14264_s1 + $0xc60] ss:$16 sps:$4 sm:$0xff]   ;;  %v9945_v43 = vld [vmem:[%s14264_s1 + $0xc68] ss:$16 sps:$4 sm:$0xff]  }
 0x15a   : > { %6757 = vmatprep.subr.bf16.mxu0 %v9860_v44  ;;  %7445 = vmatprep.subr.bf16.mxu1 %v9863_v45  ;;  %v9950_v44 = vld [vmem:[%s14264_s1 + $0xc84] ss:$16 sps:$4 sm:$0xff]   ;;  %v9953_v45 = vld [vmem:[%s14264_s1 + $0xc8c] ss:$16 sps:$4 sm:$0xff]  }
 0x15d   : > { %6758 = vmatpush1.bf16.msra.mxu0 %v9858_v46  ;;  %7446 = vmatpush1.bf16.msra.mxu1 %v9861_v47  ;;  %v9948_v46 = vld [vmem:[%s14264_s1 + $0xc80] ss:$16 sps:$4 sm:$0xff]   ;;  %v9951_v47 = vld [vmem:[%s14264_s1 + $0xc88] ss:$16 sps:$4 sm:$0xff]  }
 0x15e   : > { %6759 = vmatprep.subr.bf16.mxu0 %v9866_v48  ;;  %7447 = vmatprep.subr.bf16.mxu1 %v9869_v49  ;;  %v9956_v48 = vld [vmem:[%s14264_s1 + $0xca4] ss:$16 sps:$4 sm:$0xff]   ;;  %v9959_v49 = vld [vmem:[%s14264_s1 + $0xcac] ss:$16 sps:$4 sm:$0xff]  }
 0x161   : > { %6760 = vmatpush1.bf16.msra.mxu0 %v9864_v50  ;;  %7448 = vmatpush1.bf16.msra.mxu1 %v9867_v51  ;;  %v9954_v50 = vld [vmem:[%s14264_s1 + $0xca0] ss:$16 sps:$4 sm:$0xff]   ;;  %v9957_v51 = vld [vmem:[%s14264_s1 + $0xca8] ss:$16 sps:$4 sm:$0xff]  }
 0x162   : > { %6761 = vmatprep.subr.bf16.mxu0 %v9872_v52  ;;  %7449 = vmatprep.subr.bf16.mxu1 %v9875_v53  ;;  %v9962_v52 = vld [vmem:[%s14264_s1 + $0xcc4] ss:$16 sps:$4 sm:$0xff]   ;;  %v9965_v53 = vld [vmem:[%s14264_s1 + $0xccc] ss:$16 sps:$4 sm:$0xff]  }
 0x165   : > { %6762 = vmatpush1.bf16.msra.mxu0 %v9870_v54  ;;  %7450 = vmatpush1.bf16.msra.mxu1 %v9873_v55  ;;  %v9960_v54 = vld [vmem:[%s14264_s1 + $0xcc0] ss:$16 sps:$4 sm:$0xff]   ;;  %v9963_v55 = vld [vmem:[%s14264_s1 + $0xcc8] ss:$16 sps:$4 sm:$0xff]  }
 0x166   : > { %6763 = vmatprep.subr.bf16.mxu0 %v9878_v56  ;;  %7451 = vmatprep.subr.bf16.mxu1 %v9881_v57  ;;  %v9968_v56 = vld [vmem:[%s14264_s1 + $0xce4] ss:$16 sps:$4 sm:$0xff]   ;;  %v9971_v57 = vld [vmem:[%s14264_s1 + $0xcec] ss:$16 sps:$4 sm:$0xff]  }
 0x169   : > { %6764 = vmatpush1.bf16.msra.mxu0 %v9876_v58  ;;  %7452 = vmatpush1.bf16.msra.mxu1 %v9879_v59  ;;  %v9966_v58 = vld [vmem:[%s14264_s1 + $0xce0] ss:$16 sps:$4 sm:$0xff]   ;;  %v9969_v59 = vld [vmem:[%s14264_s1 + $0xce8] ss:$16 sps:$4 sm:$0xff]  }
 0x16a   : > { %6765 = vmatprep.subr.bf16.mxu0 %v9884_v60  ;;  %7453 = vmatprep.subr.bf16.mxu1 %v9887_v61  ;;  %v9974_v60 = vld [vmem:[%s14264_s1 + $0xd04] ss:$16 sps:$4 sm:$0xff]   ;;  %v9977_v61 = vld [vmem:[%s14264_s1 + $0xd0c] ss:$16 sps:$4 sm:$0xff]  }
 0x16d   : > { %6766 = vmatpush1.bf16.msra.mxu0 %v9882_v62  ;;  %7454 = vmatpush1.bf16.msra.mxu1 %v9885_v63  ;;  %v9972_v62 = vld [vmem:[%s14264_s1 + $0xd00] ss:$16 sps:$4 sm:$0xff]   ;;  %v9975_v63 = vld [vmem:[%s14264_s1 + $0xd08] ss:$16 sps:$4 sm:$0xff]  }
 0x16e   : > { %6767 = vmatprep.subr.bf16.mxu0 %v9890_v0  ;;  %7455 = vmatprep.subr.bf16.mxu1 %v9893_v1  ;;  %v9980_v0 = vld [vmem:[%s14264_s1 + $0xd24] ss:$16 sps:$4 sm:$0xff]   ;;  %v9983_v1 = vld [vmem:[%s14264_s1 + $0xd2c] ss:$16 sps:$4 sm:$0xff]  }
 0x171   : > { %6768 = vmatpush1.bf16.msra.mxu0 %v9888_v2  ;;  %7456 = vmatpush1.bf16.msra.mxu1 %v9891_v3  ;;  %v9978_v2 = vld [vmem:[%s14264_s1 + $0xd20] ss:$16 sps:$4 sm:$0xff]   ;;  %v9981_v3 = vld [vmem:[%s14264_s1 + $0xd28] ss:$16 sps:$4 sm:$0xff]  }
 0x172   : > { %6769 = vmatprep.subr.bf16.mxu0 %v9896_v4  ;;  %7457 = vmatprep.subr.bf16.mxu1 %v9899_v5  ;;  %v9986_v4 = vld [vmem:[%s14264_s1 + $0xd44] ss:$16 sps:$4 sm:$0xff]   ;;  %v9989_v5 = vld [vmem:[%s14264_s1 + $0xd4c] ss:$16 sps:$4 sm:$0xff]  }
 0x175   : > { %6770 = vmatpush1.bf16.msra.mxu0 %v9894_v6  ;;  %7458 = vmatpush1.bf16.msra.mxu1 %v9897_v7  ;;  %v9984_v6 = vld [vmem:[%s14264_s1 + $0xd40] ss:$16 sps:$4 sm:$0xff]   ;;  %v9987_v7 = vld [vmem:[%s14264_s1 + $0xd48] ss:$16 sps:$4 sm:$0xff]  }
 0x176   : > { %6771 = vmatprep.subr.bf16.mxu0 %v9902_v8  ;;  %7459 = vmatprep.subr.bf16.mxu1 %v9905_v9  ;;  %v9992_v8 = vld [vmem:[%s14264_s1 + $0xd64] ss:$16 sps:$4 sm:$0xff]   ;;  %v9995_v9 = vld [vmem:[%s14264_s1 + $0xd6c] ss:$16 sps:$4 sm:$0xff]  }
 0x179   : > { %6772 = vmatpush1.bf16.msra.mxu0 %v9900_v10  ;;  %7460 = vmatpush1.bf16.msra.mxu1 %v9903_v11  ;;  %v9990_v10 = vld [vmem:[%s14264_s1 + $0xd60] ss:$16 sps:$4 sm:$0xff]   ;;  %v9993_v11 = vld [vmem:[%s14264_s1 + $0xd68] ss:$16 sps:$4 sm:$0xff]  }
 0x17a   : > { %6773 = vmatprep.subr.bf16.mxu0 %v9908_v12  ;;  %7461 = vmatprep.subr.bf16.mxu1 %v9911_v13  ;;  %v9998_v12 = vld [vmem:[%s14264_s1 + $0xd84] ss:$16 sps:$4 sm:$0xff]   ;;  %v10001_v13 = vld [vmem:[%s14264_s1 + $0xd8c] ss:$16 sps:$4 sm:$0xff]  }
 0x17d   : > { %6774 = vmatpush1.bf16.msra.mxu0 %v9906_v14  ;;  %7462 = vmatpush1.bf16.msra.mxu1 %v9909_v17  ;;  %v9996_v14 = vld [vmem:[%s14264_s1 + $0xd80] ss:$16 sps:$4 sm:$0xff]   ;;  %v9999_v17 = vld [vmem:[%s14264_s1 + $0xd88] ss:$16 sps:$4 sm:$0xff]  }
 0x17e   : > { %6775 = vmatprep.subr.bf16.mxu0 %v9914_v18  ;;  %7463 = vmatprep.subr.bf16.mxu1 %v9917_v21  ;;  %v10004_v18 = vld [vmem:[%s14264_s1 + $0xda4] ss:$16 sps:$4 sm:$0xff]   ;;  %v10007_v21 = vld [vmem:[%s14264_s1 + $0xdac] ss:$16 sps:$4 sm:$0xff]  }
 0x181   : > { %6776 = vmatpush1.bf16.msra.mxu0 %v9912_v23  ;;  %7464 = vmatpush1.bf16.msra.mxu1 %v9915_v16  ;;  %v10002_v23 = vld [vmem:[%s14264_s1 + $0xda0] ss:$16 sps:$4 sm:$0xff]   ;;  %v10005_v16 = vld [vmem:[%s14264_s1 + $0xda8] ss:$16 sps:$4 sm:$0xff]  }
 0x182   : > { %6777 = vmatprep.subr.bf16.mxu0 %v9920_v24  ;;  %7465 = vmatprep.subr.bf16.mxu1 %v9923_v25  ;;  %v10010_v24 = vld [vmem:[%s14264_s1 + $0xdc4] ss:$16 sps:$4 sm:$0xff]   ;;  %v10013_v25 = vld [vmem:[%s14264_s1 + $0xdcc] ss:$16 sps:$4 sm:$0xff]  }
 0x185   : > { %6778 = vmatpush1.bf16.msra.mxu0 %v9918_v26  ;;  %7466 = vmatpush1.bf16.msra.mxu1 %v9921_v27  ;;  %v10008_v26 = vld [vmem:[%s14264_s1 + $0xdc0] ss:$16 sps:$4 sm:$0xff]   ;;  %v10011_v27 = vld [vmem:[%s14264_s1 + $0xdc8] ss:$16 sps:$4 sm:$0xff]  }
 0x186   : > { %6790 = vmatprep.subr.bf16.mxu0 %v9926_v28  ;;  %7478 = vmatprep.subr.bf16.mxu1 %v9929_v29  ;;  %v10016_v28 = vld [vmem:[%s14264_s1 + $0xde4] ss:$16 sps:$4 sm:$0xff]   ;;  %v10019_v29 = vld [vmem:[%s14264_s1 + $0xdec] ss:$16 sps:$4 sm:$0xff]  }
 0x188   : > { %6780 = vmatmul.mubr.bf16.vlgmr.msra.gmra.mrb[0].mxu0 %v8171_v30  ;;  %7468 = vmatmul.mubr.bf16.vlgmr.msra.gmra.mrb[0].mxu1 %v8171_v30  ;;  %v10014_v30 = vld [vmem:[%s14264_s1 + $0xde0] ss:$16 sps:$4 sm:$0xff]  }
 0x189   : > { %6791 = vmatpush1.bf16.msra.mxu0 %v9924_v31  ;;  %7479 = vmatpush1.bf16.msra.mxu1 %v9927_v32  ;;  %v10017_v31 = vld [vmem:[%s14264_s1 + $0xde8] ss:$16 sps:$4 sm:$0xff]   ;;  %v10022_v32 = vld [vmem:[%s14264_s1 + $0xe04] ss:$16 sps:$4 sm:$0xff]  }
 0x18a   : > { %6792 = vmatprep.subr.bf16.mxu0 %v9932_v33  ;;  %7480 = vmatprep.subr.bf16.mxu1 %v9935_v19  ;;  %v10025_v33 = vld [vmem:[%s14264_s1 + $0xe0c] ss:$16 sps:$4 sm:$0xff]  }
 0x18b   : > { %6822 = vmatprep.mubr.bf16.mxu0 %v8174_v20  ;;  %7510 = vmatprep.mubr.bf16.mxu1 %v8174_v20  ;;  %v12359_v19 = vld [vmem:[%s11078_s8 + $0x38] sm:$0xff] }
 0x18c   : > { %v12362_v20 = vld [vmem:[%s11078_s8 + $0xb8] sm:$0x11] }
 0x18d   : > { %6793 = vmatpush1.bf16.msra.mxu0 %v9930_v34  ;;  %7481 = vmatpush1.bf16.msra.mxu1 %v9933_v35  ;;  %v8173_v34 = vcombine.low %v12157_v22, %v12160_v15  ;;  %v10020_v35 = vld [vmem:[%s14264_s1 + $0xe00] ss:$16 sps:$4 sm:$0xff]   ;;  %v10031_v22 = vld [vmem:[%s14264_s1 + $0xe2c] ss:$16 sps:$4 sm:$0xff]   ;;  %v8176_v15 = vcombine.high %v12359_v19, %v12362_v20 }
 0x18e   : > { %6794 = vmatprep.subr.bf16.mxu0 %v9938_v36  ;;  %7482 = vmatprep.subr.bf16.mxu1 %v9941_v37  ;;  %v10023_v36 = vld [vmem:[%s14264_s1 + $0xe08] ss:$16 sps:$4 sm:$0xff]   ;;  %v10028_v37 = vld [vmem:[%s14264_s1 + $0xe24] ss:$16 sps:$4 sm:$0xff]  }
 0x191   : > { %6795 = vmatpush1.bf16.msra.mxu0 %v9936_v38  ;;  %7483 = vmatpush1.bf16.msra.mxu1 %v9939_v39  ;;  %v10026_v38 = vld [vmem:[%s14264_s1 + $0xe20] ss:$16 sps:$4 sm:$0xff]   ;;  %v10029_v39 = vld [vmem:[%s14264_s1 + $0xe28] ss:$16 sps:$4 sm:$0xff]  }
 0x192   : > { %6796 = vmatprep.subr.bf16.mxu0 %v9944_v40  ;;  %7484 = vmatprep.subr.bf16.mxu1 %v9947_v41  ;;  %v10034_v40 = vld [vmem:[%s14264_s1 + $0xe44] ss:$16 sps:$4 sm:$0xff]   ;;  %v10037_v41 = vld [vmem:[%s14264_s1 + $0xe4c] ss:$16 sps:$4 sm:$0xff]  }
 0x195   : > { %6797 = vmatpush1.bf16.msra.mxu0 %v9942_v42  ;;  %7485 = vmatpush1.bf16.msra.mxu1 %v9945_v43  ;;  %v10032_v42 = vld [vmem:[%s14264_s1 + $0xe40] ss:$16 sps:$4 sm:$0xff]   ;;  %v10035_v43 = vld [vmem:[%s14264_s1 + $0xe48] ss:$16 sps:$4 sm:$0xff]  }
 0x196   : > { %6798 = vmatprep.subr.bf16.mxu0 %v9950_v44  ;;  %7486 = vmatprep.subr.bf16.mxu1 %v9953_v45  ;;  %v10040_v44 = vld [vmem:[%s14264_s1 + $0xe64] ss:$16 sps:$4 sm:$0xff]   ;;  %v10043_v45 = vld [vmem:[%s14264_s1 + $0xe6c] ss:$16 sps:$4 sm:$0xff]  }
 0x199   : > { %6799 = vmatpush1.bf16.msra.mxu0 %v9948_v46  ;;  %7487 = vmatpush1.bf16.msra.mxu1 %v9951_v47  ;;  %v10038_v46 = vld [vmem:[%s14264_s1 + $0xe60] ss:$16 sps:$4 sm:$0xff]   ;;  %v10041_v47 = vld [vmem:[%s14264_s1 + $0xe68] ss:$16 sps:$4 sm:$0xff]  }
 0x19a   : > { %6800 = vmatprep.subr.bf16.mxu0 %v9956_v48  ;;  %7488 = vmatprep.subr.bf16.mxu1 %v9959_v49  ;;  %v10046_v48 = vld [vmem:[%s14264_s1 + $0xe84] ss:$16 sps:$4 sm:$0xff]   ;;  %v10049_v49 = vld [vmem:[%s14264_s1 + $0xe8c] ss:$16 sps:$4 sm:$0xff]  }
 0x19d   : > { %6801 = vmatpush1.bf16.msra.mxu0 %v9954_v50  ;;  %7489 = vmatpush1.bf16.msra.mxu1 %v9957_v51  ;;  %v10044_v50 = vld [vmem:[%s14264_s1 + $0xe80] ss:$16 sps:$4 sm:$0xff]   ;;  %v10047_v51 = vld [vmem:[%s14264_s1 + $0xe88] ss:$16 sps:$4 sm:$0xff]  }
 0x19e   : > { %6802 = vmatprep.subr.bf16.mxu0 %v9962_v52  ;;  %7490 = vmatprep.subr.bf16.mxu1 %v9965_v53  ;;  %v10052_v52 = vld [vmem:[%s14264_s1 + $0xea4] ss:$16 sps:$4 sm:$0xff]   ;;  %v10055_v53 = vld [vmem:[%s14264_s1 + $0xeac] ss:$16 sps:$4 sm:$0xff]  }
 0x1a1   : > { %6803 = vmatpush1.bf16.msra.mxu0 %v9960_v54  ;;  %7491 = vmatpush1.bf16.msra.mxu1 %v9963_v55  ;;  %v10050_v54 = vld [vmem:[%s14264_s1 + $0xea0] ss:$16 sps:$4 sm:$0xff]   ;;  %v10053_v55 = vld [vmem:[%s14264_s1 + $0xea8] ss:$16 sps:$4 sm:$0xff]  }
 0x1a2   : > { %6804 = vmatprep.subr.bf16.mxu0 %v9968_v56  ;;  %7492 = vmatprep.subr.bf16.mxu1 %v9971_v57  ;;  %v10058_v56 = vld [vmem:[%s14264_s1 + $0xec4] ss:$16 sps:$4 sm:$0xff]   ;;  %v10061_v57 = vld [vmem:[%s14264_s1 + $0xecc] ss:$16 sps:$4 sm:$0xff]  }
 0x1a5   : > { %6805 = vmatpush1.bf16.msra.mxu0 %v9966_v58  ;;  %7493 = vmatpush1.bf16.msra.mxu1 %v9969_v59  ;;  %v10056_v58 = vld [vmem:[%s14264_s1 + $0xec0] ss:$16 sps:$4 sm:$0xff]   ;;  %v10059_v59 = vld [vmem:[%s14264_s1 + $0xec8] ss:$16 sps:$4 sm:$0xff]  }
 0x1a6   : > { %6806 = vmatprep.subr.bf16.mxu0 %v9974_v60  ;;  %7494 = vmatprep.subr.bf16.mxu1 %v9977_v61  ;;  %v10064_v60 = vld [vmem:[%s14264_s1 + $0xee4] ss:$16 sps:$4 sm:$0xff]   ;;  %v10067_v61 = vld [vmem:[%s14264_s1 + $0xeec] ss:$16 sps:$4 sm:$0xff]  }
 0x1a9   : > { %6807 = vmatpush1.bf16.msra.mxu0 %v9972_v62  ;;  %7495 = vmatpush1.bf16.msra.mxu1 %v9975_v63  ;;  %v10062_v62 = vld [vmem:[%s14264_s1 + $0xee0] ss:$16 sps:$4 sm:$0xff]   ;;  %v10065_v63 = vld [vmem:[%s14264_s1 + $0xee8] ss:$16 sps:$4 sm:$0xff]  }
 0x1aa   : > { %6808 = vmatprep.subr.bf16.mxu0 %v9980_v0  ;;  %7496 = vmatprep.subr.bf16.mxu1 %v9983_v1  ;;  %v10070_v0 = vld [vmem:[%s14264_s1 + $0xf04] ss:$16 sps:$4 sm:$0xff]   ;;  %v10073_v1 = vld [vmem:[%s14264_s1 + $0xf0c] ss:$16 sps:$4 sm:$0xff]  }
 0x1ad   : > { %6809 = vmatpush1.bf16.msra.mxu0 %v9978_v2  ;;  %7497 = vmatpush1.bf16.msra.mxu1 %v9981_v3  ;;  %v10068_v2 = vld [vmem:[%s14264_s1 + $0xf00] ss:$16 sps:$4 sm:$0xff]   ;;  %v10071_v3 = vld [vmem:[%s14264_s1 + $0xf08] ss:$16 sps:$4 sm:$0xff]  }
 0x1ae   : > { %6810 = vmatprep.subr.bf16.mxu0 %v9986_v4  ;;  %7498 = vmatprep.subr.bf16.mxu1 %v9989_v5  ;;  %v10076_v4 = vld [vmem:[%s14264_s1 + $0xf24] ss:$16 sps:$4 sm:$0xff]   ;;  %v10079_v5 = vld [vmem:[%s14264_s1 + $0xf2c] ss:$16 sps:$4 sm:$0xff]  }
 0x1b1   : > { %6811 = vmatpush1.bf16.msra.mxu0 %v9984_v6  ;;  %7499 = vmatpush1.bf16.msra.mxu1 %v9987_v7  ;;  %v10074_v6 = vld [vmem:[%s14264_s1 + $0xf20] ss:$16 sps:$4 sm:$0xff]   ;;  %v10077_v7 = vld [vmem:[%s14264_s1 + $0xf28] ss:$16 sps:$4 sm:$0xff]  }
 0x1b2   : > { %6812 = vmatprep.subr.bf16.mxu0 %v9992_v8  ;;  %7500 = vmatprep.subr.bf16.mxu1 %v9995_v9  ;;  %v10082_v8 = vld [vmem:[%s14264_s1 + $0xf44] ss:$16 sps:$4 sm:$0xff]   ;;  %v10085_v9 = vld [vmem:[%s14264_s1 + $0xf4c] ss:$16 sps:$4 sm:$0xff]  }
 0x1b5   : > { %6813 = vmatpush1.bf16.msra.mxu0 %v9990_v10  ;;  %7501 = vmatpush1.bf16.msra.mxu1 %v9993_v11  ;;  %v10080_v10 = vld [vmem:[%s14264_s1 + $0xf40] ss:$16 sps:$4 sm:$0xff]   ;;  %v10083_v11 = vld [vmem:[%s14264_s1 + $0xf48] ss:$16 sps:$4 sm:$0xff]  }
 0x1b6   : > { %6814 = vmatprep.subr.bf16.mxu0 %v9998_v12  ;;  %7502 = vmatprep.subr.bf16.mxu1 %v10001_v13  ;;  %v10088_v12 = vld [vmem:[%s14264_s1 + $0xf64] ss:$16 sps:$4 sm:$0xff]   ;;  %v10091_v13 = vld [vmem:[%s14264_s1 + $0xf6c] ss:$16 sps:$4 sm:$0xff]  }
 0x1b9   : > { %6815 = vmatpush1.bf16.msra.mxu0 %v9996_v14  ;;  %7503 = vmatpush1.bf16.msra.mxu1 %v9999_v17  ;;  %v10086_v14 = vld [vmem:[%s14264_s1 + $0xf60] ss:$16 sps:$4 sm:$0xff]   ;;  %v10089_v17 = vld [vmem:[%s14264_s1 + $0xf68] ss:$16 sps:$4 sm:$0xff]  }
 0x1ba   : > { %6816 = vmatprep.subr.bf16.mxu0 %v10004_v18  ;;  %7504 = vmatprep.subr.bf16.mxu1 %v10007_v21  ;;  %v10094_v18 = vld [vmem:[%s14264_s1 + $0xf84] ss:$16 sps:$4 sm:$0xff]   ;;  %v10097_v21 = vld [vmem:[%s14264_s1 + $0xf8c] ss:$16 sps:$4 sm:$0xff]  }
 0x1bd   : > { %6817 = vmatpush1.bf16.msra.mxu0 %v10002_v23  ;;  %7505 = vmatpush1.bf16.msra.mxu1 %v10005_v16  ;;  %v10092_v23 = vld [vmem:[%s14264_s1 + $0xf80] ss:$16 sps:$4 sm:$0xff]   ;;  %v10095_v16 = vld [vmem:[%s14264_s1 + $0xf88] ss:$16 sps:$4 sm:$0xff]  }
 0x1be   : > { %6818 = vmatprep.subr.bf16.mxu0 %v10010_v24  ;;  %7506 = vmatprep.subr.bf16.mxu1 %v10013_v25  ;;  %v10100_v24 = vld [vmem:[%s14264_s1 + $0xfa4] ss:$16 sps:$4 sm:$0xff]   ;;  %v10103_v25 = vld [vmem:[%s14264_s1 + $0xfac] ss:$16 sps:$4 sm:$0xff]  }
 0x1c1   : > { %6819 = vmatpush1.bf16.msra.mxu0 %v10008_v26  ;;  %7507 = vmatpush1.bf16.msra.mxu1 %v10011_v27  ;;  %v10098_v26 = vld [vmem:[%s14264_s1 + $0xfa0] ss:$16 sps:$4 sm:$0xff]   ;;  %v10101_v27 = vld [vmem:[%s14264_s1 + $0xfa8] ss:$16 sps:$4 sm:$0xff]  }
 0x1c2   : > { %6820 = vmatprep.subr.bf16.mxu0 %v10016_v28  ;;  %7508 = vmatprep.subr.bf16.mxu1 %v10019_v29  ;;  %v10106_v28 = vld [vmem:[%s14264_s1 + $0xfc4] ss:$16 sps:$4 sm:$0xff]   ;;  %v10109_v29 = vld [vmem:[%s14264_s1 + $0xfcc] ss:$16 sps:$4 sm:$0xff]  }
 0x1c5   : > { %6821 = vmatpush1.bf16.msra.mxu0 %v10014_v30  ;;  %7509 = vmatpush1.bf16.msra.mxu1 %v10017_v31  ;;  %v10104_v30 = vld [vmem:[%s14264_s1 + $0xfc0] ss:$16 sps:$4 sm:$0xff]   ;;  %v10107_v31 = vld [vmem:[%s14264_s1 + $0xfc8] ss:$16 sps:$4 sm:$0xff]  }
 0x1c6   : > { %6833 = vmatprep.subr.bf16.mxu0 %v10022_v32  ;;  %7521 = vmatprep.subr.bf16.mxu1 %v10025_v33  ;;  %v10112_v32 = vld [vmem:[%s14264_s1 + $0xfe4] ss:$16 sps:$4 sm:$0xff]   ;;  %v10115_v33 = vld [vmem:[%s14264_s1 + $0xfec] ss:$16 sps:$4 sm:$0xff]  }
 0x1c8   : > { %6823 = vmatmul.mubr.bf16.vlgmr.msra.gmra.mrb[0].mxu0 %v8173_v34  ;;  %7511 = vmatmul.mubr.bf16.vlgmr.msra.gmra.mrb[0].mxu1 %v8173_v34  ;;  %v10110_v34 = vld [vmem:[%s14264_s1 + $0xfe0] ss:$16 sps:$4 sm:$0xff]  }
 0x1c9   : > { %6834 = vmatpush1.bf16.msra.mxu0 %v10020_v35  ;;  %7522 = vmatpush1.bf16.msra.mxu1 %v10023_v36  ;;  %v10113_v35 = vld [vmem:[%s14264_s1 + $0xfe8] ss:$16 sps:$4 sm:$0xff]   ;;  %v10118_v36 = vld [vmem:[%s14264_s1 + $0x1004] ss:$16 sps:$4 sm:$0xff]  }
 0x1ca   : > { %6835 = vmatprep.subr.bf16.mxu0 %v10028_v37  ;;  %7523 = vmatprep.subr.bf16.mxu1 %v10031_v22  ;;  %v10121_v37 = vld [vmem:[%s14264_s1 + $0x100c] ss:$16 sps:$4 sm:$0xff]   ;;  %v12561_v22 = vld [vmem:[%s11078_s8 + $0x40] sm:$0xff] }
 0x1cb   : > { %6865 = vmatprep.mubr.bf16.mxu0 %v8176_v15  ;;  %7553 = vmatprep.mubr.bf16.mxu1 %v8176_v15  ;;  %v12564_v15 = vld [vmem:[%s11078_s8 + $0xc0] sm:$0x11] }
 0x1cd   : > { %6836 = vmatpush1.bf16.msra.mxu0 %v10026_v38  ;;  %7524 = vmatpush1.bf16.msra.mxu1 %v10029_v39  ;;  %v8175_v38 = vcombine.low %v12359_v19, %v12362_v20  ;;  %v10116_v39 = vld [vmem:[%s14264_s1 + $0x1000] ss:$16 sps:$4 sm:$0xff]   ;;  %v10127_v19 = vld [vmem:[%s14264_s1 + $0x102c] ss:$16 sps:$4 sm:$0xff]   ;;  %v8178_v20 = vcombine.high %v12561_v22, %v12564_v15 }
 0x1ce   : > { %6837 = vmatprep.subr.bf16.mxu0 %v10034_v40  ;;  %7525 = vmatprep.subr.bf16.mxu1 %v10037_v41  ;;  %v10119_v40 = vld [vmem:[%s14264_s1 + $0x1008] ss:$16 sps:$4 sm:$0xff]   ;;  %v10124_v41 = vld [vmem:[%s14264_s1 + $0x1024] ss:$16 sps:$4 sm:$0xff]  }
 0x1d1   : > { %6838 = vmatpush1.bf16.msra.mxu0 %v10032_v42  ;;  %7526 = vmatpush1.bf16.msra.mxu1 %v10035_v43  ;;  %v10122_v42 = vld [vmem:[%s14264_s1 + $0x1020] ss:$16 sps:$4 sm:$0xff]   ;;  %v10125_v43 = vld [vmem:[%s14264_s1 + $0x1028] ss:$16 sps:$4 sm:$0xff]  }
 0x1d2   : > { %6839 = vmatprep.subr.bf16.mxu0 %v10040_v44  ;;  %7527 = vmatprep.subr.bf16.mxu1 %v10043_v45  ;;  %v10130_v44 = vld [vmem:[%s14264_s1 + $0x1044] ss:$16 sps:$4 sm:$0xff]   ;;  %v10133_v45 = vld [vmem:[%s14264_s1 + $0x104c] ss:$16 sps:$4 sm:$0xff]  }
 0x1d5   : > { %6840 = vmatpush1.bf16.msra.mxu0 %v10038_v46  ;;  %7528 = vmatpush1.bf16.msra.mxu1 %v10041_v47  ;;  %v10128_v46 = vld [vmem:[%s14264_s1 + $0x1040] ss:$16 sps:$4 sm:$0xff]   ;;  %v10131_v47 = vld [vmem:[%s14264_s1 + $0x1048] ss:$16 sps:$4 sm:$0xff]  }
 0x1d6   : > { %6841 = vmatprep.subr.bf16.mxu0 %v10046_v48  ;;  %7529 = vmatprep.subr.bf16.mxu1 %v10049_v49  ;;  %v10136_v48 = vld [vmem:[%s14264_s1 + $0x1064] ss:$16 sps:$4 sm:$0xff]   ;;  %v10139_v49 = vld [vmem:[%s14264_s1 + $0x106c] ss:$16 sps:$4 sm:$0xff]  }
 0x1d9   : > { %6842 = vmatpush1.bf16.msra.mxu0 %v10044_v50  ;;  %7530 = vmatpush1.bf16.msra.mxu1 %v10047_v51  ;;  %v10134_v50 = vld [vmem:[%s14264_s1 + $0x1060] ss:$16 sps:$4 sm:$0xff]   ;;  %v10137_v51 = vld [vmem:[%s14264_s1 + $0x1068] ss:$16 sps:$4 sm:$0xff]  }
 0x1da   : > { %6843 = vmatprep.subr.bf16.mxu0 %v10052_v52  ;;  %7531 = vmatprep.subr.bf16.mxu1 %v10055_v53  ;;  %v10142_v52 = vld [vmem:[%s14264_s1 + $0x1084] ss:$16 sps:$4 sm:$0xff]   ;;  %v10145_v53 = vld [vmem:[%s14264_s1 + $0x108c] ss:$16 sps:$4 sm:$0xff]  }
 0x1dd   : > { %6844 = vmatpush1.bf16.msra.mxu0 %v10050_v54  ;;  %7532 = vmatpush1.bf16.msra.mxu1 %v10053_v55  ;;  %v10140_v54 = vld [vmem:[%s14264_s1 + $0x1080] ss:$16 sps:$4 sm:$0xff]   ;;  %v10143_v55 = vld [vmem:[%s14264_s1 + $0x1088] ss:$16 sps:$4 sm:$0xff]  }
 0x1de   : > { %6845 = vmatprep.subr.bf16.mxu0 %v10058_v56  ;;  %7533 = vmatprep.subr.bf16.mxu1 %v10061_v57  ;;  %v10148_v56 = vld [vmem:[%s14264_s1 + $0x10a4] ss:$16 sps:$4 sm:$0xff]   ;;  %v10151_v57 = vld [vmem:[%s14264_s1 + $0x10ac] ss:$16 sps:$4 sm:$0xff]  }
 0x1e1   : > { %6846 = vmatpush1.bf16.msra.mxu0 %v10056_v58  ;;  %7534 = vmatpush1.bf16.msra.mxu1 %v10059_v59  ;;  %v10146_v58 = vld [vmem:[%s14264_s1 + $0x10a0] ss:$16 sps:$4 sm:$0xff]   ;;  %v10149_v59 = vld [vmem:[%s14264_s1 + $0x10a8] ss:$16 sps:$4 sm:$0xff]  }
 0x1e2   : > { %6847 = vmatprep.subr.bf16.mxu0 %v10064_v60  ;;  %7535 = vmatprep.subr.bf16.mxu1 %v10067_v61  ;;  %v10154_v60 = vld [vmem:[%s14264_s1 + $0x10c4] ss:$16 sps:$4 sm:$0xff]   ;;  %v10157_v61 = vld [vmem:[%s14264_s1 + $0x10cc] ss:$16 sps:$4 sm:$0xff]  }
 0x1e5   : > { %6848 = vmatpush1.bf16.msra.mxu0 %v10062_v62  ;;  %7536 = vmatpush1.bf16.msra.mxu1 %v10065_v63  ;;  %v10152_v62 = vld [vmem:[%s14264_s1 + $0x10c0] ss:$16 sps:$4 sm:$0xff]   ;;  %v10155_v63 = vld [vmem:[%s14264_s1 + $0x10c8] ss:$16 sps:$4 sm:$0xff]  }
 0x1e6   : > { %6849 = vmatprep.subr.bf16.mxu0 %v10070_v0  ;;  %7537 = vmatprep.subr.bf16.mxu1 %v10073_v1  ;;  %v10160_v0 = vld [vmem:[%s14264_s1 + $0x10e4] ss:$16 sps:$4 sm:$0xff]   ;;  %v10163_v1 = vld [vmem:[%s14264_s1 + $0x10ec] ss:$16 sps:$4 sm:$0xff]  }
 0x1e9   : > { %6850 = vmatpush1.bf16.msra.mxu0 %v10068_v2  ;;  %7538 = vmatpush1.bf16.msra.mxu1 %v10071_v3  ;;  %v10158_v2 = vld [vmem:[%s14264_s1 + $0x10e0] ss:$16 sps:$4 sm:$0xff]   ;;  %v10161_v3 = vld [vmem:[%s14264_s1 + $0x10e8] ss:$16 sps:$4 sm:$0xff]  }
 0x1ea   : > { %6851 = vmatprep.subr.bf16.mxu0 %v10076_v4  ;;  %7539 = vmatprep.subr.bf16.mxu1 %v10079_v5  ;;  %v10166_v4 = vld [vmem:[%s14264_s1 + $0x1104] ss:$16 sps:$4 sm:$0xff]   ;;  %v10169_v5 = vld [vmem:[%s14264_s1 + $0x110c] ss:$16 sps:$4 sm:$0xff]  }
 0x1ed   : > { %6852 = vmatpush1.bf16.msra.mxu0 %v10074_v6  ;;  %7540 = vmatpush1.bf16.msra.mxu1 %v10077_v7  ;;  %v10164_v6 = vld [vmem:[%s14264_s1 + $0x1100] ss:$16 sps:$4 sm:$0xff]   ;;  %v10167_v7 = vld [vmem:[%s14264_s1 + $0x1108] ss:$16 sps:$4 sm:$0xff]  }
 0x1ee   : > { %6853 = vmatprep.subr.bf16.mxu0 %v10082_v8  ;;  %7541 = vmatprep.subr.bf16.mxu1 %v10085_v9  ;;  %v10172_v8 = vld [vmem:[%s14264_s1 + $0x1124] ss:$16 sps:$4 sm:$0xff]   ;;  %v10175_v9 = vld [vmem:[%s14264_s1 + $0x112c] ss:$16 sps:$4 sm:$0xff]  }
 0x1f1   : > { %6854 = vmatpush1.bf16.msra.mxu0 %v10080_v10  ;;  %7542 = vmatpush1.bf16.msra.mxu1 %v10083_v11  ;;  %v10170_v10 = vld [vmem:[%s14264_s1 + $0x1120] ss:$16 sps:$4 sm:$0xff]   ;;  %v10173_v11 = vld [vmem:[%s14264_s1 + $0x1128] ss:$16 sps:$4 sm:$0xff]  }
 0x1f2   : > { %6855 = vmatprep.subr.bf16.mxu0 %v10088_v12  ;;  %7543 = vmatprep.subr.bf16.mxu1 %v10091_v13  ;;  %v10178_v12 = vld [vmem:[%s14264_s1 + $0x1144] ss:$16 sps:$4 sm:$0xff]   ;;  %v10181_v13 = vld [vmem:[%s14264_s1 + $0x114c] ss:$16 sps:$4 sm:$0xff]  }
 0x1f5   : > { %6856 = vmatpush1.bf16.msra.mxu0 %v10086_v14  ;;  %7544 = vmatpush1.bf16.msra.mxu1 %v10089_v17  ;;  %v10176_v14 = vld [vmem:[%s14264_s1 + $0x1140] ss:$16 sps:$4 sm:$0xff]   ;;  %v10179_v17 = vld [vmem:[%s14264_s1 + $0x1148] ss:$16 sps:$4 sm:$0xff]  }
 0x1f6   : > { %6857 = vmatprep.subr.bf16.mxu0 %v10094_v18  ;;  %7545 = vmatprep.subr.bf16.mxu1 %v10097_v21  ;;  %v10184_v18 = vld [vmem:[%s14264_s1 + $0x1164] ss:$16 sps:$4 sm:$0xff]   ;;  %v10187_v21 = vld [vmem:[%s14264_s1 + $0x116c] ss:$16 sps:$4 sm:$0xff]  }
 0x1f9   : > { %6858 = vmatpush1.bf16.msra.mxu0 %v10092_v23  ;;  %7546 = vmatpush1.bf16.msra.mxu1 %v10095_v16  ;;  %v10182_v23 = vld [vmem:[%s14264_s1 + $0x1160] ss:$16 sps:$4 sm:$0xff]   ;;  %v10185_v16 = vld [vmem:[%s14264_s1 + $0x1168] ss:$16 sps:$4 sm:$0xff]  }
 0x1fa   : > { %6859 = vmatprep.subr.bf16.mxu0 %v10100_v24  ;;  %7547 = vmatprep.subr.bf16.mxu1 %v10103_v25  ;;  %v10190_v24 = vld [vmem:[%s14264_s1 + $0x1184] ss:$16 sps:$4 sm:$0xff]   ;;  %v10193_v25 = vld [vmem:[%s14264_s1 + $0x118c] ss:$16 sps:$4 sm:$0xff]  }
 0x1fd   : > { %6860 = vmatpush1.bf16.msra.mxu0 %v10098_v26  ;;  %7548 = vmatpush1.bf16.msra.mxu1 %v10101_v27  ;;  %v10188_v26 = vld [vmem:[%s14264_s1 + $0x1180] ss:$16 sps:$4 sm:$0xff]   ;;  %v10191_v27 = vld [vmem:[%s14264_s1 + $0x1188] ss:$16 sps:$4 sm:$0xff]  }
 0x1fe   : > { %6861 = vmatprep.subr.bf16.mxu0 %v10106_v28  ;;  %7549 = vmatprep.subr.bf16.mxu1 %v10109_v29  ;;  %v10196_v28 = vld [vmem:[%s14264_s1 + $0x11a4] ss:$16 sps:$4 sm:$0xff]   ;;  %v10199_v29 = vld [vmem:[%s14264_s1 + $0x11ac] ss:$16 sps:$4 sm:$0xff]  }
 0x201   : > { %6862 = vmatpush1.bf16.msra.mxu0 %v10104_v30  ;;  %7550 = vmatpush1.bf16.msra.mxu1 %v10107_v31  ;;  %v10194_v30 = vld [vmem:[%s14264_s1 + $0x11a0] ss:$16 sps:$4 sm:$0xff]   ;;  %v10197_v31 = vld [vmem:[%s14264_s1 + $0x11a8] ss:$16 sps:$4 sm:$0xff]  }
 0x202   : > { %6863 = vmatprep.subr.bf16.mxu0 %v10112_v32  ;;  %7551 = vmatprep.subr.bf16.mxu1 %v10115_v33  ;;  %v10202_v32 = vld [vmem:[%s14264_s1 + $0x11c4] ss:$16 sps:$4 sm:$0xff]   ;;  %v10205_v33 = vld [vmem:[%s14264_s1 + $0x11cc] ss:$16 sps:$4 sm:$0xff]  }
 0x205   : > { %6864 = vmatpush1.bf16.msra.mxu0 %v10110_v34  ;;  %7552 = vmatpush1.bf16.msra.mxu1 %v10113_v35  ;;  %v10200_v34 = vld [vmem:[%s14264_s1 + $0x11c0] ss:$16 sps:$4 sm:$0xff]   ;;  %v10203_v35 = vld [vmem:[%s14264_s1 + $0x11c8] ss:$16 sps:$4 sm:$0xff]  }
 0x206   : > { %6876 = vmatprep.subr.bf16.mxu0 %v10118_v36  ;;  %7564 = vmatprep.subr.bf16.mxu1 %v10121_v37  ;;  %v10208_v36 = vld [vmem:[%s14264_s1 + $0x11e4] ss:$16 sps:$4 sm:$0xff]   ;;  %v10211_v37 = vld [vmem:[%s14264_s1 + $0x11ec] ss:$16 sps:$4 sm:$0xff]  }
 0x208   : > { %6866 = vmatmul.mubr.bf16.vlgmr.msra.gmra.mrb[0].mxu0 %v8175_v38  ;;  %7554 = vmatmul.mubr.bf16.vlgmr.msra.gmra.mrb[0].mxu1 %v8175_v38  ;;  %v10206_v38 = vld [vmem:[%s14264_s1 + $0x11e0] ss:$16 sps:$4 sm:$0xff]  }
 0x209   : > { %6877 = vmatpush1.bf16.msra.mxu0 %v10116_v39  ;;  %7565 = vmatpush1.bf16.msra.mxu1 %v10119_v40  ;;  %v10209_v39 = vld [vmem:[%s14264_s1 + $0x11e8] ss:$16 sps:$4 sm:$0xff]   ;;  %v10214_v40 = vld [vmem:[%s14264_s1 + $0x1204] ss:$16 sps:$4 sm:$0xff]  }
 0x20a   : > { %6878 = vmatprep.subr.bf16.mxu0 %v10124_v41  ;;  %7566 = vmatprep.subr.bf16.mxu1 %v10127_v19  ;;  %v10217_v41 = vld [vmem:[%s14264_s1 + $0x120c] ss:$16 sps:$4 sm:$0xff]  }
 0x20b   : > { %6908 = vmatprep.mubr.bf16.mxu0 %v8178_v20  ;;  %7596 = vmatprep.mubr.bf16.mxu1 %v8178_v20  ;;  %v12763_v19 = vld [vmem:[%s11078_s8 + $0x48] sm:$0xff] }
 0x20c   : > { %v12766_v20 = vld [vmem:[%s11078_s8 + $0xc8] sm:$0x11] }
 0x20d   : > { %6879 = vmatpush1.bf16.msra.mxu0 %v10122_v42  ;;  %7567 = vmatpush1.bf16.msra.mxu1 %v10125_v43  ;;  %v8177_v42 = vcombine.low %v12561_v22, %v12564_v15  ;;  %v10212_v43 = vld [vmem:[%s14264_s1 + $0x1200] ss:$16 sps:$4 sm:$0xff]   ;;  %v10223_v22 = vld [vmem:[%s14264_s1 + $0x122c] ss:$16 sps:$4 sm:$0xff]   ;;  %v8180_v15 = vcombine.high %v12763_v19, %v12766_v20 }
 0x20e   : > { %6880 = vmatprep.subr.bf16.mxu0 %v10130_v44  ;;  %7568 = vmatprep.subr.bf16.mxu1 %v10133_v45  ;;  %v10215_v44 = vld [vmem:[%s14264_s1 + $0x1208] ss:$16 sps:$4 sm:$0xff]   ;;  %v10220_v45 = vld [vmem:[%s14264_s1 + $0x1224] ss:$16 sps:$4 sm:$0xff]  }
 0x211   : > { %6881 = vmatpush1.bf16.msra.mxu0 %v10128_v46  ;;  %7569 = vmatpush1.bf16.msra.mxu1 %v10131_v47  ;;  %v10218_v46 = vld [vmem:[%s14264_s1 + $0x1220] ss:$16 sps:$4 sm:$0xff]   ;;  %v10221_v47 = vld [vmem:[%s14264_s1 + $0x1228] ss:$16 sps:$4 sm:$0xff]  }
 0x212   : > { %6882 = vmatprep.subr.bf16.mxu0 %v10136_v48  ;;  %7570 = vmatprep.subr.bf16.mxu1 %v10139_v49  ;;  %v10226_v48 = vld [vmem:[%s14264_s1 + $0x1244] ss:$16 sps:$4 sm:$0xff]   ;;  %v10229_v49 = vld [vmem:[%s14264_s1 + $0x124c] ss:$16 sps:$4 sm:$0xff]  }
 0x215   : > { %6883 = vmatpush1.bf16.msra.mxu0 %v10134_v50  ;;  %7571 = vmatpush1.bf16.msra.mxu1 %v10137_v51  ;;  %v10224_v50 = vld [vmem:[%s14264_s1 + $0x1240] ss:$16 sps:$4 sm:$0xff]   ;;  %v10227_v51 = vld [vmem:[%s14264_s1 + $0x1248] ss:$16 sps:$4 sm:$0xff]  }
 0x216   : > { %6884 = vmatprep.subr.bf16.mxu0 %v10142_v52  ;;  %7572 = vmatprep.subr.bf16.mxu1 %v10145_v53  ;;  %v10232_v52 = vld [vmem:[%s14264_s1 + $0x1264] ss:$16 sps:$4 sm:$0xff]   ;;  %v10235_v53 = vld [vmem:[%s14264_s1 + $0x126c] ss:$16 sps:$4 sm:$0xff]  }
 0x219   : > { %6885 = vmatpush1.bf16.msra.mxu0 %v10140_v54  ;;  %7573 = vmatpush1.bf16.msra.mxu1 %v10143_v55  ;;  %v10230_v54 = vld [vmem:[%s14264_s1 + $0x1260] ss:$16 sps:$4 sm:$0xff]   ;;  %v10233_v55 = vld [vmem:[%s14264_s1 + $0x1268] ss:$16 sps:$4 sm:$0xff]  }
 0x21a   : > { %6886 = vmatprep.subr.bf16.mxu0 %v10148_v56  ;;  %7574 = vmatprep.subr.bf16.mxu1 %v10151_v57  ;;  %v10238_v56 = vld [vmem:[%s14264_s1 + $0x1284] ss:$16 sps:$4 sm:$0xff]   ;;  %v10241_v57 = vld [vmem:[%s14264_s1 + $0x128c] ss:$16 sps:$4 sm:$0xff]  }
 0x21d   : > { %6887 = vmatpush1.bf16.msra.mxu0 %v10146_v58  ;;  %7575 = vmatpush1.bf16.msra.mxu1 %v10149_v59  ;;  %v10236_v58 = vld [vmem:[%s14264_s1 + $0x1280] ss:$16 sps:$4 sm:$0xff]   ;;  %v10239_v59 = vld [vmem:[%s14264_s1 + $0x1288] ss:$16 sps:$4 sm:$0xff]  }
 0x21e   : > { %6888 = vmatprep.subr.bf16.mxu0 %v10154_v60  ;;  %7576 = vmatprep.subr.bf16.mxu1 %v10157_v61  ;;  %v10244_v60 = vld [vmem:[%s14264_s1 + $0x12a4] ss:$16 sps:$4 sm:$0xff]   ;;  %v10247_v61 = vld [vmem:[%s14264_s1 + $0x12ac] ss:$16 sps:$4 sm:$0xff]  }
 0x221   : > { %6889 = vmatpush1.bf16.msra.mxu0 %v10152_v62  ;;  %7577 = vmatpush1.bf16.msra.mxu1 %v10155_v63  ;;  %v10242_v62 = vld [vmem:[%s14264_s1 + $0x12a0] ss:$16 sps:$4 sm:$0xff]   ;;  %v10245_v63 = vld [vmem:[%s14264_s1 + $0x12a8] ss:$16 sps:$4 sm:$0xff]  }
 0x222   : > { %6890 = vmatprep.subr.bf16.mxu0 %v10160_v0  ;;  %7578 = vmatprep.subr.bf16.mxu1 %v10163_v1  ;;  %v10250_v0 = vld [vmem:[%s14264_s1 + $0x12c4] ss:$16 sps:$4 sm:$0xff]   ;;  %v10253_v1 = vld [vmem:[%s14264_s1 + $0x12cc] ss:$16 sps:$4 sm:$0xff]  }
 0x225   : > { %6891 = vmatpush1.bf16.msra.mxu0 %v10158_v2  ;;  %7579 = vmatpush1.bf16.msra.mxu1 %v10161_v3  ;;  %v10248_v2 = vld [vmem:[%s14264_s1 + $0x12c0] ss:$16 sps:$4 sm:$0xff]   ;;  %v10251_v3 = vld [vmem:[%s14264_s1 + $0x12c8] ss:$16 sps:$4 sm:$0xff]  }
 0x226   : > { %6892 = vmatprep.subr.bf16.mxu0 %v10166_v4  ;;  %7580 = vmatprep.subr.bf16.mxu1 %v10169_v5  ;;  %v10256_v4 = vld [vmem:[%s14264_s1 + $0x12e4] ss:$16 sps:$4 sm:$0xff]   ;;  %v10259_v5 = vld [vmem:[%s14264_s1 + $0x12ec] ss:$16 sps:$4 sm:$0xff]  }
 0x229   : > { %6893 = vmatpush1.bf16.msra.mxu0 %v10164_v6  ;;  %7581 = vmatpush1.bf16.msra.mxu1 %v10167_v7  ;;  %v10254_v6 = vld [vmem:[%s14264_s1 + $0x12e0] ss:$16 sps:$4 sm:$0xff]   ;;  %v10257_v7 = vld [vmem:[%s14264_s1 + $0x12e8] ss:$16 sps:$4 sm:$0xff]  }
 0x22a   : > { %6894 = vmatprep.subr.bf16.mxu0 %v10172_v8  ;;  %7582 = vmatprep.subr.bf16.mxu1 %v10175_v9  ;;  %v10262_v8 = vld [vmem:[%s14264_s1 + $0x1304] ss:$16 sps:$4 sm:$0xff]   ;;  %v10265_v9 = vld [vmem:[%s14264_s1 + $0x130c] ss:$16 sps:$4 sm:$0xff]  }
 0x22d   : > { %6895 = vmatpush1.bf16.msra.mxu0 %v10170_v10  ;;  %7583 = vmatpush1.bf16.msra.mxu1 %v10173_v11  ;;  %v10260_v10 = vld [vmem:[%s14264_s1 + $0x1300] ss:$16 sps:$4 sm:$0xff]   ;;  %v10263_v11 = vld [vmem:[%s14264_s1 + $0x1308] ss:$16 sps:$4 sm:$0xff]  }
 0x22e   : > { %6896 = vmatprep.subr.bf16.mxu0 %v10178_v12  ;;  %7584 = vmatprep.subr.bf16.mxu1 %v10181_v13  ;;  %v10268_v12 = vld [vmem:[%s14264_s1 + $0x1324] ss:$16 sps:$4 sm:$0xff]   ;;  %v10271_v13 = vld [vmem:[%s14264_s1 + $0x132c] ss:$16 sps:$4 sm:$0xff]  }
 0x231   : > { %6897 = vmatpush1.bf16.msra.mxu0 %v10176_v14  ;;  %7585 = vmatpush1.bf16.msra.mxu1 %v10179_v17  ;;  %v10266_v14 = vld [vmem:[%s14264_s1 + $0x1320] ss:$16 sps:$4 sm:$0xff]   ;;  %v10269_v17 = vld [vmem:[%s14264_s1 + $0x1328] ss:$16 sps:$4 sm:$0xff]  }
 0x232   : > { %6898 = vmatprep.subr.bf16.mxu0 %v10184_v18  ;;  %7586 = vmatprep.subr.bf16.mxu1 %v10187_v21  ;;  %v10274_v18 = vld [vmem:[%s14264_s1 + $0x1344] ss:$16 sps:$4 sm:$0xff]   ;;  %v10277_v21 = vld [vmem:[%s14264_s1 + $0x134c] ss:$16 sps:$4 sm:$0xff]  }
 0x235   : > { %6899 = vmatpush1.bf16.msra.mxu0 %v10182_v23  ;;  %7587 = vmatpush1.bf16.msra.mxu1 %v10185_v16  ;;  %v10272_v23 = vld [vmem:[%s14264_s1 + $0x1340] ss:$16 sps:$4 sm:$0xff]   ;;  %v10275_v16 = vld [vmem:[%s14264_s1 + $0x1348] ss:$16 sps:$4 sm:$0xff]  }
 0x236   : > { %6900 = vmatprep.subr.bf16.mxu0 %v10190_v24  ;;  %7588 = vmatprep.subr.bf16.mxu1 %v10193_v25  ;;  %v10280_v24 = vld [vmem:[%s14264_s1 + $0x1364] ss:$16 sps:$4 sm:$0xff]   ;;  %v10283_v25 = vld [vmem:[%s14264_s1 + $0x136c] ss:$16 sps:$4 sm:$0xff]  }
 0x239   : > { %6901 = vmatpush1.bf16.msra.mxu0 %v10188_v26  ;;  %7589 = vmatpush1.bf16.msra.mxu1 %v10191_v27  ;;  %v10278_v26 = vld [vmem:[%s14264_s1 + $0x1360] ss:$16 sps:$4 sm:$0xff]   ;;  %v10281_v27 = vld [vmem:[%s14264_s1 + $0x1368] ss:$16 sps:$4 sm:$0xff]  }
 0x23a   : > { %6902 = vmatprep.subr.bf16.mxu0 %v10196_v28  ;;  %7590 = vmatprep.subr.bf16.mxu1 %v10199_v29  ;;  %v10286_v28 = vld [vmem:[%s14264_s1 + $0x1384] ss:$16 sps:$4 sm:$0xff]   ;;  %v10289_v29 = vld [vmem:[%s14264_s1 + $0x138c] ss:$16 sps:$4 sm:$0xff]  }
 0x23d   : > { %6903 = vmatpush1.bf16.msra.mxu0 %v10194_v30  ;;  %7591 = vmatpush1.bf16.msra.mxu1 %v10197_v31  ;;  %v10284_v30 = vld [vmem:[%s14264_s1 + $0x1380] ss:$16 sps:$4 sm:$0xff]   ;;  %v10287_v31 = vld [vmem:[%s14264_s1 + $0x1388] ss:$16 sps:$4 sm:$0xff]  }
 0x23e   : > { %6904 = vmatprep.subr.bf16.mxu0 %v10202_v32  ;;  %7592 = vmatprep.subr.bf16.mxu1 %v10205_v33  ;;  %v10292_v32 = vld [vmem:[%s14264_s1 + $0x13a4] ss:$16 sps:$4 sm:$0xff]   ;;  %v10295_v33 = vld [vmem:[%s14264_s1 + $0x13ac] ss:$16 sps:$4 sm:$0xff]  }
 0x241   : > { %6905 = vmatpush1.bf16.msra.mxu0 %v10200_v34  ;;  %7593 = vmatpush1.bf16.msra.mxu1 %v10203_v35  ;;  %v10290_v34 = vld [vmem:[%s14264_s1 + $0x13a0] ss:$16 sps:$4 sm:$0xff]   ;;  %v10293_v35 = vld [vmem:[%s14264_s1 + $0x13a8] ss:$16 sps:$4 sm:$0xff]  }
 0x242   : > { %6906 = vmatprep.subr.bf16.mxu0 %v10208_v36  ;;  %7594 = vmatprep.subr.bf16.mxu1 %v10211_v37  ;;  %v10298_v36 = vld [vmem:[%s14264_s1 + $0x13c4] ss:$16 sps:$4 sm:$0xff]   ;;  %v10301_v37 = vld [vmem:[%s14264_s1 + $0x13cc] ss:$16 sps:$4 sm:$0xff]  }
 0x245   : > { %6907 = vmatpush1.bf16.msra.mxu0 %v10206_v38  ;;  %7595 = vmatpush1.bf16.msra.mxu1 %v10209_v39  ;;  %v10296_v38 = vld [vmem:[%s14264_s1 + $0x13c0] ss:$16 sps:$4 sm:$0xff]   ;;  %v10299_v39 = vld [vmem:[%s14264_s1 + $0x13c8] ss:$16 sps:$4 sm:$0xff]  }
 0x246   : > { %6919 = vmatprep.subr.bf16.mxu0 %v10214_v40  ;;  %7607 = vmatprep.subr.bf16.mxu1 %v10217_v41  ;;  %v10304_v40 = vld [vmem:[%s14264_s1 + $0x13e4] ss:$16 sps:$4 sm:$0xff]   ;;  %v10307_v41 = vld [vmem:[%s14264_s1 + $0x13ec] ss:$16 sps:$4 sm:$0xff]  }
 0x248   : > { %6909 = vmatmul.mubr.bf16.vlgmr.msra.gmra.mrb[0].mxu0 %v8177_v42  ;;  %7597 = vmatmul.mubr.bf16.vlgmr.msra.gmra.mrb[0].mxu1 %v8177_v42  ;;  %v10302_v42 = vld [vmem:[%s14264_s1 + $0x13e0] ss:$16 sps:$4 sm:$0xff]  }
 0x249   : > { %6920 = vmatpush1.bf16.msra.mxu0 %v10212_v43  ;;  %7608 = vmatpush1.bf16.msra.mxu1 %v10215_v44  ;;  %v10305_v43 = vld [vmem:[%s14264_s1 + $0x13e8] ss:$16 sps:$4 sm:$0xff]   ;;  %v10310_v44 = vld [vmem:[%s14264_s1 + $0x1404] ss:$16 sps:$4 sm:$0xff]  }
 0x24a   : > { %6921 = vmatprep.subr.bf16.mxu0 %v10220_v45  ;;  %7609 = vmatprep.subr.bf16.mxu1 %v10223_v22  ;;  %v10313_v45 = vld [vmem:[%s14264_s1 + $0x140c] ss:$16 sps:$4 sm:$0xff]   ;;  %v8179_v22 = vcombine.low %v12763_v19, %v12766_v20  ;;  %v10316_v19 = vld [vmem:[%s14264_s1 + $0x1424] ss:$16 sps:$4 sm:$0xff]  }
 0x24b   : > { %6951 = vmatprep.mubr.bf16.mxu0 %v8180_v15  ;;  %7639 = vmatprep.mubr.bf16.mxu1 %v8180_v15  ;;  %v12967_v15 = vld [vmem:[%s11078_s8 + $0x50] sm:$0xff]  ;;  %v10319_v20 = vld [vmem:[%s14264_s1 + $0x142c] ss:$16 sps:$4 sm:$0xff]  }
 0x24d   : > { %6922 = vmatpush1.bf16.msra.mxu0 %v10218_v46  ;;  %7610 = vmatpush1.bf16.msra.mxu1 %v10221_v47  ;;  %v12970_v46 = vld [vmem:[%s11078_s8 + $0xd0] sm:$0x11] }
 0x24e   : > { %6923 = vmatprep.subr.bf16.mxu0 %v10226_v48  ;;  %7611 = vmatprep.subr.bf16.mxu1 %v10229_v49  ;;  %v10308_v47 = vld [vmem:[%s14264_s1 + $0x1400] ss:$16 sps:$4 sm:$0xff]   ;;  %v10311_v48 = vld [vmem:[%s14264_s1 + $0x1408] ss:$16 sps:$4 sm:$0xff]   ;;  %v8182_v49 = vcombine.high %v12967_v15, %v12970_v46 }
 0x251   : > { %6924 = vmatpush1.bf16.msra.mxu0 %v10224_v50  ;;  %7612 = vmatpush1.bf16.msra.mxu1 %v10227_v51  ;;  %v10314_v50 = vld [vmem:[%s14264_s1 + $0x1420] ss:$16 sps:$4 sm:$0xff]   ;;  %v10317_v51 = vld [vmem:[%s14264_s1 + $0x1428] ss:$16 sps:$4 sm:$0xff]  }
 0x252   : > { %6925 = vmatprep.subr.bf16.mxu0 %v10232_v52  ;;  %7613 = vmatprep.subr.bf16.mxu1 %v10235_v53  ;;  %v10322_v52 = vld [vmem:[%s14264_s1 + $0x1444] ss:$16 sps:$4 sm:$0xff]   ;;  %v10325_v53 = vld [vmem:[%s14264_s1 + $0x144c] ss:$16 sps:$4 sm:$0xff]  }
 0x255   : > { %6926 = vmatpush1.bf16.msra.mxu0 %v10230_v54  ;;  %7614 = vmatpush1.bf16.msra.mxu1 %v10233_v55  ;;  %v10320_v54 = vld [vmem:[%s14264_s1 + $0x1440] ss:$16 sps:$4 sm:$0xff]   ;;  %v10323_v55 = vld [vmem:[%s14264_s1 + $0x1448] ss:$16 sps:$4 sm:$0xff]  }
 0x256   : > { %6927 = vmatprep.subr.bf16.mxu0 %v10238_v56  ;;  %7615 = vmatprep.subr.bf16.mxu1 %v10241_v57  ;;  %v10328_v56 = vld [vmem:[%s14264_s1 + $0x1464] ss:$16 sps:$4 sm:$0xff]   ;;  %v10331_v57 = vld [vmem:[%s14264_s1 + $0x146c] ss:$16 sps:$4 sm:$0xff]  }
 0x259   : > { %6928 = vmatpush1.bf16.msra.mxu0 %v10236_v58  ;;  %7616 = vmatpush1.bf16.msra.mxu1 %v10239_v59  ;;  %v10326_v58 = vld [vmem:[%s14264_s1 + $0x1460] ss:$16 sps:$4 sm:$0xff]   ;;  %v10329_v59 = vld [vmem:[%s14264_s1 + $0x1468] ss:$16 sps:$4 sm:$0xff]  }
 0x25a   : > { %6929 = vmatprep.subr.bf16.mxu0 %v10244_v60  ;;  %7617 = vmatprep.subr.bf16.mxu1 %v10247_v61  ;;  %v10334_v60 = vld [vmem:[%s14264_s1 + $0x1484] ss:$16 sps:$4 sm:$0xff]   ;;  %v10337_v61 = vld [vmem:[%s14264_s1 + $0x148c] ss:$16 sps:$4 sm:$0xff]  }
 0x25d   : > { %6930 = vmatpush1.bf16.msra.mxu0 %v10242_v62  ;;  %7618 = vmatpush1.bf16.msra.mxu1 %v10245_v63  ;;  %v10332_v62 = vld [vmem:[%s14264_s1 + $0x1480] ss:$16 sps:$4 sm:$0xff]   ;;  %v10335_v63 = vld [vmem:[%s14264_s1 + $0x1488] ss:$16 sps:$4 sm:$0xff]  }
 0x25e   : > { %6931 = vmatprep.subr.bf16.mxu0 %v10250_v0  ;;  %7619 = vmatprep.subr.bf16.mxu1 %v10253_v1  ;;  %v10340_v0 = vld [vmem:[%s14264_s1 + $0x14a4] ss:$16 sps:$4 sm:$0xff]   ;;  %v10343_v1 = vld [vmem:[%s14264_s1 + $0x14ac] ss:$16 sps:$4 sm:$0xff]  }
 0x261   : > { %6932 = vmatpush1.bf16.msra.mxu0 %v10248_v2  ;;  %7620 = vmatpush1.bf16.msra.mxu1 %v10251_v3  ;;  %v10338_v2 = vld [vmem:[%s14264_s1 + $0x14a0] ss:$16 sps:$4 sm:$0xff]   ;;  %v10341_v3 = vld [vmem:[%s14264_s1 + $0x14a8] ss:$16 sps:$4 sm:$0xff]  }
 0x262   : > { %6933 = vmatprep.subr.bf16.mxu0 %v10256_v4  ;;  %7621 = vmatprep.subr.bf16.mxu1 %v10259_v5  ;;  %v10346_v4 = vld [vmem:[%s14264_s1 + $0x14c4] ss:$16 sps:$4 sm:$0xff]   ;;  %v10349_v5 = vld [vmem:[%s14264_s1 + $0x14cc] ss:$16 sps:$4 sm:$0xff]  }
 0x265   : > { %6934 = vmatpush1.bf16.msra.mxu0 %v10254_v6  ;;  %7622 = vmatpush1.bf16.msra.mxu1 %v10257_v7  ;;  %v10344_v6 = vld [vmem:[%s14264_s1 + $0x14c0] ss:$16 sps:$4 sm:$0xff]   ;;  %v10347_v7 = vld [vmem:[%s14264_s1 + $0x14c8] ss:$16 sps:$4 sm:$0xff]  }
 0x266   : > { %6935 = vmatprep.subr.bf16.mxu0 %v10262_v8  ;;  %7623 = vmatprep.subr.bf16.mxu1 %v10265_v9  ;;  %v10352_v8 = vld [vmem:[%s14264_s1 + $0x14e4] ss:$16 sps:$4 sm:$0xff]   ;;  %v10355_v9 = vld [vmem:[%s14264_s1 + $0x14ec] ss:$16 sps:$4 sm:$0xff]  }
 0x269   : > { %6936 = vmatpush1.bf16.msra.mxu0 %v10260_v10  ;;  %7624 = vmatpush1.bf16.msra.mxu1 %v10263_v11  ;;  %v10350_v10 = vld [vmem:[%s14264_s1 + $0x14e0] ss:$16 sps:$4 sm:$0xff]   ;;  %v10353_v11 = vld [vmem:[%s14264_s1 + $0x14e8] ss:$16 sps:$4 sm:$0xff]  }
 0x26a   : > { %6937 = vmatprep.subr.bf16.mxu0 %v10268_v12  ;;  %7625 = vmatprep.subr.bf16.mxu1 %v10271_v13  ;;  %v10358_v12 = vld [vmem:[%s14264_s1 + $0x1504] ss:$16 sps:$4 sm:$0xff]   ;;  %v10361_v13 = vld [vmem:[%s14264_s1 + $0x150c] ss:$16 sps:$4 sm:$0xff]  }
 0x26d   : > { %6938 = vmatpush1.bf16.msra.mxu0 %v10266_v14  ;;  %7626 = vmatpush1.bf16.msra.mxu1 %v10269_v17  ;;  %v10356_v14 = vld [vmem:[%s14264_s1 + $0x1500] ss:$16 sps:$4 sm:$0xff]   ;;  %v10359_v17 = vld [vmem:[%s14264_s1 + $0x1508] ss:$16 sps:$4 sm:$0xff]  }
 0x26e   : > { %6939 = vmatprep.subr.bf16.mxu0 %v10274_v18  ;;  %7627 = vmatprep.subr.bf16.mxu1 %v10277_v21  ;;  %v10364_v18 = vld [vmem:[%s14264_s1 + $0x1524] ss:$16 sps:$4 sm:$0xff]   ;;  %v10367_v21 = vld [vmem:[%s14264_s1 + $0x152c] ss:$16 sps:$4 sm:$0xff]  }
 0x271   : > { %6940 = vmatpush1.bf16.msra.mxu0 %v10272_v23  ;;  %7628 = vmatpush1.bf16.msra.mxu1 %v10275_v16  ;;  %v10362_v23 = vld [vmem:[%s14264_s1 + $0x1520] ss:$16 sps:$4 sm:$0xff]   ;;  %v10365_v16 = vld [vmem:[%s14264_s1 + $0x1528] ss:$16 sps:$4 sm:$0xff]  }
 0x272   : > { %6941 = vmatprep.subr.bf16.mxu0 %v10280_v24  ;;  %7629 = vmatprep.subr.bf16.mxu1 %v10283_v25  ;;  %v10370_v24 = vld [vmem:[%s14264_s1 + $0x1544] ss:$16 sps:$4 sm:$0xff]   ;;  %v10373_v25 = vld [vmem:[%s14264_s1 + $0x154c] ss:$16 sps:$4 sm:$0xff]  }
 0x275   : > { %6942 = vmatpush1.bf16.msra.mxu0 %v10278_v26  ;;  %7630 = vmatpush1.bf16.msra.mxu1 %v10281_v27  ;;  %v10368_v26 = vld [vmem:[%s14264_s1 + $0x1540] ss:$16 sps:$4 sm:$0xff]   ;;  %v10371_v27 = vld [vmem:[%s14264_s1 + $0x1548] ss:$16 sps:$4 sm:$0xff]  }
 0x276   : > { %6943 = vmatprep.subr.bf16.mxu0 %v10286_v28  ;;  %7631 = vmatprep.subr.bf16.mxu1 %v10289_v29  ;;  %v10376_v28 = vld [vmem:[%s14264_s1 + $0x1564] ss:$16 sps:$4 sm:$0xff]   ;;  %v10379_v29 = vld [vmem:[%s14264_s1 + $0x156c] ss:$16 sps:$4 sm:$0xff]  }
 0x279   : > { %6944 = vmatpush1.bf16.msra.mxu0 %v10284_v30  ;;  %7632 = vmatpush1.bf16.msra.mxu1 %v10287_v31  ;;  %v10374_v30 = vld [vmem:[%s14264_s1 + $0x1560] ss:$16 sps:$4 sm:$0xff]   ;;  %v10377_v31 = vld [vmem:[%s14264_s1 + $0x1568] ss:$16 sps:$4 sm:$0xff]  }
 0x27a   : > { %6945 = vmatprep.subr.bf16.mxu0 %v10292_v32  ;;  %7633 = vmatprep.subr.bf16.mxu1 %v10295_v33  ;;  %v10382_v32 = vld [vmem:[%s14264_s1 + $0x1584] ss:$16 sps:$4 sm:$0xff]   ;;  %v10385_v33 = vld [vmem:[%s14264_s1 + $0x158c] ss:$16 sps:$4 sm:$0xff]  }
 0x27d   : > { %6946 = vmatpush1.bf16.msra.mxu0 %v10290_v34  ;;  %7634 = vmatpush1.bf16.msra.mxu1 %v10293_v35  ;;  %v10380_v34 = vld [vmem:[%s14264_s1 + $0x1580] ss:$16 sps:$4 sm:$0xff]   ;;  %v10383_v35 = vld [vmem:[%s14264_s1 + $0x1588] ss:$16 sps:$4 sm:$0xff]  }
 0x27e   : > { %6947 = vmatprep.subr.bf16.mxu0 %v10298_v36  ;;  %7635 = vmatprep.subr.bf16.mxu1 %v10301_v37  ;;  %v10388_v36 = vld [vmem:[%s14264_s1 + $0x15a4] ss:$16 sps:$4 sm:$0xff]   ;;  %v10391_v37 = vld [vmem:[%s14264_s1 + $0x15ac] ss:$16 sps:$4 sm:$0xff]  }
 0x281   : > { %6948 = vmatpush1.bf16.msra.mxu0 %v10296_v38  ;;  %7636 = vmatpush1.bf16.msra.mxu1 %v10299_v39  ;;  %v10386_v38 = vld [vmem:[%s14264_s1 + $0x15a0] ss:$16 sps:$4 sm:$0xff]   ;;  %v10389_v39 = vld [vmem:[%s14264_s1 + $0x15a8] ss:$16 sps:$4 sm:$0xff]  }
 0x282   : > { %6949 = vmatprep.subr.bf16.mxu0 %v10304_v40  ;;  %7637 = vmatprep.subr.bf16.mxu1 %v10307_v41  ;;  %v10394_v40 = vld [vmem:[%s14264_s1 + $0x15c4] ss:$16 sps:$4 sm:$0xff]   ;;  %v10397_v41 = vld [vmem:[%s14264_s1 + $0x15cc] ss:$16 sps:$4 sm:$0xff]  }
 0x285   : > { %6950 = vmatpush1.bf16.msra.mxu0 %v10302_v42  ;;  %7638 = vmatpush1.bf16.msra.mxu1 %v10305_v43  ;;  %v10392_v42 = vld [vmem:[%s14264_s1 + $0x15c0] ss:$16 sps:$4 sm:$0xff]   ;;  %v10395_v43 = vld [vmem:[%s14264_s1 + $0x15c8] ss:$16 sps:$4 sm:$0xff]  }
 0x286   : > { %6962 = vmatprep.subr.bf16.mxu0 %v10310_v44  ;;  %7650 = vmatprep.subr.bf16.mxu1 %v10313_v45  ;;  %v10400_v44 = vld [vmem:[%s14264_s1 + $0x15e4] ss:$16 sps:$4 sm:$0xff]   ;;  %v10403_v45 = vld [vmem:[%s14264_s1 + $0x15ec] ss:$16 sps:$4 sm:$0xff]  }
 0x288   : > { %6952 = vmatmul.mubr.bf16.vlgmr.msra.gmra.mrb[0].mxu0 %v8179_v22  ;;  %7640 = vmatmul.mubr.bf16.vlgmr.msra.gmra.mrb[0].mxu1 %v8179_v22  ;;  %v10398_v22 = vld [vmem:[%s14264_s1 + $0x15e0] ss:$16 sps:$4 sm:$0xff]  }
 0x289   : > { %6963 = vmatpush1.bf16.msra.mxu0 %v10308_v47  ;;  %7651 = vmatpush1.bf16.msra.mxu1 %v10311_v48  ;;  %v10401_v47 = vld [vmem:[%s14264_s1 + $0x15e8] ss:$16 sps:$4 sm:$0xff]   ;;  %v10406_v48 = vld [vmem:[%s14264_s1 + $0x1604] ss:$16 sps:$4 sm:$0xff]  }
 0x28a   : > { %6964 = vmatprep.subr.bf16.mxu0 %v10316_v19  ;;  %7652 = vmatprep.subr.bf16.mxu1 %v10319_v20  ;;  %v10409_v19 = vld [vmem:[%s14264_s1 + $0x160c] ss:$16 sps:$4 sm:$0xff]   ;;  %v8181_v20 = vcombine.low %v12967_v15, %v12970_v46  ;;  %v10412_v15 = vld [vmem:[%s14264_s1 + $0x1624] ss:$16 sps:$4 sm:$0xff]  }
 0x28b   : > { %6994 = vmatprep.mubr.bf16.mxu0 %v8182_v49  ;;  %7682 = vmatprep.mubr.bf16.mxu1 %v8182_v49  ;;  %v13169_v49 = vld [vmem:[%s11078_s8 + $0x58] sm:$0xff] }
 0x28c   : > { %v10415_v46 = vld [vmem:[%s14264_s1 + $0x162c] ss:$16 sps:$4 sm:$0xff]  }
 0x28d   : > { %6965 = vmatpush1.bf16.msra.mxu0 %v10314_v50  ;;  %7653 = vmatpush1.bf16.msra.mxu1 %v10317_v51  ;;  %v13172_v50 = vld [vmem:[%s11078_s8 + $0xd8] sm:$0x11]  ;;  %v10404_v51 = vld [vmem:[%s14264_s1 + $0x1600] ss:$16 sps:$4 sm:$0xff]  }
 0x28e   : > { %6966 = vmatprep.subr.bf16.mxu0 %v10322_v52  ;;  %7654 = vmatprep.subr.bf16.mxu1 %v10325_v53  ;;  %v10407_v52 = vld [vmem:[%s14264_s1 + $0x1608] ss:$16 sps:$4 sm:$0xff]   ;;  %v8184_v53 = vcombine.high %v13169_v49, %v13172_v50 }
 0x291   : > { %6967 = vmatpush1.bf16.msra.mxu0 %v10320_v54  ;;  %7655 = vmatpush1.bf16.msra.mxu1 %v10323_v55  ;;  %v10410_v54 = vld [vmem:[%s14264_s1 + $0x1620] ss:$16 sps:$4 sm:$0xff]   ;;  %v10413_v55 = vld [vmem:[%s14264_s1 + $0x1628] ss:$16 sps:$4 sm:$0xff]  }
 0x292   : > { %6968 = vmatprep.subr.bf16.mxu0 %v10328_v56  ;;  %7656 = vmatprep.subr.bf16.mxu1 %v10331_v57  ;;  %v10418_v56 = vld [vmem:[%s14264_s1 + $0x1644] ss:$16 sps:$4 sm:$0xff]   ;;  %v10421_v57 = vld [vmem:[%s14264_s1 + $0x164c] ss:$16 sps:$4 sm:$0xff]  }
 0x295   : > { %6969 = vmatpush1.bf16.msra.mxu0 %v10326_v58  ;;  %7657 = vmatpush1.bf16.msra.mxu1 %v10329_v59  ;;  %v10416_v58 = vld [vmem:[%s14264_s1 + $0x1640] ss:$16 sps:$4 sm:$0xff]   ;;  %v10419_v59 = vld [vmem:[%s14264_s1 + $0x1648] ss:$16 sps:$4 sm:$0xff]  }
 0x296   : > { %6970 = vmatprep.subr.bf16.mxu0 %v10334_v60  ;;  %7658 = vmatprep.subr.bf16.mxu1 %v10337_v61  ;;  %v10424_v60 = vld [vmem:[%s14264_s1 + $0x1664] ss:$16 sps:$4 sm:$0xff]   ;;  %v10427_v61 = vld [vmem:[%s14264_s1 + $0x166c] ss:$16 sps:$4 sm:$0xff]  }
 0x299   : > { %6971 = vmatpush1.bf16.msra.mxu0 %v10332_v62  ;;  %7659 = vmatpush1.bf16.msra.mxu1 %v10335_v63  ;;  %v10422_v62 = vld [vmem:[%s14264_s1 + $0x1660] ss:$16 sps:$4 sm:$0xff]   ;;  %v10425_v63 = vld [vmem:[%s14264_s1 + $0x1668] ss:$16 sps:$4 sm:$0xff]  }
 0x29a   : > { %6972 = vmatprep.subr.bf16.mxu0 %v10340_v0  ;;  %7660 = vmatprep.subr.bf16.mxu1 %v10343_v1  ;;  %v10430_v0 = vld [vmem:[%s14264_s1 + $0x1684] ss:$16 sps:$4 sm:$0xff]   ;;  %v10433_v1 = vld [vmem:[%s14264_s1 + $0x168c] ss:$16 sps:$4 sm:$0xff]  }
 0x29d   : > { %6973 = vmatpush1.bf16.msra.mxu0 %v10338_v2  ;;  %7661 = vmatpush1.bf16.msra.mxu1 %v10341_v3  ;;  %v10428_v2 = vld [vmem:[%s14264_s1 + $0x1680] ss:$16 sps:$4 sm:$0xff]   ;;  %v10431_v3 = vld [vmem:[%s14264_s1 + $0x1688] ss:$16 sps:$4 sm:$0xff]  }
 0x29e   : > { %6974 = vmatprep.subr.bf16.mxu0 %v10346_v4  ;;  %7662 = vmatprep.subr.bf16.mxu1 %v10349_v5  ;;  %v10436_v4 = vld [vmem:[%s14264_s1 + $0x16a4] ss:$16 sps:$4 sm:$0xff]   ;;  %v10439_v5 = vld [vmem:[%s14264_s1 + $0x16ac] ss:$16 sps:$4 sm:$0xff]  }
 0x2a1   : > { %6975 = vmatpush1.bf16.msra.mxu0 %v10344_v6  ;;  %7663 = vmatpush1.bf16.msra.mxu1 %v10347_v7  ;;  %v10434_v6 = vld [vmem:[%s14264_s1 + $0x16a0] ss:$16 sps:$4 sm:$0xff]   ;;  %v10437_v7 = vld [vmem:[%s14264_s1 + $0x16a8] ss:$16 sps:$4 sm:$0xff]  }
 0x2a2   : > { %6976 = vmatprep.subr.bf16.mxu0 %v10352_v8  ;;  %7664 = vmatprep.subr.bf16.mxu1 %v10355_v9  ;;  %v10442_v8 = vld [vmem:[%s14264_s1 + $0x16c4] ss:$16 sps:$4 sm:$0xff]   ;;  %v10445_v9 = vld [vmem:[%s14264_s1 + $0x16cc] ss:$16 sps:$4 sm:$0xff]  }
 0x2a5   : > { %6977 = vmatpush1.bf16.msra.mxu0 %v10350_v10  ;;  %7665 = vmatpush1.bf16.msra.mxu1 %v10353_v11  ;;  %v10440_v10 = vld [vmem:[%s14264_s1 + $0x16c0] ss:$16 sps:$4 sm:$0xff]   ;;  %v10443_v11 = vld [vmem:[%s14264_s1 + $0x16c8] ss:$16 sps:$4 sm:$0xff]  }
 0x2a6   : > { %6978 = vmatprep.subr.bf16.mxu0 %v10358_v12  ;;  %7666 = vmatprep.subr.bf16.mxu1 %v10361_v13  ;;  %v10448_v12 = vld [vmem:[%s14264_s1 + $0x16e4] ss:$16 sps:$4 sm:$0xff]   ;;  %v10451_v13 = vld [vmem:[%s14264_s1 + $0x16ec] ss:$16 sps:$4 sm:$0xff]  }
 0x2a9   : > { %6979 = vmatpush1.bf16.msra.mxu0 %v10356_v14  ;;  %7667 = vmatpush1.bf16.msra.mxu1 %v10359_v17  ;;  %v10446_v14 = vld [vmem:[%s14264_s1 + $0x16e0] ss:$16 sps:$4 sm:$0xff]   ;;  %v10449_v17 = vld [vmem:[%s14264_s1 + $0x16e8] ss:$16 sps:$4 sm:$0xff]  }
 0x2aa   : > { %6980 = vmatprep.subr.bf16.mxu0 %v10364_v18  ;;  %7668 = vmatprep.subr.bf16.mxu1 %v10367_v21  ;;  %v10454_v18 = vld [vmem:[%s14264_s1 + $0x1704] ss:$16 sps:$4 sm:$0xff]   ;;  %v10457_v21 = vld [vmem:[%s14264_s1 + $0x170c] ss:$16 sps:$4 sm:$0xff]  }
 0x2ad   : > { %6981 = vmatpush1.bf16.msra.mxu0 %v10362_v23  ;;  %7669 = vmatpush1.bf16.msra.mxu1 %v10365_v16  ;;  %v10452_v23 = vld [vmem:[%s14264_s1 + $0x1700] ss:$16 sps:$4 sm:$0xff]   ;;  %v10455_v16 = vld [vmem:[%s14264_s1 + $0x1708] ss:$16 sps:$4 sm:$0xff]  }
 0x2ae   : > { %6982 = vmatprep.subr.bf16.mxu0 %v10370_v24  ;;  %7670 = vmatprep.subr.bf16.mxu1 %v10373_v25  ;;  %v10460_v24 = vld [vmem:[%s14264_s1 + $0x1724] ss:$16 sps:$4 sm:$0xff]   ;;  %v10463_v25 = vld [vmem:[%s14264_s1 + $0x172c] ss:$16 sps:$4 sm:$0xff]  }
 0x2b1   : > { %6983 = vmatpush1.bf16.msra.mxu0 %v10368_v26  ;;  %7671 = vmatpush1.bf16.msra.mxu1 %v10371_v27  ;;  %v10458_v26 = vld [vmem:[%s14264_s1 + $0x1720] ss:$16 sps:$4 sm:$0xff]   ;;  %v10461_v27 = vld [vmem:[%s14264_s1 + $0x1728] ss:$16 sps:$4 sm:$0xff]  }
 0x2b2   : > { %6984 = vmatprep.subr.bf16.mxu0 %v10376_v28  ;;  %7672 = vmatprep.subr.bf16.mxu1 %v10379_v29  ;;  %v10466_v28 = vld [vmem:[%s14264_s1 + $0x1744] ss:$16 sps:$4 sm:$0xff]   ;;  %v10469_v29 = vld [vmem:[%s14264_s1 + $0x174c] ss:$16 sps:$4 sm:$0xff]  }
 0x2b5   : > { %6985 = vmatpush1.bf16.msra.mxu0 %v10374_v30  ;;  %7673 = vmatpush1.bf16.msra.mxu1 %v10377_v31  ;;  %v10464_v30 = vld [vmem:[%s14264_s1 + $0x1740] ss:$16 sps:$4 sm:$0xff]   ;;  %v10467_v31 = vld [vmem:[%s14264_s1 + $0x1748] ss:$16 sps:$4 sm:$0xff]  }
 0x2b6   : > { %6986 = vmatprep.subr.bf16.mxu0 %v10382_v32  ;;  %7674 = vmatprep.subr.bf16.mxu1 %v10385_v33  ;;  %v10472_v32 = vld [vmem:[%s14264_s1 + $0x1764] ss:$16 sps:$4 sm:$0xff]   ;;  %v10475_v33 = vld [vmem:[%s14264_s1 + $0x176c] ss:$16 sps:$4 sm:$0xff]  }
 0x2b9   : > { %6987 = vmatpush1.bf16.msra.mxu0 %v10380_v34  ;;  %7675 = vmatpush1.bf16.msra.mxu1 %v10383_v35  ;;  %v10470_v34 = vld [vmem:[%s14264_s1 + $0x1760] ss:$16 sps:$4 sm:$0xff]   ;;  %v10473_v35 = vld [vmem:[%s14264_s1 + $0x1768] ss:$16 sps:$4 sm:$0xff]  }
 0x2ba   : > { %6988 = vmatprep.subr.bf16.mxu0 %v10388_v36  ;;  %7676 = vmatprep.subr.bf16.mxu1 %v10391_v37  ;;  %v10478_v36 = vld [vmem:[%s14264_s1 + $0x1784] ss:$16 sps:$4 sm:$0xff]   ;;  %v10481_v37 = vld [vmem:[%s14264_s1 + $0x178c] ss:$16 sps:$4 sm:$0xff]  }
 0x2bd   : > { %6989 = vmatpush1.bf16.msra.mxu0 %v10386_v38  ;;  %7677 = vmatpush1.bf16.msra.mxu1 %v10389_v39  ;;  %v10476_v38 = vld [vmem:[%s14264_s1 + $0x1780] ss:$16 sps:$4 sm:$0xff]   ;;  %v10479_v39 = vld [vmem:[%s14264_s1 + $0x1788] ss:$16 sps:$4 sm:$0xff]  }
 0x2be   : > { %6990 = vmatprep.subr.bf16.mxu0 %v10394_v40  ;;  %7678 = vmatprep.subr.bf16.mxu1 %v10397_v41  ;;  %v10484_v40 = vld [vmem:[%s14264_s1 + $0x17a4] ss:$16 sps:$4 sm:$0xff]   ;;  %v10487_v41 = vld [vmem:[%s14264_s1 + $0x17ac] ss:$16 sps:$4 sm:$0xff]  }
 0x2c1   : > { %6991 = vmatpush1.bf16.msra.mxu0 %v10392_v42  ;;  %7679 = vmatpush1.bf16.msra.mxu1 %v10395_v43  ;;  %v10482_v42 = vld [vmem:[%s14264_s1 + $0x17a0] ss:$16 sps:$4 sm:$0xff]   ;;  %v10485_v43 = vld [vmem:[%s14264_s1 + $0x17a8] ss:$16 sps:$4 sm:$0xff]  }
 0x2c2   : > { %6992 = vmatprep.subr.bf16.mxu0 %v10400_v44  ;;  %7680 = vmatprep.subr.bf16.mxu1 %v10403_v45  ;;  %v10490_v44 = vld [vmem:[%s14264_s1 + $0x17c4] ss:$16 sps:$4 sm:$0xff]   ;;  %v10493_v45 = vld [vmem:[%s14264_s1 + $0x17cc] ss:$16 sps:$4 sm:$0xff]  }
 0x2c5   : > { %6993 = vmatpush1.bf16.msra.mxu0 %v10398_v22  ;;  %7681 = vmatpush1.bf16.msra.mxu1 %v10401_v47  ;;  %v10488_v22 = vld [vmem:[%s14264_s1 + $0x17c0] ss:$16 sps:$4 sm:$0xff]   ;;  %v10491_v47 = vld [vmem:[%s14264_s1 + $0x17c8] ss:$16 sps:$4 sm:$0xff]  }
 0x2c6   : > { %7005 = vmatprep.subr.bf16.mxu0 %v10406_v48  ;;  %7693 = vmatprep.subr.bf16.mxu1 %v10409_v19  ;;  %v10496_v48 = vld [vmem:[%s14264_s1 + $0x17e4] ss:$16 sps:$4 sm:$0xff]   ;;  %v10499_v19 = vld [vmem:[%s14264_s1 + $0x17ec] ss:$16 sps:$4 sm:$0xff]  }
 0x2c8   : > { %6995 = vmatmul.mubr.bf16.vlgmr.msra.gmra.mrb[0].mxu0 %v8181_v20  ;;  %7683 = vmatmul.mubr.bf16.vlgmr.msra.gmra.mrb[0].mxu1 %v8181_v20  ;;  %v10494_v20 = vld [vmem:[%s14264_s1 + $0x17e0] ss:$16 sps:$4 sm:$0xff]  }
 0x2c9   : > { %7006 = vmatpush1.bf16.msra.mxu0 %v10404_v51  ;;  %7694 = vmatpush1.bf16.msra.mxu1 %v10407_v52  ;;  %v10497_v51 = vld [vmem:[%s14264_s1 + $0x17e8] ss:$16 sps:$4 sm:$0xff]   ;;  %v10502_v52 = vld [vmem:[%s14264_s1 + $0x1804] ss:$16 sps:$4 sm:$0xff]  }
 0x2ca   : > { %7007 = vmatprep.subr.bf16.mxu0 %v10412_v15  ;;  %7695 = vmatprep.subr.bf16.mxu1 %v10415_v46  ;;  %v10505_v15 = vld [vmem:[%s14264_s1 + $0x180c] ss:$16 sps:$4 sm:$0xff]   ;;  %v8183_v46 = vcombine.low %v13169_v49, %v13172_v50  ;;  %v10508_v49 = vld [vmem:[%s14264_s1 + $0x1824] ss:$16 sps:$4 sm:$0xff]  }
 0x2cb   : > { %7037 = vmatprep.mubr.bf16.mxu0 %v8184_v53  ;;  %7725 = vmatprep.mubr.bf16.mxu1 %v8184_v53  ;;  %v13371_v53 = vld [vmem:[%s11078_s8 + $0x60] sm:$0xff]  ;;  %v10511_v50 = vld [vmem:[%s14264_s1 + $0x182c] ss:$16 sps:$4 sm:$0xff]  }
 0x2cd   : > { %7008 = vmatpush1.bf16.msra.mxu0 %v10410_v54  ;;  %7696 = vmatpush1.bf16.msra.mxu1 %v10413_v55  ;;  %v13374_v54 = vld [vmem:[%s11078_s8 + $0xe0] sm:$0x11] }
 0x2ce   : > { %7009 = vmatprep.subr.bf16.mxu0 %v10418_v56  ;;  %7697 = vmatprep.subr.bf16.mxu1 %v10421_v57  ;;  %v10500_v55 = vld [vmem:[%s14264_s1 + $0x1800] ss:$16 sps:$4 sm:$0xff]   ;;  %v10503_v56 = vld [vmem:[%s14264_s1 + $0x1808] ss:$16 sps:$4 sm:$0xff]   ;;  %v8186_v57 = vcombine.high %v13371_v53, %v13374_v54 }
 0x2d1   : > { %7010 = vmatpush1.bf16.msra.mxu0 %v10416_v58  ;;  %7698 = vmatpush1.bf16.msra.mxu1 %v10419_v59  ;;  %v10506_v58 = vld [vmem:[%s14264_s1 + $0x1820] ss:$16 sps:$4 sm:$0xff]   ;;  %v10509_v59 = vld [vmem:[%s14264_s1 + $0x1828] ss:$16 sps:$4 sm:$0xff]  }
 0x2d2   : > { %7011 = vmatprep.subr.bf16.mxu0 %v10424_v60  ;;  %7699 = vmatprep.subr.bf16.mxu1 %v10427_v61  ;;  %v10514_v60 = vld [vmem:[%s14264_s1 + $0x1844] ss:$16 sps:$4 sm:$0xff]   ;;  %v10517_v61 = vld [vmem:[%s14264_s1 + $0x184c] ss:$16 sps:$4 sm:$0xff]  }
 0x2d5   : > { %7012 = vmatpush1.bf16.msra.mxu0 %v10422_v62  ;;  %7700 = vmatpush1.bf16.msra.mxu1 %v10425_v63  ;;  %v10512_v62 = vld [vmem:[%s14264_s1 + $0x1840] ss:$16 sps:$4 sm:$0xff]   ;;  %v10515_v63 = vld [vmem:[%s14264_s1 + $0x1848] ss:$16 sps:$4 sm:$0xff]  }
 0x2d6   : > { %7013 = vmatprep.subr.bf16.mxu0 %v10430_v0  ;;  %7701 = vmatprep.subr.bf16.mxu1 %v10433_v1  ;;  %v10520_v0 = vld [vmem:[%s14264_s1 + $0x1864] ss:$16 sps:$4 sm:$0xff]   ;;  %v10523_v1 = vld [vmem:[%s14264_s1 + $0x186c] ss:$16 sps:$4 sm:$0xff]  }
 0x2d9   : > { %7014 = vmatpush1.bf16.msra.mxu0 %v10428_v2  ;;  %7702 = vmatpush1.bf16.msra.mxu1 %v10431_v3  ;;  %v10518_v2 = vld [vmem:[%s14264_s1 + $0x1860] ss:$16 sps:$4 sm:$0xff]   ;;  %v10521_v3 = vld [vmem:[%s14264_s1 + $0x1868] ss:$16 sps:$4 sm:$0xff]  }
 0x2da   : > { %7015 = vmatprep.subr.bf16.mxu0 %v10436_v4  ;;  %7703 = vmatprep.subr.bf16.mxu1 %v10439_v5  ;;  %v10526_v4 = vld [vmem:[%s14264_s1 + $0x1884] ss:$16 sps:$4 sm:$0xff]   ;;  %v10529_v5 = vld [vmem:[%s14264_s1 + $0x188c] ss:$16 sps:$4 sm:$0xff]  }
 0x2dd   : > { %7016 = vmatpush1.bf16.msra.mxu0 %v10434_v6  ;;  %7704 = vmatpush1.bf16.msra.mxu1 %v10437_v7  ;;  %v10524_v6 = vld [vmem:[%s14264_s1 + $0x1880] ss:$16 sps:$4 sm:$0xff]   ;;  %v10527_v7 = vld [vmem:[%s14264_s1 + $0x1888] ss:$16 sps:$4 sm:$0xff]  }
 0x2de   : > { %7017 = vmatprep.subr.bf16.mxu0 %v10442_v8  ;;  %7705 = vmatprep.subr.bf16.mxu1 %v10445_v9  ;;  %v10532_v8 = vld [vmem:[%s14264_s1 + $0x18a4] ss:$16 sps:$4 sm:$0xff]   ;;  %v10535_v9 = vld [vmem:[%s14264_s1 + $0x18ac] ss:$16 sps:$4 sm:$0xff]  }
 0x2e1   : > { %7018 = vmatpush1.bf16.msra.mxu0 %v10440_v10  ;;  %7706 = vmatpush1.bf16.msra.mxu1 %v10443_v11  ;;  %v10530_v10 = vld [vmem:[%s14264_s1 + $0x18a0] ss:$16 sps:$4 sm:$0xff]   ;;  %v10533_v11 = vld [vmem:[%s14264_s1 + $0x18a8] ss:$16 sps:$4 sm:$0xff]  }
 0x2e2   : > { %7019 = vmatprep.subr.bf16.mxu0 %v10448_v12  ;;  %7707 = vmatprep.subr.bf16.mxu1 %v10451_v13  ;;  %v10538_v12 = vld [vmem:[%s14264_s1 + $0x18c4] ss:$16 sps:$4 sm:$0xff]   ;;  %v10541_v13 = vld [vmem:[%s14264_s1 + $0x18cc] ss:$16 sps:$4 sm:$0xff]  }
 0x2e5   : > { %7020 = vmatpush1.bf16.msra.mxu0 %v10446_v14  ;;  %7708 = vmatpush1.bf16.msra.mxu1 %v10449_v17  ;;  %v10536_v14 = vld [vmem:[%s14264_s1 + $0x18c0] ss:$16 sps:$4 sm:$0xff]   ;;  %v10539_v17 = vld [vmem:[%s14264_s1 + $0x18c8] ss:$16 sps:$4 sm:$0xff]  }
 0x2e6   : > { %7021 = vmatprep.subr.bf16.mxu0 %v10454_v18  ;;  %7709 = vmatprep.subr.bf16.mxu1 %v10457_v21  ;;  %v10544_v18 = vld [vmem:[%s14264_s1 + $0x18e4] ss:$16 sps:$4 sm:$0xff]   ;;  %v10547_v21 = vld [vmem:[%s14264_s1 + $0x18ec] ss:$16 sps:$4 sm:$0xff]  }
 0x2e9   : > { %7022 = vmatpush1.bf16.msra.mxu0 %v10452_v23  ;;  %7710 = vmatpush1.bf16.msra.mxu1 %v10455_v16  ;;  %v10542_v23 = vld [vmem:[%s14264_s1 + $0x18e0] ss:$16 sps:$4 sm:$0xff]   ;;  %v10545_v16 = vld [vmem:[%s14264_s1 + $0x18e8] ss:$16 sps:$4 sm:$0xff]  }
 0x2ea   : > { %7023 = vmatprep.subr.bf16.mxu0 %v10460_v24  ;;  %7711 = vmatprep.subr.bf16.mxu1 %v10463_v25  ;;  %v10550_v24 = vld [vmem:[%s14264_s1 + $0x1904] ss:$16 sps:$4 sm:$0xff]   ;;  %v10553_v25 = vld [vmem:[%s14264_s1 + $0x190c] ss:$16 sps:$4 sm:$0xff]  }
 0x2ed   : > { %7024 = vmatpush1.bf16.msra.mxu0 %v10458_v26  ;;  %7712 = vmatpush1.bf16.msra.mxu1 %v10461_v27  ;;  %v10548_v26 = vld [vmem:[%s14264_s1 + $0x1900] ss:$16 sps:$4 sm:$0xff]   ;;  %v10551_v27 = vld [vmem:[%s14264_s1 + $0x1908] ss:$16 sps:$4 sm:$0xff]  }
 0x2ee   : > { %7025 = vmatprep.subr.bf16.mxu0 %v10466_v28  ;;  %7713 = vmatprep.subr.bf16.mxu1 %v10469_v29  ;;  %v10556_v28 = vld [vmem:[%s14264_s1 + $0x1924] ss:$16 sps:$4 sm:$0xff]   ;;  %v10559_v29 = vld [vmem:[%s14264_s1 + $0x192c] ss:$16 sps:$4 sm:$0xff]  }
 0x2f1   : > { %7026 = vmatpush1.bf16.msra.mxu0 %v10464_v30  ;;  %7714 = vmatpush1.bf16.msra.mxu1 %v10467_v31  ;;  %v10554_v30 = vld [vmem:[%s14264_s1 + $0x1920] ss:$16 sps:$4 sm:$0xff]   ;;  %v10557_v31 = vld [vmem:[%s14264_s1 + $0x1928] ss:$16 sps:$4 sm:$0xff]  }
 0x2f2   : > { %7027 = vmatprep.subr.bf16.mxu0 %v10472_v32  ;;  %7715 = vmatprep.subr.bf16.mxu1 %v10475_v33  ;;  %v10562_v32 = vld [vmem:[%s14264_s1 + $0x1944] ss:$16 sps:$4 sm:$0xff]   ;;  %v10565_v33 = vld [vmem:[%s14264_s1 + $0x194c] ss:$16 sps:$4 sm:$0xff]  }
 0x2f5   : > { %7028 = vmatpush1.bf16.msra.mxu0 %v10470_v34  ;;  %7716 = vmatpush1.bf16.msra.mxu1 %v10473_v35  ;;  %v10560_v34 = vld [vmem:[%s14264_s1 + $0x1940] ss:$16 sps:$4 sm:$0xff]   ;;  %v10563_v35 = vld [vmem:[%s14264_s1 + $0x1948] ss:$16 sps:$4 sm:$0xff]  }
 0x2f6   : > { %7029 = vmatprep.subr.bf16.mxu0 %v10478_v36  ;;  %7717 = vmatprep.subr.bf16.mxu1 %v10481_v37  ;;  %v10568_v36 = vld [vmem:[%s14264_s1 + $0x1964] ss:$16 sps:$4 sm:$0xff]   ;;  %v10571_v37 = vld [vmem:[%s14264_s1 + $0x196c] ss:$16 sps:$4 sm:$0xff]  }
 0x2f9   : > { %7030 = vmatpush1.bf16.msra.mxu0 %v10476_v38  ;;  %7718 = vmatpush1.bf16.msra.mxu1 %v10479_v39  ;;  %v10566_v38 = vld [vmem:[%s14264_s1 + $0x1960] ss:$16 sps:$4 sm:$0xff]   ;;  %v10569_v39 = vld [vmem:[%s14264_s1 + $0x1968] ss:$16 sps:$4 sm:$0xff]  }
 0x2fa   : > { %7031 = vmatprep.subr.bf16.mxu0 %v10484_v40  ;;  %7719 = vmatprep.subr.bf16.mxu1 %v10487_v41  ;;  %v10574_v40 = vld [vmem:[%s14264_s1 + $0x1984] ss:$16 sps:$4 sm:$0xff]   ;;  %v10577_v41 = vld [vmem:[%s14264_s1 + $0x198c] ss:$16 sps:$4 sm:$0xff]  }
 0x2fd   : > { %7032 = vmatpush1.bf16.msra.mxu0 %v10482_v42  ;;  %7720 = vmatpush1.bf16.msra.mxu1 %v10485_v43  ;;  %v10572_v42 = vld [vmem:[%s14264_s1 + $0x1980] ss:$16 sps:$4 sm:$0xff]   ;;  %v10575_v43 = vld [vmem:[%s14264_s1 + $0x1988] ss:$16 sps:$4 sm:$0xff]  }
 0x2fe   : > { %7033 = vmatprep.subr.bf16.mxu0 %v10490_v44  ;;  %7721 = vmatprep.subr.bf16.mxu1 %v10493_v45  ;;  %v10580_v44 = vld [vmem:[%s14264_s1 + $0x19a4] ss:$16 sps:$4 sm:$0xff]   ;;  %v10583_v45 = vld [vmem:[%s14264_s1 + $0x19ac] ss:$16 sps:$4 sm:$0xff]  }
 0x301   : > { %7034 = vmatpush1.bf16.msra.mxu0 %v10488_v22  ;;  %7722 = vmatpush1.bf16.msra.mxu1 %v10491_v47  ;;  %v10578_v22 = vld [vmem:[%s14264_s1 + $0x19a0] ss:$16 sps:$4 sm:$0xff]   ;;  %v10581_v47 = vld [vmem:[%s14264_s1 + $0x19a8] ss:$16 sps:$4 sm:$0xff]  }
 0x302   : > { %7035 = vmatprep.subr.bf16.mxu0 %v10496_v48  ;;  %7723 = vmatprep.subr.bf16.mxu1 %v10499_v19  ;;  %v10586_v48 = vld [vmem:[%s14264_s1 + $0x19c4] ss:$16 sps:$4 sm:$0xff]   ;;  %v10589_v19 = vld [vmem:[%s14264_s1 + $0x19cc] ss:$16 sps:$4 sm:$0xff]  }
 0x305   : > { %7036 = vmatpush1.bf16.msra.mxu0 %v10494_v20  ;;  %7724 = vmatpush1.bf16.msra.mxu1 %v10497_v51  ;;  %v10584_v20 = vld [vmem:[%s14264_s1 + $0x19c0] ss:$16 sps:$4 sm:$0xff]   ;;  %v10587_v51 = vld [vmem:[%s14264_s1 + $0x19c8] ss:$16 sps:$4 sm:$0xff]  }
 0x306   : > { %7048 = vmatprep.subr.bf16.mxu0 %v10502_v52  ;;  %7736 = vmatprep.subr.bf16.mxu1 %v10505_v15  ;;  %v10592_v52 = vld [vmem:[%s14264_s1 + $0x19e4] ss:$16 sps:$4 sm:$0xff]   ;;  %v10595_v15 = vld [vmem:[%s14264_s1 + $0x19ec] ss:$16 sps:$4 sm:$0xff]  }
 0x308   : > { %7038 = vmatmul.mubr.bf16.vlgmr.msra.gmra.mrb[0].mxu0 %v8183_v46  ;;  %7726 = vmatmul.mubr.bf16.vlgmr.msra.gmra.mrb[0].mxu1 %v8183_v46  ;;  %v10590_v46 = vld [vmem:[%s14264_s1 + $0x19e0] ss:$16 sps:$4 sm:$0xff]  }
 0x309   : > { %7049 = vmatpush1.bf16.msra.mxu0 %v10500_v55  ;;  %7737 = vmatpush1.bf16.msra.mxu1 %v10503_v56  ;;  %v10593_v55 = vld [vmem:[%s14264_s1 + $0x19e8] ss:$16 sps:$4 sm:$0xff]   ;;  %v10598_v56 = vld [vmem:[%s14264_s1 + $0x1a04] ss:$16 sps:$4 sm:$0xff]  }
 0x30a   : > { %7050 = vmatprep.subr.bf16.mxu0 %v10508_v49  ;;  %7738 = vmatprep.subr.bf16.mxu1 %v10511_v50  ;;  %v10601_v49 = vld [vmem:[%s14264_s1 + $0x1a0c] ss:$16 sps:$4 sm:$0xff]   ;;  %v8185_v50 = vcombine.low %v13371_v53, %v13374_v54  ;;  %v10604_v53 = vld [vmem:[%s14264_s1 + $0x1a24] ss:$16 sps:$4 sm:$0xff]  }
 0x30b   : > { %7080 = vmatprep.mubr.bf16.mxu0 %v8186_v57  ;;  %7768 = vmatprep.mubr.bf16.mxu1 %v8186_v57  ;;  %v13573_v57 = vld [vmem:[%s11078_s8 + $0x68] sm:$0xff] }
 0x30c   : > { %v10607_v54 = vld [vmem:[%s14264_s1 + $0x1a2c] ss:$16 sps:$4 sm:$0xff]  }
 0x30d   : > { %7051 = vmatpush1.bf16.msra.mxu0 %v10506_v58  ;;  %7739 = vmatpush1.bf16.msra.mxu1 %v10509_v59  ;;  %v13576_v58 = vld [vmem:[%s11078_s8 + $0xe8] sm:$0x11]  ;;  %v10596_v59 = vld [vmem:[%s14264_s1 + $0x1a00] ss:$16 sps:$4 sm:$0xff]  }
 0x30e   : > { %7052 = vmatprep.subr.bf16.mxu0 %v10514_v60  ;;  %7740 = vmatprep.subr.bf16.mxu1 %v10517_v61  ;;  %v10599_v60 = vld [vmem:[%s14264_s1 + $0x1a08] ss:$16 sps:$4 sm:$0xff]   ;;  %v8188_v61 = vcombine.high %v13573_v57, %v13576_v58 }
 0x311   : > { %7053 = vmatpush1.bf16.msra.mxu0 %v10512_v62  ;;  %7741 = vmatpush1.bf16.msra.mxu1 %v10515_v63  ;;  %v10602_v62 = vld [vmem:[%s14264_s1 + $0x1a20] ss:$16 sps:$4 sm:$0xff]   ;;  %v10605_v63 = vld [vmem:[%s14264_s1 + $0x1a28] ss:$16 sps:$4 sm:$0xff]  }
 0x312   : > { %7054 = vmatprep.subr.bf16.mxu0 %v10520_v0  ;;  %7742 = vmatprep.subr.bf16.mxu1 %v10523_v1  ;;  %v10610_v0 = vld [vmem:[%s14264_s1 + $0x1a44] ss:$16 sps:$4 sm:$0xff]   ;;  %v10613_v1 = vld [vmem:[%s14264_s1 + $0x1a4c] ss:$16 sps:$4 sm:$0xff]  }
 0x315   : > { %7055 = vmatpush1.bf16.msra.mxu0 %v10518_v2  ;;  %7743 = vmatpush1.bf16.msra.mxu1 %v10521_v3  ;;  %v10608_v2 = vld [vmem:[%s14264_s1 + $0x1a40] ss:$16 sps:$4 sm:$0xff]   ;;  %v10611_v3 = vld [vmem:[%s14264_s1 + $0x1a48] ss:$16 sps:$4 sm:$0xff]  }
 0x316   : > { %7056 = vmatprep.subr.bf16.mxu0 %v10526_v4  ;;  %7744 = vmatprep.subr.bf16.mxu1 %v10529_v5  ;;  %v10616_v4 = vld [vmem:[%s14264_s1 + $0x1a64] ss:$16 sps:$4 sm:$0xff]   ;;  %v10619_v5 = vld [vmem:[%s14264_s1 + $0x1a6c] ss:$16 sps:$4 sm:$0xff]  }
 0x319   : > { %7057 = vmatpush1.bf16.msra.mxu0 %v10524_v6  ;;  %7745 = vmatpush1.bf16.msra.mxu1 %v10527_v7  ;;  %v10614_v6 = vld [vmem:[%s14264_s1 + $0x1a60] ss:$16 sps:$4 sm:$0xff]   ;;  %v10617_v7 = vld [vmem:[%s14264_s1 + $0x1a68] ss:$16 sps:$4 sm:$0xff]  }
 0x31a   : > { %7058 = vmatprep.subr.bf16.mxu0 %v10532_v8  ;;  %7746 = vmatprep.subr.bf16.mxu1 %v10535_v9  ;;  %v10622_v8 = vld [vmem:[%s14264_s1 + $0x1a84] ss:$16 sps:$4 sm:$0xff]   ;;  %v10625_v9 = vld [vmem:[%s14264_s1 + $0x1a8c] ss:$16 sps:$4 sm:$0xff]  }
 0x31d   : > { %7059 = vmatpush1.bf16.msra.mxu0 %v10530_v10  ;;  %7747 = vmatpush1.bf16.msra.mxu1 %v10533_v11  ;;  %v10620_v10 = vld [vmem:[%s14264_s1 + $0x1a80] ss:$16 sps:$4 sm:$0xff]   ;;  %v10623_v11 = vld [vmem:[%s14264_s1 + $0x1a88] ss:$16 sps:$4 sm:$0xff]  }
 0x31e   : > { %7060 = vmatprep.subr.bf16.mxu0 %v10538_v12  ;;  %7748 = vmatprep.subr.bf16.mxu1 %v10541_v13  ;;  %v10628_v12 = vld [vmem:[%s14264_s1 + $0x1aa4] ss:$16 sps:$4 sm:$0xff]   ;;  %v10631_v13 = vld [vmem:[%s14264_s1 + $0x1aac] ss:$16 sps:$4 sm:$0xff]  }
 0x321   : > { %7061 = vmatpush1.bf16.msra.mxu0 %v10536_v14  ;;  %7749 = vmatpush1.bf16.msra.mxu1 %v10539_v17  ;;  %v10626_v14 = vld [vmem:[%s14264_s1 + $0x1aa0] ss:$16 sps:$4 sm:$0xff]   ;;  %v10629_v17 = vld [vmem:[%s14264_s1 + $0x1aa8] ss:$16 sps:$4 sm:$0xff]  }
 0x322   : > { %7062 = vmatprep.subr.bf16.mxu0 %v10544_v18  ;;  %7750 = vmatprep.subr.bf16.mxu1 %v10547_v21  ;;  %v10634_v18 = vld [vmem:[%s14264_s1 + $0x1ac4] ss:$16 sps:$4 sm:$0xff]   ;;  %v10637_v21 = vld [vmem:[%s14264_s1 + $0x1acc] ss:$16 sps:$4 sm:$0xff]  }
 0x325   : > { %7063 = vmatpush1.bf16.msra.mxu0 %v10542_v23  ;;  %7751 = vmatpush1.bf16.msra.mxu1 %v10545_v16  ;;  %v10632_v23 = vld [vmem:[%s14264_s1 + $0x1ac0] ss:$16 sps:$4 sm:$0xff]   ;;  %v10635_v16 = vld [vmem:[%s14264_s1 + $0x1ac8] ss:$16 sps:$4 sm:$0xff]  }
 0x326   : > { %7064 = vmatprep.subr.bf16.mxu0 %v10550_v24  ;;  %7752 = vmatprep.subr.bf16.mxu1 %v10553_v25  ;;  %v10640_v24 = vld [vmem:[%s14264_s1 + $0x1ae4] ss:$16 sps:$4 sm:$0xff]   ;;  %v10643_v25 = vld [vmem:[%s14264_s1 + $0x1aec] ss:$16 sps:$4 sm:$0xff]  }
 0x329   : > { %7065 = vmatpush1.bf16.msra.mxu0 %v10548_v26  ;;  %7753 = vmatpush1.bf16.msra.mxu1 %v10551_v27  ;;  %v10638_v26 = vld [vmem:[%s14264_s1 + $0x1ae0] ss:$16 sps:$4 sm:$0xff]   ;;  %v10641_v27 = vld [vmem:[%s14264_s1 + $0x1ae8] ss:$16 sps:$4 sm:$0xff]  }
 0x32a   : > { %7066 = vmatprep.subr.bf16.mxu0 %v10556_v28  ;;  %7754 = vmatprep.subr.bf16.mxu1 %v10559_v29  ;;  %v10646_v28 = vld [vmem:[%s14264_s1 + $0x1b04] ss:$16 sps:$4 sm:$0xff]   ;;  %v10649_v29 = vld [vmem:[%s14264_s1 + $0x1b0c] ss:$16 sps:$4 sm:$0xff]  }
 0x32d   : > { %7067 = vmatpush1.bf16.msra.mxu0 %v10554_v30  ;;  %7755 = vmatpush1.bf16.msra.mxu1 %v10557_v31  ;;  %v10644_v30 = vld [vmem:[%s14264_s1 + $0x1b00] ss:$16 sps:$4 sm:$0xff]   ;;  %v10647_v31 = vld [vmem:[%s14264_s1 + $0x1b08] ss:$16 sps:$4 sm:$0xff]  }
 0x32e   : > { %7068 = vmatprep.subr.bf16.mxu0 %v10562_v32  ;;  %7756 = vmatprep.subr.bf16.mxu1 %v10565_v33  ;;  %v10652_v32 = vld [vmem:[%s14264_s1 + $0x1b24] ss:$16 sps:$4 sm:$0xff]   ;;  %v10655_v33 = vld [vmem:[%s14264_s1 + $0x1b2c] ss:$16 sps:$4 sm:$0xff]  }
 0x331   : > { %7069 = vmatpush1.bf16.msra.mxu0 %v10560_v34  ;;  %7757 = vmatpush1.bf16.msra.mxu1 %v10563_v35  ;;  %v10650_v34 = vld [vmem:[%s14264_s1 + $0x1b20] ss:$16 sps:$4 sm:$0xff]   ;;  %v10653_v35 = vld [vmem:[%s14264_s1 + $0x1b28] ss:$16 sps:$4 sm:$0xff]  }
 0x332   : > { %7070 = vmatprep.subr.bf16.mxu0 %v10568_v36  ;;  %7758 = vmatprep.subr.bf16.mxu1 %v10571_v37  ;;  %v10658_v36 = vld [vmem:[%s14264_s1 + $0x1b44] ss:$16 sps:$4 sm:$0xff]   ;;  %v10661_v37 = vld [vmem:[%s14264_s1 + $0x1b4c] ss:$16 sps:$4 sm:$0xff]  }
 0x335   : > { %7071 = vmatpush1.bf16.msra.mxu0 %v10566_v38  ;;  %7759 = vmatpush1.bf16.msra.mxu1 %v10569_v39  ;;  %v10656_v38 = vld [vmem:[%s14264_s1 + $0x1b40] ss:$16 sps:$4 sm:$0xff]   ;;  %v10659_v39 = vld [vmem:[%s14264_s1 + $0x1b48] ss:$16 sps:$4 sm:$0xff]  }
 0x336   : > { %7072 = vmatprep.subr.bf16.mxu0 %v10574_v40  ;;  %7760 = vmatprep.subr.bf16.mxu1 %v10577_v41  ;;  %v10664_v40 = vld [vmem:[%s14264_s1 + $0x1b64] ss:$16 sps:$4 sm:$0xff]   ;;  %v10667_v41 = vld [vmem:[%s14264_s1 + $0x1b6c] ss:$16 sps:$4 sm:$0xff]  }
 0x339   : > { %7073 = vmatpush1.bf16.msra.mxu0 %v10572_v42  ;;  %7761 = vmatpush1.bf16.msra.mxu1 %v10575_v43  ;;  %v10662_v42 = vld [vmem:[%s14264_s1 + $0x1b60] ss:$16 sps:$4 sm:$0xff]   ;;  %v10665_v43 = vld [vmem:[%s14264_s1 + $0x1b68] ss:$16 sps:$4 sm:$0xff]  }
 0x33a   : > { %7074 = vmatprep.subr.bf16.mxu0 %v10580_v44  ;;  %7762 = vmatprep.subr.bf16.mxu1 %v10583_v45  ;;  %v10670_v44 = vld [vmem:[%s14264_s1 + $0x1b84] ss:$16 sps:$4 sm:$0xff]   ;;  %v10673_v45 = vld [vmem:[%s14264_s1 + $0x1b8c] ss:$16 sps:$4 sm:$0xff]  }
 0x33d   : > { %7075 = vmatpush1.bf16.msra.mxu0 %v10578_v22  ;;  %7763 = vmatpush1.bf16.msra.mxu1 %v10581_v47  ;;  %v10668_v22 = vld [vmem:[%s14264_s1 + $0x1b80] ss:$16 sps:$4 sm:$0xff]   ;;  %v10671_v47 = vld [vmem:[%s14264_s1 + $0x1b88] ss:$16 sps:$4 sm:$0xff]  }
 0x33e   : > { %7076 = vmatprep.subr.bf16.mxu0 %v10586_v48  ;;  %7764 = vmatprep.subr.bf16.mxu1 %v10589_v19  ;;  %v10676_v48 = vld [vmem:[%s14264_s1 + $0x1ba4] ss:$16 sps:$4 sm:$0xff]   ;;  %v10679_v19 = vld [vmem:[%s14264_s1 + $0x1bac] ss:$16 sps:$4 sm:$0xff]  }
 0x341   : > { %7077 = vmatpush1.bf16.msra.mxu0 %v10584_v20  ;;  %7765 = vmatpush1.bf16.msra.mxu1 %v10587_v51  ;;  %v10674_v20 = vld [vmem:[%s14264_s1 + $0x1ba0] ss:$16 sps:$4 sm:$0xff]   ;;  %v10677_v51 = vld [vmem:[%s14264_s1 + $0x1ba8] ss:$16 sps:$4 sm:$0xff]  }
 0x342   : > { %7078 = vmatprep.subr.bf16.mxu0 %v10592_v52  ;;  %7766 = vmatprep.subr.bf16.mxu1 %v10595_v15  ;;  %v10682_v52 = vld [vmem:[%s14264_s1 + $0x1bc4] ss:$16 sps:$4 sm:$0xff]   ;;  %v10685_v15 = vld [vmem:[%s14264_s1 + $0x1bcc] ss:$16 sps:$4 sm:$0xff]  }
 0x345   : > { %7079 = vmatpush1.bf16.msra.mxu0 %v10590_v46  ;;  %7767 = vmatpush1.bf16.msra.mxu1 %v10593_v55  ;;  %v10680_v46 = vld [vmem:[%s14264_s1 + $0x1bc0] ss:$16 sps:$4 sm:$0xff]   ;;  %v10683_v55 = vld [vmem:[%s14264_s1 + $0x1bc8] ss:$16 sps:$4 sm:$0xff]  }
 0x346   : > { %7091 = vmatprep.subr.bf16.mxu0 %v10598_v56  ;;  %7779 = vmatprep.subr.bf16.mxu1 %v10601_v49  ;;  %v10688_v56 = vld [vmem:[%s14264_s1 + $0x1be4] ss:$16 sps:$4 sm:$0xff]   ;;  %v10691_v49 = vld [vmem:[%s14264_s1 + $0x1bec] ss:$16 sps:$4 sm:$0xff]  }
 0x348   : > { %7081 = vmatmul.mubr.bf16.vlgmr.msra.gmra.mrb[0].mxu0 %v8185_v50  ;;  %7769 = vmatmul.mubr.bf16.vlgmr.msra.gmra.mrb[0].mxu1 %v8185_v50  ;;  %v10686_v50 = vld [vmem:[%s14264_s1 + $0x1be0] ss:$16 sps:$4 sm:$0xff]  }
 0x349   : > { %7092 = vmatpush1.bf16.msra.mxu0 %v10596_v59  ;;  %7780 = vmatpush1.bf16.msra.mxu1 %v10599_v60  ;;  %v10689_v59 = vld [vmem:[%s14264_s1 + $0x1be8] ss:$16 sps:$4 sm:$0xff]   ;;  %v10694_v60 = vld [vmem:[%s14264_s1 + $0x1c04] ss:$16 sps:$4 sm:$0xff]  }
 0x34a   : > { %7093 = vmatprep.subr.bf16.mxu0 %v10604_v53  ;;  %7781 = vmatprep.subr.bf16.mxu1 %v10607_v54  ;;  %v10697_v53 = vld [vmem:[%s14264_s1 + $0x1c0c] ss:$16 sps:$4 sm:$0xff]   ;;  %v8187_v54 = vcombine.low %v13573_v57, %v13576_v58  ;;  %v10700_v57 = vld [vmem:[%s14264_s1 + $0x1c24] ss:$16 sps:$4 sm:$0xff]  }
 0x34b   : > { %7123 = vmatprep.mubr.bf16.mxu0 %v8188_v61  ;;  %7811 = vmatprep.mubr.bf16.mxu1 %v8188_v61  ;;  %v13775_v61 = vld [vmem:[%s11078_s8 + $0x70] sm:$0xff]  ;;  %v10703_v58 = vld [vmem:[%s14264_s1 + $0x1c2c] ss:$16 sps:$4 sm:$0xff]  }
 0x34d   : > { %7094 = vmatpush1.bf16.msra.mxu0 %v10602_v62  ;;  %7782 = vmatpush1.bf16.msra.mxu1 %v10605_v63  ;;  %v13778_v62 = vld [vmem:[%s11078_s8 + $0xf0] sm:$0x11] }
 0x34e   : > { %7095 = vmatprep.subr.bf16.mxu0 %v10610_v0  ;;  %7783 = vmatprep.subr.bf16.mxu1 %v10613_v1  ;;  %v10692_v63 = vld [vmem:[%s14264_s1 + $0x1c00] ss:$16 sps:$4 sm:$0xff]   ;;  %v10695_v0 = vld [vmem:[%s14264_s1 + $0x1c08] ss:$16 sps:$4 sm:$0xff]   ;;  %v8190_v1 = vcombine.high %v13775_v61, %v13778_v62 }
 0x351   : > { %7096 = vmatpush1.bf16.msra.mxu0 %v10608_v2  ;;  %7784 = vmatpush1.bf16.msra.mxu1 %v10611_v3  ;;  %v10698_v2 = vld [vmem:[%s14264_s1 + $0x1c20] ss:$16 sps:$4 sm:$0xff]   ;;  %v10701_v3 = vld [vmem:[%s14264_s1 + $0x1c28] ss:$16 sps:$4 sm:$0xff]  }
 0x352   : > { %7097 = vmatprep.subr.bf16.mxu0 %v10616_v4  ;;  %7785 = vmatprep.subr.bf16.mxu1 %v10619_v5  ;;  %v10706_v4 = vld [vmem:[%s14264_s1 + $0x1c44] ss:$16 sps:$4 sm:$0xff]   ;;  %v10709_v5 = vld [vmem:[%s14264_s1 + $0x1c4c] ss:$16 sps:$4 sm:$0xff]  }
 0x355   : > { %7098 = vmatpush1.bf16.msra.mxu0 %v10614_v6  ;;  %7786 = vmatpush1.bf16.msra.mxu1 %v10617_v7  ;;  %v10704_v6 = vld [vmem:[%s14264_s1 + $0x1c40] ss:$16 sps:$4 sm:$0xff]   ;;  %v10707_v7 = vld [vmem:[%s14264_s1 + $0x1c48] ss:$16 sps:$4 sm:$0xff]  }
 0x356   : > { %7099 = vmatprep.subr.bf16.mxu0 %v10622_v8  ;;  %7787 = vmatprep.subr.bf16.mxu1 %v10625_v9  ;;  %v10712_v8 = vld [vmem:[%s14264_s1 + $0x1c64] ss:$16 sps:$4 sm:$0xff]   ;;  %v10715_v9 = vld [vmem:[%s14264_s1 + $0x1c6c] ss:$16 sps:$4 sm:$0xff]  }
 0x359   : > { %7100 = vmatpush1.bf16.msra.mxu0 %v10620_v10  ;;  %7788 = vmatpush1.bf16.msra.mxu1 %v10623_v11  ;;  %v10710_v10 = vld [vmem:[%s14264_s1 + $0x1c60] ss:$16 sps:$4 sm:$0xff]   ;;  %v10713_v11 = vld [vmem:[%s14264_s1 + $0x1c68] ss:$16 sps:$4 sm:$0xff]  }
 0x35a   : > { %7101 = vmatprep.subr.bf16.mxu0 %v10628_v12  ;;  %7789 = vmatprep.subr.bf16.mxu1 %v10631_v13  ;;  %v10718_v12 = vld [vmem:[%s14264_s1 + $0x1c84] ss:$16 sps:$4 sm:$0xff]   ;;  %v10721_v13 = vld [vmem:[%s14264_s1 + $0x1c8c] ss:$16 sps:$4 sm:$0xff]  }
 0x35d   : > { %7102 = vmatpush1.bf16.msra.mxu0 %v10626_v14  ;;  %7790 = vmatpush1.bf16.msra.mxu1 %v10629_v17  ;;  %v10716_v14 = vld [vmem:[%s14264_s1 + $0x1c80] ss:$16 sps:$4 sm:$0xff]   ;;  %v10719_v17 = vld [vmem:[%s14264_s1 + $0x1c88] ss:$16 sps:$4 sm:$0xff]  }
 0x35e   : > { %7103 = vmatprep.subr.bf16.mxu0 %v10634_v18  ;;  %7791 = vmatprep.subr.bf16.mxu1 %v10637_v21  ;;  %v10724_v18 = vld [vmem:[%s14264_s1 + $0x1ca4] ss:$16 sps:$4 sm:$0xff]   ;;  %v10727_v21 = vld [vmem:[%s14264_s1 + $0x1cac] ss:$16 sps:$4 sm:$0xff]  }
 0x361   : > { %7104 = vmatpush1.bf16.msra.mxu0 %v10632_v23  ;;  %7792 = vmatpush1.bf16.msra.mxu1 %v10635_v16  ;;  %v10722_v23 = vld [vmem:[%s14264_s1 + $0x1ca0] ss:$16 sps:$4 sm:$0xff]   ;;  %v10725_v16 = vld [vmem:[%s14264_s1 + $0x1ca8] ss:$16 sps:$4 sm:$0xff]  }
 0x362   : > { %7105 = vmatprep.subr.bf16.mxu0 %v10640_v24  ;;  %7793 = vmatprep.subr.bf16.mxu1 %v10643_v25  ;;  %v10730_v24 = vld [vmem:[%s14264_s1 + $0x1cc4] ss:$16 sps:$4 sm:$0xff]   ;;  %v10733_v25 = vld [vmem:[%s14264_s1 + $0x1ccc] ss:$16 sps:$4 sm:$0xff]  }
 0x365   : > { %7106 = vmatpush1.bf16.msra.mxu0 %v10638_v26  ;;  %7794 = vmatpush1.bf16.msra.mxu1 %v10641_v27  ;;  %v10728_v26 = vld [vmem:[%s14264_s1 + $0x1cc0] ss:$16 sps:$4 sm:$0xff]   ;;  %v10731_v27 = vld [vmem:[%s14264_s1 + $0x1cc8] ss:$16 sps:$4 sm:$0xff]  }
 0x366   : > { %7107 = vmatprep.subr.bf16.mxu0 %v10646_v28  ;;  %7795 = vmatprep.subr.bf16.mxu1 %v10649_v29  ;;  %v10736_v28 = vld [vmem:[%s14264_s1 + $0x1ce4] ss:$16 sps:$4 sm:$0xff]   ;;  %v10739_v29 = vld [vmem:[%s14264_s1 + $0x1cec] ss:$16 sps:$4 sm:$0xff]  }
 0x369   : > { %7108 = vmatpush1.bf16.msra.mxu0 %v10644_v30  ;;  %7796 = vmatpush1.bf16.msra.mxu1 %v10647_v31  ;;  %v10734_v30 = vld [vmem:[%s14264_s1 + $0x1ce0] ss:$16 sps:$4 sm:$0xff]   ;;  %v10737_v31 = vld [vmem:[%s14264_s1 + $0x1ce8] ss:$16 sps:$4 sm:$0xff]  }
 0x36a   : > { %7109 = vmatprep.subr.bf16.mxu0 %v10652_v32  ;;  %7797 = vmatprep.subr.bf16.mxu1 %v10655_v33  ;;  %v10742_v32 = vld [vmem:[%s14264_s1 + $0x1d04] ss:$16 sps:$4 sm:$0xff]   ;;  %v10745_v33 = vld [vmem:[%s14264_s1 + $0x1d0c] ss:$16 sps:$4 sm:$0xff]  }
 0x36d   : > { %7110 = vmatpush1.bf16.msra.mxu0 %v10650_v34  ;;  %7798 = vmatpush1.bf16.msra.mxu1 %v10653_v35  ;;  %v10740_v34 = vld [vmem:[%s14264_s1 + $0x1d00] ss:$16 sps:$4 sm:$0xff]   ;;  %v10743_v35 = vld [vmem:[%s14264_s1 + $0x1d08] ss:$16 sps:$4 sm:$0xff]  }
 0x36e   : > { %7111 = vmatprep.subr.bf16.mxu0 %v10658_v36  ;;  %7799 = vmatprep.subr.bf16.mxu1 %v10661_v37  ;;  %v10748_v36 = vld [vmem:[%s14264_s1 + $0x1d24] ss:$16 sps:$4 sm:$0xff]   ;;  %v10751_v37 = vld [vmem:[%s14264_s1 + $0x1d2c] ss:$16 sps:$4 sm:$0xff]  }
 0x371   : > { %7112 = vmatpush1.bf16.msra.mxu0 %v10656_v38  ;;  %7800 = vmatpush1.bf16.msra.mxu1 %v10659_v39  ;;  %v10746_v38 = vld [vmem:[%s14264_s1 + $0x1d20] ss:$16 sps:$4 sm:$0xff]   ;;  %v10749_v39 = vld [vmem:[%s14264_s1 + $0x1d28] ss:$16 sps:$4 sm:$0xff]  }
 0x372   : > { %7113 = vmatprep.subr.bf16.mxu0 %v10664_v40  ;;  %7801 = vmatprep.subr.bf16.mxu1 %v10667_v41  ;;  %v10754_v40 = vld [vmem:[%s14264_s1 + $0x1d44] ss:$16 sps:$4 sm:$0xff]   ;;  %v10757_v41 = vld [vmem:[%s14264_s1 + $0x1d4c] ss:$16 sps:$4 sm:$0xff]  }
 0x375   : > { %7114 = vmatpush1.bf16.msra.mxu0 %v10662_v42  ;;  %7802 = vmatpush1.bf16.msra.mxu1 %v10665_v43  ;;  %v10752_v42 = vld [vmem:[%s14264_s1 + $0x1d40] ss:$16 sps:$4 sm:$0xff]   ;;  %v10755_v43 = vld [vmem:[%s14264_s1 + $0x1d48] ss:$16 sps:$4 sm:$0xff]  }
 0x376   : > { %7115 = vmatprep.subr.bf16.mxu0 %v10670_v44  ;;  %7803 = vmatprep.subr.bf16.mxu1 %v10673_v45  ;;  %v10760_v44 = vld [vmem:[%s14264_s1 + $0x1d64] ss:$16 sps:$4 sm:$0xff]   ;;  %v10763_v45 = vld [vmem:[%s14264_s1 + $0x1d6c] ss:$16 sps:$4 sm:$0xff]  }
 0x379   : > { %7116 = vmatpush1.bf16.msra.mxu0 %v10668_v22  ;;  %7804 = vmatpush1.bf16.msra.mxu1 %v10671_v47  ;;  %v10758_v22 = vld [vmem:[%s14264_s1 + $0x1d60] ss:$16 sps:$4 sm:$0xff]   ;;  %v10761_v47 = vld [vmem:[%s14264_s1 + $0x1d68] ss:$16 sps:$4 sm:$0xff]  }
 0x37a   : > { %7117 = vmatprep.subr.bf16.mxu0 %v10676_v48  ;;  %7805 = vmatprep.subr.bf16.mxu1 %v10679_v19  ;;  %v10766_v48 = vld [vmem:[%s14264_s1 + $0x1d84] ss:$16 sps:$4 sm:$0xff]   ;;  %v10769_v19 = vld [vmem:[%s14264_s1 + $0x1d8c] ss:$16 sps:$4 sm:$0xff]  }
 0x37d   : > { %7118 = vmatpush1.bf16.msra.mxu0 %v10674_v20  ;;  %7806 = vmatpush1.bf16.msra.mxu1 %v10677_v51  ;;  %v10764_v20 = vld [vmem:[%s14264_s1 + $0x1d80] ss:$16 sps:$4 sm:$0xff]   ;;  %v10767_v51 = vld [vmem:[%s14264_s1 + $0x1d88] ss:$16 sps:$4 sm:$0xff]  }
 0x37e   : > { %7119 = vmatprep.subr.bf16.mxu0 %v10682_v52  ;;  %7807 = vmatprep.subr.bf16.mxu1 %v10685_v15  ;;  %v10772_v52 = vld [vmem:[%s14264_s1 + $0x1da4] ss:$16 sps:$4 sm:$0xff]   ;;  %v10775_v15 = vld [vmem:[%s14264_s1 + $0x1dac] ss:$16 sps:$4 sm:$0xff]  }
 0x381   : > { %7120 = vmatpush1.bf16.msra.mxu0 %v10680_v46  ;;  %7808 = vmatpush1.bf16.msra.mxu1 %v10683_v55  ;;  %v10770_v46 = vld [vmem:[%s14264_s1 + $0x1da0] ss:$16 sps:$4 sm:$0xff]   ;;  %v10773_v55 = vld [vmem:[%s14264_s1 + $0x1da8] ss:$16 sps:$4 sm:$0xff]  }
 0x382   : > { %7121 = vmatprep.subr.bf16.mxu0 %v10688_v56  ;;  %7809 = vmatprep.subr.bf16.mxu1 %v10691_v49  ;;  %v10778_v56 = vld [vmem:[%s14264_s1 + $0x1dc4] ss:$16 sps:$4 sm:$0xff]   ;;  %v10781_v49 = vld [vmem:[%s14264_s1 + $0x1dcc] ss:$16 sps:$4 sm:$0xff]  }
 0x385   : > { %7122 = vmatpush1.bf16.msra.mxu0 %v10686_v50  ;;  %7810 = vmatpush1.bf16.msra.mxu1 %v10689_v59  ;;  %v10776_v50 = vld [vmem:[%s14264_s1 + $0x1dc0] ss:$16 sps:$4 sm:$0xff]   ;;  %v10779_v59 = vld [vmem:[%s14264_s1 + $0x1dc8] ss:$16 sps:$4 sm:$0xff]  }
 0x386   : > { %7134 = vmatprep.subr.bf16.mxu0 %v10694_v60  ;;  %7822 = vmatprep.subr.bf16.mxu1 %v10697_v53  ;;  %v10784_v60 = vld [vmem:[%s14264_s1 + $0x1de4] ss:$16 sps:$4 sm:$0xff]   ;;  %v10787_v53 = vld [vmem:[%s14264_s1 + $0x1dec] ss:$16 sps:$4 sm:$0xff]  }
 0x388   : > { %7124 = vmatmul.mubr.bf16.vlgmr.msra.gmra.mrb[0].mxu0 %v8187_v54  ;;  %7812 = vmatmul.mubr.bf16.vlgmr.msra.gmra.mrb[0].mxu1 %v8187_v54  ;;  %v10782_v54 = vld [vmem:[%s14264_s1 + $0x1de0] ss:$16 sps:$4 sm:$0xff]  }
 0x389   : > { %7135 = vmatpush1.bf16.msra.mxu0 %v10692_v63  ;;  %7823 = vmatpush1.bf16.msra.mxu1 %v10695_v0  ;;  %v10785_v63 = vld [vmem:[%s14264_s1 + $0x1de8] ss:$16 sps:$4 sm:$0xff]   ;;  %v10790_v0 = vld [vmem:[%s14264_s1 + $0x1e04] ss:$16 sps:$4 sm:$0xff]  }
 0x38a   : > { %7136 = vmatprep.subr.bf16.mxu0 %v10700_v57  ;;  %7824 = vmatprep.subr.bf16.mxu1 %v10703_v58  ;;  %v10793_v57 = vld [vmem:[%s14264_s1 + $0x1e0c] ss:$16 sps:$4 sm:$0xff]   ;;  %v8189_v58 = vcombine.low %v13775_v61, %v13778_v62  ;;  %v10796_v61 = vld [vmem:[%s14264_s1 + $0x1e24] ss:$16 sps:$4 sm:$0xff]  }
 0x38b   : > { %7166 = vmatprep.mubr.bf16.mxu0 %v8190_v1  ;;  %7854 = vmatprep.mubr.bf16.mxu1 %v8190_v1  ;;  %v13977_v1 = vld [vmem:[%s11078_s8 + $0x78] sm:$0xff] }
 0x38c   : > { %v10799_v62 = vld [vmem:[%s14264_s1 + $0x1e2c] ss:$16 sps:$4 sm:$0xff]  }
 0x38d   : > { %7137 = vmatpush1.bf16.msra.mxu0 %v10698_v2  ;;  %7825 = vmatpush1.bf16.msra.mxu1 %v10701_v3  ;;  %v13980_v2 = vld [vmem:[%s11078_s8 + $0xf8] sm:$0x11]  ;;  %v10788_v3 = vld [vmem:[%s14264_s1 + $0x1e00] ss:$16 sps:$4 sm:$0xff]  }
 0x38e   : > { %7138 = vmatprep.subr.bf16.mxu0 %v10706_v4  ;;  %7826 = vmatprep.subr.bf16.mxu1 %v10709_v5  ;;  %v10791_v4 = vld [vmem:[%s14264_s1 + $0x1e08] ss:$16 sps:$4 sm:$0xff]   ;;  %v8192_v5 = vcombine.high %v13977_v1, %v13980_v2 }
 0x391   : > { %7139 = vmatpush1.bf16.msra.mxu0 %v10704_v6  ;;  %7827 = vmatpush1.bf16.msra.mxu1 %v10707_v7  ;;  %v10794_v6 = vld [vmem:[%s14264_s1 + $0x1e20] ss:$16 sps:$4 sm:$0xff]   ;;  %v10797_v7 = vld [vmem:[%s14264_s1 + $0x1e28] ss:$16 sps:$4 sm:$0xff]  }
 0x392   : > { %7140 = vmatprep.subr.bf16.mxu0 %v10712_v8  ;;  %7828 = vmatprep.subr.bf16.mxu1 %v10715_v9  ;;  %v10802_v8 = vld [vmem:[%s14264_s1 + $0x1e44] ss:$16 sps:$4 sm:$0xff]   ;;  %v10805_v9 = vld [vmem:[%s14264_s1 + $0x1e4c] ss:$16 sps:$4 sm:$0xff]  }
 0x395   : > { %7141 = vmatpush1.bf16.msra.mxu0 %v10710_v10  ;;  %7829 = vmatpush1.bf16.msra.mxu1 %v10713_v11  ;;  %v10800_v10 = vld [vmem:[%s14264_s1 + $0x1e40] ss:$16 sps:$4 sm:$0xff]   ;;  %v10803_v11 = vld [vmem:[%s14264_s1 + $0x1e48] ss:$16 sps:$4 sm:$0xff]  }
 0x396   : > { %7142 = vmatprep.subr.bf16.mxu0 %v10718_v12  ;;  %7830 = vmatprep.subr.bf16.mxu1 %v10721_v13  ;;  %v10808_v12 = vld [vmem:[%s14264_s1 + $0x1e64] ss:$16 sps:$4 sm:$0xff]   ;;  %v10811_v13 = vld [vmem:[%s14264_s1 + $0x1e6c] ss:$16 sps:$4 sm:$0xff]  }
 0x399   : > { %7143 = vmatpush1.bf16.msra.mxu0 %v10716_v14  ;;  %7831 = vmatpush1.bf16.msra.mxu1 %v10719_v17  ;;  %v10806_v14 = vld [vmem:[%s14264_s1 + $0x1e60] ss:$16 sps:$4 sm:$0xff]   ;;  %v10809_v17 = vld [vmem:[%s14264_s1 + $0x1e68] ss:$16 sps:$4 sm:$0xff]  }
 0x39a   : > { %7144 = vmatprep.subr.bf16.mxu0 %v10724_v18  ;;  %7832 = vmatprep.subr.bf16.mxu1 %v10727_v21  ;;  %v10814_v18 = vld [vmem:[%s14264_s1 + $0x1e84] ss:$16 sps:$4 sm:$0xff]   ;;  %v10817_v21 = vld [vmem:[%s14264_s1 + $0x1e8c] ss:$16 sps:$4 sm:$0xff]  }
 0x39d   : > { %7145 = vmatpush1.bf16.msra.mxu0 %v10722_v23  ;;  %7833 = vmatpush1.bf16.msra.mxu1 %v10725_v16  ;;  %v10812_v23 = vld [vmem:[%s14264_s1 + $0x1e80] ss:$16 sps:$4 sm:$0xff]   ;;  %v10815_v16 = vld [vmem:[%s14264_s1 + $0x1e88] ss:$16 sps:$4 sm:$0xff]  }
 0x39e   : > { %7146 = vmatprep.subr.bf16.mxu0 %v10730_v24  ;;  %7834 = vmatprep.subr.bf16.mxu1 %v10733_v25  ;;  %v10820_v24 = vld [vmem:[%s14264_s1 + $0x1ea4] ss:$16 sps:$4 sm:$0xff]   ;;  %v10823_v25 = vld [vmem:[%s14264_s1 + $0x1eac] ss:$16 sps:$4 sm:$0xff]  }
 0x3a1   : > { %7147 = vmatpush1.bf16.msra.mxu0 %v10728_v26  ;;  %7835 = vmatpush1.bf16.msra.mxu1 %v10731_v27  ;;  %v10818_v26 = vld [vmem:[%s14264_s1 + $0x1ea0] ss:$16 sps:$4 sm:$0xff]   ;;  %v10821_v27 = vld [vmem:[%s14264_s1 + $0x1ea8] ss:$16 sps:$4 sm:$0xff]  }
 0x3a2   : > { %7148 = vmatprep.subr.bf16.mxu0 %v10736_v28  ;;  %7836 = vmatprep.subr.bf16.mxu1 %v10739_v29  ;;  %v10826_v28 = vld [vmem:[%s14264_s1 + $0x1ec4] ss:$16 sps:$4 sm:$0xff]   ;;  %v10829_v29 = vld [vmem:[%s14264_s1 + $0x1ecc] ss:$16 sps:$4 sm:$0xff]  }
 0x3a5   : > { %7149 = vmatpush1.bf16.msra.mxu0 %v10734_v30  ;;  %7837 = vmatpush1.bf16.msra.mxu1 %v10737_v31  ;;  %v10824_v30 = vld [vmem:[%s14264_s1 + $0x1ec0] ss:$16 sps:$4 sm:$0xff]   ;;  %v10827_v31 = vld [vmem:[%s14264_s1 + $0x1ec8] ss:$16 sps:$4 sm:$0xff]  }
 0x3a6   : > { %7150 = vmatprep.subr.bf16.mxu0 %v10742_v32  ;;  %7838 = vmatprep.subr.bf16.mxu1 %v10745_v33  ;;  %v10832_v32 = vld [vmem:[%s14264_s1 + $0x1ee4] ss:$16 sps:$4 sm:$0xff]   ;;  %v10835_v33 = vld [vmem:[%s14264_s1 + $0x1eec] ss:$16 sps:$4 sm:$0xff]  }
 0x3a9   : > { %7151 = vmatpush1.bf16.msra.mxu0 %v10740_v34  ;;  %7839 = vmatpush1.bf16.msra.mxu1 %v10743_v35  ;;  %v10830_v34 = vld [vmem:[%s14264_s1 + $0x1ee0] ss:$16 sps:$4 sm:$0xff]   ;;  %v10833_v35 = vld [vmem:[%s14264_s1 + $0x1ee8] ss:$16 sps:$4 sm:$0xff]  }
 0x3aa   : > { %7152 = vmatprep.subr.bf16.mxu0 %v10748_v36  ;;  %7840 = vmatprep.subr.bf16.mxu1 %v10751_v37  ;;  %v10838_v36 = vld [vmem:[%s14264_s1 + $0x1f04] ss:$16 sps:$4 sm:$0xff]   ;;  %v10841_v37 = vld [vmem:[%s14264_s1 + $0x1f0c] ss:$16 sps:$4 sm:$0xff]  }
 0x3ad   : > { %7153 = vmatpush1.bf16.msra.mxu0 %v10746_v38  ;;  %7841 = vmatpush1.bf16.msra.mxu1 %v10749_v39  ;;  %v10836_v38 = vld [vmem:[%s14264_s1 + $0x1f00] ss:$16 sps:$4 sm:$0xff]   ;;  %v10839_v39 = vld [vmem:[%s14264_s1 + $0x1f08] ss:$16 sps:$4 sm:$0xff]  }
 0x3ae   : > { %7154 = vmatprep.subr.bf16.mxu0 %v10754_v40  ;;  %7842 = vmatprep.subr.bf16.mxu1 %v10757_v41  ;;  %v10844_v40 = vld [vmem:[%s14264_s1 + $0x1f24] ss:$16 sps:$4 sm:$0xff]   ;;  %v10847_v41 = vld [vmem:[%s14264_s1 + $0x1f2c] ss:$16 sps:$4 sm:$0xff]  }
 0x3b1   : > { %7155 = vmatpush1.bf16.msra.mxu0 %v10752_v42  ;;  %7843 = vmatpush1.bf16.msra.mxu1 %v10755_v43  ;;  %v10842_v42 = vld [vmem:[%s14264_s1 + $0x1f20] ss:$16 sps:$4 sm:$0xff]   ;;  %v10845_v43 = vld [vmem:[%s14264_s1 + $0x1f28] ss:$16 sps:$4 sm:$0xff]  }
 0x3b2   : > { %7156 = vmatprep.subr.bf16.mxu0 %v10760_v44  ;;  %7844 = vmatprep.subr.bf16.mxu1 %v10763_v45  ;;  %v10850_v44 = vld [vmem:[%s14264_s1 + $0x1f44] ss:$16 sps:$4 sm:$0xff]   ;;  %v10853_v45 = vld [vmem:[%s14264_s1 + $0x1f4c] ss:$16 sps:$4 sm:$0xff]  }
 0x3b5   : > { %7157 = vmatpush1.bf16.msra.mxu0 %v10758_v22  ;;  %7845 = vmatpush1.bf16.msra.mxu1 %v10761_v47  ;;  %v10848_v22 = vld [vmem:[%s14264_s1 + $0x1f40] ss:$16 sps:$4 sm:$0xff]   ;;  %v10851_v47 = vld [vmem:[%s14264_s1 + $0x1f48] ss:$16 sps:$4 sm:$0xff]  }
 0x3b6   : > { %7158 = vmatprep.subr.bf16.mxu0 %v10766_v48  ;;  %7846 = vmatprep.subr.bf16.mxu1 %v10769_v19  ;;  %v10856_v48 = vld [vmem:[%s14264_s1 + $0x1f64] ss:$16 sps:$4 sm:$0xff]   ;;  %v10859_v19 = vld [vmem:[%s14264_s1 + $0x1f6c] ss:$16 sps:$4 sm:$0xff]  }
 0x3b9   : > { %7159 = vmatpush1.bf16.msra.mxu0 %v10764_v20  ;;  %7847 = vmatpush1.bf16.msra.mxu1 %v10767_v51  ;;  %v10854_v20 = vld [vmem:[%s14264_s1 + $0x1f60] ss:$16 sps:$4 sm:$0xff]   ;;  %v10857_v51 = vld [vmem:[%s14264_s1 + $0x1f68] ss:$16 sps:$4 sm:$0xff]  }
 0x3ba   : > { %7160 = vmatprep.subr.bf16.mxu0 %v10772_v52  ;;  %7848 = vmatprep.subr.bf16.mxu1 %v10775_v15  ;;  %v10862_v52 = vld [vmem:[%s14264_s1 + $0x1f84] ss:$16 sps:$4 sm:$0xff]   ;;  %v10865_v15 = vld [vmem:[%s14264_s1 + $0x1f8c] ss:$16 sps:$4 sm:$0xff]  }
 0x3bd   : > { %7161 = vmatpush1.bf16.msra.mxu0 %v10770_v46  ;;  %7849 = vmatpush1.bf16.msra.mxu1 %v10773_v55  ;;  %v10860_v46 = vld [vmem:[%s14264_s1 + $0x1f80] ss:$16 sps:$4 sm:$0xff]   ;;  %v10863_v55 = vld [vmem:[%s14264_s1 + $0x1f88] ss:$16 sps:$4 sm:$0xff]  }
 0x3be   : > { %7162 = vmatprep.subr.bf16.mxu0 %v10778_v56  ;;  %7850 = vmatprep.subr.bf16.mxu1 %v10781_v49  ;;  %v10868_v56 = vld [vmem:[%s14264_s1 + $0x1fa4] ss:$16 sps:$4 sm:$0xff]   ;;  %v10871_v49 = vld [vmem:[%s14264_s1 + $0x1fac] ss:$16 sps:$4 sm:$0xff]  }
 0x3c1   : > { %7163 = vmatpush1.bf16.msra.mxu0 %v10776_v50  ;;  %7851 = vmatpush1.bf16.msra.mxu1 %v10779_v59  ;;  %v10866_v50 = vld [vmem:[%s14264_s1 + $0x1fa0] ss:$16 sps:$4 sm:$0xff]   ;;  %v10869_v59 = vld [vmem:[%s14264_s1 + $0x1fa8] ss:$16 sps:$4 sm:$0xff]  }
 0x3c2   : > { %7164 = vmatprep.subr.bf16.mxu0 %v10784_v60  ;;  %7852 = vmatprep.subr.bf16.mxu1 %v10787_v53  ;;  %v10874_v60 = vld [vmem:[%s14264_s1 + $0x1fc4] ss:$16 sps:$4 sm:$0xff]   ;;  %v10877_v53 = vld [vmem:[%s14264_s1 + $0x1fcc] ss:$16 sps:$4 sm:$0xff]  }
 0x3c5   : > { %7165 = vmatpush1.bf16.msra.mxu0 %v10782_v54  ;;  %7853 = vmatpush1.bf16.msra.mxu1 %v10785_v63  ;;  %v10872_v54 = vld [vmem:[%s14264_s1 + $0x1fc0] ss:$16 sps:$4 sm:$0xff]   ;;  %v10875_v63 = vld [vmem:[%s14264_s1 + $0x1fc8] ss:$16 sps:$4 sm:$0xff]  }
 0x3c6   : > { %7177 = vmatprep.subr.bf16.mxu0 %v10790_v0  ;;  %7865 = vmatprep.subr.bf16.mxu1 %v10793_v57  ;;  %v10880_v0 = vld [vmem:[%s14264_s1 + $0x1fe4] ss:$16 sps:$4 sm:$0xff]   ;;  %v10883_v57 = vld [vmem:[%s14264_s1 + $0x1fec] ss:$16 sps:$4 sm:$0xff]  }
 0x3c8   : > { %7167 = vmatmul.mubr.bf16.vlgmr.msra.gmra.mrb[0].mxu0 %v8189_v58  ;;  %7855 = vmatmul.mubr.bf16.vlgmr.msra.gmra.mrb[0].mxu1 %v8189_v58  ;;  %v10878_v58 = vld [vmem:[%s14264_s1 + $0x1fe0] ss:$16 sps:$4 sm:$0xff]  }
 0x3c9   : > { %7178 = vmatpush1.bf16.msra.mxu0 %v10788_v3  ;;  %7866 = vmatpush1.bf16.msra.mxu1 %v10791_v4  ;;  %v10881_v3 = vld [vmem:[%s14264_s1 + $0x1fe8] ss:$16 sps:$4 sm:$0xff]   ;;  %v8191_v4 = vcombine.low %v13977_v1, %v13980_v2 }
 0x3ca   : > { %7179 = vmatprep.subr.bf16.mxu0 %v10796_v61  ;;  %7867 = vmatprep.subr.bf16.mxu1 %v10799_v62 }
 0x3cb   : > { %7209 = vmatprep.mubr.bf16.mxu0 %v8192_v5  ;;  %7897 = vmatprep.mubr.bf16.mxu1 %v8192_v5 }
 0x3cd   : > { %7180 = vmatpush1.bf16.msra.mxu0 %v10794_v6  ;;  %7868 = vmatpush1.bf16.msra.mxu1 %v10797_v7 }
 0x3ce   : > { %7181 = vmatprep.subr.bf16.mxu0 %v10802_v8  ;;  %7869 = vmatprep.subr.bf16.mxu1 %v10805_v9 }
 0x3d1   : > { %7182 = vmatpush1.bf16.msra.mxu0 %v10800_v10  ;;  %7870 = vmatpush1.bf16.msra.mxu1 %v10803_v11 }
 0x3d2   : > { %7183 = vmatprep.subr.bf16.mxu0 %v10808_v12  ;;  %7871 = vmatprep.subr.bf16.mxu1 %v10811_v13 }
 0x3d5   : > { %7184 = vmatpush1.bf16.msra.mxu0 %v10806_v14  ;;  %7872 = vmatpush1.bf16.msra.mxu1 %v10809_v17 }
 0x3d6   : > { %7185 = vmatprep.subr.bf16.mxu0 %v10814_v18  ;;  %7873 = vmatprep.subr.bf16.mxu1 %v10817_v21 }
 0x3d9   : > { %7186 = vmatpush1.bf16.msra.mxu0 %v10812_v23  ;;  %7874 = vmatpush1.bf16.msra.mxu1 %v10815_v16 }
 0x3da   : > { %7187 = vmatprep.subr.bf16.mxu0 %v10820_v24  ;;  %7875 = vmatprep.subr.bf16.mxu1 %v10823_v25 }
 0x3dd   : > { %7188 = vmatpush1.bf16.msra.mxu0 %v10818_v26  ;;  %7876 = vmatpush1.bf16.msra.mxu1 %v10821_v27 }
 0x3de   : > { %7189 = vmatprep.subr.bf16.mxu0 %v10826_v28  ;;  %7877 = vmatprep.subr.bf16.mxu1 %v10829_v29 }
 0x3e1   : > { %7190 = vmatpush1.bf16.msra.mxu0 %v10824_v30  ;;  %7878 = vmatpush1.bf16.msra.mxu1 %v10827_v31 }
 0x3e2   : > { %7191 = vmatprep.subr.bf16.mxu0 %v10832_v32  ;;  %7879 = vmatprep.subr.bf16.mxu1 %v10835_v33 }
 0x3e5   : > { %7192 = vmatpush1.bf16.msra.mxu0 %v10830_v34  ;;  %7880 = vmatpush1.bf16.msra.mxu1 %v10833_v35 }
 0x3e6   : > { %7193 = vmatprep.subr.bf16.mxu0 %v10838_v36  ;;  %7881 = vmatprep.subr.bf16.mxu1 %v10841_v37 }
 0x3e9   : > { %7194 = vmatpush1.bf16.msra.mxu0 %v10836_v38  ;;  %7882 = vmatpush1.bf16.msra.mxu1 %v10839_v39 }
 0x3ea   : > { %7195 = vmatprep.subr.bf16.mxu0 %v10844_v40  ;;  %7883 = vmatprep.subr.bf16.mxu1 %v10847_v41 }
 0x3ed   : > { %7196 = vmatpush1.bf16.msra.mxu0 %v10842_v42  ;;  %7884 = vmatpush1.bf16.msra.mxu1 %v10845_v43 }
 0x3ee   : > { %7197 = vmatprep.subr.bf16.mxu0 %v10850_v44  ;;  %7885 = vmatprep.subr.bf16.mxu1 %v10853_v45 }
 0x3f1   : > { %7198 = vmatpush1.bf16.msra.mxu0 %v10848_v22  ;;  %7886 = vmatpush1.bf16.msra.mxu1 %v10851_v47 }
 0x3f2   : > { %7199 = vmatprep.subr.bf16.mxu0 %v10856_v48  ;;  %7887 = vmatprep.subr.bf16.mxu1 %v10859_v19 }
 0x3f5   : > { %7200 = vmatpush1.bf16.msra.mxu0 %v10854_v20  ;;  %7888 = vmatpush1.bf16.msra.mxu1 %v10857_v51 }
 0x3f6   : > { %7201 = vmatprep.subr.bf16.mxu0 %v10862_v52  ;;  %7889 = vmatprep.subr.bf16.mxu1 %v10865_v15 }
 0x3f9   : > { %7202 = vmatpush1.bf16.msra.mxu0 %v10860_v46  ;;  %7890 = vmatpush1.bf16.msra.mxu1 %v10863_v55 }
 0x3fa   : > { %7203 = vmatprep.subr.bf16.mxu0 %v10868_v56  ;;  %7891 = vmatprep.subr.bf16.mxu1 %v10871_v49 }
 0x3fd   : > { %7204 = vmatpush1.bf16.msra.mxu0 %v10866_v50  ;;  %7892 = vmatpush1.bf16.msra.mxu1 %v10869_v59 }
 0x3fe   : > { %7205 = vmatprep.subr.bf16.mxu0 %v10874_v60  ;;  %7893 = vmatprep.subr.bf16.mxu1 %v10877_v53 }
 0x401   : > { %7206 = vmatpush1.bf16.msra.mxu0 %v10872_v54  ;;  %7894 = vmatpush1.bf16.msra.mxu1 %v10875_v63 }
 0x402   : > { %7207 = vmatprep.subr.bf16.mxu0 %v10880_v0  ;;  %7895 = vmatprep.subr.bf16.mxu1 %v10883_v57 }
 0x405   : > { %7208 = vmatpush1.bf16.msra.mxu0 %v10878_v58  ;;  %7896 = vmatpush1.bf16.msra.mxu1 %v10881_v3 }
 0x408   : > { %7210 = vmatmul.mubr.bf16.vlgmr.msra.gmra.mrb[0].mxu0 %v8191_v4  ;;  %7898 = vmatmul.mubr.bf16.vlgmr.msra.gmra.mrb[0].mxu1 %v8191_v4 }
 0x4db   : > { %v14172_v61 = vpop.f32.mrb[0].mxu0  ;;  %v14174_v62 = vpop.f32.mrb[0].mxu1 }
 0x4dc   : > { %v14176_v5 = vpop.f32.mrb[1].mxu0  ;;  %v14178_v6 = vpop.f32.mrb[1].mxu1  ;;  %v7946_v7 = vmul.f32 %v14172_v61, %v14172_v61  ;;  %v7948_v8 = vmul.f32 %v14174_v62, %v14174_v62 }
 0x4dd   : > { %v7947_v1 = vmul.f32 %v14176_v5, %v14176_v5  ;;  %v7949_v2 = vmul.f32 %v14178_v6, %v14178_v6  ;;  %v14188_v9 = vpop.f32.mrb[2].mxu0  ;;  %v14190_v10 = vpop.f32.mrb[2].mxu1 }
 0x4de   : > { %v7909_v11 = vsel %vm7908_vm0, %v14188_v9, 0.0  ;;  %v7950_v12 = vmul.f32 %v14188_v9, %v14188_v9  ;;  %v7925_v13 = vsel %vm7908_vm0, %v14190_v10, 0.0  ;;  %v7952_v14 = vmul.f32 %v14190_v10, %v14190_v10  ;;  %v14200_v17 = vpop.f32.mrb[3].mxu0  ;;  %v14202_v18 = vpop.f32.mrb[3].mxu1 }
 0x4df   : > { %v7910_v21 = vadd.f32 %v7909_v11, %v14172_v61  ;;  %v7926_v23 = vadd.f32 %v7925_v13, %v14174_v62  ;;  %v7917_v16 = vsel %vm7908_vm0, %v14200_v17, 0.0  ;;  %v7951_v24 = vmul.f32 %v14200_v17, %v14200_v17 }
 0x4e0   : > { %v7954_v25 = vsel %vm7908_vm0, %v7950_v12, 0.0  ;;  %v7970_v26 = vsel %vm7908_vm0, %v7952_v14, 0.0  ;;  %v7918_v27 = vadd.f32 %v7917_v16, %v14176_v5  ;;  %v7933_v28 = vsel %vm7908_vm0, %v14202_v18, 0.0 }
 0x4e1   : > { %v7911_v29 = vrot.slane %v7910_v21, 4  ;;  %v7955_v30 = vadd.f32 %v7954_v25, %v7946_v7  ;;  %v7927_v31 = vrot.slane %v7926_v23, 4  ;;  %v7971_v32 = vadd.f32 %v7970_v26, %v7948_v8 }
 0x4e2   : > { %v7919_v33 = vrot.slane %v7918_v27, 4  ;;  %v7962_v34 = vsel %vm7908_vm0, %v7951_v24, 0.0  ;;  %v7934_v35 = vadd.f32 %v7933_v28, %v14178_v6  ;;  %v7953_v36 = vmul.f32 %v14202_v18, %v14202_v18 }
 0x4e3   : > { %v7912_v37 = vadd.f32 %v7911_v29, %v7910_v21  ;;  %v7956_v38 = vrot.slane %v7955_v30, 4  ;;  %v7928_v39 = vadd.f32 %v7927_v31, %v7926_v23  ;;  %v7972_v40 = vrot.slane %v7971_v32, 4 }
 0x4e4   : > { %v7920_v41 = vadd.f32 %v7919_v33, %v7918_v27  ;;  %v7963_v42 = vadd.f32 %v7962_v34, %v7947_v1  ;;  %v7935_v43 = vrot.slane %v7934_v35, 4  ;;  %v7978_v44 = vsel %vm7908_vm0, %v7953_v36, 0.0 }
 0x4e5   : > { %v7913_v45 = vrot.slane %v7912_v37, 2  ;;  %v7957_v22 = vadd.f32 %v7956_v38, %v7955_v30  ;;  %v7929_v47 = vrot.slane %v7928_v39, 2  ;;  %v7973_v48 = vadd.f32 %v7972_v40, %v7971_v32 }
 0x4e6   : > { %v7921_v19 = vrot.slane %v7920_v41, 2  ;;  %v7964_v20 = vrot.slane %v7963_v42, 4  ;;  %v7936_v51 = vadd.f32 %v7935_v43, %v7934_v35  ;;  %v7979_v52 = vadd.f32 %v7978_v44, %v7949_v2 }
 0x4e7   : > { %v7914_v15 = vadd.f32 %v7913_v45, %v7912_v37  ;;  %v7958_v46 = vrot.slane %v7957_v22, 2  ;;  %v7930_v55 = vadd.f32 %v7929_v47, %v7928_v39  ;;  %v7974_v56 = vrot.slane %v7973_v48, 2 }
 0x4e8   : > { %v7922_v49 = vadd.f32 %v7921_v19, %v7920_v41  ;;  %v7965_v50 = vadd.f32 %v7964_v20, %v7963_v42  ;;  %v7937_v59 = vrot.slane %v7936_v51, 2  ;;  %v7980_v60 = vrot.slane %v7979_v52, 4 }
 0x4e9   : > { %v7915_v53 = vrot.slane %v7914_v15, 1  ;;  %v7959_v54 = vadd.f32 %v7958_v46, %v7957_v22  ;;  %v7931_v63 = vrot.slane %v7930_v55, 1  ;;  %v7975_v0 = vadd.f32 %v7974_v56, %v7973_v48 }
 0x4ea   : > { %v7923_v57 = vrot.slane %v7922_v49, 1  ;;  %v7966_v58 = vrot.slane %v7965_v50, 2  ;;  %v7938_v3 = vadd.f32 %v7937_v59, %v7936_v51  ;;  %v7981_v4 = vadd.f32 %v7980_v60, %v7979_v52  ;;  %v8056_v60 = vld [vmem:[%s14265_s2 + $0x30] sm:$0x1] }
 0x4eb   : > { %v7916_v7 = vadd.f32 %v7915_v53, %v7914_v15  ;;  %v7960_v8 = vrot.slane %v7959_v54, 1  ;;  %v7932_v1 = vadd.f32 %v7931_v63, %v7930_v55  ;;  %v7976_v2 = vrot.slane %v7975_v0, 1  ;;  %v8050_v53 = vld [vmem:[%s14265_s2] sm:$0xff] }
 0x4ec   : > { %v7924_v11 = vadd.f32 %v7923_v57, %v7922_v49  ;;  %v7967_v12 = vadd.f32 %v7966_v58, %v7965_v50  ;;  %v7939_v13 = vrot.slane %v7938_v3, 1  ;;  %v7982_v14 = vrot.slane %v7981_v4, 2 }
 0x4ed   : > { %v7942_v21 = vmul.f32 0.11111111, %v7916_v7  ;;  %v7961_v23 = vadd.f32 %v7960_v8, %v7959_v54  ;;  %v7944_v16 = vmul.f32 0.11111111, %v7932_v1  ;;  %v7977_v24 = vadd.f32 %v7976_v2, %v7975_v0  ;;  %v8052_v1 = vld [vmem:[%s14265_s2 + $0x10] sm:$0xff] }
 0x4ee   : > { %v7943_v25 = vmul.f32 0.11111111, %v7924_v11  ;;  %v7968_v26 = vrot.slane %v7967_v12, 1  ;;  %v7940_v27 = vadd.f32 %v7939_v13, %v7938_v3  ;;  %v7983_v28 = vadd.f32 %v7982_v14, %v7981_v4 }
 0x4ef   : > { %v7986_v29 = vmul.f32 0.11111111, %v7961_v23  ;;  %v7990_v30 = vmul.f32 %v7942_v21, %v7942_v21  ;;  %v8002_v31 = vsub.f32 %v14172_v61, %v7942_v21  ;;  %v8006_v32 = vsub.f32 %v14188_v9, %v7942_v21 }
 0x4f0   : > { %v7988_v33 = vmul.f32 0.11111111, %v7977_v24  ;;  %v7992_v34 = vmul.f32 %v7944_v16, %v7944_v16  ;;  %v8004_v35 = vsub.f32 %v14174_v62, %v7944_v16  ;;  %v8008_v36 = vsub.f32 %v14190_v10, %v7944_v16 }
 0x4f1   : > { %v7994_v37 = vsub.f32 %v7986_v29, %v7990_v30  ;;  %v7969_v38 = vadd.f32 %v7968_v26, %v7967_v12  ;;  %v7991_v39 = vmul.f32 %v7943_v25, %v7943_v25  ;;  %v8003_v40 = vsub.f32 %v14176_v5, %v7943_v25  ;;  %v8055_v12 = vld [vmem:[%s14265_s2 + $0x28] sm:$0x1] }
 0x4f2   : > { %v7996_v41 = vsub.f32 %v7988_v33, %v7992_v34  ;;  %v8007_v42 = vsub.f32 %v14200_v17, %v7943_v25  ;;  %v7945_v43 = vmul.f32 0.11111111, %v7940_v27  ;;  %v7984_v44 = vrot.slane %v7983_v28, 1  ;;  %v8051_v27 = vld [vmem:[%s14265_s2 + $0x8] sm:$0xff] }
 0x4f3   : > { %v7998_v45 = vmax.f32 %v7994_v37, 0.0  ;;  %v7987_v61 = vmul.f32 0.11111111, %v7969_v38  ;;  %v8053_v37 = vld [vmem:[%s14265_s2 + $0x18] sm:$0xff] }
 0x4f4   : > { %v8000_v22 = vmax.f32 %v7996_v41, 0.0  ;;  %v7985_v9 = vadd.f32 %v7984_v44, %v7983_v28  ;;  %v7993_v47 = vmul.f32 %v7945_v43, %v7945_v43  ;;  %v8005_v48 = vsub.f32 %v14178_v6, %v7945_v43  ;;  %v8054_v6 = vld [vmem:[%s14265_s2 + $0x20] sm:$0x1] }
 0x4f5   : > { %v8010_v62 = vadd.f32 1e-05, %v7998_v45  ;;  %v7995_v19 = vsub.f32 %v7987_v61, %v7991_v39  ;;  %v8009_v10 = vsub.f32 %v14202_v18, %v7945_v43 }
 0x4f6   : > { %v8012_v20 = vadd.f32 1e-05, %v8000_v22  ;;  %v7989_v51 = vmul.f32 0.11111111, %v7985_v9 }
 0x4f7   : > { %10884 = vrsqrt.f32 %v8010_v62  ;;  %v7999_v5 = vmax.f32 %v7995_v19, 0.0 }
 0x4f8   : > { %10886 = vrsqrt.f32 %v8012_v20  ;;  %v7997_v52 = vsub.f32 %v7989_v51, %v7993_v47 }
 0x4f9   : > { %v8011_v17 = vadd.f32 1e-05, %v7999_v5 }
 0x4fa   : > { %v8001_v15 = vmax.f32 %v7997_v52, 0.0 }
 0x4fb   : > { %10888 = vrsqrt.f32 %v8011_v17 }
 0x4fc   : > { %v8013_v46 = vadd.f32 1e-05, %v8001_v15 }
 0x4fe   : > { %10890 = vrsqrt.f32 %v8013_v46 }
 0x501   : > { %v10885_v55 = vpop.eup %10884 }
 0x502   : > { %v10887_v56 = vpop.eup %10886  ;;  %v8018_v49 = vmul.f32 %v10885_v55, %v8002_v31  ;;  %v8022_v50 = vmul.f32 %v10885_v55, %v8006_v32 }
 0x503   : > { %v8020_v18 = vmul.f32 %v10887_v56, %v8004_v35  ;;  %v8024_v59 = vmul.f32 %v10887_v56, %v8008_v36  ;;  %v8057_v35 = vld [vmem:[%s14265_s2 + $0x38] sm:$0x1] }
 0x504   : > { %vm8030_vm1 = vcmp.gt.f32.partialorder %v8022_v50, 0.0  ;;  %v8034_v54 = vmul.f32 0.2, %v8018_v49  ;;  %v8038_v63 = vmul.f32 0.2, %v8022_v50  ;;  %vm8026_vm2 = vcmp.gt.f32.partialorder %v8018_v49, 0.0 }
 0x505   : > { %v10889_v0 = vpop.eup %10888  ;;  %vm8032_vm3 = vcmp.gt.f32.partialorder %v8024_v59, 0.0  ;;  %v8040_v57 = vmul.f32 0.2, %v8024_v59  ;;  %vm8028_vm4 = vcmp.gt.f32.partialorder %v8020_v18, 0.0  ;;  %v8036_v58 = vmul.f32 0.2, %v8020_v18 }
 0x506   : > { %v8046_v3 = vsel %vm8030_vm1, %v8022_v50, %v8038_v63  ;;  %v8019_v4 = vmul.f32 %v10889_v0, %v8003_v40  ;;  %v8023_v7 = vmul.f32 %v10889_v0, %v8007_v42  ;;  %v8042_v8 = vsel %vm8026_vm2, %v8018_v49, %v8034_v54 }
 0x507   : > { %v8062_v2 = vmul.f32 %v8054_v6, %v8046_v3  ;;  %v8048_v11 = vsel %vm8032_vm3, %v8024_v59, %v8040_v57  ;;  %v8044_v13 = vsel %vm8028_vm4, %v8020_v18, %v8036_v58  ;;  %v8058_v14 = vmul.f32 %v8050_v53, %v8042_v8 }
 0x508   : > { %v10891_v21 = vpop.eup %10890  ;;  %v8064_v23 = vmul.f32 %v8056_v60, %v8048_v11  ;;  %vm8031_vm5 = vcmp.gt.f32.partialorder %v8023_v7, 0.0  ;;  %v8035_v16 = vmul.f32 0.2, %v8019_v4  ;;  %v8039_v24 = vmul.f32 0.2, %v8023_v7 }
 0x509   : > { %v8021_v25 = vmul.f32 %v10891_v21, %v8005_v48  ;;  %v8025_v26 = vmul.f32 %v10891_v21, %v8009_v10  ;;  %vm8027_vm6 = vcmp.gt.f32.partialorder %v8019_v4, 0.0  ;;  %v8060_v28 = vmul.f32 %v8052_v1, %v8044_v13 }
 0x50a   : > { %v8047_v29 = vsel %vm8031_vm5, %v8023_v7, %v8039_v24  ;;  %v8043_v30 = vsel %vm8027_vm6, %v8019_v4, %v8035_v16  ;;  %v8066_v31 = vsel %vm7908_vm0, %v8062_v2, 0.0  ;;  %v8082_v32 = vsel %vm7908_vm0, %v8064_v23, 0.0  ;;  %v8103_v4 = vld [vmem:[#allocation2] sm:$0x1] }
 0x50b   : > { %v8063_v33 = vmul.f32 %v8055_v12, %v8047_v29  ;;  %vm8033_vm7 = vcmp.gt.f32.partialorder %v8025_v26, 0.0  ;;  %v8041_v34 = vmul.f32 0.2, %v8025_v26  ;;  %vm8029_vm8 = vcmp.gt.f32.partialorder %v8021_v25, 0.0 }
 0x50c   : > { %v8037_v36 = vmul.f32 0.2, %v8021_v25  ;;  %v8059_v38 = vmul.f32 %v8051_v27, %v8043_v30  ;;  %v8067_v39 = vadd.f32 %v8066_v31, %v8058_v14  ;;  %v8083_v40 = vadd.f32 %v8082_v32, %v8060_v28 }
 0x50d   : > { %v8074_v41 = vsel %vm7908_vm0, %v8063_v33, 0.0  ;;  %v8049_v42 = vsel %vm8033_vm7, %v8025_v26, %v8041_v34 }
 0x50e   : > { %v8065_v43 = vmul.f32 %v8057_v35, %v8049_v42  ;;  %v8045_v44 = vsel %vm8029_vm8, %v8021_v25, %v8037_v36  ;;  %v8068_v45 = vrot.slane %v8067_v39, 4  ;;  %v8075_v61 = vadd.f32 %v8074_v41, %v8059_v38 }
 0x50f   : > { %v8061_v22 = vmul.f32 %v8053_v37, %v8045_v44  ;;  %v8084_v9 = vrot.slane %v8083_v40, 4 }
 0x510   : > { %v8069_v47 = vadd.f32 %v8068_v45, %v8067_v39  ;;  %v8076_v48 = vrot.slane %v8075_v61, 4  ;;  %v8090_v62 = vsel %vm7908_vm0, %v8065_v43, 0.0 }
 0x511   : > { %v8085_v19 = vadd.f32 %v8084_v9, %v8083_v40  ;;  %v8091_v10 = vadd.f32 %v8090_v62, %v8061_v22 }
 0x512   : > { %v8070_v20 = vrot.slane %v8069_v47, 2  ;;  %v8077_v51 = vadd.f32 %v8076_v48, %v8075_v61 }
 0x513   : > { %v8086_v5 = vrot.slane %v8085_v19, 2  ;;  %v8092_v52 = vrot.slane %v8091_v10, 4 }
 0x514   : > { %v8071_v17 = vadd.f32 %v8070_v20, %v8069_v47  ;;  %v8078_v15 = vrot.slane %v8077_v51, 2 }
 0x515   : > { %v8087_v46 = vadd.f32 %v8086_v5, %v8085_v19  ;;  %v8093_v55 = vadd.f32 %v8092_v52, %v8091_v10 }
 0x516   : > { %v8072_v56 = vrot.slane %v8071_v17, 1  ;;  %v8079_v49 = vadd.f32 %v8078_v15, %v8077_v51 }
 0x517   : > { %v8094_v50 = vrot.slane %v8093_v55, 2  ;;  %v8088_v59 = vrot.slane %v8087_v46, 1 }
 0x518   : > { %v8073_v6 = vadd.f32 %v8072_v56, %v8071_v17  ;;  %v8080_v18 = vrot.slane %v8079_v49, 1 }
 0x519   : > { %v8095_v60 = vadd.f32 %v8094_v50, %v8093_v55  ;;  %v8089_v63 = vadd.f32 %v8088_v59, %v8087_v46 }
 0x51a   : > { %v8081_v53 = vadd.f32 %v8080_v18, %v8079_v49 }
 0x51b   : > { %v8096_v54 = vrot.slane %v8095_v60, 1 }
 0x51c   : > { %v8098_v0 = vadd.f32 %v8081_v53, %v8073_v6 }
 0x51d   : > { %v8097_v57 = vadd.f32 %v8096_v54, %v8095_v60 }
 0x51e   : > { %v8099_v58 = vadd.f32 %v8098_v0, %v8089_v63 }
 0x520   : > { %v8100_v3 = vadd.f32 %v8099_v58, %v8097_v57 }
 0x522   : > { %8101 = vadd.xlane.f32.xlu0 %v8100_v3 }
 0x5af   : > { %v8102_v7 = vpop.xlane.xlu0 %8101 }
 0x5b0   : > { %v8104_v8 = vadd.f32 %v8103_v4, %v8102_v7 }
 0x5b2   : > { %8106 = vst.msk [vmem:[%s195_s13] sm:$0x1] %vm8105_vm9, %v8104_v8 }
 0x5b3 PF: > { %s16_s17 = sadd.s32 1, %s10898_s17  }
 0x5b4   : > { %p13_p4 = scmp.ge.s32.totalorder %s16_s17, 4  }
 0x5b6   :  { %15 = sbr.rel (!%p13_p4) target bundleno = 3 (0x3), region = 66 }

</bundles_post_ra>
